<compile_context>
chip_gen: v7x
topology: tpu7x:2x2x1
jax: 0.10.0
libtpu: 0.0.40
codegen_flags: <defaults>
</compile_context>

<pallas_src>
import functools

import jax
import jax.numpy as jnp
from jax.experimental import pallas as pl
from jax.experimental.pallas import tpu as pltpu

NEG_SLOPE = 0.01   # nn.LeakyReLU default
BN_EPS = 1e-5


# ----------------------------------------------------------------------------
# Fused "tap matmul" Pallas kernel (shared by every conv / deconv / linear)
# ----------------------------------------------------------------------------
def _tap_matmul_kernel(x_ref, w_ref, b_ref, o_ref, *, offsets, act, transpose_out):
    """out_tile = act( sum_t x[rows + off_t] @ w[t] + b ).

    x_ref : (rows, Cin)      full flattened activation, resident in VMEM
    w_ref : (T, Cin, Cout)   (or (T, Cout, Cin) when transpose_out)
    b_ref : (1, Cout)        (or (Cout, 1))
    o_ref : (TM, Cout)       (or (Cout, TM))   one tile per grid step
    """
    tm = o_ref.shape[1] if transpose_out else o_ref.shape[0]
    base = pl.program_id(0) * tm
    acc = jnp.zeros(o_ref.shape, jnp.float32)
    for t, off in enumerate(offsets):
        xs = x_ref[pl.ds(base + off, tm), :].astype(jnp.bfloat16)  # bf16 -> MXU
        wt = w_ref[t]
        if transpose_out:
            # (Cout, Cin) x (TM, Cin)^T -> (Cout, TM): lane-dense output tile.
            acc = acc + jax.lax.dot_general(
                wt, xs, (((1,), (1,)), ((), ())),
                preferred_element_type=jnp.float32)
        else:
            acc = acc + jnp.dot(xs, wt, preferred_element_type=jnp.float32)
    y = acc + b_ref[...]
    if act == "leaky":
        y = jnp.where(y >= 0.0, y, NEG_SLOPE * y)
    elif act == "tanh":
        y = jnp.tanh(y)
    o_ref[...] = y.astype(o_ref.dtype)


def _tap_matmul(xf, w_taps, b, offsets, *, act="none", transpose_out=False):
    """Fused multi-tap matmul wrapper.

    xf:     (M, Cin) float32 flattened activation (row m = flat spatial index)
    w_taps: (T, Cin, Cout) weights (BatchNorm already folded in)
    b:      (Cout,) float32 bias
    Returns (M, Cout), or (Cout, M) if transpose_out.
    """
    M, cin = xf.shape
    T, _, cout = w_taps.shape

    if transpose_out:
        tm = 512                                   # lane-dense (Cout, TM) tiles
    else:
        # ceil-div tiling, 8-aligned, capped so the f32 accumulator stays small,
        # >= 2 grid steps when M allows it (v7x dual-TensorCore sharding).
        tm = max(8, min(256, (((M + 1) // 2) + 7) // 8 * 8))
    grid_m = -(-M // tm)
    m_pad = grid_m * tm
    max_off = max(offsets)
    rows = ((m_pad + max_off + 7) // 8) * 8        # zero tail so tap slices stay in-bounds

    xf = jnp.pad(xf.astype(jnp.float32), ((0, rows - M), (0, 0)))
    w_taps = w_taps.astype(jnp.bfloat16)

    if transpose_out:
        w_taps = jnp.transpose(w_taps, (0, 2, 1))  # (T, Cout, Cin)
        b2 = b.reshape(cout, 1).astype(jnp.float32)
        out_shape = jax.ShapeDtypeStruct((cout, m_pad), jnp.float32)
        out_spec = pl.BlockSpec((cout, tm), lambda i: (0, i))
        w_spec = pl.BlockSpec((T, cout, cin), lambda i: (0, 0, 0))
        b_spec = pl.BlockSpec((cout, 1), lambda i: (0, 0))
    else:
        b2 = b.reshape(1, cout).astype(jnp.float32)
        out_shape = jax.ShapeDtypeStruct((m_pad, cout), jnp.float32)
        out_spec = pl.BlockSpec((tm, cout), lambda i: (i, 0))
        w_spec = pl.BlockSpec((T, cin, cout), lambda i: (0, 0, 0))
        b_spec = pl.BlockSpec((1, cout), lambda i: (0, 0))

    # Whole (small) activation as a single VMEM-resident block; constant index
    # map => fetched once, not re-DMA'd per grid step.
    x_spec = pl.BlockSpec((rows, cin), lambda i: (0, 0))

    out = pl.pallas_call(
        functools.partial(_tap_matmul_kernel, offsets=tuple(offsets),
                          act=act, transpose_out=transpose_out),
        out_shape=out_shape,
        grid=(grid_m,),
        in_specs=[x_spec, w_spec, b_spec],
        out_specs=out_spec,
        compiler_params=pltpu.CompilerParams(
            dimension_semantics=("parallel",),
            vmem_limit_bytes=32 * 1024 * 1024),
    )(xf, w_taps, b2)
    return out[:, :M] if transpose_out else out[:M]


# ----------------------------------------------------------------------------
# Stride-1 "valid" convolution on flattened NHWC spatial grid
# ----------------------------------------------------------------------------
def conv_stride1(x, w_taps, b, kh, kw, act, transpose_out=False):
    """x: (N, Hq, Wq, Cin) NHWC (already padded as required).
    w_taps: (kh*kw, Cin, Cout), tap order (ki major, kj minor).
    Returns (N, Ho, Wo, Cout), or (Cout, N, Ho, Wo) if transpose_out."""
    N, Hq, Wq, Cin = x.shape
    T, Cin2, Cout = w_taps.shape
    assert T == kh * kw and Cin2 == Cin
    Ho, Wo = Hq - kh + 1, Wq - kw + 1
    offsets = tuple(ki * Wq + kj for ki in range(kh) for kj in range(kw))
    xf = x.reshape(N * Hq * Wq, Cin)
    out = _tap_matmul(xf, w_taps, b, offsets, act=act, transpose_out=transpose_out)
    if transpose_out:
        return out.reshape(Cout, N, Hq, Wq)[:, :, :Ho, :Wo]
    return out.reshape(N, Hq, Wq, Cout)[:, :Ho, :Wo, :]


def dense(x, w, b, act="none"):
    """x: (B, K), w: (K, N) -> (B, N)."""
    return _tap_matmul(x, w[None], b, (0,), act=act)


# ----------------------------------------------------------------------------
# Layout helpers (small JAX glue; no 9x im2col expansion, no NCHW transposes)
# ----------------------------------------------------------------------------
def space_to_depth2(x):
    """(N, H, W, C) with even H, W -> (N, H/2, W/2, 4C), slot order (0,0),(0,1),(1,0),(1,1)."""
    return jnp.concatenate(
        [x[:, 0::2, 0::2, :], x[:, 0::2, 1::2, :],
         x[:, 1::2, 0::2, :], x[:, 1::2, 1::2, :]], axis=-1)


def depth_to_space2(y, cout):
    """(N, H, W, 4*cout) -> (N, 2H, 2W, cout); channel index = (a*2+b)*cout + c."""
    N, H, W, _ = y.shape
    y = y.reshape(N, H, W, 2, 2, cout).transpose(0, 1, 3, 2, 4, 5)
    return y.reshape(N, 2 * H, 2 * W, cout)


def conv3x3_s2(x, w_taps, b, act="leaky"):
    """Conv2d(k=3, s=2, p=1) + folded BN + act, via space-to-depth + 2x2 conv."""
    assert x.shape[1] % 2 == 0 and x.shape[2] % 2 == 0
    xp = jnp.pad(x, ((0, 0), (1, 1), (1, 1), (0, 0)))
    xq = space_to_depth2(xp)
    return conv_stride1(xq, w_taps, b, 2, 2, act=act)


def tconv3x3_s2(x, w_taps, b, act="leaky"):
    """ConvTranspose2d(k=3, s=2, p=1, output_padding=1) + folded BN + act,
    via sub-pixel 2x2 conv (4*Cout channels) + depth-to-space."""
    cout = w_taps.shape[2] // 4
    xp = jnp.pad(x, ((0, 0), (0, 1), (0, 1), (0, 0)))
    y = conv_stride1(xp, w_taps, b, 2, 2, act=act)
    return depth_to_space2(y, cout)


def conv3x3_s1(x, w_taps, b, act, transpose_out=False):
    """Conv2d(k=3, s=1, p=1) (+ act)."""
    xp = jnp.pad(x, ((0, 0), (1, 1), (1, 1), (0, 0)))
    return conv_stride1(xp, w_taps, b, 3, 3, act=act, transpose_out=transpose_out)


# ----------------------------------------------------------------------------
# Weight rearrangement (done once, outside the traced forward)
# ----------------------------------------------------------------------------
def s2d_conv_weight(w):
    """(Cout, Cin, 3, 3) conv weight -> (4, 4*Cin, Cout) taps for the
    space-to-depth 2x2 stride-1 equivalent of a 3x3 stride-2 pad-1 conv."""
    Cout, Cin, _, _ = w.shape
    taps = []
    for di in (0, 1):
        for dj in (0, 1):
            blocks = []
            for pi in (0, 1):
                for pj in (0, 1):
                    ki, kj = 2 * di + pi, 2 * dj + pj
                    if ki < 3 and kj < 3:
                        blocks.append(jnp.transpose(w[:, :, ki, kj]))  # (Cin, Cout)
                    else:
                        blocks.append(jnp.zeros((Cin, Cout), w.dtype))
            taps.append(jnp.concatenate(blocks, axis=0))               # (4Cin, Cout)
    return jnp.stack(taps, axis=0)                                     # (4, 4Cin, Cout)


def subpix_tconv_weight(wt):
    """(Cin, Cout, 3, 3) ConvTranspose2d weight -> (4, Cin, 4*Cout) taps for the
    sub-pixel 2x2 stride-1 equivalent (stride=2, pad=1, output_padding=1)."""
    Cin, Cout, _, _ = wt.shape
    tap_of = {(0, 0): 1, (1, 0): 2, (1, 1): 0}   # (parity, d) -> original tap; (0,1) absent
    taps = []
    for di in (0, 1):
        for dj in (0, 1):
            cols = []
            for a in (0, 1):
                for b_ in (0, 1):
                    ki = tap_of.get((a, di))
                    kj = tap_of.get((b_, dj))
                    if ki is None or kj is None:
                        cols.append(jnp.zeros((Cin, Cout), wt.dtype))
                    else:
                        cols.append(wt[:, :, ki, kj])                  # (Cin, Cout)
            taps.append(jnp.concatenate(cols, axis=1))                 # (Cin, 4Cout)
    return jnp.stack(taps, axis=0)                                     # (4, Cin, 4Cout)


def conv3_weight(w):
    """(Cout, Cin, 3, 3) -> (9, Cin, Cout) taps (ki major, kj minor)."""
    return jnp.stack([jnp.transpose(w[:, :, ki, kj])
                      for ki in range(3) for kj in range(3)], axis=0)


# ----------------------------------------------------------------------------
# Parameter init (deterministic synthetic, PyTorch layouts) and preparation
# ----------------------------------------------------------------------------
def init_params(key, channels, latent_dim):
    keys = iter(jax.random.split(key, 128))

    def nrm(shape, s=0.1):
        return (s * jax.random.normal(next(keys), shape)).astype(jnp.float32)

    def bn_affine(c_):
        gamma = 1.0 + 0.1 * jax.random.normal(next(keys), (c_,))
        beta = 0.1 * jax.random.normal(next(keys), (c_,))
        rmean = 0.1 * jax.random.normal(next(keys), (c_,))
        rvar = jnp.abs(jax.random.normal(next(keys), (c_,))) + 0.5
        scale = gamma / jnp.sqrt(rvar + BN_EPS)
        shift = beta - rmean * scale
        return scale.astype(jnp.float32), shift.astype(jnp.float32)

    def conv_layer(cin, cout, bn=True):
        w = nrm((cout, cin, 3, 3))
        b = nrm((cout,))
        scale, shift = bn_affine(cout) if bn else (jnp.ones((cout,), jnp.float32),
                                                   jnp.zeros((cout,), jnp.float32))
        return {"w": w, "b": b, "scale": scale, "shift": shift}

    def tconv_layer(cin, cout, bn=True):
        w = nrm((cin, cout, 3, 3))
        b = nrm((cout,))
        scale, shift = bn_affine(cout) if bn else (jnp.ones((cout,), jnp.float32),
                                                   jnp.zeros((cout,), jnp.float32))
        return {"w": w, "b": b, "scale": scale, "shift": shift}

    def linear(fin, fout):
        return {"w": nrm((fout, fin)), "b": nrm((fout,))}

    c = channels
    return {
        "enc": [conv_layer(3, c[0]), conv_layer(c[0], c[1]), conv_layer(c[1], c[2]),
                conv_layer(c[2], c[3]), conv_layer(c[3], c[4])],
        "fc_mu": linear(c[4] * 4, latent_dim),
        "fc_var": linear(c[4] * 4, latent_dim),
        "decoder_input": linear(latent_dim, c[4] * 4),
        "dec": [tconv_layer(c[4], c[3]), tconv_layer(c[3], c[2]),
                tconv_layer(c[2], c[1]), tconv_layer(c[1], c[0])],
        "final_tconv": tconv_layer(c[0], c[0]),
        "final_conv": conv_layer(c[0], 3, bn=False),
    }


def prepare_params(params):
    """Fold BatchNorm into weights/bias, rearrange for the Pallas kernels, cast to bf16."""
    prep = {"enc": [], "dec": []}

    for layer in params["enc"]:
        w = layer["w"] * layer["scale"][:, None, None, None]
        b = layer["b"] * layer["scale"] + layer["shift"]
        prep["enc"].append({"w": s2d_conv_weight(w).astype(jnp.bfloat16),
                            "b": b.astype(jnp.float32)})

    w_cat = jnp.concatenate([params["fc_mu"]["w"], params["fc_var"]["w"]], axis=0)
    b_cat = jnp.concatenate([params["fc_mu"]["b"], params["fc_var"]["b"]], axis=0)
    prep["fc_muvar"] = {"w": jnp.transpose(w_cat).astype(jnp.bfloat16),
                        "b": b_cat.astype(jnp.float32)}
    prep["decoder_input"] = {"w": jnp.transpose(params["decoder_input"]["w"]).astype(jnp.bfloat16),
                             "b": params["decoder_input"]["b"].astype(jnp.float32)}

    def prep_tconv(layer):
        wt = layer["w"] * layer["scale"][None, :, None, None]
        b = layer["b"] * layer["scale"] + layer["shift"]
        return {"w": subpix_tconv_weight(wt).astype(jnp.bfloat16),
                "b": jnp.tile(b, 4).astype(jnp.float32)}

    for layer in params["dec"]:
        prep["dec"].append(prep_tconv(layer))
    prep["final_tconv"] = prep_tconv(params["final_tconv"])

    fc = params["final_conv"]
    w = fc["w"] * fc["scale"][:, None, None, None]
    b = fc["b"] * fc["scale"] + fc["shift"]
    prep["final_conv"] = {"w": conv3_weight(w).astype(jnp.bfloat16),
                          "b": b.astype(jnp.float32)}
    return prep


# ----------------------------------------------------------------------------
# Forward pass
# ----------------------------------------------------------------------------
def vanilla_vae_forward(prep, x_nchw, eps, *, latent_dim, c4):
    # --- encode (NHWC) ---
    h = jnp.transpose(x_nchw, (0, 2, 3, 1)).astype(jnp.float32)
    for layer in prep["enc"]:
        h = conv3x3_s2(h, layer["w"], layer["b"])
    B = h.shape[0]
    # torch.flatten(NCHW, start_dim=1) ordering
    flat = jnp.transpose(h, (0, 3, 1, 2)).reshape(B, -1)
    mv = dense(flat, prep["fc_muvar"]["w"], prep["fc_muvar"]["b"])
    mu, log_var = mv[:, :latent_dim], mv[:, latent_dim:]

    # --- reparameterize (plain jnp; 32 elements) ---
    z = mu + eps * jnp.exp(0.5 * log_var)

    # --- decode ---
    d = dense(z, prep["decoder_input"]["w"], prep["decoder_input"]["b"])
    h = d.reshape(B, c4, 2, 2).transpose(0, 2, 3, 1)          # view(-1,C,2,2) -> NHWC
    for layer in prep["dec"]:
        h = tconv3x3_s2(h, layer["w"], layer["b"])
    ft = prep["final_tconv"]
    h = tconv3x3_s2(h, ft["w"], ft["b"])
    fcv = prep["final_conv"]
    rec_cf = conv3x3_s1(h, fcv["w"], fcv["b"], act="tanh", transpose_out=True)
    rec = jnp.transpose(rec_cf, (1, 0, 2, 3))                 # (Cout,N,H,W) -> NCHW
    return rec, mu, log_var


# ----------------------------------------------------------------------------
if __name__ == "__main__":
    channels = [8, 16, 32, 32, 32]
    latent_dim = 16
    batch = 2

    key = jax.random.PRNGKey(0)
    pkey, xkey, ekey = jax.random.split(key, 3)
    params = init_params(pkey, channels, latent_dim)
    prep = prepare_params(params)

    # spatial must be 64 so the encoder bottleneck is 2x2 (channels[-1]*4 flatten)
    x = jax.random.normal(xkey, (batch, 3, 64, 64), dtype=jnp.float32)
    eps = jax.random.normal(ekey, (batch, latent_dim), dtype=jnp.float32)

    fwd = jax.jit(functools.partial(vanilla_vae_forward,
                                    latent_dim=latent_dim, c4=channels[4]))
    rec, mu, log_var = fwd(prep, x, eps)
    jax.block_until_ready((rec, mu, log_var))

    assert rec.shape == (batch, 3, 64, 64), rec.shape
    assert mu.shape == (batch, latent_dim), mu.shape
    assert log_var.shape == (batch, latent_dim), log_var.shape
    assert bool(jnp.all(jnp.isfinite(rec)))
    assert bool(jnp.all(jnp.isfinite(mu))) and bool(jnp.all(jnp.isfinite(log_var)))

    print("KERNEL_OK")
</pallas_src>

<mosaic_0001>
module attributes {stable_mosaic.version = 11 : i64} {
  func.func @_tap_matmul_kernel(%arg0: i32, %arg1: memref<2344x12xf32, #tpu.memory_space<vmem>>, %arg2: memref<4x12x8xbf16, #tpu.memory_space<vmem>>, %arg3: memref<1x8xf32, #tpu.memory_space<vmem>>, %arg4: memref<256x8xf32, #tpu.memory_space<vmem>>) attributes {dimension_semantics = [#tpu.dimension_semantics<parallel>], iteration_bounds = array<i64: 9>, scalar_prefetch = 0 : i64, scratch_operands = 0 : i64, tpu.core_type = #tpu.core_type<tc>, window_params = [{pipeline_mode = #tpu.pipeline_mode<synchronous>, transform_indices = @transform_0, window_bounds = array<i64: 2344, 12>}, {pipeline_mode = #tpu.pipeline_mode<synchronous>, transform_indices = @transform_1, window_bounds = array<i64: 4, 12, 8>}, {pipeline_mode = #tpu.pipeline_mode<synchronous>, transform_indices = @transform_2, window_bounds = array<i64: 1, 8>}, {transform_indices = @transform_3, window_bounds = array<i64: 256, 8>}]} {
    %c256_i32 = arith.constant 256 : i32
    %0 = arith.muli %arg0, %c256_i32 : i32
    %cst = arith.constant 0.000000e+00 : f32
    %1 = vector.broadcast %cst : f32 to vector<256x8xf32>
    %c0_i32 = arith.constant 0 : i32
    %2 = arith.addi %0, %c0_i32 : i32
    %3 = arith.index_cast %2 : i32 to index
    %c0 = arith.constant 0 : index
    %4 = vector.load %arg1[%3, %c0] : memref<2344x12xf32, #tpu.memory_space<vmem>>, vector<256x12xf32>
    %5 = arith.truncf %4 : vector<256x12xf32> to vector<256x12xbf16>
    %c0_0 = arith.constant 0 : index
    %c0_1 = arith.constant 0 : index
    %c0_2 = arith.constant 0 : index
    %6 = vector.load %arg2[%c0_0, %c0_1, %c0_2] : memref<4x12x8xbf16, #tpu.memory_space<vmem>>, vector<1x12x8xbf16>
    %7 = vector.shape_cast %6 : vector<1x12x8xbf16> to vector<12x8xbf16>
    %cst_3 = arith.constant dense<0.000000e+00> : vector<256x8xf32>
    %8 = tpu.matmul %5, %7, %cst_3 {dimension_numbers = #tpu.dot_dimension_numbers<[1], [0], [0], [1], [0, 0, 1, 1], [], []>} : vector<256x12xbf16>, vector<12x8xbf16>, vector<256x8xf32> -> vector<256x8xf32>
    %9 = arith.addf %1, %8 : vector<256x8xf32>
    %c1_i32 = arith.constant 1 : i32
    %10 = arith.addi %0, %c1_i32 : i32
    %11 = arith.index_cast %10 : i32 to index
    %c0_4 = arith.constant 0 : index
    %12 = vector.load %arg1[%11, %c0_4] : memref<2344x12xf32, #tpu.memory_space<vmem>>, vector<256x12xf32>
    %13 = arith.truncf %12 : vector<256x12xf32> to vector<256x12xbf16>
    %c1 = arith.constant 1 : index
    %c0_5 = arith.constant 0 : index
    %c0_6 = arith.constant 0 : index
    %14 = vector.load %arg2[%c1, %c0_5, %c0_6] : memref<4x12x8xbf16, #tpu.memory_space<vmem>>, vector<1x12x8xbf16>
    %15 = vector.shape_cast %14 : vector<1x12x8xbf16> to vector<12x8xbf16>
    %cst_7 = arith.constant dense<0.000000e+00> : vector<256x8xf32>
    %16 = tpu.matmul %13, %15, %cst_7 {dimension_numbers = #tpu.dot_dimension_numbers<[1], [0], [0], [1], [0, 0, 1, 1], [], []>} : vector<256x12xbf16>, vector<12x8xbf16>, vector<256x8xf32> -> vector<256x8xf32>
    %17 = arith.addf %9, %16 : vector<256x8xf32>
    %c33_i32 = arith.constant 33 : i32
    %18 = arith.addi %0, %c33_i32 : i32
    %19 = arith.index_cast %18 : i32 to index
    %c0_8 = arith.constant 0 : index
    %20 = vector.load %arg1[%19, %c0_8] : memref<2344x12xf32, #tpu.memory_space<vmem>>, vector<256x12xf32>
    %21 = arith.truncf %20 : vector<256x12xf32> to vector<256x12xbf16>
    %c2 = arith.constant 2 : index
    %c0_9 = arith.constant 0 : index
    %c0_10 = arith.constant 0 : index
    %22 = vector.load %arg2[%c2, %c0_9, %c0_10] : memref<4x12x8xbf16, #tpu.memory_space<vmem>>, vector<1x12x8xbf16>
    %23 = vector.shape_cast %22 : vector<1x12x8xbf16> to vector<12x8xbf16>
    %cst_11 = arith.constant dense<0.000000e+00> : vector<256x8xf32>
    %24 = tpu.matmul %21, %23, %cst_11 {dimension_numbers = #tpu.dot_dimension_numbers<[1], [0], [0], [1], [0, 0, 1, 1], [], []>} : vector<256x12xbf16>, vector<12x8xbf16>, vector<256x8xf32> -> vector<256x8xf32>
    %25 = arith.addf %17, %24 : vector<256x8xf32>
    %c34_i32 = arith.constant 34 : i32
    %26 = arith.addi %0, %c34_i32 : i32
    %27 = arith.index_cast %26 : i32 to index
    %c0_12 = arith.constant 0 : index
    %28 = vector.load %arg1[%27, %c0_12] : memref<2344x12xf32, #tpu.memory_space<vmem>>, vector<256x12xf32>
    %29 = arith.truncf %28 : vector<256x12xf32> to vector<256x12xbf16>
    %c3 = arith.constant 3 : index
    %c0_13 = arith.constant 0 : index
    %c0_14 = arith.constant 0 : index
    %30 = vector.load %arg2[%c3, %c0_13, %c0_14] : memref<4x12x8xbf16, #tpu.memory_space<vmem>>, vector<1x12x8xbf16>
    %31 = vector.shape_cast %30 : vector<1x12x8xbf16> to vector<12x8xbf16>
    %cst_15 = arith.constant dense<0.000000e+00> : vector<256x8xf32>
    %32 = tpu.matmul %29, %31, %cst_15 {dimension_numbers = #tpu.dot_dimension_numbers<[1], [0], [0], [1], [0, 0, 1, 1], [], []>} : vector<256x12xbf16>, vector<12x8xbf16>, vector<256x8xf32> -> vector<256x8xf32>
    %33 = arith.addf %25, %32 : vector<256x8xf32>
    %c0_16 = arith.constant 0 : index
    %c0_17 = arith.constant 0 : index
    %34 = vector.load %arg3[%c0_16, %c0_17] : memref<1x8xf32, #tpu.memory_space<vmem>>, vector<1x8xf32>
    %35 = vector.broadcast %34 : vector<1x8xf32> to vector<256x8xf32>
    %36 = arith.addf %33, %35 : vector<256x8xf32>
    %cst_18 = arith.constant 0.000000e+00 : f32
    %37 = vector.broadcast %cst_18 : f32 to vector<256x8xf32>
    %38 = arith.cmpf oge, %36, %37 : vector<256x8xf32>
    %cst_19 = arith.constant 0.00999999977 : f32
    %39 = vector.broadcast %cst_19 : f32 to vector<256x8xf32>
    %40 = arith.mulf %39, %36 : vector<256x8xf32>
    %41 = arith.select %38, %36, %40 : vector<256x8xi1>, vector<256x8xf32>
    %c0_20 = arith.constant 0 : index
    %c0_21 = arith.constant 0 : index
    %42 = vector.load %arg4[%c0_20, %c0_21] : memref<256x8xf32, #tpu.memory_space<vmem>>, vector<256x8xf32>
    tpu.vector_store %arg4[%c0_20, %c0_21], %41 {strides = array<i32>} : memref<256x8xf32, #tpu.memory_space<vmem>>, vector<256x8xf32>,
    return
  }
  func.func @transform_0(%arg0: i32) -> (i32, i32) {
    %c0_i32 = arith.constant 0 : i32
    %c0_i32_0 = arith.constant 0 : i32
    %c0_i32_1 = arith.constant 0 : i32
    return %c0_i32, %c0_i32_0 : i32, i32
  }
  func.func @transform_1(%arg0: i32) -> (i32, i32, i32) {
    %c0_i32 = arith.constant 0 : i32
    %c0_i32_0 = arith.constant 0 : i32
    %c0_i32_1 = arith.constant 0 : i32
    %c0_i32_2 = arith.constant 0 : i32
    return %c0_i32, %c0_i32_0, %c0_i32_1 : i32, i32, i32
  }
  func.func @transform_2(%arg0: i32) -> (i32, i32) {
    %c0_i32 = arith.constant 0 : i32
    %c0_i32_0 = arith.constant 0 : i32
    %c0_i32_1 = arith.constant 0 : i32
    return %c0_i32, %c0_i32_0 : i32, i32
  }
  func.func @transform_3(%arg0: i32) -> (i32, i32) {
    %c0_i32 = arith.constant 0 : i32
    %c0_i32_0 = arith.constant 0 : i32
    return %arg0, %c0_i32 : i32, i32
  }
}

module attributes {stable_mosaic.version = 11 : i64} {
  func.func @_tap_matmul_kernel(%arg0: i32, %arg1: memref<792x32xf32, #tpu.memory_space<vmem>>, %arg2: memref<4x32x16xbf16, #tpu.memory_space<vmem>>, %arg3: memref<1x16xf32, #tpu.memory_space<vmem>>, %arg4: memref<256x16xf32, #tpu.memory_space<vmem>>) attributes {dimension_semantics = [#tpu.dimension_semantics<parallel>], iteration_bounds = array<i64: 3>, scalar_prefetch = 0 : i64, scratch_operands = 0 : i64, tpu.core_type = #tpu.core_type<tc>, window_params = [{pipeline_mode = #tpu.pipeline_mode<synchronous>, transform_indices = @transform_0, window_bounds = array<i64: 792, 32>}, {pipeline_mode = #tpu.pipeline_mode<synchronous>, transform_indices = @transform_1, window_bounds = array<i64: 4, 32, 16>}, {pipeline_mode = #tpu.pipeline_mode<synchronous>, transform_indices = @transform_2, window_bounds = array<i64: 1, 16>}, {transform_indices = @transform_3, window_bounds = array<i64: 256, 16>}]} {
    %c256_i32 = arith.constant 256 : i32
    %0 = arith.muli %arg0, %c256_i32 : i32
    %cst = arith.constant 0.000000e+00 : f32
    %1 = vector.broadcast %cst : f32 to vector<256x16xf32>
    %c0_i32 = arith.constant 0 : i32
    %2 = arith.addi %0, %c0_i32 : i32
    %3 = arith.index_cast %2 : i32 to index
    %c0 = arith.constant 0 : index
    %4 = vector.load %arg1[%3, %c0] : memref<792x32xf32, #tpu.memory_space<vmem>>, vector<256x32xf32>
    %5 = arith.truncf %4 : vector<256x32xf32> to vector<256x32xbf16>
    %c0_0 = arith.constant 0 : index
    %c0_1 = arith.constant 0 : index
    %c0_2 = arith.constant 0 : index
    %6 = vector.load %arg2[%c0_0, %c0_1, %c0_2] : memref<4x32x16xbf16, #tpu.memory_space<vmem>>, vector<1x32x16xbf16>
    %7 = vector.shape_cast %6 : vector<1x32x16xbf16> to vector<32x16xbf16>
    %cst_3 = arith.constant dense<0.000000e+00> : vector<256x16xf32>
    %8 = tpu.matmul %5, %7, %cst_3 {dimension_numbers = #tpu.dot_dimension_numbers<[1], [0], [0], [1], [0, 0, 1, 1], [], []>} : vector<256x32xbf16>, vector<32x16xbf16>, vector<256x16xf32> -> vector<256x16xf32>
    %9 = arith.addf %1, %8 : vector<256x16xf32>
    %c1_i32 = arith.constant 1 : i32
    %10 = arith.addi %0, %c1_i32 : i32
    %11 = arith.index_cast %10 : i32 to index
    %c0_4 = arith.constant 0 : index
    %12 = vector.load %arg1[%11, %c0_4] : memref<792x32xf32, #tpu.memory_space<vmem>>, vector<256x32xf32>
    %13 = arith.truncf %12 : vector<256x32xf32> to vector<256x32xbf16>
    %c1 = arith.constant 1 : index
    %c0_5 = arith.constant 0 : index
    %c0_6 = arith.constant 0 : index
    %14 = vector.load %arg2[%c1, %c0_5, %c0_6] : memref<4x32x16xbf16, #tpu.memory_space<vmem>>, vector<1x32x16xbf16>
    %15 = vector.shape_cast %14 : vector<1x32x16xbf16> to vector<32x16xbf16>
    %cst_7 = arith.constant dense<0.000000e+00> : vector<256x16xf32>
    %16 = tpu.matmul %13, %15, %cst_7 {dimension_numbers = #tpu.dot_dimension_numbers<[1], [0], [0], [1], [0, 0, 1, 1], [], []>} : vector<256x32xbf16>, vector<32x16xbf16>, vector<256x16xf32> -> vector<256x16xf32>
    %17 = arith.addf %9, %16 : vector<256x16xf32>
    %c17_i32 = arith.constant 17 : i32
    %18 = arith.addi %0, %c17_i32 : i32
    %19 = arith.index_cast %18 : i32 to index
    %c0_8 = arith.constant 0 : index
    %20 = vector.load %arg1[%19, %c0_8] : memref<792x32xf32, #tpu.memory_space<vmem>>, vector<256x32xf32>
    %21 = arith.truncf %20 : vector<256x32xf32> to vector<256x32xbf16>
    %c2 = arith.constant 2 : index
    %c0_9 = arith.constant 0 : index
    %c0_10 = arith.constant 0 : index
    %22 = vector.load %arg2[%c2, %c0_9, %c0_10] : memref<4x32x16xbf16, #tpu.memory_space<vmem>>, vector<1x32x16xbf16>
    %23 = vector.shape_cast %22 : vector<1x32x16xbf16> to vector<32x16xbf16>
    %cst_11 = arith.constant dense<0.000000e+00> : vector<256x16xf32>
    %24 = tpu.matmul %21, %23, %cst_11 {dimension_numbers = #tpu.dot_dimension_numbers<[1], [0], [0], [1], [0, 0, 1, 1], [], []>} : vector<256x32xbf16>, vector<32x16xbf16>, vector<256x16xf32> -> vector<256x16xf32>
    %25 = arith.addf %17, %24 : vector<256x16xf32>
    %c18_i32 = arith.constant 18 : i32
    %26 = arith.addi %0, %c18_i32 : i32
    %27 = arith.index_cast %26 : i32 to index
    %c0_12 = arith.constant 0 : index
    %28 = vector.load %arg1[%27, %c0_12] : memref<792x32xf32, #tpu.memory_space<vmem>>, vector<256x32xf32>
    %29 = arith.truncf %28 : vector<256x32xf32> to vector<256x32xbf16>
    %c3 = arith.constant 3 : index
    %c0_13 = arith.constant 0 : index
    %c0_14 = arith.constant 0 : index
    %30 = vector.load %arg2[%c3, %c0_13, %c0_14] : memref<4x32x16xbf16, #tpu.memory_space<vmem>>, vector<1x32x16xbf16>
    %31 = vector.shape_cast %30 : vector<1x32x16xbf16> to vector<32x16xbf16>
    %cst_15 = arith.constant dense<0.000000e+00> : vector<256x16xf32>
    %32 = tpu.matmul %29, %31, %cst_15 {dimension_numbers = #tpu.dot_dimension_numbers<[1], [0], [0], [1], [0, 0, 1, 1], [], []>} : vector<256x32xbf16>, vector<32x16xbf16>, vector<256x16xf32> -> vector<256x16xf32>
    %33 = arith.addf %25, %32 : vector<256x16xf32>
    %c0_16 = arith.constant 0 : index
    %c0_17 = arith.constant 0 : index
    %34 = vector.load %arg3[%c0_16, %c0_17] : memref<1x16xf32, #tpu.memory_space<vmem>>, vector<1x16xf32>
    %35 = vector.broadcast %34 : vector<1x16xf32> to vector<256x16xf32>
    %36 = arith.addf %33, %35 : vector<256x16xf32>
    %cst_18 = arith.constant 0.000000e+00 : f32
    %37 = vector.broadcast %cst_18 : f32 to vector<256x16xf32>
    %38 = arith.cmpf oge, %36, %37 : vector<256x16xf32>
    %cst_19 = arith.constant 0.00999999977 : f32
    %39 = vector.broadcast %cst_19 : f32 to vector<256x16xf32>
    %40 = arith.mulf %39, %36 : vector<256x16xf32>
    %41 = arith.select %38, %36, %40 : vector<256x16xi1>, vector<256x16xf32>
    %c0_20 = arith.constant 0 : index
    %c0_21 = arith.constant 0 : index
    %42 = vector.load %arg4[%c0_20, %c0_21] : memref<256x16xf32, #tpu.memory_space<vmem>>, vector<256x16xf32>
    tpu.vector_store %arg4[%c0_20, %c0_21], %41 {strides = array<i32>} : memref<256x16xf32, #tpu.memory_space<vmem>>, vector<256x16xf32>,
    return
  }
  func.func @transform_0(%arg0: i32) -> (i32, i32) {
    %c0_i32 = arith.constant 0 : i32
    %c0_i32_0 = arith.constant 0 : i32
    %c0_i32_1 = arith.constant 0 : i32
    return %c0_i32, %c0_i32_0 : i32, i32
  }
  func.func @transform_1(%arg0: i32) -> (i32, i32, i32) {
    %c0_i32 = arith.constant 0 : i32
    %c0_i32_0 = arith.constant 0 : i32
    %c0_i32_1 = arith.constant 0 : i32
    %c0_i32_2 = arith.constant 0 : i32
    return %c0_i32, %c0_i32_0, %c0_i32_1 : i32, i32, i32
  }
  func.func @transform_2(%arg0: i32) -> (i32, i32) {
    %c0_i32 = arith.constant 0 : i32
    %c0_i32_0 = arith.constant 0 : i32
    %c0_i32_1 = arith.constant 0 : i32
    return %c0_i32, %c0_i32_0 : i32, i32
  }
  func.func @transform_3(%arg0: i32) -> (i32, i32) {
    %c0_i32 = arith.constant 0 : i32
    %c0_i32_0 = arith.constant 0 : i32
    return %arg0, %c0_i32 : i32, i32
  }
}

module attributes {stable_mosaic.version = 11 : i64} {
  func.func @_tap_matmul_kernel(%arg0: i32, %arg1: memref<192x64xf32, #tpu.memory_space<vmem>>, %arg2: memref<4x64x32xbf16, #tpu.memory_space<vmem>>, %arg3: memref<1x32xf32, #tpu.memory_space<vmem>>, %arg4: memref<88x32xf32, #tpu.memory_space<vmem>>) attributes {dimension_semantics = [#tpu.dimension_semantics<parallel>], iteration_bounds = array<i64: 2>, scalar_prefetch = 0 : i64, scratch_operands = 0 : i64, tpu.core_type = #tpu.core_type<tc>, window_params = [{pipeline_mode = #tpu.pipeline_mode<synchronous>, transform_indices = @transform_0, window_bounds = array<i64: 192, 64>}, {pipeline_mode = #tpu.pipeline_mode<synchronous>, transform_indices = @transform_1, window_bounds = array<i64: 4, 64, 32>}, {pipeline_mode = #tpu.pipeline_mode<synchronous>, transform_indices = @transform_2, window_bounds = array<i64: 1, 32>}, {transform_indices = @transform_3, window_bounds = array<i64: 88, 32>}]} {
    %c88_i32 = arith.constant 88 : i32
    %0 = arith.muli %arg0, %c88_i32 : i32
    %cst = arith.constant 0.000000e+00 : f32
    %1 = vector.broadcast %cst : f32 to vector<88x32xf32>
    %c0_i32 = arith.constant 0 : i32
    %2 = arith.addi %0, %c0_i32 : i32
    %3 = arith.index_cast %2 : i32 to index
    %c0 = arith.constant 0 : index
    %4 = vector.load %arg1[%3, %c0] : memref<192x64xf32, #tpu.memory_space<vmem>>, vector<88x64xf32>
    %5 = arith.truncf %4 : vector<88x64xf32> to vector<88x64xbf16>
    %c0_0 = arith.constant 0 : index
    %c0_1 = arith.constant 0 : index
    %c0_2 = arith.constant 0 : index
    %6 = vector.load %arg2[%c0_0, %c0_1, %c0_2] : memref<4x64x32xbf16, #tpu.memory_space<vmem>>, vector<1x64x32xbf16>
    %7 = vector.shape_cast %6 : vector<1x64x32xbf16> to vector<64x32xbf16>
    %cst_3 = arith.constant dense<0.000000e+00> : vector<88x32xf32>
    %8 = tpu.matmul %5, %7, %cst_3 {dimension_numbers = #tpu.dot_dimension_numbers<[1], [0], [0], [1], [0, 0, 1, 1], [], []>} : vector<88x64xbf16>, vector<64x32xbf16>, vector<88x32xf32> -> vector<88x32xf32>
    %9 = arith.addf %1, %8 : vector<88x32xf32>
    %c1_i32 = arith.constant 1 : i32
    %10 = arith.addi %0, %c1_i32 : i32
    %11 = arith.index_cast %10 : i32 to index
    %c0_4 = arith.constant 0 : index
    %12 = vector.load %arg1[%11, %c0_4] : memref<192x64xf32, #tpu.memory_space<vmem>>, vector<88x64xf32>
    %13 = arith.truncf %12 : vector<88x64xf32> to vector<88x64xbf16>
    %c1 = arith.constant 1 : index
    %c0_5 = arith.constant 0 : index
    %c0_6 = arith.constant 0 : index
    %14 = vector.load %arg2[%c1, %c0_5, %c0_6] : memref<4x64x32xbf16, #tpu.memory_space<vmem>>, vector<1x64x32xbf16>
    %15 = vector.shape_cast %14 : vector<1x64x32xbf16> to vector<64x32xbf16>
    %cst_7 = arith.constant dense<0.000000e+00> : vector<88x32xf32>
    %16 = tpu.matmul %13, %15, %cst_7 {dimension_numbers = #tpu.dot_dimension_numbers<[1], [0], [0], [1], [0, 0, 1, 1], [], []>} : vector<88x64xbf16>, vector<64x32xbf16>, vector<88x32xf32> -> vector<88x32xf32>
    %17 = arith.addf %9, %16 : vector<88x32xf32>
    %c9_i32 = arith.constant 9 : i32
    %18 = arith.addi %0, %c9_i32 : i32
    %19 = arith.index_cast %18 : i32 to index
    %c0_8 = arith.constant 0 : index
    %20 = vector.load %arg1[%19, %c0_8] : memref<192x64xf32, #tpu.memory_space<vmem>>, vector<88x64xf32>
    %21 = arith.truncf %20 : vector<88x64xf32> to vector<88x64xbf16>
    %c2 = arith.constant 2 : index
    %c0_9 = arith.constant 0 : index
    %c0_10 = arith.constant 0 : index
    %22 = vector.load %arg2[%c2, %c0_9, %c0_10] : memref<4x64x32xbf16, #tpu.memory_space<vmem>>, vector<1x64x32xbf16>
    %23 = vector.shape_cast %22 : vector<1x64x32xbf16> to vector<64x32xbf16>
    %cst_11 = arith.constant dense<0.000000e+00> : vector<88x32xf32>
    %24 = tpu.matmul %21, %23, %cst_11 {dimension_numbers = #tpu.dot_dimension_numbers<[1], [0], [0], [1], [0, 0, 1, 1], [], []>} : vector<88x64xbf16>, vector<64x32xbf16>, vector<88x32xf32> -> vector<88x32xf32>
    %25 = arith.addf %17, %24 : vector<88x32xf32>
    %c10_i32 = arith.constant 10 : i32
    %26 = arith.addi %0, %c10_i32 : i32
    %27 = arith.index_cast %26 : i32 to index
    %c0_12 = arith.constant 0 : index
    %28 = vector.load %arg1[%27, %c0_12] : memref<192x64xf32, #tpu.memory_space<vmem>>, vector<88x64xf32>
    %29 = arith.truncf %28 : vector<88x64xf32> to vector<88x64xbf16>
    %c3 = arith.constant 3 : index
    %c0_13 = arith.constant 0 : index
    %c0_14 = arith.constant 0 : index
    %30 = vector.load %arg2[%c3, %c0_13, %c0_14] : memref<4x64x32xbf16, #tpu.memory_space<vmem>>, vector<1x64x32xbf16>
    %31 = vector.shape_cast %30 : vector<1x64x32xbf16> to vector<64x32xbf16>
    %cst_15 = arith.constant dense<0.000000e+00> : vector<88x32xf32>
    %32 = tpu.matmul %29, %31, %cst_15 {dimension_numbers = #tpu.dot_dimension_numbers<[1], [0], [0], [1], [0, 0, 1, 1], [], []>} : vector<88x64xbf16>, vector<64x32xbf16>, vector<88x32xf32> -> vector<88x32xf32>
    %33 = arith.addf %25, %32 : vector<88x32xf32>
    %c0_16 = arith.constant 0 : index
    %c0_17 = arith.constant 0 : index
    %34 = vector.load %arg3[%c0_16, %c0_17] : memref<1x32xf32, #tpu.memory_space<vmem>>, vector<1x32xf32>
    %35 = vector.broadcast %34 : vector<1x32xf32> to vector<88x32xf32>
    %36 = arith.addf %33, %35 : vector<88x32xf32>
    %cst_18 = arith.constant 0.000000e+00 : f32
    %37 = vector.broadcast %cst_18 : f32 to vector<88x32xf32>
    %38 = arith.cmpf oge, %36, %37 : vector<88x32xf32>
    %cst_19 = arith.constant 0.00999999977 : f32
    %39 = vector.broadcast %cst_19 : f32 to vector<88x32xf32>
    %40 = arith.mulf %39, %36 : vector<88x32xf32>
    %41 = arith.select %38, %36, %40 : vector<88x32xi1>, vector<88x32xf32>
    %c0_20 = arith.constant 0 : index
    %c0_21 = arith.constant 0 : index
    %42 = vector.load %arg4[%c0_20, %c0_21] : memref<88x32xf32, #tpu.memory_space<vmem>>, vector<88x32xf32>
    tpu.vector_store %arg4[%c0_20, %c0_21], %41 {strides = array<i32>} : memref<88x32xf32, #tpu.memory_space<vmem>>, vector<88x32xf32>,
    return
  }
  func.func @transform_0(%arg0: i32) -> (i32, i32) {
    %c0_i32 = arith.constant 0 : i32
    %c0_i32_0 = arith.constant 0 : i32
    %c0_i32_1 = arith.constant 0 : i32
    return %c0_i32, %c0_i32_0 : i32, i32
  }
  func.func @transform_1(%arg0: i32) -> (i32, i32, i32) {
    %c0_i32 = arith.constant 0 : i32
    %c0_i32_0 = arith.constant 0 : i32
    %c0_i32_1 = arith.constant 0 : i32
    %c0_i32_2 = arith.constant 0 : i32
    return %c0_i32, %c0_i32_0, %c0_i32_1 : i32, i32, i32
  }
  func.func @transform_2(%arg0: i32) -> (i32, i32) {
    %c0_i32 = arith.constant 0 : i32
    %c0_i32_0 = arith.constant 0 : i32
    %c0_i32_1 = arith.constant 0 : i32
    return %c0_i32, %c0_i32_0 : i32, i32
  }
  func.func @transform_3(%arg0: i32) -> (i32, i32) {
    %c0_i32 = arith.constant 0 : i32
    %c0_i32_0 = arith.constant 0 : i32
    return %arg0, %c0_i32 : i32, i32
  }
}

module attributes {stable_mosaic.version = 11 : i64} {
  func.func @_tap_matmul_kernel(%arg0: i32, %arg1: memref<72x128xf32, #tpu.memory_space<vmem>>, %arg2: memref<4x128x32xbf16, #tpu.memory_space<vmem>>, %arg3: memref<1x32xf32, #tpu.memory_space<vmem>>, %arg4: memref<32x32xf32, #tpu.memory_space<vmem>>) attributes {dimension_semantics = [#tpu.dimension_semantics<parallel>], iteration_bounds = array<i64: 2>, scalar_prefetch = 0 : i64, scratch_operands = 0 : i64, tpu.core_type = #tpu.core_type<tc>, window_params = [{pipeline_mode = #tpu.pipeline_mode<synchronous>, transform_indices = @transform_0, window_bounds = array<i64: 72, 128>}, {pipeline_mode = #tpu.pipeline_mode<synchronous>, transform_indices = @transform_1, window_bounds = array<i64: 4, 128, 32>}, {pipeline_mode = #tpu.pipeline_mode<synchronous>, transform_indices = @transform_2, window_bounds = array<i64: 1, 32>}, {transform_indices = @transform_3, window_bounds = array<i64: 32, 32>}]} {
    %c32_i32 = arith.constant 32 : i32
    %0 = arith.muli %arg0, %c32_i32 : i32
    %cst = arith.constant 0.000000e+00 : f32
    %1 = vector.broadcast %cst : f32 to vector<32x32xf32>
    %c0_i32 = arith.constant 0 : i32
    %2 = arith.addi %0, %c0_i32 : i32
    %3 = arith.index_cast %2 : i32 to index
    %c0 = arith.constant 0 : index
    %4 = vector.load %arg1[%3, %c0] : memref<72x128xf32, #tpu.memory_space<vmem>>, vector<32x128xf32>
    %5 = arith.truncf %4 : vector<32x128xf32> to vector<32x128xbf16>
    %c0_0 = arith.constant 0 : index
    %c0_1 = arith.constant 0 : index
    %c0_2 = arith.constant 0 : index
    %6 = vector.load %arg2[%c0_0, %c0_1, %c0_2] : memref<4x128x32xbf16, #tpu.memory_space<vmem>>, vector<1x128x32xbf16>
    %7 = vector.shape_cast %6 : vector<1x128x32xbf16> to vector<128x32xbf16>
    %cst_3 = arith.constant dense<0.000000e+00> : vector<32x32xf32>
    %8 = tpu.matmul %5, %7, %cst_3 {dimension_numbers = #tpu.dot_dimension_numbers<[1], [0], [0], [1], [0, 0, 1, 1], [], []>} : vector<32x128xbf16>, vector<128x32xbf16>, vector<32x32xf32> -> vector<32x32xf32>
    %9 = arith.addf %1, %8 : vector<32x32xf32>
    %c1_i32 = arith.constant 1 : i32
    %10 = arith.addi %0, %c1_i32 : i32
    %11 = arith.index_cast %10 : i32 to index
    %c0_4 = arith.constant 0 : index
    %12 = vector.load %arg1[%11, %c0_4] : memref<72x128xf32, #tpu.memory_space<vmem>>, vector<32x128xf32>
    %13 = arith.truncf %12 : vector<32x128xf32> to vector<32x128xbf16>
    %c1 = arith.constant 1 : index
    %c0_5 = arith.constant 0 : index
    %c0_6 = arith.constant 0 : index
    %14 = vector.load %arg2[%c1, %c0_5, %c0_6] : memref<4x128x32xbf16, #tpu.memory_space<vmem>>, vector<1x128x32xbf16>
    %15 = vector.shape_cast %14 : vector<1x128x32xbf16> to vector<128x32xbf16>
    %cst_7 = arith.constant dense<0.000000e+00> : vector<32x32xf32>
    %16 = tpu.matmul %13, %15, %cst_7 {dimension_numbers = #tpu.dot_dimension_numbers<[1], [0], [0], [1], [0, 0, 1, 1], [], []>} : vector<32x128xbf16>, vector<128x32xbf16>, vector<32x32xf32> -> vector<32x32xf32>
    %17 = arith.addf %9, %16 : vector<32x32xf32>
    %c5_i32 = arith.constant 5 : i32
    %18 = arith.addi %0, %c5_i32 : i32
    %19 = arith.index_cast %18 : i32 to index
    %c0_8 = arith.constant 0 : index
    %20 = vector.load %arg1[%19, %c0_8] : memref<72x128xf32, #tpu.memory_space<vmem>>, vector<32x128xf32>
    %21 = arith.truncf %20 : vector<32x128xf32> to vector<32x128xbf16>
    %c2 = arith.constant 2 : index
    %c0_9 = arith.constant 0 : index
    %c0_10 = arith.constant 0 : index
    %22 = vector.load %arg2[%c2, %c0_9, %c0_10] : memref<4x128x32xbf16, #tpu.memory_space<vmem>>, vector<1x128x32xbf16>
    %23 = vector.shape_cast %22 : vector<1x128x32xbf16> to vector<128x32xbf16>
    %cst_11 = arith.constant dense<0.000000e+00> : vector<32x32xf32>
    %24 = tpu.matmul %21, %23, %cst_11 {dimension_numbers = #tpu.dot_dimension_numbers<[1], [0], [0], [1], [0, 0, 1, 1], [], []>} : vector<32x128xbf16>, vector<128x32xbf16>, vector<32x32xf32> -> vector<32x32xf32>
    %25 = arith.addf %17, %24 : vector<32x32xf32>
    %c6_i32 = arith.constant 6 : i32
    %26 = arith.addi %0, %c6_i32 : i32
    %27 = arith.index_cast %26 : i32 to index
    %c0_12 = arith.constant 0 : index
    %28 = vector.load %arg1[%27, %c0_12] : memref<72x128xf32, #tpu.memory_space<vmem>>, vector<32x128xf32>
    %29 = arith.truncf %28 : vector<32x128xf32> to vector<32x128xbf16>
    %c3 = arith.constant 3 : index
    %c0_13 = arith.constant 0 : index
    %c0_14 = arith.constant 0 : index
    %30 = vector.load %arg2[%c3, %c0_13, %c0_14] : memref<4x128x32xbf16, #tpu.memory_space<vmem>>, vector<1x128x32xbf16>
    %31 = vector.shape_cast %30 : vector<1x128x32xbf16> to vector<128x32xbf16>
    %cst_15 = arith.constant dense<0.000000e+00> : vector<32x32xf32>
    %32 = tpu.matmul %29, %31, %cst_15 {dimension_numbers = #tpu.dot_dimension_numbers<[1], [0], [0], [1], [0, 0, 1, 1], [], []>} : vector<32x128xbf16>, vector<128x32xbf16>, vector<32x32xf32> -> vector<32x32xf32>
    %33 = arith.addf %25, %32 : vector<32x32xf32>
    %c0_16 = arith.constant 0 : index
    %c0_17 = arith.constant 0 : index
    %34 = vector.load %arg3[%c0_16, %c0_17] : memref<1x32xf32, #tpu.memory_space<vmem>>, vector<1x32xf32>
    %35 = vector.broadcast %34 : vector<1x32xf32> to vector<32x32xf32>
    %36 = arith.addf %33, %35 : vector<32x32xf32>
    %cst_18 = arith.constant 0.000000e+00 : f32
    %37 = vector.broadcast %cst_18 : f32 to vector<32x32xf32>
    %38 = arith.cmpf oge, %36, %37 : vector<32x32xf32>
    %cst_19 = arith.constant 0.00999999977 : f32
    %39 = vector.broadcast %cst_19 : f32 to vector<32x32xf32>
    %40 = arith.mulf %39, %36 : vector<32x32xf32>
    %41 = arith.select %38, %36, %40 : vector<32x32xi1>, vector<32x32xf32>
    %c0_20 = arith.constant 0 : index
    %c0_21 = arith.constant 0 : index
    %42 = vector.load %arg4[%c0_20, %c0_21] : memref<32x32xf32, #tpu.memory_space<vmem>>, vector<32x32xf32>
    tpu.vector_store %arg4[%c0_20, %c0_21], %41 {strides = array<i32>} : memref<32x32xf32, #tpu.memory_space<vmem>>, vector<32x32xf32>,
    return
  }
  func.func @transform_0(%arg0: i32) -> (i32, i32) {
    %c0_i32 = arith.constant 0 : i32
    %c0_i32_0 = arith.constant 0 : i32
    %c0_i32_1 = arith.constant 0 : i32
    return %c0_i32, %c0_i32_0 : i32, i32
  }
  func.func @transform_1(%arg0: i32) -> (i32, i32, i32) {
    %c0_i32 = arith.constant 0 : i32
    %c0_i32_0 = arith.constant 0 : i32
    %c0_i32_1 = arith.constant 0 : i32
    %c0_i32_2 = arith.constant 0 : i32
    return %c0_i32, %c0_i32_0, %c0_i32_1 : i32, i32, i32
  }
  func.func @transform_2(%arg0: i32) -> (i32, i32) {
    %c0_i32 = arith.constant 0 : i32
    %c0_i32_0 = arith.constant 0 : i32
    %c0_i32_1 = arith.constant 0 : i32
    return %c0_i32, %c0_i32_0 : i32, i32
  }
  func.func @transform_3(%arg0: i32) -> (i32, i32) {
    %c0_i32 = arith.constant 0 : i32
    %c0_i32_0 = arith.constant 0 : i32
    return %arg0, %c0_i32 : i32, i32
  }
}

module attributes {stable_mosaic.version = 11 : i64} {
  func.func @_tap_matmul_kernel(%arg0: i32, %arg1: memref<40x128xf32, #tpu.memory_space<vmem>>, %arg2: memref<4x128x32xbf16, #tpu.memory_space<vmem>>, %arg3: memref<1x32xf32, #tpu.memory_space<vmem>>, %arg4: memref<16x32xf32, #tpu.memory_space<vmem>>) attributes {dimension_semantics = [#tpu.dimension_semantics<parallel>], iteration_bounds = array<i64: 2>, scalar_prefetch = 0 : i64, scratch_operands = 0 : i64, tpu.core_type = #tpu.core_type<tc>, window_params = [{pipeline_mode = #tpu.pipeline_mode<synchronous>, transform_indices = @transform_0, window_bounds = array<i64: 40, 128>}, {pipeline_mode = #tpu.pipeline_mode<synchronous>, transform_indices = @transform_1, window_bounds = array<i64: 4, 128, 32>}, {pipeline_mode = #tpu.pipeline_mode<synchronous>, transform_indices = @transform_2, window_bounds = array<i64: 1, 32>}, {transform_indices = @transform_3, window_bounds = array<i64: 16, 32>}]} {
    %c16_i32 = arith.constant 16 : i32
    %0 = arith.muli %arg0, %c16_i32 : i32
    %cst = arith.constant 0.000000e+00 : f32
    %1 = vector.broadcast %cst : f32 to vector<16x32xf32>
    %c0_i32 = arith.constant 0 : i32
    %2 = arith.addi %0, %c0_i32 : i32
    %3 = arith.index_cast %2 : i32 to index
    %c0 = arith.constant 0 : index
    %4 = vector.load %arg1[%3, %c0] : memref<40x128xf32, #tpu.memory_space<vmem>>, vector<16x128xf32>
    %5 = arith.truncf %4 : vector<16x128xf32> to vector<16x128xbf16>
    %c0_0 = arith.constant 0 : index
    %c0_1 = arith.constant 0 : index
    %c0_2 = arith.constant 0 : index
    %6 = vector.load %arg2[%c0_0, %c0_1, %c0_2] : memref<4x128x32xbf16, #tpu.memory_space<vmem>>, vector<1x128x32xbf16>
    %7 = vector.shape_cast %6 : vector<1x128x32xbf16> to vector<128x32xbf16>
    %cst_3 = arith.constant dense<0.000000e+00> : vector<16x32xf32>
    %8 = tpu.matmul %5, %7, %cst_3 {dimension_numbers = #tpu.dot_dimension_numbers<[1], [0], [0], [1], [0, 0, 1, 1], [], []>} : vector<16x128xbf16>, vector<128x32xbf16>, vector<16x32xf32> -> vector<16x32xf32>
    %9 = arith.addf %1, %8 : vector<16x32xf32>
    %c1_i32 = arith.constant 1 : i32
    %10 = arith.addi %0, %c1_i32 : i32
    %11 = arith.index_cast %10 : i32 to index
    %c0_4 = arith.constant 0 : index
    %12 = vector.load %arg1[%11, %c0_4] : memref<40x128xf32, #tpu.memory_space<vmem>>, vector<16x128xf32>
    %13 = arith.truncf %12 : vector<16x128xf32> to vector<16x128xbf16>
    %c1 = arith.constant 1 : index
    %c0_5 = arith.constant 0 : index
    %c0_6 = arith.constant 0 : index
    %14 = vector.load %arg2[%c1, %c0_5, %c0_6] : memref<4x128x32xbf16, #tpu.memory_space<vmem>>, vector<1x128x32xbf16>
    %15 = vector.shape_cast %14 : vector<1x128x32xbf16> to vector<128x32xbf16>
    %cst_7 = arith.constant dense<0.000000e+00> : vector<16x32xf32>
    %16 = tpu.matmul %13, %15, %cst_7 {dimension_numbers = #tpu.dot_dimension_numbers<[1], [0], [0], [1], [0, 0, 1, 1], [], []>} : vector<16x128xbf16>, vector<128x32xbf16>, vector<16x32xf32> -> vector<16x32xf32>
    %17 = arith.addf %9, %16 : vector<16x32xf32>
    %c3_i32 = arith.constant 3 : i32
    %18 = arith.addi %0, %c3_i32 : i32
    %19 = arith.index_cast %18 : i32 to index
    %c0_8 = arith.constant 0 : index
    %20 = vector.load %arg1[%19, %c0_8] : memref<40x128xf32, #tpu.memory_space<vmem>>, vector<16x128xf32>
    %21 = arith.truncf %20 : vector<16x128xf32> to vector<16x128xbf16>
    %c2 = arith.constant 2 : index
    %c0_9 = arith.constant 0 : index
    %c0_10 = arith.constant 0 : index
    %22 = vector.load %arg2[%c2, %c0_9, %c0_10] : memref<4x128x32xbf16, #tpu.memory_space<vmem>>, vector<1x128x32xbf16>
    %23 = vector.shape_cast %22 : vector<1x128x32xbf16> to vector<128x32xbf16>
    %cst_11 = arith.constant dense<0.000000e+00> : vector<16x32xf32>
    %24 = tpu.matmul %21, %23, %cst_11 {dimension_numbers = #tpu.dot_dimension_numbers<[1], [0], [0], [1], [0, 0, 1, 1], [], []>} : vector<16x128xbf16>, vector<128x32xbf16>, vector<16x32xf32> -> vector<16x32xf32>
    %25 = arith.addf %17, %24 : vector<16x32xf32>
    %c4_i32 = arith.constant 4 : i32
    %26 = arith.addi %0, %c4_i32 : i32
    %27 = arith.index_cast %26 : i32 to index
    %c0_12 = arith.constant 0 : index
    %28 = vector.load %arg1[%27, %c0_12] : memref<40x128xf32, #tpu.memory_space<vmem>>, vector<16x128xf32>
    %29 = arith.truncf %28 : vector<16x128xf32> to vector<16x128xbf16>
    %c3 = arith.constant 3 : index
    %c0_13 = arith.constant 0 : index
    %c0_14 = arith.constant 0 : index
    %30 = vector.load %arg2[%c3, %c0_13, %c0_14] : memref<4x128x32xbf16, #tpu.memory_space<vmem>>, vector<1x128x32xbf16>
    %31 = vector.shape_cast %30 : vector<1x128x32xbf16> to vector<128x32xbf16>
    %cst_15 = arith.constant dense<0.000000e+00> : vector<16x32xf32>
    %32 = tpu.matmul %29, %31, %cst_15 {dimension_numbers = #tpu.dot_dimension_numbers<[1], [0], [0], [1], [0, 0, 1, 1], [], []>} : vector<16x128xbf16>, vector<128x32xbf16>, vector<16x32xf32> -> vector<16x32xf32>
    %33 = arith.addf %25, %32 : vector<16x32xf32>
    %c0_16 = arith.constant 0 : index
    %c0_17 = arith.constant 0 : index
    %34 = vector.load %arg3[%c0_16, %c0_17] : memref<1x32xf32, #tpu.memory_space<vmem>>, vector<1x32xf32>
    %35 = vector.broadcast %34 : vector<1x32xf32> to vector<16x32xf32>
    %36 = arith.addf %33, %35 : vector<16x32xf32>
    %cst_18 = arith.constant 0.000000e+00 : f32
    %37 = vector.broadcast %cst_18 : f32 to vector<16x32xf32>
    %38 = arith.cmpf oge, %36, %37 : vector<16x32xf32>
    %cst_19 = arith.constant 0.00999999977 : f32
    %39 = vector.broadcast %cst_19 : f32 to vector<16x32xf32>
    %40 = arith.mulf %39, %36 : vector<16x32xf32>
    %41 = arith.select %38, %36, %40 : vector<16x32xi1>, vector<16x32xf32>
    %c0_20 = arith.constant 0 : index
    %c0_21 = arith.constant 0 : index
    %42 = vector.load %arg4[%c0_20, %c0_21] : memref<16x32xf32, #tpu.memory_space<vmem>>, vector<16x32xf32>
    tpu.vector_store %arg4[%c0_20, %c0_21], %41 {strides = array<i32>} : memref<16x32xf32, #tpu.memory_space<vmem>>, vector<16x32xf32>,
    return
  }
  func.func @transform_0(%arg0: i32) -> (i32, i32) {
    %c0_i32 = arith.constant 0 : i32
    %c0_i32_0 = arith.constant 0 : i32
    %c0_i32_1 = arith.constant 0 : i32
    return %c0_i32, %c0_i32_0 : i32, i32
  }
  func.func @transform_1(%arg0: i32) -> (i32, i32, i32) {
    %c0_i32 = arith.constant 0 : i32
    %c0_i32_0 = arith.constant 0 : i32
    %c0_i32_1 = arith.constant 0 : i32
    %c0_i32_2 = arith.constant 0 : i32
    return %c0_i32, %c0_i32_0, %c0_i32_1 : i32, i32, i32
  }
  func.func @transform_2(%arg0: i32) -> (i32, i32) {
    %c0_i32 = arith.constant 0 : i32
    %c0_i32_0 = arith.constant 0 : i32
    %c0_i32_1 = arith.constant 0 : i32
    return %c0_i32, %c0_i32_0 : i32, i32
  }
  func.func @transform_3(%arg0: i32) -> (i32, i32) {
    %c0_i32 = arith.constant 0 : i32
    %c0_i32_0 = arith.constant 0 : i32
    return %arg0, %c0_i32 : i32, i32
  }
}

module attributes {stable_mosaic.version = 11 : i64} {
  func.func @_tap_matmul_kernel(%arg0: i32, %arg1: memref<8x16xf32, #tpu.memory_space<vmem>>, %arg2: memref<1x16x128xbf16, #tpu.memory_space<vmem>>, %arg3: memref<1x128xf32, #tpu.memory_space<vmem>>, %arg4: memref<8x128xf32, #tpu.memory_space<vmem>>) attributes {dimension_semantics = [#tpu.dimension_semantics<parallel>], iteration_bounds = array<i64: 1>, scalar_prefetch = 0 : i64, scratch_operands = 0 : i64, tpu.core_type = #tpu.core_type<tc>, window_params = [{pipeline_mode = #tpu.pipeline_mode<synchronous>, transform_indices = @transform_0, window_bounds = array<i64: 8, 16>}, {pipeline_mode = #tpu.pipeline_mode<synchronous>, transform_indices = @transform_1, window_bounds = array<i64: 1, 16, 128>}, {pipeline_mode = #tpu.pipeline_mode<synchronous>, transform_indices = @transform_2, window_bounds = array<i64: 1, 128>}, {transform_indices = @transform_3, window_bounds = array<i64: 8, 128>}]} {
    %c8_i32 = arith.constant 8 : i32
    %0 = arith.muli %arg0, %c8_i32 : i32
    %cst = arith.constant 0.000000e+00 : f32
    %1 = vector.broadcast %cst : f32 to vector<8x128xf32>
    %c0_i32 = arith.constant 0 : i32
    %2 = arith.addi %0, %c0_i32 : i32
    %3 = arith.index_cast %2 : i32 to index
    %c0 = arith.constant 0 : index
    %4 = vector.load %arg1[%3, %c0] : memref<8x16xf32, #tpu.memory_space<vmem>>, vector<8x16xf32>
    %5 = arith.truncf %4 : vector<8x16xf32> to vector<8x16xbf16>
    %c0_0 = arith.constant 0 : index
    %c0_1 = arith.constant 0 : index
    %c0_2 = arith.constant 0 : index
    %6 = vector.load %arg2[%c0_0, %c0_1, %c0_2] : memref<1x16x128xbf16, #tpu.memory_space<vmem>>, vector<1x16x128xbf16>
    %7 = vector.shape_cast %6 : vector<1x16x128xbf16> to vector<16x128xbf16>
    %cst_3 = arith.constant dense<0.000000e+00> : vector<8x128xf32>
    %8 = tpu.matmul %5, %7, %cst_3 {dimension_numbers = #tpu.dot_dimension_numbers<[1], [0], [0], [1], [0, 0, 1, 1], [], []>} : vector<8x16xbf16>, vector<16x128xbf16>, vector<8x128xf32> -> vector<8x128xf32>
    %9 = arith.addf %1, %8 : vector<8x128xf32>
    %c0_4 = arith.constant 0 : index
    %c0_5 = arith.constant 0 : index
    %10 = vector.load %arg3[%c0_4, %c0_5] : memref<1x128xf32, #tpu.memory_space<vmem>>, vector<1x128xf32>
    %11 = vector.broadcast %10 : vector<1x128xf32> to vector<8x128xf32>
    %12 = arith.addf %9, %11 : vector<8x128xf32>
    %c0_6 = arith.constant 0 : index
    %c0_7 = arith.constant 0 : index
    %13 = vector.load %arg4[%c0_6, %c0_7] : memref<8x128xf32, #tpu.memory_space<vmem>>, vector<8x128xf32>
    tpu.vector_store %arg4[%c0_6, %c0_7], %12 {strides = array<i32>} : memref<8x128xf32, #tpu.memory_space<vmem>>, vector<8x128xf32>,
    return
  }
  func.func @transform_0(%arg0: i32) -> (i32, i32) {
    %c0_i32 = arith.constant 0 : i32
    %c0_i32_0 = arith.constant 0 : i32
    %c0_i32_1 = arith.constant 0 : i32
    return %c0_i32, %c0_i32_0 : i32, i32
  }
  func.func @transform_1(%arg0: i32) -> (i32, i32, i32) {
    %c0_i32 = arith.constant 0 : i32
    %c0_i32_0 = arith.constant 0 : i32
    %c0_i32_1 = arith.constant 0 : i32
    %c0_i32_2 = arith.constant 0 : i32
    return %c0_i32, %c0_i32_0, %c0_i32_1 : i32, i32, i32
  }
  func.func @transform_2(%arg0: i32) -> (i32, i32) {
    %c0_i32 = arith.constant 0 : i32
    %c0_i32_0 = arith.constant 0 : i32
    %c0_i32_1 = arith.constant 0 : i32
    return %c0_i32, %c0_i32_0 : i32, i32
  }
  func.func @transform_3(%arg0: i32) -> (i32, i32) {
    %c0_i32 = arith.constant 0 : i32
    %c0_i32_0 = arith.constant 0 : i32
    return %arg0, %c0_i32 : i32, i32
  }
}

module attributes {stable_mosaic.version = 11 : i64} {
  func.func @_tap_matmul_kernel(%arg0: i32, %arg1: memref<8x128xf32, #tpu.memory_space<vmem>>, %arg2: memref<1x128x32xbf16, #tpu.memory_space<vmem>>, %arg3: memref<1x32xf32, #tpu.memory_space<vmem>>, %arg4: memref<8x32xf32, #tpu.memory_space<vmem>>) attributes {dimension_semantics = [#tpu.dimension_semantics<parallel>], iteration_bounds = array<i64: 1>, scalar_prefetch = 0 : i64, scratch_operands = 0 : i64, tpu.core_type = #tpu.core_type<tc>, window_params = [{pipeline_mode = #tpu.pipeline_mode<synchronous>, transform_indices = @transform_0, window_bounds = array<i64: 8, 128>}, {pipeline_mode = #tpu.pipeline_mode<synchronous>, transform_indices = @transform_1, window_bounds = array<i64: 1, 128, 32>}, {pipeline_mode = #tpu.pipeline_mode<synchronous>, transform_indices = @transform_2, window_bounds = array<i64: 1, 32>}, {transform_indices = @transform_3, window_bounds = array<i64: 8, 32>}]} {
    %c8_i32 = arith.constant 8 : i32
    %0 = arith.muli %arg0, %c8_i32 : i32
    %cst = arith.constant 0.000000e+00 : f32
    %1 = vector.broadcast %cst : f32 to vector<8x32xf32>
    %c0_i32 = arith.constant 0 : i32
    %2 = arith.addi %0, %c0_i32 : i32
    %3 = arith.index_cast %2 : i32 to index
    %c0 = arith.constant 0 : index
    %4 = vector.load %arg1[%3, %c0] : memref<8x128xf32, #tpu.memory_space<vmem>>, vector<8x128xf32>
    %5 = arith.truncf %4 : vector<8x128xf32> to vector<8x128xbf16>
    %c0_0 = arith.constant 0 : index
    %c0_1 = arith.constant 0 : index
    %c0_2 = arith.constant 0 : index
    %6 = vector.load %arg2[%c0_0, %c0_1, %c0_2] : memref<1x128x32xbf16, #tpu.memory_space<vmem>>, vector<1x128x32xbf16>
    %7 = vector.shape_cast %6 : vector<1x128x32xbf16> to vector<128x32xbf16>
    %cst_3 = arith.constant dense<0.000000e+00> : vector<8x32xf32>
    %8 = tpu.matmul %5, %7, %cst_3 {dimension_numbers = #tpu.dot_dimension_numbers<[1], [0], [0], [1], [0, 0, 1, 1], [], []>} : vector<8x128xbf16>, vector<128x32xbf16>, vector<8x32xf32> -> vector<8x32xf32>
    %9 = arith.addf %1, %8 : vector<8x32xf32>
    %c0_4 = arith.constant 0 : index
    %c0_5 = arith.constant 0 : index
    %10 = vector.load %arg3[%c0_4, %c0_5] : memref<1x32xf32, #tpu.memory_space<vmem>>, vector<1x32xf32>
    %11 = vector.broadcast %10 : vector<1x32xf32> to vector<8x32xf32>
    %12 = arith.addf %9, %11 : vector<8x32xf32>
    %c0_6 = arith.constant 0 : index
    %c0_7 = arith.constant 0 : index
    %13 = vector.load %arg4[%c0_6, %c0_7] : memref<8x32xf32, #tpu.memory_space<vmem>>, vector<8x32xf32>
    tpu.vector_store %arg4[%c0_6, %c0_7], %12 {strides = array<i32>} : memref<8x32xf32, #tpu.memory_space<vmem>>, vector<8x32xf32>,
    return
  }
  func.func @transform_0(%arg0: i32) -> (i32, i32) {
    %c0_i32 = arith.constant 0 : i32
    %c0_i32_0 = arith.constant 0 : i32
    %c0_i32_1 = arith.constant 0 : i32
    return %c0_i32, %c0_i32_0 : i32, i32
  }
  func.func @transform_1(%arg0: i32) -> (i32, i32, i32) {
    %c0_i32 = arith.constant 0 : i32
    %c0_i32_0 = arith.constant 0 : i32
    %c0_i32_1 = arith.constant 0 : i32
    %c0_i32_2 = arith.constant 0 : i32
    return %c0_i32, %c0_i32_0, %c0_i32_1 : i32, i32, i32
  }
  func.func @transform_2(%arg0: i32) -> (i32, i32) {
    %c0_i32 = arith.constant 0 : i32
    %c0_i32_0 = arith.constant 0 : i32
    %c0_i32_1 = arith.constant 0 : i32
    return %c0_i32, %c0_i32_0 : i32, i32
  }
  func.func @transform_3(%arg0: i32) -> (i32, i32) {
    %c0_i32 = arith.constant 0 : i32
    %c0_i32_0 = arith.constant 0 : i32
    return %arg0, %c0_i32 : i32, i32
  }
}

module attributes {stable_mosaic.version = 11 : i64} {
  func.func @_tap_matmul_kernel(%arg0: i32, %arg1: memref<72x32xf32, #tpu.memory_space<vmem>>, %arg2: memref<4x32x128xbf16, #tpu.memory_space<vmem>>, %arg3: memref<1x128xf32, #tpu.memory_space<vmem>>, %arg4: memref<32x128xf32, #tpu.memory_space<vmem>>) attributes {dimension_semantics = [#tpu.dimension_semantics<parallel>], iteration_bounds = array<i64: 2>, scalar_prefetch = 0 : i64, scratch_operands = 0 : i64, tpu.core_type = #tpu.core_type<tc>, window_params = [{pipeline_mode = #tpu.pipeline_mode<synchronous>, transform_indices = @transform_0, window_bounds = array<i64: 72, 32>}, {pipeline_mode = #tpu.pipeline_mode<synchronous>, transform_indices = @transform_1, window_bounds = array<i64: 4, 32, 128>}, {pipeline_mode = #tpu.pipeline_mode<synchronous>, transform_indices = @transform_2, window_bounds = array<i64: 1, 128>}, {transform_indices = @transform_3, window_bounds = array<i64: 32, 128>}]} {
    %c32_i32 = arith.constant 32 : i32
    %0 = arith.muli %arg0, %c32_i32 : i32
    %cst = arith.constant 0.000000e+00 : f32
    %1 = vector.broadcast %cst : f32 to vector<32x128xf32>
    %c0_i32 = arith.constant 0 : i32
    %2 = arith.addi %0, %c0_i32 : i32
    %3 = arith.index_cast %2 : i32 to index
    %c0 = arith.constant 0 : index
    %4 = vector.load %arg1[%3, %c0] : memref<72x32xf32, #tpu.memory_space<vmem>>, vector<32x32xf32>
    %5 = arith.truncf %4 : vector<32x32xf32> to vector<32x32xbf16>
    %c0_0 = arith.constant 0 : index
    %c0_1 = arith.constant 0 : index
    %c0_2 = arith.constant 0 : index
    %6 = vector.load %arg2[%c0_0, %c0_1, %c0_2] : memref<4x32x128xbf16, #tpu.memory_space<vmem>>, vector<1x32x128xbf16>
    %7 = vector.shape_cast %6 : vector<1x32x128xbf16> to vector<32x128xbf16>
    %cst_3 = arith.constant dense<0.000000e+00> : vector<32x128xf32>
    %8 = tpu.matmul %5, %7, %cst_3 {dimension_numbers = #tpu.dot_dimension_numbers<[1], [0], [0], [1], [0, 0, 1, 1], [], []>} : vector<32x32xbf16>, vector<32x128xbf16>, vector<32x128xf32> -> vector<32x128xf32>
    %9 = arith.addf %1, %8 : vector<32x128xf32>
    %c1_i32 = arith.constant 1 : i32
    %10 = arith.addi %0, %c1_i32 : i32
    %11 = arith.index_cast %10 : i32 to index
    %c0_4 = arith.constant 0 : index
    %12 = vector.load %arg1[%11, %c0_4] : memref<72x32xf32, #tpu.memory_space<vmem>>, vector<32x32xf32>
    %13 = arith.truncf %12 : vector<32x32xf32> to vector<32x32xbf16>
    %c1 = arith.constant 1 : index
    %c0_5 = arith.constant 0 : index
    %c0_6 = arith.constant 0 : index
    %14 = vector.load %arg2[%c1, %c0_5, %c0_6] : memref<4x32x128xbf16, #tpu.memory_space<vmem>>, vector<1x32x128xbf16>
    %15 = vector.shape_cast %14 : vector<1x32x128xbf16> to vector<32x128xbf16>
    %cst_7 = arith.constant dense<0.000000e+00> : vector<32x128xf32>
    %16 = tpu.matmul %13, %15, %cst_7 {dimension_numbers = #tpu.dot_dimension_numbers<[1], [0], [0], [1], [0, 0, 1, 1], [], []>} : vector<32x32xbf16>, vector<32x128xbf16>, vector<32x128xf32> -> vector<32x128xf32>
    %17 = arith.addf %9, %16 : vector<32x128xf32>
    %c5_i32 = arith.constant 5 : i32
    %18 = arith.addi %0, %c5_i32 : i32
    %19 = arith.index_cast %18 : i32 to index
    %c0_8 = arith.constant 0 : index
    %20 = vector.load %arg1[%19, %c0_8] : memref<72x32xf32, #tpu.memory_space<vmem>>, vector<32x32xf32>
    %21 = arith.truncf %20 : vector<32x32xf32> to vector<32x32xbf16>
    %c2 = arith.constant 2 : index
    %c0_9 = arith.constant 0 : index
    %c0_10 = arith.constant 0 : index
    %22 = vector.load %arg2[%c2, %c0_9, %c0_10] : memref<4x32x128xbf16, #tpu.memory_space<vmem>>, vector<1x32x128xbf16>
    %23 = vector.shape_cast %22 : vector<1x32x128xbf16> to vector<32x128xbf16>
    %cst_11 = arith.constant dense<0.000000e+00> : vector<32x128xf32>
    %24 = tpu.matmul %21, %23, %cst_11 {dimension_numbers = #tpu.dot_dimension_numbers<[1], [0], [0], [1], [0, 0, 1, 1], [], []>} : vector<32x32xbf16>, vector<32x128xbf16>, vector<32x128xf32> -> vector<32x128xf32>
    %25 = arith.addf %17, %24 : vector<32x128xf32>
    %c6_i32 = arith.constant 6 : i32
    %26 = arith.addi %0, %c6_i32 : i32
    %27 = arith.index_cast %26 : i32 to index
    %c0_12 = arith.constant 0 : index
    %28 = vector.load %arg1[%27, %c0_12] : memref<72x32xf32, #tpu.memory_space<vmem>>, vector<32x32xf32>
    %29 = arith.truncf %28 : vector<32x32xf32> to vector<32x32xbf16>
    %c3 = arith.constant 3 : index
    %c0_13 = arith.constant 0 : index
    %c0_14 = arith.constant 0 : index
    %30 = vector.load %arg2[%c3, %c0_13, %c0_14] : memref<4x32x128xbf16, #tpu.memory_space<vmem>>, vector<1x32x128xbf16>
    %31 = vector.shape_cast %30 : vector<1x32x128xbf16> to vector<32x128xbf16>
    %cst_15 = arith.constant dense<0.000000e+00> : vector<32x128xf32>
    %32 = tpu.matmul %29, %31, %cst_15 {dimension_numbers = #tpu.dot_dimension_numbers<[1], [0], [0], [1], [0, 0, 1, 1], [], []>} : vector<32x32xbf16>, vector<32x128xbf16>, vector<32x128xf32> -> vector<32x128xf32>
    %33 = arith.addf %25, %32 : vector<32x128xf32>
    %c0_16 = arith.constant 0 : index
    %c0_17 = arith.constant 0 : index
    %34 = vector.load %arg3[%c0_16, %c0_17] : memref<1x128xf32, #tpu.memory_space<vmem>>, vector<1x128xf32>
    %35 = vector.broadcast %34 : vector<1x128xf32> to vector<32x128xf32>
    %36 = arith.addf %33, %35 : vector<32x128xf32>
    %cst_18 = arith.constant 0.000000e+00 : f32
    %37 = vector.broadcast %cst_18 : f32 to vector<32x128xf32>
    %38 = arith.cmpf oge, %36, %37 : vector<32x128xf32>
    %cst_19 = arith.constant 0.00999999977 : f32
    %39 = vector.broadcast %cst_19 : f32 to vector<32x128xf32>
    %40 = arith.mulf %39, %36 : vector<32x128xf32>
    %41 = arith.select %38, %36, %40 : vector<32x128xi1>, vector<32x128xf32>
    %c0_20 = arith.constant 0 : index
    %c0_21 = arith.constant 0 : index
    %42 = vector.load %arg4[%c0_20, %c0_21] : memref<32x128xf32, #tpu.memory_space<vmem>>, vector<32x128xf32>
    tpu.vector_store %arg4[%c0_20, %c0_21], %41 {strides = array<i32>} : memref<32x128xf32, #tpu.memory_space<vmem>>, vector<32x128xf32>,
    return
  }
  func.func @transform_0(%arg0: i32) -> (i32, i32) {
    %c0_i32 = arith.constant 0 : i32
    %c0_i32_0 = arith.constant 0 : i32
    %c0_i32_1 = arith.constant 0 : i32
    return %c0_i32, %c0_i32_0 : i32, i32
  }
  func.func @transform_1(%arg0: i32) -> (i32, i32, i32) {
    %c0_i32 = arith.constant 0 : i32
    %c0_i32_0 = arith.constant 0 : i32
    %c0_i32_1 = arith.constant 0 : i32
    %c0_i32_2 = arith.constant 0 : i32
    return %c0_i32, %c0_i32_0, %c0_i32_1 : i32, i32, i32
  }
  func.func @transform_2(%arg0: i32) -> (i32, i32) {
    %c0_i32 = arith.constant 0 : i32
    %c0_i32_0 = arith.constant 0 : i32
    %c0_i32_1 = arith.constant 0 : i32
    return %c0_i32, %c0_i32_0 : i32, i32
  }
  func.func @transform_3(%arg0: i32) -> (i32, i32) {
    %c0_i32 = arith.constant 0 : i32
    %c0_i32_0 = arith.constant 0 : i32
    return %arg0, %c0_i32 : i32, i32
  }
}

module attributes {stable_mosaic.version = 11 : i64} {
  func.func @_tap_matmul_kernel(%arg0: i32, %arg1: memref<40x32xf32, #tpu.memory_space<vmem>>, %arg2: memref<4x32x128xbf16, #tpu.memory_space<vmem>>, %arg3: memref<1x128xf32, #tpu.memory_space<vmem>>, %arg4: memref<16x128xf32, #tpu.memory_space<vmem>>) attributes {dimension_semantics = [#tpu.dimension_semantics<parallel>], iteration_bounds = array<i64: 2>, scalar_prefetch = 0 : i64, scratch_operands = 0 : i64, tpu.core_type = #tpu.core_type<tc>, window_params = [{pipeline_mode = #tpu.pipeline_mode<synchronous>, transform_indices = @transform_0, window_bounds = array<i64: 40, 32>}, {pipeline_mode = #tpu.pipeline_mode<synchronous>, transform_indices = @transform_1, window_bounds = array<i64: 4, 32, 128>}, {pipeline_mode = #tpu.pipeline_mode<synchronous>, transform_indices = @transform_2, window_bounds = array<i64: 1, 128>}, {transform_indices = @transform_3, window_bounds = array<i64: 16, 128>}]} {
    %c16_i32 = arith.constant 16 : i32
    %0 = arith.muli %arg0, %c16_i32 : i32
    %cst = arith.constant 0.000000e+00 : f32
    %1 = vector.broadcast %cst : f32 to vector<16x128xf32>
    %c0_i32 = arith.constant 0 : i32
    %2 = arith.addi %0, %c0_i32 : i32
    %3 = arith.index_cast %2 : i32 to index
    %c0 = arith.constant 0 : index
    %4 = vector.load %arg1[%3, %c0] : memref<40x32xf32, #tpu.memory_space<vmem>>, vector<16x32xf32>
    %5 = arith.truncf %4 : vector<16x32xf32> to vector<16x32xbf16>
    %c0_0 = arith.constant 0 : index
    %c0_1 = arith.constant 0 : index
    %c0_2 = arith.constant 0 : index
    %6 = vector.load %arg2[%c0_0, %c0_1, %c0_2] : memref<4x32x128xbf16, #tpu.memory_space<vmem>>, vector<1x32x128xbf16>
    %7 = vector.shape_cast %6 : vector<1x32x128xbf16> to vector<32x128xbf16>
    %cst_3 = arith.constant dense<0.000000e+00> : vector<16x128xf32>
    %8 = tpu.matmul %5, %7, %cst_3 {dimension_numbers = #tpu.dot_dimension_numbers<[1], [0], [0], [1], [0, 0, 1, 1], [], []>} : vector<16x32xbf16>, vector<32x128xbf16>, vector<16x128xf32> -> vector<16x128xf32>
    %9 = arith.addf %1, %8 : vector<16x128xf32>
    %c1_i32 = arith.constant 1 : i32
    %10 = arith.addi %0, %c1_i32 : i32
    %11 = arith.index_cast %10 : i32 to index
    %c0_4 = arith.constant 0 : index
    %12 = vector.load %arg1[%11, %c0_4] : memref<40x32xf32, #tpu.memory_space<vmem>>, vector<16x32xf32>
    %13 = arith.truncf %12 : vector<16x32xf32> to vector<16x32xbf16>
    %c1 = arith.constant 1 : index
    %c0_5 = arith.constant 0 : index
    %c0_6 = arith.constant 0 : index
    %14 = vector.load %arg2[%c1, %c0_5, %c0_6] : memref<4x32x128xbf16, #tpu.memory_space<vmem>>, vector<1x32x128xbf16>
    %15 = vector.shape_cast %14 : vector<1x32x128xbf16> to vector<32x128xbf16>
    %cst_7 = arith.constant dense<0.000000e+00> : vector<16x128xf32>
    %16 = tpu.matmul %13, %15, %cst_7 {dimension_numbers = #tpu.dot_dimension_numbers<[1], [0], [0], [1], [0, 0, 1, 1], [], []>} : vector<16x32xbf16>, vector<32x128xbf16>, vector<16x128xf32> -> vector<16x128xf32>
    %17 = arith.addf %9, %16 : vector<16x128xf32>
    %c3_i32 = arith.constant 3 : i32
    %18 = arith.addi %0, %c3_i32 : i32
    %19 = arith.index_cast %18 : i32 to index
    %c0_8 = arith.constant 0 : index
    %20 = vector.load %arg1[%19, %c0_8] : memref<40x32xf32, #tpu.memory_space<vmem>>, vector<16x32xf32>
    %21 = arith.truncf %20 : vector<16x32xf32> to vector<16x32xbf16>
    %c2 = arith.constant 2 : index
    %c0_9 = arith.constant 0 : index
    %c0_10 = arith.constant 0 : index
    %22 = vector.load %arg2[%c2, %c0_9, %c0_10] : memref<4x32x128xbf16, #tpu.memory_space<vmem>>, vector<1x32x128xbf16>
    %23 = vector.shape_cast %22 : vector<1x32x128xbf16> to vector<32x128xbf16>
    %cst_11 = arith.constant dense<0.000000e+00> : vector<16x128xf32>
    %24 = tpu.matmul %21, %23, %cst_11 {dimension_numbers = #tpu.dot_dimension_numbers<[1], [0], [0], [1], [0, 0, 1, 1], [], []>} : vector<16x32xbf16>, vector<32x128xbf16>, vector<16x128xf32> -> vector<16x128xf32>
    %25 = arith.addf %17, %24 : vector<16x128xf32>
    %c4_i32 = arith.constant 4 : i32
    %26 = arith.addi %0, %c4_i32 : i32
    %27 = arith.index_cast %26 : i32 to index
    %c0_12 = arith.constant 0 : index
    %28 = vector.load %arg1[%27, %c0_12] : memref<40x32xf32, #tpu.memory_space<vmem>>, vector<16x32xf32>
    %29 = arith.truncf %28 : vector<16x32xf32> to vector<16x32xbf16>
    %c3 = arith.constant 3 : index
    %c0_13 = arith.constant 0 : index
    %c0_14 = arith.constant 0 : index
    %30 = vector.load %arg2[%c3, %c0_13, %c0_14] : memref<4x32x128xbf16, #tpu.memory_space<vmem>>, vector<1x32x128xbf16>
    %31 = vector.shape_cast %30 : vector<1x32x128xbf16> to vector<32x128xbf16>
    %cst_15 = arith.constant dense<0.000000e+00> : vector<16x128xf32>
    %32 = tpu.matmul %29, %31, %cst_15 {dimension_numbers = #tpu.dot_dimension_numbers<[1], [0], [0], [1], [0, 0, 1, 1], [], []>} : vector<16x32xbf16>, vector<32x128xbf16>, vector<16x128xf32> -> vector<16x128xf32>
    %33 = arith.addf %25, %32 : vector<16x128xf32>
    %c0_16 = arith.constant 0 : index
    %c0_17 = arith.constant 0 : index
    %34 = vector.load %arg3[%c0_16, %c0_17] : memref<1x128xf32, #tpu.memory_space<vmem>>, vector<1x128xf32>
    %35 = vector.broadcast %34 : vector<1x128xf32> to vector<16x128xf32>
    %36 = arith.addf %33, %35 : vector<16x128xf32>
    %cst_18 = arith.constant 0.000000e+00 : f32
    %37 = vector.broadcast %cst_18 : f32 to vector<16x128xf32>
    %38 = arith.cmpf oge, %36, %37 : vector<16x128xf32>
    %cst_19 = arith.constant 0.00999999977 : f32
    %39 = vector.broadcast %cst_19 : f32 to vector<16x128xf32>
    %40 = arith.mulf %39, %36 : vector<16x128xf32>
    %41 = arith.select %38, %36, %40 : vector<16x128xi1>, vector<16x128xf32>
    %c0_20 = arith.constant 0 : index
    %c0_21 = arith.constant 0 : index
    %42 = vector.load %arg4[%c0_20, %c0_21] : memref<16x128xf32, #tpu.memory_space<vmem>>, vector<16x128xf32>
    tpu.vector_store %arg4[%c0_20, %c0_21], %41 {strides = array<i32>} : memref<16x128xf32, #tpu.memory_space<vmem>>, vector<16x128xf32>,
    return
  }
  func.func @transform_0(%arg0: i32) -> (i32, i32) {
    %c0_i32 = arith.constant 0 : i32
    %c0_i32_0 = arith.constant 0 : i32
    %c0_i32_1 = arith.constant 0 : i32
    return %c0_i32, %c0_i32_0 : i32, i32
  }
  func.func @transform_1(%arg0: i32) -> (i32, i32, i32) {
    %c0_i32 = arith.constant 0 : i32
    %c0_i32_0 = arith.constant 0 : i32
    %c0_i32_1 = arith.constant 0 : i32
    %c0_i32_2 = arith.constant 0 : i32
    return %c0_i32, %c0_i32_0, %c0_i32_1 : i32, i32, i32
  }
  func.func @transform_2(%arg0: i32) -> (i32, i32) {
    %c0_i32 = arith.constant 0 : i32
    %c0_i32_0 = arith.constant 0 : i32
    %c0_i32_1 = arith.constant 0 : i32
    return %c0_i32, %c0_i32_0 : i32, i32
  }
  func.func @transform_3(%arg0: i32) -> (i32, i32) {
    %c0_i32 = arith.constant 0 : i32
    %c0_i32_0 = arith.constant 0 : i32
    return %arg0, %c0_i32 : i32, i32
  }
}

module attributes {stable_mosaic.version = 11 : i64} {
  func.func @_tap_matmul_kernel(%arg0: i32, %arg1: memref<192x32xf32, #tpu.memory_space<vmem>>, %arg2: memref<4x32x64xbf16, #tpu.memory_space<vmem>>, %arg3: memref<1x64xf32, #tpu.memory_space<vmem>>, %arg4: memref<88x64xf32, #tpu.memory_space<vmem>>) attributes {dimension_semantics = [#tpu.dimension_semantics<parallel>], iteration_bounds = array<i64: 2>, scalar_prefetch = 0 : i64, scratch_operands = 0 : i64, tpu.core_type = #tpu.core_type<tc>, window_params = [{pipeline_mode = #tpu.pipeline_mode<synchronous>, transform_indices = @transform_0, window_bounds = array<i64: 192, 32>}, {pipeline_mode = #tpu.pipeline_mode<synchronous>, transform_indices = @transform_1, window_bounds = array<i64: 4, 32, 64>}, {pipeline_mode = #tpu.pipeline_mode<synchronous>, transform_indices = @transform_2, window_bounds = array<i64: 1, 64>}, {transform_indices = @transform_3, window_bounds = array<i64: 88, 64>}]} {
    %c88_i32 = arith.constant 88 : i32
    %0 = arith.muli %arg0, %c88_i32 : i32
    %cst = arith.constant 0.000000e+00 : f32
    %1 = vector.broadcast %cst : f32 to vector<88x64xf32>
    %c0_i32 = arith.constant 0 : i32
    %2 = arith.addi %0, %c0_i32 : i32
    %3 = arith.index_cast %2 : i32 to index
    %c0 = arith.constant 0 : index
    %4 = vector.load %arg1[%3, %c0] : memref<192x32xf32, #tpu.memory_space<vmem>>, vector<88x32xf32>
    %5 = arith.truncf %4 : vector<88x32xf32> to vector<88x32xbf16>
    %c0_0 = arith.constant 0 : index
    %c0_1 = arith.constant 0 : index
    %c0_2 = arith.constant 0 : index
    %6 = vector.load %arg2[%c0_0, %c0_1, %c0_2] : memref<4x32x64xbf16, #tpu.memory_space<vmem>>, vector<1x32x64xbf16>
    %7 = vector.shape_cast %6 : vector<1x32x64xbf16> to vector<32x64xbf16>
    %cst_3 = arith.constant dense<0.000000e+00> : vector<88x64xf32>
    %8 = tpu.matmul %5, %7, %cst_3 {dimension_numbers = #tpu.dot_dimension_numbers<[1], [0], [0], [1], [0, 0, 1, 1], [], []>} : vector<88x32xbf16>, vector<32x64xbf16>, vector<88x64xf32> -> vector<88x64xf32>
    %9 = arith.addf %1, %8 : vector<88x64xf32>
    %c1_i32 = arith.constant 1 : i32
    %10 = arith.addi %0, %c1_i32 : i32
    %11 = arith.index_cast %10 : i32 to index
    %c0_4 = arith.constant 0 : index
    %12 = vector.load %arg1[%11, %c0_4] : memref<192x32xf32, #tpu.memory_space<vmem>>, vector<88x32xf32>
    %13 = arith.truncf %12 : vector<88x32xf32> to vector<88x32xbf16>
    %c1 = arith.constant 1 : index
    %c0_5 = arith.constant 0 : index
    %c0_6 = arith.constant 0 : index
    %14 = vector.load %arg2[%c1, %c0_5, %c0_6] : memref<4x32x64xbf16, #tpu.memory_space<vmem>>, vector<1x32x64xbf16>
    %15 = vector.shape_cast %14 : vector<1x32x64xbf16> to vector<32x64xbf16>
    %cst_7 = arith.constant dense<0.000000e+00> : vector<88x64xf32>
    %16 = tpu.matmul %13, %15, %cst_7 {dimension_numbers = #tpu.dot_dimension_numbers<[1], [0], [0], [1], [0, 0, 1, 1], [], []>} : vector<88x32xbf16>, vector<32x64xbf16>, vector<88x64xf32> -> vector<88x64xf32>
    %17 = arith.addf %9, %16 : vector<88x64xf32>
    %c9_i32 = arith.constant 9 : i32
    %18 = arith.addi %0, %c9_i32 : i32
    %19 = arith.index_cast %18 : i32 to index
    %c0_8 = arith.constant 0 : index
    %20 = vector.load %arg1[%19, %c0_8] : memref<192x32xf32, #tpu.memory_space<vmem>>, vector<88x32xf32>
    %21 = arith.truncf %20 : vector<88x32xf32> to vector<88x32xbf16>
    %c2 = arith.constant 2 : index
    %c0_9 = arith.constant 0 : index
    %c0_10 = arith.constant 0 : index
    %22 = vector.load %arg2[%c2, %c0_9, %c0_10] : memref<4x32x64xbf16, #tpu.memory_space<vmem>>, vector<1x32x64xbf16>
    %23 = vector.shape_cast %22 : vector<1x32x64xbf16> to vector<32x64xbf16>
    %cst_11 = arith.constant dense<0.000000e+00> : vector<88x64xf32>
    %24 = tpu.matmul %21, %23, %cst_11 {dimension_numbers = #tpu.dot_dimension_numbers<[1], [0], [0], [1], [0, 0, 1, 1], [], []>} : vector<88x32xbf16>, vector<32x64xbf16>, vector<88x64xf32> -> vector<88x64xf32>
    %25 = arith.addf %17, %24 : vector<88x64xf32>
    %c10_i32 = arith.constant 10 : i32
    %26 = arith.addi %0, %c10_i32 : i32
    %27 = arith.index_cast %26 : i32 to index
    %c0_12 = arith.constant 0 : index
    %28 = vector.load %arg1[%27, %c0_12] : memref<192x32xf32, #tpu.memory_space<vmem>>, vector<88x32xf32>
    %29 = arith.truncf %28 : vector<88x32xf32> to vector<88x32xbf16>
    %c3 = arith.constant 3 : index
    %c0_13 = arith.constant 0 : index
    %c0_14 = arith.constant 0 : index
    %30 = vector.load %arg2[%c3, %c0_13, %c0_14] : memref<4x32x64xbf16, #tpu.memory_space<vmem>>, vector<1x32x64xbf16>
    %31 = vector.shape_cast %30 : vector<1x32x64xbf16> to vector<32x64xbf16>
    %cst_15 = arith.constant dense<0.000000e+00> : vector<88x64xf32>
    %32 = tpu.matmul %29, %31, %cst_15 {dimension_numbers = #tpu.dot_dimension_numbers<[1], [0], [0], [1], [0, 0, 1, 1], [], []>} : vector<88x32xbf16>, vector<32x64xbf16>, vector<88x64xf32> -> vector<88x64xf32>
    %33 = arith.addf %25, %32 : vector<88x64xf32>
    %c0_16 = arith.constant 0 : index
    %c0_17 = arith.constant 0 : index
    %34 = vector.load %arg3[%c0_16, %c0_17] : memref<1x64xf32, #tpu.memory_space<vmem>>, vector<1x64xf32>
    %35 = vector.broadcast %34 : vector<1x64xf32> to vector<88x64xf32>
    %36 = arith.addf %33, %35 : vector<88x64xf32>
    %cst_18 = arith.constant 0.000000e+00 : f32
    %37 = vector.broadcast %cst_18 : f32 to vector<88x64xf32>
    %38 = arith.cmpf oge, %36, %37 : vector<88x64xf32>
    %cst_19 = arith.constant 0.00999999977 : f32
    %39 = vector.broadcast %cst_19 : f32 to vector<88x64xf32>
    %40 = arith.mulf %39, %36 : vector<88x64xf32>
    %41 = arith.select %38, %36, %40 : vector<88x64xi1>, vector<88x64xf32>
    %c0_20 = arith.constant 0 : index
    %c0_21 = arith.constant 0 : index
    %42 = vector.load %arg4[%c0_20, %c0_21] : memref<88x64xf32, #tpu.memory_space<vmem>>, vector<88x64xf32>
    tpu.vector_store %arg4[%c0_20, %c0_21], %41 {strides = array<i32>} : memref<88x64xf32, #tpu.memory_space<vmem>>, vector<88x64xf32>,
    return
  }
  func.func @transform_0(%arg0: i32) -> (i32, i32) {
    %c0_i32 = arith.constant 0 : i32
    %c0_i32_0 = arith.constant 0 : i32
    %c0_i32_1 = arith.constant 0 : i32
    return %c0_i32, %c0_i32_0 : i32, i32
  }
  func.func @transform_1(%arg0: i32) -> (i32, i32, i32) {
    %c0_i32 = arith.constant 0 : i32
    %c0_i32_0 = arith.constant 0 : i32
    %c0_i32_1 = arith.constant 0 : i32
    %c0_i32_2 = arith.constant 0 : i32
    return %c0_i32, %c0_i32_0, %c0_i32_1 : i32, i32, i32
  }
  func.func @transform_2(%arg0: i32) -> (i32, i32) {
    %c0_i32 = arith.constant 0 : i32
    %c0_i32_0 = arith.constant 0 : i32
    %c0_i32_1 = arith.constant 0 : i32
    return %c0_i32, %c0_i32_0 : i32, i32
  }
  func.func @transform_3(%arg0: i32) -> (i32, i32) {
    %c0_i32 = arith.constant 0 : i32
    %c0_i32_0 = arith.constant 0 : i32
    return %arg0, %c0_i32 : i32, i32
  }
}

module attributes {stable_mosaic.version = 11 : i64} {
  func.func @_tap_matmul_kernel(%arg0: i32, %arg1: memref<792x16xf32, #tpu.memory_space<vmem>>, %arg2: memref<4x16x32xbf16, #tpu.memory_space<vmem>>, %arg3: memref<1x32xf32, #tpu.memory_space<vmem>>, %arg4: memref<256x32xf32, #tpu.memory_space<vmem>>) attributes {dimension_semantics = [#tpu.dimension_semantics<parallel>], iteration_bounds = array<i64: 3>, scalar_prefetch = 0 : i64, scratch_operands = 0 : i64, tpu.core_type = #tpu.core_type<tc>, window_params = [{pipeline_mode = #tpu.pipeline_mode<synchronous>, transform_indices = @transform_0, window_bounds = array<i64: 792, 16>}, {pipeline_mode = #tpu.pipeline_mode<synchronous>, transform_indices = @transform_1, window_bounds = array<i64: 4, 16, 32>}, {pipeline_mode = #tpu.pipeline_mode<synchronous>, transform_indices = @transform_2, window_bounds = array<i64: 1, 32>}, {transform_indices = @transform_3, window_bounds = array<i64: 256, 32>}]} {
    %c256_i32 = arith.constant 256 : i32
    %0 = arith.muli %arg0, %c256_i32 : i32
    %cst = arith.constant 0.000000e+00 : f32
    %1 = vector.broadcast %cst : f32 to vector<256x32xf32>
    %c0_i32 = arith.constant 0 : i32
    %2 = arith.addi %0, %c0_i32 : i32
    %3 = arith.index_cast %2 : i32 to index
    %c0 = arith.constant 0 : index
    %4 = vector.load %arg1[%3, %c0] : memref<792x16xf32, #tpu.memory_space<vmem>>, vector<256x16xf32>
    %5 = arith.truncf %4 : vector<256x16xf32> to vector<256x16xbf16>
    %c0_0 = arith.constant 0 : index
    %c0_1 = arith.constant 0 : index
    %c0_2 = arith.constant 0 : index
    %6 = vector.load %arg2[%c0_0, %c0_1, %c0_2] : memref<4x16x32xbf16, #tpu.memory_space<vmem>>, vector<1x16x32xbf16>
    %7 = vector.shape_cast %6 : vector<1x16x32xbf16> to vector<16x32xbf16>
    %cst_3 = arith.constant dense<0.000000e+00> : vector<256x32xf32>
    %8 = tpu.matmul %5, %7, %cst_3 {dimension_numbers = #tpu.dot_dimension_numbers<[1], [0], [0], [1], [0, 0, 1, 1], [], []>} : vector<256x16xbf16>, vector<16x32xbf16>, vector<256x32xf32> -> vector<256x32xf32>
    %9 = arith.addf %1, %8 : vector<256x32xf32>
    %c1_i32 = arith.constant 1 : i32
    %10 = arith.addi %0, %c1_i32 : i32
    %11 = arith.index_cast %10 : i32 to index
    %c0_4 = arith.constant 0 : index
    %12 = vector.load %arg1[%11, %c0_4] : memref<792x16xf32, #tpu.memory_space<vmem>>, vector<256x16xf32>
    %13 = arith.truncf %12 : vector<256x16xf32> to vector<256x16xbf16>
    %c1 = arith.constant 1 : index
    %c0_5 = arith.constant 0 : index
    %c0_6 = arith.constant 0 : index
    %14 = vector.load %arg2[%c1, %c0_5, %c0_6] : memref<4x16x32xbf16, #tpu.memory_space<vmem>>, vector<1x16x32xbf16>
    %15 = vector.shape_cast %14 : vector<1x16x32xbf16> to vector<16x32xbf16>
    %cst_7 = arith.constant dense<0.000000e+00> : vector<256x32xf32>
    %16 = tpu.matmul %13, %15, %cst_7 {dimension_numbers = #tpu.dot_dimension_numbers<[1], [0], [0], [1], [0, 0, 1, 1], [], []>} : vector<256x16xbf16>, vector<16x32xbf16>, vector<256x32xf32> -> vector<256x32xf32>
    %17 = arith.addf %9, %16 : vector<256x32xf32>
    %c17_i32 = arith.constant 17 : i32
    %18 = arith.addi %0, %c17_i32 : i32
    %19 = arith.index_cast %18 : i32 to index
    %c0_8 = arith.constant 0 : index
    %20 = vector.load %arg1[%19, %c0_8] : memref<792x16xf32, #tpu.memory_space<vmem>>, vector<256x16xf32>
    %21 = arith.truncf %20 : vector<256x16xf32> to vector<256x16xbf16>
    %c2 = arith.constant 2 : index
    %c0_9 = arith.constant 0 : index
    %c0_10 = arith.constant 0 : index
    %22 = vector.load %arg2[%c2, %c0_9, %c0_10] : memref<4x16x32xbf16, #tpu.memory_space<vmem>>, vector<1x16x32xbf16>
    %23 = vector.shape_cast %22 : vector<1x16x32xbf16> to vector<16x32xbf16>
    %cst_11 = arith.constant dense<0.000000e+00> : vector<256x32xf32>
    %24 = tpu.matmul %21, %23, %cst_11 {dimension_numbers = #tpu.dot_dimension_numbers<[1], [0], [0], [1], [0, 0, 1, 1], [], []>} : vector<256x16xbf16>, vector<16x32xbf16>, vector<256x32xf32> -> vector<256x32xf32>
    %25 = arith.addf %17, %24 : vector<256x32xf32>
    %c18_i32 = arith.constant 18 : i32
    %26 = arith.addi %0, %c18_i32 : i32
    %27 = arith.index_cast %26 : i32 to index
    %c0_12 = arith.constant 0 : index
    %28 = vector.load %arg1[%27, %c0_12] : memref<792x16xf32, #tpu.memory_space<vmem>>, vector<256x16xf32>
    %29 = arith.truncf %28 : vector<256x16xf32> to vector<256x16xbf16>
    %c3 = arith.constant 3 : index
    %c0_13 = arith.constant 0 : index
    %c0_14 = arith.constant 0 : index
    %30 = vector.load %arg2[%c3, %c0_13, %c0_14] : memref<4x16x32xbf16, #tpu.memory_space<vmem>>, vector<1x16x32xbf16>
    %31 = vector.shape_cast %30 : vector<1x16x32xbf16> to vector<16x32xbf16>
    %cst_15 = arith.constant dense<0.000000e+00> : vector<256x32xf32>
    %32 = tpu.matmul %29, %31, %cst_15 {dimension_numbers = #tpu.dot_dimension_numbers<[1], [0], [0], [1], [0, 0, 1, 1], [], []>} : vector<256x16xbf16>, vector<16x32xbf16>, vector<256x32xf32> -> vector<256x32xf32>
    %33 = arith.addf %25, %32 : vector<256x32xf32>
    %c0_16 = arith.constant 0 : index
    %c0_17 = arith.constant 0 : index
    %34 = vector.load %arg3[%c0_16, %c0_17] : memref<1x32xf32, #tpu.memory_space<vmem>>, vector<1x32xf32>
    %35 = vector.broadcast %34 : vector<1x32xf32> to vector<256x32xf32>
    %36 = arith.addf %33, %35 : vector<256x32xf32>
    %cst_18 = arith.constant 0.000000e+00 : f32
    %37 = vector.broadcast %cst_18 : f32 to vector<256x32xf32>
    %38 = arith.cmpf oge, %36, %37 : vector<256x32xf32>
    %cst_19 = arith.constant 0.00999999977 : f32
    %39 = vector.broadcast %cst_19 : f32 to vector<256x32xf32>
    %40 = arith.mulf %39, %36 : vector<256x32xf32>
    %41 = arith.select %38, %36, %40 : vector<256x32xi1>, vector<256x32xf32>
    %c0_20 = arith.constant 0 : index
    %c0_21 = arith.constant 0 : index
    %42 = vector.load %arg4[%c0_20, %c0_21] : memref<256x32xf32, #tpu.memory_space<vmem>>, vector<256x32xf32>
    tpu.vector_store %arg4[%c0_20, %c0_21], %41 {strides = array<i32>} : memref<256x32xf32, #tpu.memory_space<vmem>>, vector<256x32xf32>,
    return
  }
  func.func @transform_0(%arg0: i32) -> (i32, i32) {
    %c0_i32 = arith.constant 0 : i32
    %c0_i32_0 = arith.constant 0 : i32
    %c0_i32_1 = arith.constant 0 : i32
    return %c0_i32, %c0_i32_0 : i32, i32
  }
  func.func @transform_1(%arg0: i32) -> (i32, i32, i32) {
    %c0_i32 = arith.constant 0 : i32
    %c0_i32_0 = arith.constant 0 : i32
    %c0_i32_1 = arith.constant 0 : i32
    %c0_i32_2 = arith.constant 0 : i32
    return %c0_i32, %c0_i32_0, %c0_i32_1 : i32, i32, i32
  }
  func.func @transform_2(%arg0: i32) -> (i32, i32) {
    %c0_i32 = arith.constant 0 : i32
    %c0_i32_0 = arith.constant 0 : i32
    %c0_i32_1 = arith.constant 0 : i32
    return %c0_i32, %c0_i32_0 : i32, i32
  }
  func.func @transform_3(%arg0: i32) -> (i32, i32) {
    %c0_i32 = arith.constant 0 : i32
    %c0_i32_0 = arith.constant 0 : i32
    return %arg0, %c0_i32 : i32, i32
  }
}

module attributes {stable_mosaic.version = 11 : i64} {
  func.func @_tap_matmul_kernel(%arg0: i32, %arg1: memref<2344x8xf32, #tpu.memory_space<vmem>>, %arg2: memref<4x8x32xbf16, #tpu.memory_space<vmem>>, %arg3: memref<1x32xf32, #tpu.memory_space<vmem>>, %arg4: memref<256x32xf32, #tpu.memory_space<vmem>>) attributes {dimension_semantics = [#tpu.dimension_semantics<parallel>], iteration_bounds = array<i64: 9>, scalar_prefetch = 0 : i64, scratch_operands = 0 : i64, tpu.core_type = #tpu.core_type<tc>, window_params = [{pipeline_mode = #tpu.pipeline_mode<synchronous>, transform_indices = @transform_0, window_bounds = array<i64: 2344, 8>}, {pipeline_mode = #tpu.pipeline_mode<synchronous>, transform_indices = @transform_1, window_bounds = array<i64: 4, 8, 32>}, {pipeline_mode = #tpu.pipeline_mode<synchronous>, transform_indices = @transform_2, window_bounds = array<i64: 1, 32>}, {transform_indices = @transform_3, window_bounds = array<i64: 256, 32>}]} {
    %c256_i32 = arith.constant 256 : i32
    %0 = arith.muli %arg0, %c256_i32 : i32
    %cst = arith.constant 0.000000e+00 : f32
    %1 = vector.broadcast %cst : f32 to vector<256x32xf32>
    %c0_i32 = arith.constant 0 : i32
    %2 = arith.addi %0, %c0_i32 : i32
    %3 = arith.index_cast %2 : i32 to index
    %c0 = arith.constant 0 : index
    %4 = vector.load %arg1[%3, %c0] : memref<2344x8xf32, #tpu.memory_space<vmem>>, vector<256x8xf32>
    %5 = arith.truncf %4 : vector<256x8xf32> to vector<256x8xbf16>
    %c0_0 = arith.constant 0 : index
    %c0_1 = arith.constant 0 : index
    %c0_2 = arith.constant 0 : index
    %6 = vector.load %arg2[%c0_0, %c0_1, %c0_2] : memref<4x8x32xbf16, #tpu.memory_space<vmem>>, vector<1x8x32xbf16>
    %7 = vector.shape_cast %6 : vector<1x8x32xbf16> to vector<8x32xbf16>
    %cst_3 = arith.constant dense<0.000000e+00> : vector<256x32xf32>
    %8 = tpu.matmul %5, %7, %cst_3 {dimension_numbers = #tpu.dot_dimension_numbers<[1], [0], [0], [1], [0, 0, 1, 1], [], []>} : vector<256x8xbf16>, vector<8x32xbf16>, vector<256x32xf32> -> vector<256x32xf32>
    %9 = arith.addf %1, %8 : vector<256x32xf32>
    %c1_i32 = arith.constant 1 : i32
    %10 = arith.addi %0, %c1_i32 : i32
    %11 = arith.index_cast %10 : i32 to index
    %c0_4 = arith.constant 0 : index
    %12 = vector.load %arg1[%11, %c0_4] : memref<2344x8xf32, #tpu.memory_space<vmem>>, vector<256x8xf32>
    %13 = arith.truncf %12 : vector<256x8xf32> to vector<256x8xbf16>
    %c1 = arith.constant 1 : index
    %c0_5 = arith.constant 0 : index
    %c0_6 = arith.constant 0 : index
    %14 = vector.load %arg2[%c1, %c0_5, %c0_6] : memref<4x8x32xbf16, #tpu.memory_space<vmem>>, vector<1x8x32xbf16>
    %15 = vector.shape_cast %14 : vector<1x8x32xbf16> to vector<8x32xbf16>
    %cst_7 = arith.constant dense<0.000000e+00> : vector<256x32xf32>
    %16 = tpu.matmul %13, %15, %cst_7 {dimension_numbers = #tpu.dot_dimension_numbers<[1], [0], [0], [1], [0, 0, 1, 1], [], []>} : vector<256x8xbf16>, vector<8x32xbf16>, vector<256x32xf32> -> vector<256x32xf32>
    %17 = arith.addf %9, %16 : vector<256x32xf32>
    %c33_i32 = arith.constant 33 : i32
    %18 = arith.addi %0, %c33_i32 : i32
    %19 = arith.index_cast %18 : i32 to index
    %c0_8 = arith.constant 0 : index
    %20 = vector.load %arg1[%19, %c0_8] : memref<2344x8xf32, #tpu.memory_space<vmem>>, vector<256x8xf32>
    %21 = arith.truncf %20 : vector<256x8xf32> to vector<256x8xbf16>
    %c2 = arith.constant 2 : index
    %c0_9 = arith.constant 0 : index
    %c0_10 = arith.constant 0 : index
    %22 = vector.load %arg2[%c2, %c0_9, %c0_10] : memref<4x8x32xbf16, #tpu.memory_space<vmem>>, vector<1x8x32xbf16>
    %23 = vector.shape_cast %22 : vector<1x8x32xbf16> to vector<8x32xbf16>
    %cst_11 = arith.constant dense<0.000000e+00> : vector<256x32xf32>
    %24 = tpu.matmul %21, %23, %cst_11 {dimension_numbers = #tpu.dot_dimension_numbers<[1], [0], [0], [1], [0, 0, 1, 1], [], []>} : vector<256x8xbf16>, vector<8x32xbf16>, vector<256x32xf32> -> vector<256x32xf32>
    %25 = arith.addf %17, %24 : vector<256x32xf32>
    %c34_i32 = arith.constant 34 : i32
    %26 = arith.addi %0, %c34_i32 : i32
    %27 = arith.index_cast %26 : i32 to index
    %c0_12 = arith.constant 0 : index
    %28 = vector.load %arg1[%27, %c0_12] : memref<2344x8xf32, #tpu.memory_space<vmem>>, vector<256x8xf32>
    %29 = arith.truncf %28 : vector<256x8xf32> to vector<256x8xbf16>
    %c3 = arith.constant 3 : index
    %c0_13 = arith.constant 0 : index
    %c0_14 = arith.constant 0 : index
    %30 = vector.load %arg2[%c3, %c0_13, %c0_14] : memref<4x8x32xbf16, #tpu.memory_space<vmem>>, vector<1x8x32xbf16>
    %31 = vector.shape_cast %30 : vector<1x8x32xbf16> to vector<8x32xbf16>
    %cst_15 = arith.constant dense<0.000000e+00> : vector<256x32xf32>
    %32 = tpu.matmul %29, %31, %cst_15 {dimension_numbers = #tpu.dot_dimension_numbers<[1], [0], [0], [1], [0, 0, 1, 1], [], []>} : vector<256x8xbf16>, vector<8x32xbf16>, vector<256x32xf32> -> vector<256x32xf32>
    %33 = arith.addf %25, %32 : vector<256x32xf32>
    %c0_16 = arith.constant 0 : index
    %c0_17 = arith.constant 0 : index
    %34 = vector.load %arg3[%c0_16, %c0_17] : memref<1x32xf32, #tpu.memory_space<vmem>>, vector<1x32xf32>
    %35 = vector.broadcast %34 : vector<1x32xf32> to vector<256x32xf32>
    %36 = arith.addf %33, %35 : vector<256x32xf32>
    %cst_18 = arith.constant 0.000000e+00 : f32
    %37 = vector.broadcast %cst_18 : f32 to vector<256x32xf32>
    %38 = arith.cmpf oge, %36, %37 : vector<256x32xf32>
    %cst_19 = arith.constant 0.00999999977 : f32
    %39 = vector.broadcast %cst_19 : f32 to vector<256x32xf32>
    %40 = arith.mulf %39, %36 : vector<256x32xf32>
    %41 = arith.select %38, %36, %40 : vector<256x32xi1>, vector<256x32xf32>
    %c0_20 = arith.constant 0 : index
    %c0_21 = arith.constant 0 : index
    %42 = vector.load %arg4[%c0_20, %c0_21] : memref<256x32xf32, #tpu.memory_space<vmem>>, vector<256x32xf32>
    tpu.vector_store %arg4[%c0_20, %c0_21], %41 {strides = array<i32>} : memref<256x32xf32, #tpu.memory_space<vmem>>, vector<256x32xf32>,
    return
  }
  func.func @transform_0(%arg0: i32) -> (i32, i32) {
    %c0_i32 = arith.constant 0 : i32
    %c0_i32_0 = arith.constant 0 : i32
    %c0_i32_1 = arith.constant 0 : i32
    return %c0_i32, %c0_i32_0 : i32, i32
  }
  func.func @transform_1(%arg0: i32) -> (i32, i32, i32) {
    %c0_i32 = arith.constant 0 : i32
    %c0_i32_0 = arith.constant 0 : i32
    %c0_i32_1 = arith.constant 0 : i32
    %c0_i32_2 = arith.constant 0 : i32
    return %c0_i32, %c0_i32_0, %c0_i32_1 : i32, i32, i32
  }
  func.func @transform_2(%arg0: i32) -> (i32, i32) {
    %c0_i32 = arith.constant 0 : i32
    %c0_i32_0 = arith.constant 0 : i32
    %c0_i32_1 = arith.constant 0 : i32
    return %c0_i32, %c0_i32_0 : i32, i32
  }
  func.func @transform_3(%arg0: i32) -> (i32, i32) {
    %c0_i32 = arith.constant 0 : i32
    %c0_i32_0 = arith.constant 0 : i32
    return %arg0, %c0_i32 : i32, i32
  }
}

module attributes {stable_mosaic.version = 11 : i64} {
  func.func @_tap_matmul_kernel(%arg0: i32, %arg1: memref<9352x8xf32, #tpu.memory_space<vmem>>, %arg2: memref<9x3x8xbf16, #tpu.memory_space<vmem>>, %arg3: memref<3x1xf32, #tpu.memory_space<vmem>>, %arg4: memref<3x512xf32, #tpu.memory_space<vmem>>) attributes {dimension_semantics = [#tpu.dimension_semantics<parallel>], iteration_bounds = array<i64: 18>, scalar_prefetch = 0 : i64, scratch_operands = 0 : i64, tpu.core_type = #tpu.core_type<tc>, window_params = [{pipeline_mode = #tpu.pipeline_mode<synchronous>, transform_indices = @transform_0, window_bounds = array<i64: 9352, 8>}, {pipeline_mode = #tpu.pipeline_mode<synchronous>, transform_indices = @transform_1, window_bounds = array<i64: 9, 3, 8>}, {pipeline_mode = #tpu.pipeline_mode<synchronous>, transform_indices = @transform_2, window_bounds = array<i64: 3, 1>}, {transform_indices = @transform_3, window_bounds = array<i64: 3, 512>}]} {
    %c512_i32 = arith.constant 512 : i32
    %0 = arith.muli %arg0, %c512_i32 : i32
    %cst = arith.constant 0.000000e+00 : f32
    %1 = vector.broadcast %cst : f32 to vector<3x512xf32>
    %c0_i32 = arith.constant 0 : i32
    %2 = arith.addi %0, %c0_i32 : i32
    %3 = arith.index_cast %2 : i32 to index
    %c0 = arith.constant 0 : index
    %4 = vector.load %arg1[%3, %c0] : memref<9352x8xf32, #tpu.memory_space<vmem>>, vector<512x8xf32>
    %5 = arith.truncf %4 : vector<512x8xf32> to vector<512x8xbf16>
    %c0_0 = arith.constant 0 : index
    %c0_1 = arith.constant 0 : index
    %c0_2 = arith.constant 0 : index
    %6 = vector.load %arg2[%c0_0, %c0_1, %c0_2] : memref<9x3x8xbf16, #tpu.memory_space<vmem>>, vector<1x3x8xbf16>
    %7 = vector.shape_cast %6 : vector<1x3x8xbf16> to vector<3x8xbf16>
    %cst_3 = arith.constant dense<0.000000e+00> : vector<3x512xf32>
    %8 = tpu.matmul %7, %5, %cst_3 {dimension_numbers = #tpu.dot_dimension_numbers<[1], [1], [0], [0], [0, 0, 1, 0], [], []>} : vector<3x8xbf16>, vector<512x8xbf16>, vector<3x512xf32> -> vector<3x512xf32>
    %9 = arith.addf %1, %8 : vector<3x512xf32>
    %c1_i32 = arith.constant 1 : i32
    %10 = arith.addi %0, %c1_i32 : i32
    %11 = arith.index_cast %10 : i32 to index
    %c0_4 = arith.constant 0 : index
    %12 = vector.load %arg1[%11, %c0_4] : memref<9352x8xf32, #tpu.memory_space<vmem>>, vector<512x8xf32>
    %13 = arith.truncf %12 : vector<512x8xf32> to vector<512x8xbf16>
    %c1 = arith.constant 1 : index
    %c0_5 = arith.constant 0 : index
    %c0_6 = arith.constant 0 : index
    %14 = vector.load %arg2[%c1, %c0_5, %c0_6] : memref<9x3x8xbf16, #tpu.memory_space<vmem>>, vector<1x3x8xbf16>
    %15 = vector.shape_cast %14 : vector<1x3x8xbf16> to vector<3x8xbf16>
    %cst_7 = arith.constant dense<0.000000e+00> : vector<3x512xf32>
    %16 = tpu.matmul %15, %13, %cst_7 {dimension_numbers = #tpu.dot_dimension_numbers<[1], [1], [0], [0], [0, 0, 1, 0], [], []>} : vector<3x8xbf16>, vector<512x8xbf16>, vector<3x512xf32> -> vector<3x512xf32>
    %17 = arith.addf %9, %16 : vector<3x512xf32>
    %c2_i32 = arith.constant 2 : i32
    %18 = arith.addi %0, %c2_i32 : i32
    %19 = arith.index_cast %18 : i32 to index
    %c0_8 = arith.constant 0 : index
    %20 = vector.load %arg1[%19, %c0_8] : memref<9352x8xf32, #tpu.memory_space<vmem>>, vector<512x8xf32>
    %21 = arith.truncf %20 : vector<512x8xf32> to vector<512x8xbf16>
    %c2 = arith.constant 2 : index
    %c0_9 = arith.constant 0 : index
    %c0_10 = arith.constant 0 : index
    %22 = vector.load %arg2[%c2, %c0_9, %c0_10] : memref<9x3x8xbf16, #tpu.memory_space<vmem>>, vector<1x3x8xbf16>
    %23 = vector.shape_cast %22 : vector<1x3x8xbf16> to vector<3x8xbf16>
    %cst_11 = arith.constant dense<0.000000e+00> : vector<3x512xf32>
    %24 = tpu.matmul %23, %21, %cst_11 {dimension_numbers = #tpu.dot_dimension_numbers<[1], [1], [0], [0], [0, 0, 1, 0], [], []>} : vector<3x8xbf16>, vector<512x8xbf16>, vector<3x512xf32> -> vector<3x512xf32>
    %25 = arith.addf %17, %24 : vector<3x512xf32>
    %c66_i32 = arith.constant 66 : i32
    %26 = arith.addi %0, %c66_i32 : i32
    %27 = arith.index_cast %26 : i32 to index
    %c0_12 = arith.constant 0 : index
    %28 = vector.load %arg1[%27, %c0_12] : memref<9352x8xf32, #tpu.memory_space<vmem>>, vector<512x8xf32>
    %29 = arith.truncf %28 : vector<512x8xf32> to vector<512x8xbf16>
    %c3 = arith.constant 3 : index
    %c0_13 = arith.constant 0 : index
    %c0_14 = arith.constant 0 : index
    %30 = vector.load %arg2[%c3, %c0_13, %c0_14] : memref<9x3x8xbf16, #tpu.memory_space<vmem>>, vector<1x3x8xbf16>
    %31 = vector.shape_cast %30 : vector<1x3x8xbf16> to vector<3x8xbf16>
    %cst_15 = arith.constant dense<0.000000e+00> : vector<3x512xf32>
    %32 = tpu.matmul %31, %29, %cst_15 {dimension_numbers = #tpu.dot_dimension_numbers<[1], [1], [0], [0], [0, 0, 1, 0], [], []>} : vector<3x8xbf16>, vector<512x8xbf16>, vector<3x512xf32> -> vector<3x512xf32>
    %33 = arith.addf %25, %32 : vector<3x512xf32>
    %c67_i32 = arith.constant 67 : i32
    %34 = arith.addi %0, %c67_i32 : i32
    %35 = arith.index_cast %34 : i32 to index
    %c0_16 = arith.constant 0 : index
    %36 = vector.load %arg1[%35, %c0_16] : memref<9352x8xf32, #tpu.memory_space<vmem>>, vector<512x8xf32>
    %37 = arith.truncf %36 : vector<512x8xf32> to vector<512x8xbf16>
    %c4 = arith.constant 4 : index
    %c0_17 = arith.constant 0 : index
    %c0_18 = arith.constant 0 : index
    %38 = vector.load %arg2[%c4, %c0_17, %c0_18] : memref<9x3x8xbf16, #tpu.memory_space<vmem>>, vector<1x3x8xbf16>
    %39 = vector.shape_cast %38 : vector<1x3x8xbf16> to vector<3x8xbf16>
    %cst_19 = arith.constant dense<0.000000e+00> : vector<3x512xf32>
    %40 = tpu.matmul %39, %37, %cst_19 {dimension_numbers = #tpu.dot_dimension_numbers<[1], [1], [0], [0], [0, 0, 1, 0], [], []>} : vector<3x8xbf16>, vector<512x8xbf16>, vector<3x512xf32> -> vector<3x512xf32>
    %41 = arith.addf %33, %40 : vector<3x512xf32>
    %c68_i32 = arith.constant 68 : i32
    %42 = arith.addi %0, %c68_i32 : i32
    %43 = arith.index_cast %42 : i32 to index
    %c0_20 = arith.constant 0 : index
    %44 = vector.load %arg1[%43, %c0_20] : memref<9352x8xf32, #tpu.memory_space<vmem>>, vector<512x8xf32>
    %45 = arith.truncf %44 : vector<512x8xf32> to vector<512x8xbf16>
    %c5 = arith.constant 5 : index
    %c0_21 = arith.constant 0 : index
    %c0_22 = arith.constant 0 : index
    %46 = vector.load %arg2[%c5, %c0_21, %c0_22] : memref<9x3x8xbf16, #tpu.memory_space<vmem>>, vector<1x3x8xbf16>
    %47 = vector.shape_cast %46 : vector<1x3x8xbf16> to vector<3x8xbf16>
    %cst_23 = arith.constant dense<0.000000e+00> : vector<3x512xf32>
    %48 = tpu.matmul %47, %45, %cst_23 {dimension_numbers = #tpu.dot_dimension_numbers<[1], [1], [0], [0], [0, 0, 1, 0], [], []>} : vector<3x8xbf16>, vector<512x8xbf16>, vector<3x512xf32> -> vector<3x512xf32>
    %49 = arith.addf %41, %48 : vector<3x512xf32>
    %c132_i32 = arith.constant 132 : i32
    %50 = arith.addi %0, %c132_i32 : i32
    %51 = arith.index_cast %50 : i32 to index
    %c0_24 = arith.constant 0 : index
    %52 = vector.load %arg1[%51, %c0_24] : memref<9352x8xf32, #tpu.memory_space<vmem>>, vector<512x8xf32>
    %53 = arith.truncf %52 : vector<512x8xf32> to vector<512x8xbf16>
    %c6 = arith.constant 6 : index
    %c0_25 = arith.constant 0 : index
    %c0_26 = arith.constant 0 : index
    %54 = vector.load %arg2[%c6, %c0_25, %c0_26] : memref<9x3x8xbf16, #tpu.memory_space<vmem>>, vector<1x3x8xbf16>
    %55 = vector.shape_cast %54 : vector<1x3x8xbf16> to vector<3x8xbf16>
    %cst_27 = arith.constant dense<0.000000e+00> : vector<3x512xf32>
    %56 = tpu.matmul %55, %53, %cst_27 {dimension_numbers = #tpu.dot_dimension_numbers<[1], [1], [0], [0], [0, 0, 1, 0], [], []>} : vector<3x8xbf16>, vector<512x8xbf16>, vector<3x512xf32> -> vector<3x512xf32>
    %57 = arith.addf %49, %56 : vector<3x512xf32>
    %c133_i32 = arith.constant 133 : i32
    %58 = arith.addi %0, %c133_i32 : i32
    %59 = arith.index_cast %58 : i32 to index
    %c0_28 = arith.constant 0 : index
    %60 = vector.load %arg1[%59, %c0_28] : memref<9352x8xf32, #tpu.memory_space<vmem>>, vector<512x8xf32>
    %61 = arith.truncf %60 : vector<512x8xf32> to vector<512x8xbf16>
    %c7 = arith.constant 7 : index
    %c0_29 = arith.constant 0 : index
    %c0_30 = arith.constant 0 : index
    %62 = vector.load %arg2[%c7, %c0_29, %c0_30] : memref<9x3x8xbf16, #tpu.memory_space<vmem>>, vector<1x3x8xbf16>
    %63 = vector.shape_cast %62 : vector<1x3x8xbf16> to vector<3x8xbf16>
    %cst_31 = arith.constant dense<0.000000e+00> : vector<3x512xf32>
    %64 = tpu.matmul %63, %61, %cst_31 {dimension_numbers = #tpu.dot_dimension_numbers<[1], [1], [0], [0], [0, 0, 1, 0], [], []>} : vector<3x8xbf16>, vector<512x8xbf16>, vector<3x512xf32> -> vector<3x512xf32>
    %65 = arith.addf %57, %64 : vector<3x512xf32>
    %c134_i32 = arith.constant 134 : i32
    %66 = arith.addi %0, %c134_i32 : i32
    %67 = arith.index_cast %66 : i32 to index
    %c0_32 = arith.constant 0 : index
    %68 = vector.load %arg1[%67, %c0_32] : memref<9352x8xf32, #tpu.memory_space<vmem>>, vector<512x8xf32>
    %69 = arith.truncf %68 : vector<512x8xf32> to vector<512x8xbf16>
    %c8 = arith.constant 8 : index
    %c0_33 = arith.constant 0 : index
    %c0_34 = arith.constant 0 : index
    %70 = vector.load %arg2[%c8, %c0_33, %c0_34] : memref<9x3x8xbf16, #tpu.memory_space<vmem>>, vector<1x3x8xbf16>
    %71 = vector.shape_cast %70 : vector<1x3x8xbf16> to vector<3x8xbf16>
    %cst_35 = arith.constant dense<0.000000e+00> : vector<3x512xf32>
    %72 = tpu.matmul %71, %69, %cst_35 {dimension_numbers = #tpu.dot_dimension_numbers<[1], [1], [0], [0], [0, 0, 1, 0], [], []>} : vector<3x8xbf16>, vector<512x8xbf16>, vector<3x512xf32> -> vector<3x512xf32>
    %73 = arith.addf %65, %72 : vector<3x512xf32>
    %c0_36 = arith.constant 0 : index
    %c0_37 = arith.constant 0 : index
    %74 = vector.load %arg3[%c0_36, %c0_37] : memref<3x1xf32, #tpu.memory_space<vmem>>, vector<3x1xf32>
    %75 = vector.broadcast %74 : vector<3x1xf32> to vector<3x512xf32>
    %76 = arith.addf %73, %75 : vector<3x512xf32>
    %77 = math.tanh %76 : vector<3x512xf32>
    %c0_38 = arith.constant 0 : index
    %c0_39 = arith.constant 0 : index
    %78 = vector.load %arg4[%c0_38, %c0_39] : memref<3x512xf32, #tpu.memory_space<vmem>>, vector<3x512xf32>
    tpu.vector_store %arg4[%c0_38, %c0_39], %77 {strides = array<i32>} : memref<3x512xf32, #tpu.memory_space<vmem>>, vector<3x512xf32>,
    return
  }
  func.func @transform_0(%arg0: i32) -> (i32, i32) {
    %c0_i32 = arith.constant 0 : i32
    %c0_i32_0 = arith.constant 0 : i32
    %c0_i32_1 = arith.constant 0 : i32
    return %c0_i32, %c0_i32_0 : i32, i32
  }
  func.func @transform_1(%arg0: i32) -> (i32, i32, i32) {
    %c0_i32 = arith.constant 0 : i32
    %c0_i32_0 = arith.constant 0 : i32
    %c0_i32_1 = arith.constant 0 : i32
    %c0_i32_2 = arith.constant 0 : i32
    return %c0_i32, %c0_i32_0, %c0_i32_1 : i32, i32, i32
  }
  func.func @transform_2(%arg0: i32) -> (i32, i32) {
    %c0_i32 = arith.constant 0 : i32
    %c0_i32_0 = arith.constant 0 : i32
    %c0_i32_1 = arith.constant 0 : i32
    return %c0_i32, %c0_i32_0 : i32, i32
  }
  func.func @transform_3(%arg0: i32) -> (i32, i32) {
    %c0_i32 = arith.constant 0 : i32
    %c0_i32_0 = arith.constant 0 : i32
    return %c0_i32, %arg0 : i32, i32
  }
}

</mosaic_0001>

<bundles_post_ra>
// kernel: vanilla_vae_forward.13
= control target key start
LH: loop header
LB: loop body
LE: loop exit
PB: predicated region body
PF: predicated region fallthrough
CT: control target
= control target key end

     0   :  { %s2048_s12 = smov 0   ;;  %s2358_s0 = inlined_call_operand.vmem [shape: f32[2344,12], index: 0, kind: input, shape index: {}]   ;;  %s2359_s1 = inlined_call_operand.vmem [shape: bf16[4,12,8], index: 1, kind: input, shape index: {}]   ;;  %s2360_s2 = inlined_call_operand.vmem [shape: f32[1,8], index: 2, kind: input, shape index: {}]   ;;  %s2361_s3 = inlined_call_operand.vmem [shape: f32[2304,8], index: 3, kind: output, shape index: {}]  }
   0x1 LB: > { %s1521_s13 = sadd.s32 4294967295, %s2026_s12   ;;  %p1524_p0 = scmp.ge.s32.totalorder %s2026_s12, 1  ;;  %s2026_s12 = sphi %s2048_s12, %s13_s12  }
   0x2   : > { %p127_p1 = scmp.lt.s32.totalorder %s2026_s12, 10 }
   0x4   : > { %p128_p2 = pnand %p1524_p0, %p127_p1 }
   0x5   : > { %v2016_v0 = vld [vmem:[%s2359_s1 + $0x8] sm:$0x3f] (!%p128_p2)   ;;  %vm312_vm0 = vcmask (!%p128_p2), 1045504   ;;  %s1527_s16 = sshll.u32 (!%p128_p2), %s1521_s13, 8  ;;  %v2017_v1 = vld [vmem:[%s2359_s1 + $0x10] sm:$0x3f] (!%p128_p2)  }
   0x6   : > { %131 = sbr.rel (%p128_p2) target bundleno = 355 (0x163), region = 32  ;;  %2004 = vmatprep.subr.msk.bf16.mxu1 (!%p128_p2), %vm312_vm0, %v2016_v0  ;;  %v314_v2 = vsel (!%p128_p2), %vm312_vm0, %v2016_v0, 0  ;;  %s2069_s21 = scalar_lea.vmem (!%p128_p2), %s2358_s0, %s1527_s16  ;;  %vm263_vm1 = vcmask (!%p128_p2), 97280   ;;  %2006 = vmatprep.subr.msk.bf16.mxu0 (!%p128_p2), %vm312_vm0, %v2017_v1  ;;  %v801_v6 = vsel (!%p128_p2), %vm312_vm0, %v2017_v1, 0  ;;  %v2018_v13 = vld [vmem:[%s2359_s1] sm:$0x3f] (!%p128_p2)  }
   0x7   : > { %1773 = vmatpush3.bf16.msra.mxu1 (!%p128_p2), %v314_v2  ;;  %v1529_v3 = vld [vmem:[%s2069_s21 + $0x1] sm:$0xff] (!%p128_p2)  ;;  %v1530_v4 = vld [vmem:[%s2069_s21 + $0x9] sm:$0xff] (!%p128_p2)  ;;  %v1531_v9 = vld [vmem:[%s2069_s21 + $0x11] sm:$0xff] (!%p128_p2)  ;;  %1841 = vmatpush3.bf16.msra.mxu0 (!%p128_p2), %v801_v6  ;;  %v531_v18 = vsel (!%p128_p2), %vm312_vm0, %v2018_v13, 0  ;;  %s1525_s26 = sshll.u32 (!%p128_p2), %s1521_s13, 5  ;;  %vm1433_vm3 = vcmask (!%p128_p2), 64512  }
   0x8   : > { %v1598_v5 = vld [vmem:[%s2069_s21 + $0x21] sm:$0xff] (!%p128_p2)  ;;  %v239_v7 = vpack.c.bf16 (!%p128_p2), %v1530_v4, %v1529_v3  ;;  %v1599_v8 = vld [vmem:[%s2069_s21 + $0x29] sm:$0xff] (!%p128_p2)  ;;  %v1532_v10 = vld [vmem:[%s2069_s21 + $0x19] sm:$0xff] (!%p128_p2)  ;;  %2005 = vmatprep.subr.msk.bf16.mxu1 (!%p128_p2), %vm312_vm0, %v2018_v13  ;;  %p147_p3 = scmp.lt.s32.totalorder (!%p128_p2), %s1525_s26, 287 }
   0x9   : > { %v728_v11 = vpack.c.bf16 (!%p128_p2), %v1599_v8, %v1598_v5  ;;  %v240_v12 = vpack.c.bf16 (!%p128_p2), %v1532_v10, %v1531_v9  ;;  %v1600_v14 = vld [vmem:[%s2069_s21 + $0x31] sm:$0xff] (!%p128_p2)  ;;  %v1601_v15 = vld [vmem:[%s2069_s21 + $0x39] sm:$0xff] (!%p128_p2)  ;;  %v1602_v19 = vld [vmem:[%s2069_s21 + $0x41] sm:$0xff] (!%p128_p2) }
   0xa   : > { %1774 = vmatprep.mubr.msk.bf16.mxu1 (!%p128_p2), %vm263_vm1, %v239_v7  ;;  %v729_v16 = vpack.c.bf16 (!%p128_p2), %v1601_v15, %v1600_v14  ;;  %v2019_v17 = vld [vmem:[%s2359_s1 + $0x18] sm:$0x3f] (!%p128_p2)   ;;  %v1603_v20 = vld [vmem:[%s2069_s21 + $0x49] sm:$0xff] (!%p128_p2)  ;;  %v1606_v25 = vld [vmem:[%s2069_s21 + $0x61] sm:$0xff] (!%p128_p2) }
   0xb   : > { %1842 = vmatprep.mubr.msk.bf16.mxu0 (!%p128_p2), %vm263_vm1, %v728_v11  ;;  %1775 = vmatmul.mubr.msk.bf16.vlgmr.msra.gmra.mrb[0].mxu1 (!%p128_p2), %vm263_vm1, %v240_v12  ;;  %v730_v21 = vpack.c.bf16 (!%p128_p2), %v1603_v20, %v1602_v19  ;;  %v1103_v22 = vsel (!%p128_p2), %vm312_vm0, %v2019_v17, 0  ;;  %v1604_v23 = vld [vmem:[%s2069_s21 + $0x51] sm:$0xff] (!%p128_p2)  ;;  %v1605_v24 = vld [vmem:[%s2069_s21 + $0x59] sm:$0xff] (!%p128_p2)  ;;  %v1607_v26 = vld [vmem:[%s2069_s21 + $0x69] sm:$0xff] (!%p128_p2) }
   0xc   : > { %1778 = vmatprep.mubr.msk.bf16.mxu1 (!%p128_p2), %vm263_vm1, %v728_v11  ;;  %1843 = vmatmul.mubr.msk.bf16.vlgmr.msra.gmra.mrb[0].mxu0 (!%p128_p2), %vm263_vm1, %v729_v16  ;;  %v731_v27 = vpack.c.bf16 (!%p128_p2), %v1605_v24, %v1604_v23  ;;  %v732_v28 = vpack.c.bf16 (!%p128_p2), %v1607_v26, %v1606_v25  ;;  %v1608_v29 = vld [vmem:[%s2069_s21 + $0x71] sm:$0xff] (!%p128_p2)  ;;  %v1609_v30 = vld [vmem:[%s2069_s21 + $0x79] sm:$0xff] (!%p128_p2)  ;;  %v1610_v31 = vld [vmem:[%s2069_s21 + $0x81] sm:$0xff] (!%p128_p2) }
   0xd   : > { %2007 = vmatprep.subr.msk.bf16.mxu0 %vm312_vm0, %v2019_v17  ;;  %1807 = vmatpush3.bf16.msra.mxu1 %v531_v18  ;;  %v1611_v32 = vld [vmem:[%s2069_s21 + $0x89] sm:$0xff]  ;;  %v733_v33 = vpack.c.bf16 %v1609_v30, %v1608_v29  ;;  %v1612_v35 = vld [vmem:[%s2069_s21 + $0x91] sm:$0xff]  ;;  %v1613_v36 = vld [vmem:[%s2069_s21 + $0x99] sm:$0xff]  ;;  %s2363_s26 = smov (!%p147_p3, %s1525_s26), 287 }
   0xe   : > { %1875 = vmatpush3.bf16.msra.mxu0 %v1103_v22  ;;  %1846 = vmatprep.mubr.msk.bf16.mxu0 %vm263_vm1, %v730_v21  ;;  %v734_v34 = vpack.c.bf16 %v1611_v32, %v1610_v31  ;;  %v1614_v37 = vld [vmem:[%s2069_s21 + $0xa1] sm:$0xff]  ;;  %v1615_v38 = vld [vmem:[%s2069_s21 + $0xa9] sm:$0xff]  ;;  %v735_v39 = vpack.c.bf16 %v1613_v36, %v1612_v35  ;;  %v1616_v41 = vld [vmem:[%s2069_s21 + $0xb1] sm:$0xff]  ;;  %s1526_s29 = sshll.u32 %s2363_s26, 3 }
   0xf   : > { %v736_v40 = vpack.c.bf16 %v1615_v38, %v1614_v37  ;;  %v1617_v42 = vld [vmem:[%s2069_s21 + $0xb9] sm:$0xff]  ;;  %v1618_v43 = vld [vmem:[%s2069_s21 + $0xc1] sm:$0xff]  ;;  %v1619_v44 = vld [vmem:[%s2069_s21 + $0xc9] sm:$0xff]  ;;  %s2259_s5 = scalar_lea.vmem %s2361_s3, %s1526_s29 }
  0x10   : > { %v737_v45 = vpack.c.bf16 %v1617_v42, %v1616_v41  ;;  %v738_v46 = vpack.c.bf16 %v1619_v44, %v1618_v43  ;;  %v1620_v47 = vld [vmem:[%s2069_s21 + $0xd1] sm:$0xff]  ;;  %v1621_v48 = vld [vmem:[%s2069_s21 + $0xd9] sm:$0xff]  ;;  %v1622_v49 = vld [vmem:[%s2069_s21 + $0xe1] sm:$0xff] }
  0x11   : > { %v1623_v50 = vld [vmem:[%s2069_s21 + $0xe9] sm:$0xff]  ;;  %v739_v51 = vpack.c.bf16 %v1621_v48, %v1620_v47  ;;  %v1624_v53 = vld [vmem:[%s2069_s21 + $0xf1] sm:$0xff]  ;;  %v1625_v54 = vld [vmem:[%s2069_s21 + $0xf9] sm:$0xff] }
  0x12   : > { %v740_v52 = vpack.c.bf16 %v1623_v50, %v1622_v49  ;;  %v1626_v55 = vld [vmem:[%s2069_s21 + $0x101] sm:$0xff]  ;;  %v1627_v56 = vld [vmem:[%s2069_s21 + $0x109] sm:$0xff]  ;;  %v741_v57 = vpack.c.bf16 %v1625_v54, %v1624_v53  ;;  %v1628_v61 = vld [vmem:[%s2069_s21 + $0x111] sm:$0xff] }
  0x13   : > { %1779 = vmatmul.mubr.msk.bf16.gmra.mrb[4].mxu1 %vm263_vm1, %v729_v16  ;;  %v742_v58 = vpack.c.bf16 %v1627_v56, %v1626_v55  ;;  %v155_v59 = vld [vmem:[%s2069_s21] sm:$0xff]  ;;  %v156_v60 = vld [vmem:[%s2069_s21 + $0x8] sm:$0xff]  ;;  %v157_v4 = vld [vmem:[%s2069_s21 + $0x10] sm:$0xff] }
  0x14   : > { %1782 = vmatprep.mubr.msk.bf16.mxu1 %vm263_vm1, %v730_v21  ;;  %1847 = vmatmul.mubr.msk.bf16.gmra.mrb[4].mxu0 %vm263_vm1, %v731_v27  ;;  %v1629_v62 = vld [vmem:[%s2069_s21 + $0x119] sm:$0xff]  ;;  %v1650_v63 = vld [vmem:[%s2069_s21 + $0x22] sm:$0xff]  ;;  %v1651_v0 = vld [vmem:[%s2069_s21 + $0x2a] sm:$0xff]  ;;  %v187_v1 = vpack.c.bf16 %v156_v60, %v155_v59 }
  0x15   : > { %1850 = vmatprep.mubr.msk.bf16.mxu0 %vm263_vm1, %v732_v28  ;;  %v743_v2 = vpack.c.bf16 %v1629_v62, %v1628_v61  ;;  %v1030_v3 = vpack.c.bf16 %v1651_v0, %v1650_v63  ;;  %v158_v5 = vld [vmem:[%s2069_s21 + $0x18] sm:$0xff]  ;;  %v159_v6 = vld [vmem:[%s2069_s21 + $0x20] sm:$0xff]  ;;  %v160_v7 = vld [vmem:[%s2069_s21 + $0x28] sm:$0xff] }
  0x16   : > { %v1652_v8 = vld [vmem:[%s2069_s21 + $0x32] sm:$0xff]  ;;  %v1653_v9 = vld [vmem:[%s2069_s21 + $0x3a] sm:$0xff]  ;;  %v188_v10 = vpack.c.bf16 %v158_v5, %v157_v4  ;;  %v1654_v11 = vld [vmem:[%s2069_s21 + $0x42] sm:$0xff]  ;;  %v189_v13 = vpack.c.bf16 %v160_v7, %v159_v6 }
  0x17   : > { %v1655_v12 = vld [vmem:[%s2069_s21 + $0x4a] sm:$0xff]  ;;  %v1031_v14 = vpack.c.bf16 %v1653_v9, %v1652_v8  ;;  %v162_v17 = vld [vmem:[%s2069_s21 + $0x38] sm:$0xff]  ;;  %v163_v18 = vld [vmem:[%s2069_s21 + $0x40] sm:$0xff] }
  0x18   : > { %v1032_v15 = vpack.c.bf16 %v1655_v12, %v1654_v11  ;;  %v161_v16 = vld [vmem:[%s2069_s21 + $0x30] sm:$0xff]  ;;  %v164_v19 = vld [vmem:[%s2069_s21 + $0x48] sm:$0xff]  ;;  %v1657_v21 = vld [vmem:[%s2069_s21 + $0x5a] sm:$0xff] }
  0x19   : > { %v1656_v20 = vld [vmem:[%s2069_s21 + $0x52] sm:$0xff]  ;;  %v190_v22 = vpack.c.bf16 %v162_v17, %v161_v16  ;;  %v1658_v23 = vld [vmem:[%s2069_s21 + $0x62] sm:$0xff]  ;;  %v1659_v24 = vld [vmem:[%s2069_s21 + $0x6a] sm:$0xff]  ;;  %v191_v25 = vpack.c.bf16 %v164_v19, %v163_v18 }
  0x1a   : > { %v1033_v26 = vpack.c.bf16 %v1657_v21, %v1656_v20  ;;  %v166_v29 = vld [vmem:[%s2069_s21 + $0x58] sm:$0xff]  ;;  %v167_v30 = vld [vmem:[%s2069_s21 + $0x60] sm:$0xff]  ;;  %v168_v31 = vld [vmem:[%s2069_s21 + $0x68] sm:$0xff] }
  0x1b   : > { %1783 = vmatmul.mubr.msk.bf16.gmra.mrb[8].mxu1 %vm263_vm1, %v731_v27  ;;  %v1034_v27 = vpack.c.bf16 %v1659_v24, %v1658_v23  ;;  %v1660_v32 = vld [vmem:[%s2069_s21 + $0x72] sm:$0xff]  ;;  %v1662_v35 = vld [vmem:[%s2069_s21 + $0x82] sm:$0xff]  ;;  %v1663_v36 = vld [vmem:[%s2069_s21 + $0x8a] sm:$0xff]  ;;  %v193_v37 = vpack.c.bf16 %v168_v31, %v167_v30 }
  0x1c   : > { %1786 = vmatprep.mubr.msk.bf16.mxu1 %vm263_vm1, %v732_v28  ;;  %1851 = vmatmul.mubr.msk.bf16.gmra.mrb[8].mxu0 %vm263_vm1, %v733_v33  ;;  %v165_v28 = vld [vmem:[%s2069_s21 + $0x50] sm:$0xff]  ;;  %v170_v41 = vld [vmem:[%s2069_s21 + $0x78] sm:$0xff]  ;;  %v171_v42 = vld [vmem:[%s2069_s21 + $0x80] sm:$0xff] }
  0x1d   : > { %1854 = vmatprep.mubr.msk.bf16.mxu0 %vm263_vm1, %v734_v34  ;;  %v172_v43 = vld [vmem:[%s2069_s21 + $0x88] sm:$0xff]  ;;  %v1664_v44 = vld [vmem:[%s2069_s21 + $0x92] sm:$0xff]  ;;  %v175_v54 = vld [vmem:[%s2069_s21 + $0xa0] sm:$0xff] }
  0x1e   : > { %v1666_v47 = vld [vmem:[%s2069_s21 + $0xa2] sm:$0xff]  ;;  %v1667_v48 = vld [vmem:[%s2069_s21 + $0xaa] sm:$0xff]  ;;  %v195_v49 = vpack.c.bf16 %v172_v43, %v171_v42  ;;  %v174_v53 = vld [vmem:[%s2069_s21 + $0x98] sm:$0xff] }
  0x1f   : > { %v176_v55 = vld [vmem:[%s2069_s21 + $0xa8] sm:$0xff]  ;;  %v1668_v56 = vld [vmem:[%s2069_s21 + $0xb2] sm:$0xff]  ;;  %v1673_v5 = vld [vmem:[%s2069_s21 + $0xda] sm:$0xff] }
  0x20   : > { %v1670_v59 = vld [vmem:[%s2069_s21 + $0xc2] sm:$0xff]  ;;  %v1671_v60 = vld [vmem:[%s2069_s21 + $0xca] sm:$0xff]  ;;  %v197_v61 = vpack.c.bf16 %v176_v55, %v175_v54  ;;  %v1672_v4 = vld [vmem:[%s2069_s21 + $0xd2] sm:$0xff] }
  0x21   : > { %v1040_v63 = vpack.c.bf16 %v1671_v60, %v1670_v59  ;;  %v177_v0 = vld [vmem:[%s2069_s21 + $0xb0] sm:$0xff]  ;;  %v1674_v7 = vld [vmem:[%s2069_s21 + $0xe2] sm:$0xff]  ;;  %v1677_v17 = vld [vmem:[%s2069_s21 + $0xfa] sm:$0xff] }
  0x22   : > { %v1675_v8 = vld [vmem:[%s2069_s21 + $0xea] sm:$0xff]  ;;  %v1676_v16 = vld [vmem:[%s2069_s21 + $0xf2] sm:$0xff]  ;;  %v1678_v19 = vld [vmem:[%s2069_s21 + $0x102] sm:$0xff] }
  0x23   : > { %1787 = vmatmul.mubr.msk.bf16.gmra.mrb[12].mxu1 %vm263_vm1, %v733_v33  ;;  %v1661_v33 = vld [vmem:[%s2069_s21 + $0x7a] sm:$0xff]  ;;  %v1042_v11 = vpack.c.bf16 %v1675_v8, %v1674_v7  ;;  %v181_v12 = vld [vmem:[%s2069_s21 + $0xd0] sm:$0xff] }
  0x24   : > { %1790 = vmatprep.mubr.msk.bf16.mxu1 %vm263_vm1, %v734_v34  ;;  %1855 = vmatmul.mubr.msk.bf16.gmra.mrb[12].mxu0 %vm263_vm1, %v735_v39  ;;  %v192_v34 = vpack.c.bf16 %v166_v29, %v165_v28  ;;  %v1035_v38 = vpack.c.bf16 %v1661_v33, %v1660_v32  ;;  %v1679_v20 = vld [vmem:[%s2069_s21 + $0x10a] sm:$0xff]  ;;  %v2252_v33 = vld [vmem:[%s2360_s2] ss:$0 sm:$0xff] }
  0x25   : > { %1858 = vmatprep.mubr.msk.bf16.mxu0 %vm263_vm1, %v736_v40  ;;  %v1044_v23 = vpack.c.bf16 %v1679_v20, %v1678_v19  ;;  %v185_v24 = vld [vmem:[%s2069_s21 + $0xf0] sm:$0xff] }
  0x2b   : > { %1791 = vmatmul.mubr.msk.bf16.gmra.mrb[16].mxu1 %vm263_vm1, %v735_v39  ;;  %v1036_v39 = vpack.c.bf16 %v1663_v36, %v1662_v35 }
  0x2c   : > { %1794 = vmatprep.mubr.msk.bf16.mxu1 %vm263_vm1, %v736_v40  ;;  %1859 = vmatmul.mubr.msk.bf16.gmra.mrb[16].mxu0 %vm263_vm1, %v737_v45  ;;  %v169_v40 = vld [vmem:[%s2069_s21 + $0x70] sm:$0xff] }
  0x2d   : > { %1862 = vmatprep.mubr.msk.bf16.mxu0 %vm263_vm1, %v738_v46 }
  0x33   : > { %1795 = vmatmul.mubr.msk.bf16.gmra.mrb[20].mxu1 %vm263_vm1, %v737_v45  ;;  %v1665_v45 = vld [vmem:[%s2069_s21 + $0x9a] sm:$0xff] }
  0x34   : > { %1798 = vmatprep.mubr.msk.bf16.mxu1 %vm263_vm1, %v738_v46  ;;  %1863 = vmatmul.mubr.msk.bf16.gmra.mrb[20].mxu0 %vm263_vm1, %v739_v51  ;;  %v194_v46 = vpack.c.bf16 %v170_v41, %v169_v40  ;;  %v1037_v50 = vpack.c.bf16 %v1665_v45, %v1664_v44 }
  0x35   : > { %1866 = vmatprep.mubr.msk.bf16.mxu0 %vm263_vm1, %v740_v52 }
  0x3b   : > { %1799 = vmatmul.mubr.msk.bf16.gmra.mrb[24].mxu1 %vm263_vm1, %v739_v51  ;;  %v1038_v51 = vpack.c.bf16 %v1667_v48, %v1666_v47 }
  0x3c   : > { %1802 = vmatprep.mubr.msk.bf16.mxu1 %vm263_vm1, %v740_v52  ;;  %1867 = vmatmul.mubr.msk.bf16.gmra.mrb[24].mxu0 %vm263_vm1, %v741_v57  ;;  %v173_v52 = vld [vmem:[%s2069_s21 + $0x90] sm:$0xff] }
  0x3d   : > { %1870 = vmatprep.mubr.msk.bf16.mxu0 %vm263_vm1, %v742_v58  ;;  %v196_v58 = vpack.c.bf16 %v174_v53, %v173_v52 }
  0x43   : > { %1803 = vmatmul.mubr.msk.bf16.gmra.mrb[28].mxu1 %vm263_vm1, %v741_v57  ;;  %v1669_v57 = vld [vmem:[%s2069_s21 + $0xba] sm:$0xff] }
  0x44   : > { %1808 = vmatprep.mubr.msk.bf16.mxu1 %vm263_vm1, %v187_v1  ;;  %1871 = vmatmul.mubr.msk.bf16.gmra.mrb[28].mxu0 %vm263_vm1, %v743_v2  ;;  %v1039_v62 = vpack.c.bf16 %v1669_v57, %v1668_v56  ;;  %v178_v1 = vld [vmem:[%s2069_s21 + $0xb8] sm:$0xff]  ;;  %v179_v2 = vld [vmem:[%s2069_s21 + $0xc0] sm:$0xff] }
  0x45   : > { %1876 = vmatprep.mubr.msk.bf16.mxu0 %vm263_vm1, %v1030_v3  ;;  %v180_v3 = vld [vmem:[%s2069_s21 + $0xc8] sm:$0xff]  ;;  %v198_v6 = vpack.c.bf16 %v178_v1, %v177_v0 }
  0x46   : > { %v199_v9 = vpack.c.bf16 %v180_v3, %v179_v2 }
  0x4b   : > { %1809 = vmatmul.mubr.msk.bf16.vlgmr.msra.gmra.mrb[0].mxu1 %vm263_vm1, %v188_v10  ;;  %v1041_v10 = vpack.c.bf16 %v1673_v5, %v1672_v4 }
  0x4c   : > { %1812 = vmatprep.mubr.msk.bf16.mxu1 %vm263_vm1, %v189_v13  ;;  %1877 = vmatmul.mubr.msk.bf16.vlgmr.msra.gmra.mrb[0].mxu0 %vm263_vm1, %v1031_v14  ;;  %v182_v13 = vld [vmem:[%s2069_s21 + $0xd8] sm:$0xff]  ;;  %v183_v14 = vld [vmem:[%s2069_s21 + $0xe0] sm:$0xff] }
  0x4d   : > { %1880 = vmatprep.mubr.msk.bf16.mxu0 %vm263_vm1, %v1032_v15  ;;  %v184_v15 = vld [vmem:[%s2069_s21 + $0xe8] sm:$0xff]  ;;  %v200_v18 = vpack.c.bf16 %v182_v13, %v181_v12 }
  0x4e   : > { %v201_v21 = vpack.c.bf16 %v184_v15, %v183_v14 }
  0x53   : > { %1813 = vmatmul.mubr.msk.bf16.gmra.mrb[4].mxu1 %vm263_vm1, %v190_v22  ;;  %v1043_v22 = vpack.c.bf16 %v1677_v17, %v1676_v16 }
  0x54   : > { %1816 = vmatprep.mubr.msk.bf16.mxu1 %vm263_vm1, %v191_v25  ;;  %1881 = vmatmul.mubr.msk.bf16.gmra.mrb[4].mxu0 %vm263_vm1, %v1033_v26  ;;  %v186_v25 = vld [vmem:[%s2069_s21 + $0xf8] sm:$0xff] }
  0x55   : > { %1884 = vmatprep.mubr.msk.bf16.mxu0 %vm263_vm1, %v1034_v27  ;;  %v1680_v26 = vld [vmem:[%s2069_s21 + $0x112] sm:$0xff]  ;;  %v1681_v27 = vld [vmem:[%s2069_s21 + $0x11a] sm:$0xff]  ;;  %v202_v28 = vpack.c.bf16 %v186_v25, %v185_v24 }
  0x56   : > { %v1045_v29 = vpack.c.bf16 %v1681_v27, %v1680_v26 }
  0x5b   : > { %1817 = vmatmul.mubr.msk.bf16.gmra.mrb[8].mxu1 %vm263_vm1, %v192_v34 }
  0x5c   : > { %1820 = vmatprep.mubr.msk.bf16.mxu1 %vm263_vm1, %v193_v37  ;;  %1885 = vmatmul.mubr.msk.bf16.gmra.mrb[8].mxu0 %vm263_vm1, %v1035_v38 }
  0x5d   : > { %1888 = vmatprep.mubr.msk.bf16.mxu0 %vm263_vm1, %v1036_v39 }
  0x63   : > { %1821 = vmatmul.mubr.msk.bf16.gmra.mrb[12].mxu1 %vm263_vm1, %v194_v46 }
  0x64   : > { %1824 = vmatprep.mubr.msk.bf16.mxu1 %vm263_vm1, %v195_v49  ;;  %1889 = vmatmul.mubr.msk.bf16.gmra.mrb[12].mxu0 %vm263_vm1, %v1037_v50 }
  0x65   : > { %1892 = vmatprep.mubr.msk.bf16.mxu0 %vm263_vm1, %v1038_v51 }
  0x6b   : > { %1825 = vmatmul.mubr.msk.bf16.gmra.mrb[16].mxu1 %vm263_vm1, %v196_v58 }
  0x6c   : > { %1828 = vmatprep.mubr.msk.bf16.mxu1 %vm263_vm1, %v197_v61  ;;  %1893 = vmatmul.mubr.msk.bf16.gmra.mrb[16].mxu0 %vm263_vm1, %v1039_v62 }
  0x6d   : > { %1896 = vmatprep.mubr.msk.bf16.mxu0 %vm263_vm1, %v1040_v63 }
  0x73   : > { %1829 = vmatmul.mubr.msk.bf16.gmra.mrb[20].mxu1 %vm263_vm1, %v198_v6 }
  0x74   : > { %1832 = vmatprep.mubr.msk.bf16.mxu1 %vm263_vm1, %v199_v9  ;;  %1897 = vmatmul.mubr.msk.bf16.gmra.mrb[20].mxu0 %vm263_vm1, %v1041_v10 }
  0x75   : > { %1900 = vmatprep.mubr.msk.bf16.mxu0 %vm263_vm1, %v1042_v11 }
  0x7b   : > { %1833 = vmatmul.mubr.msk.bf16.gmra.mrb[24].mxu1 %vm263_vm1, %v200_v18 }
  0x7c   : > { %1836 = vmatprep.mubr.msk.bf16.mxu1 %vm263_vm1, %v201_v21  ;;  %1901 = vmatmul.mubr.msk.bf16.gmra.mrb[24].mxu0 %vm263_vm1, %v1043_v22 }
  0x7d   : > { %1904 = vmatprep.mubr.msk.bf16.mxu0 %vm263_vm1, %v1044_v23 }
  0x83   : > { %1837 = vmatmul.mubr.msk.bf16.gmra.mrb[28].mxu1 %vm263_vm1, %v202_v28 }
  0x84   : > { %1905 = vmatmul.mubr.msk.bf16.gmra.mrb[28].mxu0 %vm263_vm1, %v1045_v29 }
 0x11e   : > { %v1810_v30 = vpop.f32.mrb[0].mxu1 }
 0x11f   : > { %v567_v31 = vpop.f32.mrb[1].mxu1  ;;  %v1878_v32 = vpop.f32.mrb[0].mxu0 }
 0x120   : > { %v1811_v34 = vpop.f32.mrb[2].mxu1  ;;  %v1908_v35 = vadd.f32 %v1878_v32, %v1810_v30  ;;  %v1139_v36 = vpop.f32.mrb[1].mxu0 }
 0x121   : > { %v570_v37 = vpop.f32.mrb[3].mxu1  ;;  %v1909_v38 = vadd.f32 %v1139_v36, %v567_v31  ;;  %v1879_v39 = vpop.f32.mrb[2].mxu0 }
 0x122   : > { %v1307_v40 = vadd.f32 %v1908_v35, %v2252_v33  ;;  %v1910_v41 = vadd.f32 %v1879_v39, %v1811_v34  ;;  %v1142_v42 = vpop.f32.mrb[3].mxu0 }
 0x123   : > { %v1305_v43 = vadd.f32 %v1909_v38, %v2252_v33  ;;  %v1911_v44 = vadd.f32 %v1142_v42, %v570_v37 }
 0x124   : > { %vm1339_vm2 = vcmp.ge.f32.partialorder %v1307_v40, 0.0  ;;  %v1371_v45 = vmul.f32 0.01, %v1307_v40  ;;  %v1308_v46 = vadd.f32 %v1910_v41, %v2252_v33 }
 0x125   : > { %vm1337_vm4 = vcmp.ge.f32.partialorder %v1305_v43, 0.0  ;;  %v1369_v47 = vmul.f32 0.01, %v1305_v43  ;;  %v1306_v48 = vadd.f32 %v1911_v44, %v2252_v33 }
 0x126   : > { %v1814_v49 = vpop.f32.mrb[4].mxu1  ;;  %v1403_v50 = vsel %vm1339_vm2, %v1307_v40, %v1371_v45  ;;  %vm1340_vm5 = vcmp.ge.f32.partialorder %v1308_v46, 0.0  ;;  %v1372_v51 = vmul.f32 0.01, %v1308_v46 }
 0x127   : > { %v583_v52 = vpop.f32.mrb[5].mxu1  ;;  %1436 = vst.msk [vmem:[%s2259_s5 + $0x10] sm:$0xff] %vm1433_vm3, %v1403_v50  ;;  %v1401_v53 = vsel %vm1337_vm4, %v1305_v43, %v1369_v47  ;;  %vm1338_vm6 = vcmp.ge.f32.partialorder %v1306_v48, 0.0  ;;  %v1370_v54 = vmul.f32 0.01, %v1306_v48  ;;  %v1882_v55 = vpop.f32.mrb[4].mxu0 }
 0x128   : > { %v1815_v56 = vpop.f32.mrb[6].mxu1  ;;  %1434 = vst.msk [vmem:[%s2259_s5] sm:$0xff] %vm1433_vm3, %v1401_v53  ;;  %v1404_v57 = vsel %vm1340_vm5, %v1308_v46, %v1372_v51  ;;  %v1912_v58 = vadd.f32 %v1882_v55, %v1814_v49  ;;  %v1155_v59 = vpop.f32.mrb[5].mxu0 }
 0x129   : > { %v586_v60 = vpop.f32.mrb[7].mxu1  ;;  %1437 = vst.msk [vmem:[%s2259_s5 + $0x18] sm:$0xff] %vm1433_vm3, %v1404_v57  ;;  %v1402_v61 = vsel %vm1338_vm6, %v1306_v48, %v1370_v54  ;;  %v1913_v62 = vadd.f32 %v1155_v59, %v583_v52  ;;  %v1883_v63 = vpop.f32.mrb[6].mxu0 }
 0x12a   : > { %1435 = vst.msk [vmem:[%s2259_s5 + $0x8] sm:$0xff] %vm1433_vm3, %v1402_v61  ;;  %v1311_v0 = vadd.f32 %v1912_v58, %v2252_v33  ;;  %v1914_v1 = vadd.f32 %v1883_v63, %v1815_v56  ;;  %v1158_v2 = vpop.f32.mrb[7].mxu0 }
 0x12b   : > { %v1309_v3 = vadd.f32 %v1913_v62, %v2252_v33  ;;  %v1915_v4 = vadd.f32 %v1158_v2, %v586_v60 }
 0x12c   : > { %vm1343_vm7 = vcmp.ge.f32.partialorder %v1311_v0, 0.0  ;;  %v1375_v5 = vmul.f32 0.01, %v1311_v0  ;;  %v1312_v6 = vadd.f32 %v1914_v1, %v2252_v33 }
 0x12d   : > { %vm1341_vm8 = vcmp.ge.f32.partialorder %v1309_v3, 0.0  ;;  %v1373_v7 = vmul.f32 0.01, %v1309_v3  ;;  %v1310_v8 = vadd.f32 %v1915_v4, %v2252_v33 }
 0x12e   : > { %v1818_v9 = vpop.f32.mrb[8].mxu1  ;;  %v1407_v10 = vsel %vm1343_vm7, %v1311_v0, %v1375_v5  ;;  %vm1344_vm9 = vcmp.ge.f32.partialorder %v1312_v6, 0.0  ;;  %v1376_v11 = vmul.f32 0.01, %v1312_v6 }
 0x12f   : > { %v599_v12 = vpop.f32.mrb[9].mxu1  ;;  %1440 = vst.msk [vmem:[%s2259_s5 + $0x30] sm:$0xff] %vm1433_vm3, %v1407_v10  ;;  %v1405_v13 = vsel %vm1341_vm8, %v1309_v3, %v1373_v7  ;;  %vm1342_vm10 = vcmp.ge.f32.partialorder %v1310_v8, 0.0  ;;  %v1374_v14 = vmul.f32 0.01, %v1310_v8  ;;  %v1886_v15 = vpop.f32.mrb[8].mxu0 }
 0x130   : > { %v1819_v16 = vpop.f32.mrb[10].mxu1  ;;  %1438 = vst.msk [vmem:[%s2259_s5 + $0x20] sm:$0xff] %vm1433_vm3, %v1405_v13  ;;  %v1408_v17 = vsel %vm1344_vm9, %v1312_v6, %v1376_v11  ;;  %v1916_v18 = vadd.f32 %v1886_v15, %v1818_v9  ;;  %v1171_v19 = vpop.f32.mrb[9].mxu0 }
 0x131   : > { %v602_v20 = vpop.f32.mrb[11].mxu1  ;;  %1441 = vst.msk [vmem:[%s2259_s5 + $0x38] sm:$0xff] %vm1433_vm3, %v1408_v17  ;;  %v1406_v21 = vsel %vm1342_vm10, %v1310_v8, %v1374_v14  ;;  %v1917_v22 = vadd.f32 %v1171_v19, %v599_v12  ;;  %v1887_v23 = vpop.f32.mrb[10].mxu0 }
 0x132   : > { %1439 = vst.msk [vmem:[%s2259_s5 + $0x28] sm:$0xff] %vm1433_vm3, %v1406_v21  ;;  %v1315_v24 = vadd.f32 %v1916_v18, %v2252_v33  ;;  %v1918_v25 = vadd.f32 %v1887_v23, %v1819_v16  ;;  %v1174_v26 = vpop.f32.mrb[11].mxu0 }
 0x133   : > { %v1313_v27 = vadd.f32 %v1917_v22, %v2252_v33  ;;  %v1919_v28 = vadd.f32 %v1174_v26, %v602_v20 }
 0x134   : > { %vm1347_vm11 = vcmp.ge.f32.partialorder %v1315_v24, 0.0  ;;  %v1379_v29 = vmul.f32 0.01, %v1315_v24  ;;  %v1316_v30 = vadd.f32 %v1918_v25, %v2252_v33 }
 0x135   : > { %vm1345_vm12 = vcmp.ge.f32.partialorder %v1313_v27, 0.0  ;;  %v1377_v31 = vmul.f32 0.01, %v1313_v27  ;;  %v1314_v32 = vadd.f32 %v1919_v28, %v2252_v33 }
 0x136   : > { %v1822_v34 = vpop.f32.mrb[12].mxu1  ;;  %v1411_v35 = vsel %vm1347_vm11, %v1315_v24, %v1379_v29  ;;  %vm1348_vm13 = vcmp.ge.f32.partialorder %v1316_v30, 0.0  ;;  %v1380_v36 = vmul.f32 0.01, %v1316_v30 }
 0x137   : > { %v615_v37 = vpop.f32.mrb[13].mxu1  ;;  %1444 = vst.msk [vmem:[%s2259_s5 + $0x50] sm:$0xff] %vm1433_vm3, %v1411_v35  ;;  %v1409_v38 = vsel %vm1345_vm12, %v1313_v27, %v1377_v31  ;;  %vm1346_vm14 = vcmp.ge.f32.partialorder %v1314_v32, 0.0  ;;  %v1378_v39 = vmul.f32 0.01, %v1314_v32  ;;  %v1890_v40 = vpop.f32.mrb[12].mxu0 }
 0x138   : > { %v1823_v41 = vpop.f32.mrb[14].mxu1  ;;  %1442 = vst.msk [vmem:[%s2259_s5 + $0x40] sm:$0xff] %vm1433_vm3, %v1409_v38  ;;  %v1412_v42 = vsel %vm1348_vm13, %v1316_v30, %v1380_v36  ;;  %v1920_v43 = vadd.f32 %v1890_v40, %v1822_v34  ;;  %v1187_v44 = vpop.f32.mrb[13].mxu0 }
 0x139   : > { %v618_v45 = vpop.f32.mrb[15].mxu1  ;;  %1445 = vst.msk [vmem:[%s2259_s5 + $0x58] sm:$0xff] %vm1433_vm3, %v1412_v42  ;;  %v1410_v46 = vsel %vm1346_vm14, %v1314_v32, %v1378_v39  ;;  %v1921_v47 = vadd.f32 %v1187_v44, %v615_v37  ;;  %v1891_v48 = vpop.f32.mrb[14].mxu0 }
 0x13a   : > { %1443 = vst.msk [vmem:[%s2259_s5 + $0x48] sm:$0xff] %vm1433_vm3, %v1410_v46  ;;  %v1319_v49 = vadd.f32 %v1920_v43, %v2252_v33  ;;  %v1922_v50 = vadd.f32 %v1891_v48, %v1823_v41  ;;  %v1190_v51 = vpop.f32.mrb[15].mxu0 }
 0x13b   : > { %v1317_v52 = vadd.f32 %v1921_v47, %v2252_v33  ;;  %v1923_v53 = vadd.f32 %v1190_v51, %v618_v45 }
 0x13c   : > { %vm1351_vm15 = vcmp.ge.f32.partialorder %v1319_v49, 0.0  ;;  %v1383_v54 = vmul.f32 0.01, %v1319_v49  ;;  %v1320_v55 = vadd.f32 %v1922_v50, %v2252_v33 }
 0x13d   : > { %vm1349_vm0 = vcmp.ge.f32.partialorder %v1317_v52, 0.0  ;;  %v1381_v56 = vmul.f32 0.01, %v1317_v52  ;;  %v1318_v57 = vadd.f32 %v1923_v53, %v2252_v33 }
 0x13e   : > { %v1826_v58 = vpop.f32.mrb[16].mxu1  ;;  %v1415_v59 = vsel %vm1351_vm15, %v1319_v49, %v1383_v54  ;;  %vm1352_vm1 = vcmp.ge.f32.partialorder %v1320_v55, 0.0  ;;  %v1384_v60 = vmul.f32 0.01, %v1320_v55 }
 0x13f   : > { %v631_v61 = vpop.f32.mrb[17].mxu1  ;;  %1448 = vst.msk [vmem:[%s2259_s5 + $0x70] sm:$0xff] %vm1433_vm3, %v1415_v59  ;;  %v1413_v62 = vsel %vm1349_vm0, %v1317_v52, %v1381_v56  ;;  %vm1350_vm2 = vcmp.ge.f32.partialorder %v1318_v57, 0.0  ;;  %v1382_v63 = vmul.f32 0.01, %v1318_v57  ;;  %v1894_v0 = vpop.f32.mrb[16].mxu0 }
 0x140   : > { %v1827_v1 = vpop.f32.mrb[18].mxu1  ;;  %1446 = vst.msk [vmem:[%s2259_s5 + $0x60] sm:$0xff] %vm1433_vm3, %v1413_v62  ;;  %v1416_v2 = vsel %vm1352_vm1, %v1320_v55, %v1384_v60  ;;  %v1924_v3 = vadd.f32 %v1894_v0, %v1826_v58  ;;  %v1203_v4 = vpop.f32.mrb[17].mxu0 }
 0x141   : > { %v634_v5 = vpop.f32.mrb[19].mxu1  ;;  %1449 = vst.msk [vmem:[%s2259_s5 + $0x78] sm:$0xff] %vm1433_vm3, %v1416_v2  ;;  %v1414_v6 = vsel %vm1350_vm2, %v1318_v57, %v1382_v63  ;;  %v1925_v7 = vadd.f32 %v1203_v4, %v631_v61  ;;  %v1895_v8 = vpop.f32.mrb[18].mxu0 }
 0x142   : > { %1447 = vst.msk [vmem:[%s2259_s5 + $0x68] sm:$0xff] %vm1433_vm3, %v1414_v6  ;;  %v1323_v9 = vadd.f32 %v1924_v3, %v2252_v33  ;;  %v1926_v10 = vadd.f32 %v1895_v8, %v1827_v1  ;;  %v1206_v11 = vpop.f32.mrb[19].mxu0 }
 0x143   : > { %v1321_v12 = vadd.f32 %v1925_v7, %v2252_v33  ;;  %v1927_v13 = vadd.f32 %v1206_v11, %v634_v5 }
 0x144   : > { %vm1355_vm4 = vcmp.ge.f32.partialorder %v1323_v9, 0.0  ;;  %v1387_v14 = vmul.f32 0.01, %v1323_v9  ;;  %v1324_v15 = vadd.f32 %v1926_v10, %v2252_v33 }
 0x145   : > { %vm1353_vm5 = vcmp.ge.f32.partialorder %v1321_v12, 0.0  ;;  %v1385_v16 = vmul.f32 0.01, %v1321_v12  ;;  %v1322_v17 = vadd.f32 %v1927_v13, %v2252_v33 }
 0x146   : > { %v1830_v18 = vpop.f32.mrb[20].mxu1  ;;  %v1419_v19 = vsel %vm1355_vm4, %v1323_v9, %v1387_v14  ;;  %vm1356_vm6 = vcmp.ge.f32.partialorder %v1324_v15, 0.0  ;;  %v1388_v20 = vmul.f32 0.01, %v1324_v15 }
 0x147   : > { %v647_v21 = vpop.f32.mrb[21].mxu1  ;;  %1452 = vst.msk [vmem:[%s2259_s5 + $0x90] sm:$0xff] %vm1433_vm3, %v1419_v19  ;;  %v1417_v22 = vsel %vm1353_vm5, %v1321_v12, %v1385_v16  ;;  %vm1354_vm7 = vcmp.ge.f32.partialorder %v1322_v17, 0.0  ;;  %v1386_v23 = vmul.f32 0.01, %v1322_v17  ;;  %v1898_v24 = vpop.f32.mrb[20].mxu0 }
 0x148   : > { %v1831_v25 = vpop.f32.mrb[22].mxu1  ;;  %1450 = vst.msk [vmem:[%s2259_s5 + $0x80] sm:$0xff] %vm1433_vm3, %v1417_v22  ;;  %v1420_v26 = vsel %vm1356_vm6, %v1324_v15, %v1388_v20  ;;  %v1928_v27 = vadd.f32 %v1898_v24, %v1830_v18  ;;  %v1219_v28 = vpop.f32.mrb[21].mxu0 }
 0x149   : > { %v650_v29 = vpop.f32.mrb[23].mxu1  ;;  %1453 = vst.msk [vmem:[%s2259_s5 + $0x98] sm:$0xff] %vm1433_vm3, %v1420_v26  ;;  %v1418_v30 = vsel %vm1354_vm7, %v1322_v17, %v1386_v23  ;;  %v1929_v31 = vadd.f32 %v1219_v28, %v647_v21  ;;  %v1899_v32 = vpop.f32.mrb[22].mxu0 }
 0x14a   : > { %1451 = vst.msk [vmem:[%s2259_s5 + $0x88] sm:$0xff] %vm1433_vm3, %v1418_v30  ;;  %v1327_v34 = vadd.f32 %v1928_v27, %v2252_v33  ;;  %v1930_v35 = vadd.f32 %v1899_v32, %v1831_v25  ;;  %v1222_v36 = vpop.f32.mrb[23].mxu0 }
 0x14b   : > { %v1325_v37 = vadd.f32 %v1929_v31, %v2252_v33  ;;  %v1931_v38 = vadd.f32 %v1222_v36, %v650_v29 }
 0x14c   : > { %vm1359_vm8 = vcmp.ge.f32.partialorder %v1327_v34, 0.0  ;;  %v1391_v39 = vmul.f32 0.01, %v1327_v34  ;;  %v1328_v40 = vadd.f32 %v1930_v35, %v2252_v33 }
 0x14d   : > { %vm1357_vm9 = vcmp.ge.f32.partialorder %v1325_v37, 0.0  ;;  %v1389_v41 = vmul.f32 0.01, %v1325_v37  ;;  %v1326_v42 = vadd.f32 %v1931_v38, %v2252_v33 }
 0x14e   : > { %v1834_v43 = vpop.f32.mrb[24].mxu1  ;;  %v1423_v44 = vsel %vm1359_vm8, %v1327_v34, %v1391_v39  ;;  %vm1360_vm10 = vcmp.ge.f32.partialorder %v1328_v40, 0.0  ;;  %v1392_v45 = vmul.f32 0.01, %v1328_v40 }
 0x14f   : > { %v663_v46 = vpop.f32.mrb[25].mxu1  ;;  %1456 = vst.msk [vmem:[%s2259_s5 + $0xb0] sm:$0xff] %vm1433_vm3, %v1423_v44  ;;  %v1421_v47 = vsel %vm1357_vm9, %v1325_v37, %v1389_v41  ;;  %vm1358_vm11 = vcmp.ge.f32.partialorder %v1326_v42, 0.0  ;;  %v1390_v48 = vmul.f32 0.01, %v1326_v42  ;;  %v1902_v49 = vpop.f32.mrb[24].mxu0 }
 0x150   : > { %v1835_v50 = vpop.f32.mrb[26].mxu1  ;;  %1454 = vst.msk [vmem:[%s2259_s5 + $0xa0] sm:$0xff] %vm1433_vm3, %v1421_v47  ;;  %v1424_v51 = vsel %vm1360_vm10, %v1328_v40, %v1392_v45  ;;  %v1932_v52 = vadd.f32 %v1902_v49, %v1834_v43  ;;  %v1235_v53 = vpop.f32.mrb[25].mxu0 }
 0x151   : > { %v666_v54 = vpop.f32.mrb[27].mxu1  ;;  %1457 = vst.msk [vmem:[%s2259_s5 + $0xb8] sm:$0xff] %vm1433_vm3, %v1424_v51  ;;  %v1422_v55 = vsel %vm1358_vm11, %v1326_v42, %v1390_v48  ;;  %v1933_v56 = vadd.f32 %v1235_v53, %v663_v46  ;;  %v1903_v57 = vpop.f32.mrb[26].mxu0 }
 0x152   : > { %1455 = vst.msk [vmem:[%s2259_s5 + $0xa8] sm:$0xff] %vm1433_vm3, %v1422_v55  ;;  %v1331_v58 = vadd.f32 %v1932_v52, %v2252_v33  ;;  %v1934_v59 = vadd.f32 %v1903_v57, %v1835_v50  ;;  %v1238_v60 = vpop.f32.mrb[27].mxu0 }
 0x153   : > { %v1329_v61 = vadd.f32 %v1933_v56, %v2252_v33  ;;  %v1935_v62 = vadd.f32 %v1238_v60, %v666_v54 }
 0x154   : > { %vm1363_vm12 = vcmp.ge.f32.partialorder %v1331_v58, 0.0  ;;  %v1395_v63 = vmul.f32 0.01, %v1331_v58  ;;  %v1332_v0 = vadd.f32 %v1934_v59, %v2252_v33 }
 0x155   : > { %vm1361_vm13 = vcmp.ge.f32.partialorder %v1329_v61, 0.0  ;;  %v1393_v1 = vmul.f32 0.01, %v1329_v61  ;;  %v1330_v2 = vadd.f32 %v1935_v62, %v2252_v33 }
 0x156   : > { %v1838_v3 = vpop.f32.mrb[28].mxu1  ;;  %v1427_v4 = vsel %vm1363_vm12, %v1331_v58, %v1395_v63  ;;  %vm1364_vm14 = vcmp.ge.f32.partialorder %v1332_v0, 0.0  ;;  %v1396_v5 = vmul.f32 0.01, %v1332_v0 }
 0x157   : > { %v679_v6 = vpop.f32.mrb[29].mxu1  ;;  %1460 = vst.msk [vmem:[%s2259_s5 + $0xd0] sm:$0xff] %vm1433_vm3, %v1427_v4  ;;  %v1425_v7 = vsel %vm1361_vm13, %v1329_v61, %v1393_v1  ;;  %vm1362_vm15 = vcmp.ge.f32.partialorder %v1330_v2, 0.0  ;;  %v1394_v8 = vmul.f32 0.01, %v1330_v2  ;;  %v1906_v9 = vpop.f32.mrb[28].mxu0 }
 0x158   : > { %v1839_v10 = vpop.f32.mrb[30].mxu1  ;;  %1458 = vst.msk [vmem:[%s2259_s5 + $0xc0] sm:$0xff] %vm1433_vm3, %v1425_v7  ;;  %v1428_v11 = vsel %vm1364_vm14, %v1332_v0, %v1396_v5  ;;  %v1936_v12 = vadd.f32 %v1906_v9, %v1838_v3  ;;  %v1251_v13 = vpop.f32.mrb[29].mxu0 }
 0x159   : > { %v682_v14 = vpop.f32.mrb[31].mxu1  ;;  %1461 = vst.msk [vmem:[%s2259_s5 + $0xd8] sm:$0xff] %vm1433_vm3, %v1428_v11  ;;  %v1426_v15 = vsel %vm1362_vm15, %v1330_v2, %v1394_v8  ;;  %v1937_v16 = vadd.f32 %v1251_v13, %v679_v6  ;;  %v1907_v17 = vpop.f32.mrb[30].mxu0 }
 0x15a   : > { %1459 = vst.msk [vmem:[%s2259_s5 + $0xc8] sm:$0xff] %vm1433_vm3, %v1426_v15  ;;  %v1335_v18 = vadd.f32 %v1936_v12, %v2252_v33  ;;  %v1938_v19 = vadd.f32 %v1907_v17, %v1839_v10  ;;  %v1254_v20 = vpop.f32.mrb[31].mxu0 }
 0x15b   : > { %v1333_v21 = vadd.f32 %v1937_v16, %v2252_v33  ;;  %v1939_v22 = vadd.f32 %v1254_v20, %v682_v14 }
 0x15c   : > { %vm1367_vm0 = vcmp.ge.f32.partialorder %v1335_v18, 0.0  ;;  %v1399_v23 = vmul.f32 0.01, %v1335_v18  ;;  %v1336_v24 = vadd.f32 %v1938_v19, %v2252_v33 }
 0x15d   : > { %vm1365_vm1 = vcmp.ge.f32.partialorder %v1333_v21, 0.0  ;;  %v1397_v25 = vmul.f32 0.01, %v1333_v21  ;;  %v1334_v26 = vadd.f32 %v1939_v22, %v2252_v33 }
 0x15e   : > { %v1431_v27 = vsel %vm1367_vm0, %v1335_v18, %v1399_v23  ;;  %vm1368_vm2 = vcmp.ge.f32.partialorder %v1336_v24, 0.0  ;;  %v1400_v28 = vmul.f32 0.01, %v1336_v24 }
 0x15f   : > { %1464 = vst.msk [vmem:[%s2259_s5 + $0xf0] sm:$0xff] %vm1433_vm3, %v1431_v27  ;;  %v1429_v29 = vsel %vm1365_vm1, %v1333_v21, %v1397_v25  ;;  %vm1366_vm4 = vcmp.ge.f32.partialorder %v1334_v26, 0.0  ;;  %v1398_v30 = vmul.f32 0.01, %v1334_v26 }
 0x160   : > { %1462 = vst.msk [vmem:[%s2259_s5 + $0xe0] sm:$0xff] %vm1433_vm3, %v1429_v29  ;;  %v1432_v31 = vsel %vm1368_vm2, %v1336_v24, %v1400_v28 }
 0x161   : > { %1465 = vst.msk [vmem:[%s2259_s5 + $0xf8] sm:$0xff] %vm1433_vm3, %v1432_v31  ;;  %v1430_v32 = vsel %vm1366_vm4, %v1334_v26, %v1398_v30 }
 0x162   : > { %1463 = vst.msk [vmem:[%s2259_s5 + $0xe8] sm:$0xff] %vm1433_vm3, %v1430_v32 }
 0x163 PF: > { %s13_s12 = sadd.s32 1, %s2026_s12  }
 0x164   : > { %p10_p4 = scmp.ge.s32.totalorder %s13_s12, 11  }
 0x166   :  { %12 = sbr.rel (!%p10_p4) target bundleno = 1 (0x1), region = 66 }

// kernel: vanilla_vae_forward.14
= control target key start
LH: loop header
LB: loop body
LE: loop exit
PB: predicated region body
PF: predicated region fallthrough
CT: control target
= control target key end

     0   :  { %s2093_s12 = smov 0   ;;  %s2405_s0 = inlined_call_operand.vmem [shape: f32[792,32], index: 0, kind: input, shape index: {}]   ;;  %s2406_s1 = inlined_call_operand.vmem [shape: bf16[4,32,16], index: 1, kind: input, shape index: {}]   ;;  %s2407_s2 = inlined_call_operand.vmem [shape: f32[1,16], index: 2, kind: input, shape index: {}]   ;;  %s2408_s3 = inlined_call_operand.vmem [shape: f32[768,16], index: 3, kind: output, shape index: {}]  }
   0x1 LB: > { %s1544_s13 = sadd.s32 4294967295, %s2071_s12   ;;  %p1547_p0 = scmp.ge.s32.totalorder %s2071_s12, 1  ;;  %s2071_s12 = sphi %s2093_s12, %s13_s12  }
   0x2   : > { %p127_p1 = scmp.lt.s32.totalorder %s2071_s12, 4 }
   0x4   : > { %p128_p2 = pnand %p1547_p0, %p127_p1 }
   0x5   : > { %v2057_v0 = vld [vmem:[%s2406_s1 + $0x10] sm:$0xff] (!%p128_p2)   ;;  %s1550_s16 = sshll.u32 (!%p128_p2), %s1544_s13, 8  ;;  %v2058_v1 = vld [vmem:[%s2406_s1 + $0x20] sm:$0xff] (!%p128_p2)   ;;  %v2059_v2 = vld [vmem:[%s2406_s1 + $0x18] sm:$0xff] (!%p128_p2)   ;;  %vm274_vm0 = vcmask (!%p128_p2), 261120   ;;  %s1548_s7 = sshll.u32 (!%p128_p2), %s1544_s13, 5 }
   0x6   : > { %131 = sbr.rel (%p128_p2) target bundleno = 357 (0x165), region = 32  ;;  %s2112_s21 = scalar_lea.vmem (!%p128_p2), %s2405_s0, %s1550_s16  ;;  %1809 = vmatprep.subr.bf16.mxu1 (!%p128_p2), %v2057_v0  ;;  %1881 = vmatprep.subr.bf16.mxu0 (!%p128_p2), %v2058_v1  ;;  %v2060_v3 = vld [vmem:[%s2406_s1 + $0x28] sm:$0xff] (!%p128_p2)   ;;  %v2061_v10 = vld [vmem:[%s2406_s1] sm:$0xff] (!%p128_p2)   ;;  %v2062_v14 = vld [vmem:[%s2406_s1 + $0x30] sm:$0xff] (!%p128_p2)   ;;  %vm1456_vm2 = vcmask (!%p128_p2), 130048  }
   0x7   : > { %1810 = vmatpush3.bf16.msra.mxu1 (!%p128_p2), %v2057_v0  ;;  %1882 = vmatpush3.bf16.msra.mxu0 (!%p128_p2), %v2058_v1  ;;  %v1552_v4 = vld [vmem:[%s2112_s21 + $0x1] sm:$0xff] (!%p128_p2)  ;;  %v1553_v5 = vld [vmem:[%s2112_s21 + $0x9] sm:$0xff] (!%p128_p2)  ;;  %v1625_v6 = vld [vmem:[%s2112_s21 + $0x11] sm:$0xff] (!%p128_p2)  ;;  %p147_p3 = scmp.lt.s32.totalorder (!%p128_p2), %s1548_s7, 95 }
   0x8   : > { %1811 = vmatprep.subr.bf16.mxu1 (!%p128_p2), %v2059_v2  ;;  %1883 = vmatprep.subr.bf16.mxu0 (!%p128_p2), %v2060_v3  ;;  %v241_v7 = vpack.c.bf16 (!%p128_p2), %v1553_v5, %v1552_v4  ;;  %v1626_v8 = vld [vmem:[%s2112_s21 + $0x19] sm:$0xff] (!%p128_p2)  ;;  %v1627_v11 = vld [vmem:[%s2112_s21 + $0x21] sm:$0xff] (!%p128_p2)  ;;  %v1628_v12 = vld [vmem:[%s2112_s21 + $0x29] sm:$0xff] (!%p128_p2) }
   0x9   : > { %v739_v9 = vpack.c.bf16 (!%p128_p2), %v1626_v8, %v1625_v6  ;;  %v740_v13 = vpack.c.bf16 (!%p128_p2), %v1628_v12, %v1627_v11  ;;  %v1629_v15 = vld [vmem:[%s2112_s21 + $0x31] sm:$0xff] (!%p128_p2)  ;;  %v1630_v16 = vld [vmem:[%s2112_s21 + $0x39] sm:$0xff] (!%p128_p2)  ;;  %v1631_v18 = vld [vmem:[%s2112_s21 + $0x41] sm:$0xff] (!%p128_p2) }
   0xa   : > { %1813 = vmatprep.mubr.msk.bf16.mxu1 (!%p128_p2), %vm274_vm0, %v241_v7  ;;  %v741_v17 = vpack.c.bf16 (!%p128_p2), %v1630_v16, %v1629_v15  ;;  %v1632_v19 = vld [vmem:[%s2112_s21 + $0x49] sm:$0xff] (!%p128_p2)  ;;  %v1633_v20 = vld [vmem:[%s2112_s21 + $0x51] sm:$0xff] (!%p128_p2)  ;;  %v1634_v21 = vld [vmem:[%s2112_s21 + $0x59] sm:$0xff] (!%p128_p2) }
   0xb   : > { %1812 = vmatpush3.bf16.msra.mxu1 (!%p128_p2), %v2059_v2  ;;  %1884 = vmatpush3.bf16.msra.mxu0 (!%p128_p2), %v2060_v3  ;;  %v2063_v22 = vld [vmem:[%s2406_s1 + $0x8] sm:$0xff] (!%p128_p2)   ;;  %v742_v23 = vpack.c.bf16 (!%p128_p2), %v1632_v19, %v1631_v18  ;;  %v2064_v24 = vld [vmem:[%s2406_s1 + $0x38] sm:$0xff] (!%p128_p2)   ;;  %v743_v25 = vpack.c.bf16 (!%p128_p2), %v1634_v21, %v1633_v20  ;;  %v155_v58 = vld [vmem:[%s2112_s21] sm:$0xff] (!%p128_p2) }
   0xc   : > { %1885 = vmatprep.mubr.msk.bf16.mxu0 (!%p128_p2), %vm274_vm0, %v739_v9  ;;  %1845 = vmatprep.subr.bf16.mxu1 (!%p128_p2), %v2061_v10  ;;  %v1635_v26 = vld [vmem:[%s2112_s21 + $0x61] sm:$0xff] (!%p128_p2)  ;;  %v1636_v27 = vld [vmem:[%s2112_s21 + $0x69] sm:$0xff] (!%p128_p2)  ;;  %v1637_v28 = vld [vmem:[%s2112_s21 + $0x71] sm:$0xff] (!%p128_p2) }
   0xd   : > { %1917 = vmatprep.subr.bf16.mxu0 %v2062_v14  ;;  %v1638_v29 = vld [vmem:[%s2112_s21 + $0x79] sm:$0xff]  ;;  %v744_v30 = vpack.c.bf16 %v1636_v27, %v1635_v26  ;;  %v1639_v32 = vld [vmem:[%s2112_s21 + $0x81] sm:$0xff]  ;;  %v1640_v33 = vld [vmem:[%s2112_s21 + $0x89] sm:$0xff]  ;;  %s2410_s7 = smov (!%p147_p3, %s1548_s7), 95 }
   0xe   : > { %1814 = vmatmul.mubr.msk.bf16.vlgmr.msra.gmra.mrb[0].mxu1 %vm274_vm0, %v739_v9  ;;  %1886 = vmatmul.mubr.msk.bf16.vlgmr.msra.gmra.mrb[0].mxu0 %vm274_vm0, %v740_v13  ;;  %v745_v31 = vpack.c.bf16 %v1638_v29, %v1637_v28  ;;  %v1641_v34 = vld [vmem:[%s2112_s21 + $0x91] sm:$0xff]  ;;  %v1642_v35 = vld [vmem:[%s2112_s21 + $0x99] sm:$0xff]  ;;  %v746_v36 = vpack.c.bf16 %v1640_v33, %v1639_v32  ;;  %v1643_v38 = vld [vmem:[%s2112_s21 + $0xa1] sm:$0xff]  ;;  %s1549_s10 = sshll.u32 %s2410_s7, 3 }
   0xf   : > { %1846 = vmatpush3.bf16.msra.mxu1 %v2061_v10  ;;  %1918 = vmatpush3.bf16.msra.mxu0 %v2062_v14  ;;  %v747_v37 = vpack.c.bf16 %v1642_v35, %v1641_v34  ;;  %v1644_v39 = vld [vmem:[%s2112_s21 + $0xa9] sm:$0xff]  ;;  %v1645_v40 = vld [vmem:[%s2112_s21 + $0xb1] sm:$0xff]  ;;  %v1646_v41 = vld [vmem:[%s2112_s21 + $0xb9] sm:$0xff]  ;;  %s2306_s14 = scalar_lea.vmem %s2408_s3, %s1549_s10 }
  0x10   : > { %1817 = vmatprep.mubr.msk.bf16.mxu1 %vm274_vm0, %v740_v13  ;;  %1889 = vmatprep.mubr.msk.bf16.mxu0 %vm274_vm0, %v741_v17  ;;  %v748_v42 = vpack.c.bf16 %v1644_v39, %v1643_v38  ;;  %v749_v43 = vpack.c.bf16 %v1646_v41, %v1645_v40  ;;  %v1647_v44 = vld [vmem:[%s2112_s21 + $0xc1] sm:$0xff]  ;;  %v1648_v45 = vld [vmem:[%s2112_s21 + $0xc9] sm:$0xff]  ;;  %v1649_v46 = vld [vmem:[%s2112_s21 + $0xd1] sm:$0xff] }
  0x11   : > { %1847 = vmatprep.subr.bf16.mxu1 %v2063_v22  ;;  %1919 = vmatprep.subr.bf16.mxu0 %v2064_v24  ;;  %v1650_v47 = vld [vmem:[%s2112_s21 + $0xd9] sm:$0xff]  ;;  %v750_v48 = vpack.c.bf16 %v1648_v45, %v1647_v44  ;;  %v1651_v50 = vld [vmem:[%s2112_s21 + $0xe1] sm:$0xff]  ;;  %v1652_v51 = vld [vmem:[%s2112_s21 + $0xe9] sm:$0xff] }
  0x12   : > { %v751_v49 = vpack.c.bf16 %v1650_v47, %v1649_v46  ;;  %v1653_v52 = vld [vmem:[%s2112_s21 + $0xf1] sm:$0xff]  ;;  %v1654_v53 = vld [vmem:[%s2112_s21 + $0xf9] sm:$0xff]  ;;  %v752_v54 = vpack.c.bf16 %v1652_v51, %v1651_v50  ;;  %v1655_v56 = vld [vmem:[%s2112_s21 + $0x101] sm:$0xff] }
  0x13   : > { %1848 = vmatpush3.bf16.msra.mxu1 %v2063_v22  ;;  %1920 = vmatpush3.bf16.msra.mxu0 %v2064_v24  ;;  %v753_v55 = vpack.c.bf16 %v1654_v53, %v1653_v52  ;;  %v1656_v57 = vld [vmem:[%s2112_s21 + $0x109] sm:$0xff]  ;;  %v1680_v60 = vld [vmem:[%s2112_s21 + $0x12] sm:$0xff]  ;;  %v1681_v61 = vld [vmem:[%s2112_s21 + $0x1a] sm:$0xff] }
  0x14   : > { %v156_v59 = vld [vmem:[%s2112_s21 + $0x8] sm:$0xff]  ;;  %v754_v62 = vpack.c.bf16 %v1656_v57, %v1655_v56  ;;  %v1047_v0 = vpack.c.bf16 %v1681_v61, %v1680_v60  ;;  %v157_v1 = vld [vmem:[%s2112_s21 + $0x10] sm:$0xff]  ;;  %v158_v2 = vld [vmem:[%s2112_s21 + $0x18] sm:$0xff] }
  0x15   : > { %v187_v63 = vpack.c.bf16 %v156_v59, %v155_v58  ;;  %v1682_v3 = vld [vmem:[%s2112_s21 + $0x22] sm:$0xff]  ;;  %v1683_v4 = vld [vmem:[%s2112_s21 + $0x2a] sm:$0xff]  ;;  %v1684_v7 = vld [vmem:[%s2112_s21 + $0x32] sm:$0xff]  ;;  %v188_v9 = vpack.c.bf16 %v158_v2, %v157_v1 }
  0x16   : > { %1818 = vmatmul.mubr.msk.bf16.gmra.mrb[4].mxu1 %vm274_vm0, %v741_v17  ;;  %1890 = vmatmul.mubr.msk.bf16.gmra.mrb[4].mxu0 %vm274_vm0, %v742_v23  ;;  %v159_v5 = vld [vmem:[%s2112_s21 + $0x20] sm:$0xff]  ;;  %v160_v6 = vld [vmem:[%s2112_s21 + $0x28] sm:$0xff]  ;;  %v1048_v10 = vpack.c.bf16 %v1683_v4, %v1682_v3  ;;  %v161_v13 = vld [vmem:[%s2112_s21 + $0x30] sm:$0xff] }
  0x17   : > { %1821 = vmatprep.mubr.msk.bf16.mxu1 %vm274_vm0, %v742_v23  ;;  %1893 = vmatprep.mubr.msk.bf16.mxu0 %vm274_vm0, %v743_v25  ;;  %v1685_v8 = vld [vmem:[%s2112_s21 + $0x3a] sm:$0xff]  ;;  %v189_v11 = vpack.c.bf16 %v160_v6, %v159_v5  ;;  %v1686_v15 = vld [vmem:[%s2112_s21 + $0x42] sm:$0xff]  ;;  %v1687_v16 = vld [vmem:[%s2112_s21 + $0x4a] sm:$0xff] }
  0x18   : > { %v1049_v12 = vpack.c.bf16 %v1685_v8, %v1684_v7  ;;  %v162_v14 = vld [vmem:[%s2112_s21 + $0x38] sm:$0xff]  ;;  %v163_v17 = vld [vmem:[%s2112_s21 + $0x40] sm:$0xff]  ;;  %v164_v18 = vld [vmem:[%s2112_s21 + $0x48] sm:$0xff]  ;;  %v1050_v22 = vpack.c.bf16 %v1687_v16, %v1686_v15 }
  0x19   : > { %v1688_v19 = vld [vmem:[%s2112_s21 + $0x52] sm:$0xff]  ;;  %v1689_v20 = vld [vmem:[%s2112_s21 + $0x5a] sm:$0xff]  ;;  %v190_v21 = vpack.c.bf16 %v162_v14, %v161_v13  ;;  %v191_v23 = vpack.c.bf16 %v164_v18, %v163_v17  ;;  %v1690_v27 = vld [vmem:[%s2112_s21 + $0x62] sm:$0xff] }
  0x1a   : > { %v1051_v24 = vpack.c.bf16 %v1689_v20, %v1688_v19  ;;  %v166_v26 = vld [vmem:[%s2112_s21 + $0x58] sm:$0xff]  ;;  %v1691_v28 = vld [vmem:[%s2112_s21 + $0x6a] sm:$0xff]  ;;  %v167_v29 = vld [vmem:[%s2112_s21 + $0x60] sm:$0xff] }
  0x1b   : > { %v1693_v32 = vld [vmem:[%s2112_s21 + $0x7a] sm:$0xff]  ;;  %v1052_v34 = vpack.c.bf16 %v1691_v28, %v1690_v27  ;;  %v1694_v39 = vld [vmem:[%s2112_s21 + $0x82] sm:$0xff]  ;;  %v1695_v40 = vld [vmem:[%s2112_s21 + $0x8a] sm:$0xff] }
  0x1c   : > { %v170_v38 = vld [vmem:[%s2112_s21 + $0x78] sm:$0xff]  ;;  %v171_v41 = vld [vmem:[%s2112_s21 + $0x80] sm:$0xff]  ;;  %v1054_v46 = vpack.c.bf16 %v1695_v40, %v1694_v39  ;;  %v1699_v52 = vld [vmem:[%s2112_s21 + $0xaa] sm:$0xff] }
  0x1d   : > { %v1697_v44 = vld [vmem:[%s2112_s21 + $0x9a] sm:$0xff]  ;;  %v1698_v51 = vld [vmem:[%s2112_s21 + $0xa2] sm:$0xff]  ;;  %v177_v61 = vld [vmem:[%s2112_s21 + $0xb0] sm:$0xff] }
  0x1e   : > { %1822 = vmatmul.mubr.msk.bf16.gmra.mrb[8].mxu1 %vm274_vm0, %v743_v25  ;;  %1894 = vmatmul.mubr.msk.bf16.gmra.mrb[8].mxu0 %vm274_vm0, %v744_v30  ;;  %v165_v25 = vld [vmem:[%s2112_s21 + $0x50] sm:$0xff]  ;;  %v174_v50 = vld [vmem:[%s2112_s21 + $0x98] sm:$0xff]  ;;  %v175_v53 = vld [vmem:[%s2112_s21 + $0xa0] sm:$0xff]  ;;  %v1056_v58 = vpack.c.bf16 %v1699_v52, %v1698_v51 }
  0x1f   : > { %1825 = vmatprep.mubr.msk.bf16.mxu1 %vm274_vm0, %v744_v30  ;;  %1897 = vmatprep.mubr.msk.bf16.mxu0 %vm274_vm0, %v745_v31  ;;  %v168_v30 = vld [vmem:[%s2112_s21 + $0x68] sm:$0xff]  ;;  %v192_v33 = vpack.c.bf16 %v166_v26, %v165_v25  ;;  %v1701_v56 = vld [vmem:[%s2112_s21 + $0xba] sm:$0xff]  ;;  %v1704_v3 = vld [vmem:[%s2112_s21 + $0xd2] sm:$0xff] }
  0x20   : > { %v193_v35 = vpack.c.bf16 %v168_v30, %v167_v29  ;;  %v179_v1 = vld [vmem:[%s2112_s21 + $0xc0] sm:$0xff]  ;;  %v180_v2 = vld [vmem:[%s2112_s21 + $0xc8] sm:$0xff]  ;;  %v1708_v15 = vld [vmem:[%s2112_s21 + $0xf2] sm:$0xff] }
  0x21   : > { %v1705_v4 = vld [vmem:[%s2112_s21 + $0xda] sm:$0xff]  ;;  %v199_v7 = vpack.c.bf16 %v180_v2, %v179_v1  ;;  %v184_v14 = vld [vmem:[%s2112_s21 + $0xe8] sm:$0xff] }
  0x22   : > { %v1059_v8 = vpack.c.bf16 %v1705_v4, %v1704_v3  ;;  %v183_v13 = vld [vmem:[%s2112_s21 + $0xe0] sm:$0xff] }
  0x23   : > { %v1709_v16 = vld [vmem:[%s2112_s21 + $0xfa] sm:$0xff]  ;;  %v201_v19 = vpack.c.bf16 %v184_v14, %v183_v13 }
  0x24   : > { %v1061_v20 = vpack.c.bf16 %v1709_v16, %v1708_v15  ;;  %v2299_v29 = vld [vmem:[%s2407_s2] ss:$0 sm:$0xff] }
  0x26   : > { %1826 = vmatmul.mubr.msk.bf16.gmra.mrb[12].mxu1 %vm274_vm0, %v745_v31  ;;  %1898 = vmatmul.mubr.msk.bf16.gmra.mrb[12].mxu0 %vm274_vm0, %v746_v36  ;;  %v1692_v31 = vld [vmem:[%s2112_s21 + $0x72] sm:$0xff] }
  0x27   : > { %1829 = vmatprep.mubr.msk.bf16.mxu1 %vm274_vm0, %v746_v36  ;;  %1901 = vmatprep.mubr.msk.bf16.mxu0 %vm274_vm0, %v747_v37  ;;  %v1053_v36 = vpack.c.bf16 %v1693_v32, %v1692_v31 }
  0x2e   : > { %1830 = vmatmul.mubr.msk.bf16.gmra.mrb[16].mxu1 %vm274_vm0, %v747_v37  ;;  %1902 = vmatmul.mubr.msk.bf16.gmra.mrb[16].mxu0 %vm274_vm0, %v748_v42  ;;  %v169_v37 = vld [vmem:[%s2112_s21 + $0x70] sm:$0xff] }
  0x2f   : > { %1833 = vmatprep.mubr.msk.bf16.mxu1 %vm274_vm0, %v748_v42  ;;  %1905 = vmatprep.mubr.msk.bf16.mxu0 %vm274_vm0, %v749_v43  ;;  %v172_v42 = vld [vmem:[%s2112_s21 + $0x88] sm:$0xff]  ;;  %v194_v45 = vpack.c.bf16 %v170_v38, %v169_v37 }
  0x30   : > { %v195_v47 = vpack.c.bf16 %v172_v42, %v171_v41 }
  0x36   : > { %1834 = vmatmul.mubr.msk.bf16.gmra.mrb[20].mxu1 %vm274_vm0, %v749_v43  ;;  %1906 = vmatmul.mubr.msk.bf16.gmra.mrb[20].mxu0 %vm274_vm0, %v750_v48  ;;  %v1696_v43 = vld [vmem:[%s2112_s21 + $0x92] sm:$0xff] }
  0x37   : > { %1837 = vmatprep.mubr.msk.bf16.mxu1 %vm274_vm0, %v750_v48  ;;  %1909 = vmatprep.mubr.msk.bf16.mxu0 %vm274_vm0, %v751_v49  ;;  %v1055_v48 = vpack.c.bf16 %v1697_v44, %v1696_v43 }
  0x3e   : > { %1838 = vmatmul.mubr.msk.bf16.gmra.mrb[24].mxu1 %vm274_vm0, %v751_v49  ;;  %1910 = vmatmul.mubr.msk.bf16.gmra.mrb[24].mxu0 %vm274_vm0, %v752_v54  ;;  %v173_v49 = vld [vmem:[%s2112_s21 + $0x90] sm:$0xff] }
  0x3f   : > { %1841 = vmatprep.mubr.msk.bf16.mxu1 %vm274_vm0, %v752_v54  ;;  %1913 = vmatprep.mubr.msk.bf16.mxu0 %vm274_vm0, %v753_v55  ;;  %v176_v54 = vld [vmem:[%s2112_s21 + $0xa8] sm:$0xff]  ;;  %v196_v57 = vpack.c.bf16 %v174_v50, %v173_v49 }
  0x40   : > { %v197_v59 = vpack.c.bf16 %v176_v54, %v175_v53 }
  0x46   : > { %1842 = vmatmul.mubr.msk.bf16.gmra.mrb[28].mxu1 %vm274_vm0, %v753_v55  ;;  %1914 = vmatmul.mubr.msk.bf16.gmra.mrb[28].mxu0 %vm274_vm0, %v754_v62  ;;  %v1700_v55 = vld [vmem:[%s2112_s21 + $0xb2] sm:$0xff] }
  0x47   : > { %1849 = vmatprep.mubr.msk.bf16.mxu1 %vm274_vm0, %v187_v63  ;;  %1921 = vmatprep.mubr.msk.bf16.mxu0 %vm274_vm0, %v1047_v0  ;;  %v1057_v60 = vpack.c.bf16 %v1701_v56, %v1700_v55  ;;  %v178_v62 = vld [vmem:[%s2112_s21 + $0xb8] sm:$0xff]  ;;  %v1702_v63 = vld [vmem:[%s2112_s21 + $0xc2] sm:$0xff]  ;;  %v1703_v0 = vld [vmem:[%s2112_s21 + $0xca] sm:$0xff] }
  0x48   : > { %v198_v5 = vpack.c.bf16 %v178_v62, %v177_v61  ;;  %v1058_v6 = vpack.c.bf16 %v1703_v0, %v1702_v63 }
  0x4e   : > { %1850 = vmatmul.mubr.msk.bf16.vlgmr.msra.gmra.mrb[0].mxu1 %vm274_vm0, %v188_v9  ;;  %1922 = vmatmul.mubr.msk.bf16.vlgmr.msra.gmra.mrb[0].mxu0 %vm274_vm0, %v1048_v10  ;;  %v181_v9 = vld [vmem:[%s2112_s21 + $0xd0] sm:$0xff]  ;;  %v182_v10 = vld [vmem:[%s2112_s21 + $0xd8] sm:$0xff] }
  0x4f   : > { %1853 = vmatprep.mubr.msk.bf16.mxu1 %vm274_vm0, %v189_v11  ;;  %1925 = vmatprep.mubr.msk.bf16.mxu0 %vm274_vm0, %v1049_v12  ;;  %v1706_v11 = vld [vmem:[%s2112_s21 + $0xe2] sm:$0xff]  ;;  %v1707_v12 = vld [vmem:[%s2112_s21 + $0xea] sm:$0xff]  ;;  %v200_v17 = vpack.c.bf16 %v182_v10, %v181_v9 }
  0x50   : > { %v1060_v18 = vpack.c.bf16 %v1707_v12, %v1706_v11 }
  0x56   : > { %1854 = vmatmul.mubr.msk.bf16.gmra.mrb[4].mxu1 %vm274_vm0, %v190_v21  ;;  %1926 = vmatmul.mubr.msk.bf16.gmra.mrb[4].mxu0 %vm274_vm0, %v1050_v22  ;;  %v185_v21 = vld [vmem:[%s2112_s21 + $0xf0] sm:$0xff]  ;;  %v186_v22 = vld [vmem:[%s2112_s21 + $0xf8] sm:$0xff] }
  0x57   : > { %1857 = vmatprep.mubr.msk.bf16.mxu1 %vm274_vm0, %v191_v23  ;;  %1929 = vmatprep.mubr.msk.bf16.mxu0 %vm274_vm0, %v1051_v24  ;;  %v1710_v23 = vld [vmem:[%s2112_s21 + $0x102] sm:$0xff]  ;;  %v1711_v24 = vld [vmem:[%s2112_s21 + $0x10a] sm:$0xff]  ;;  %v202_v25 = vpack.c.bf16 %v186_v22, %v185_v21 }
  0x58   : > { %v1062_v26 = vpack.c.bf16 %v1711_v24, %v1710_v23 }
  0x5e   : > { %1858 = vmatmul.mubr.msk.bf16.gmra.mrb[8].mxu1 %vm274_vm0, %v192_v33  ;;  %1930 = vmatmul.mubr.msk.bf16.gmra.mrb[8].mxu0 %vm274_vm0, %v1052_v34 }
  0x5f   : > { %1861 = vmatprep.mubr.msk.bf16.mxu1 %vm274_vm0, %v193_v35  ;;  %1933 = vmatprep.mubr.msk.bf16.mxu0 %vm274_vm0, %v1053_v36 }
  0x66   : > { %1862 = vmatmul.mubr.msk.bf16.gmra.mrb[12].mxu1 %vm274_vm0, %v194_v45  ;;  %1934 = vmatmul.mubr.msk.bf16.gmra.mrb[12].mxu0 %vm274_vm0, %v1054_v46 }
  0x67   : > { %1865 = vmatprep.mubr.msk.bf16.mxu1 %vm274_vm0, %v195_v47  ;;  %1937 = vmatprep.mubr.msk.bf16.mxu0 %vm274_vm0, %v1055_v48 }
  0x6e   : > { %1866 = vmatmul.mubr.msk.bf16.gmra.mrb[16].mxu1 %vm274_vm0, %v196_v57  ;;  %1938 = vmatmul.mubr.msk.bf16.gmra.mrb[16].mxu0 %vm274_vm0, %v1056_v58 }
  0x6f   : > { %1869 = vmatprep.mubr.msk.bf16.mxu1 %vm274_vm0, %v197_v59  ;;  %1941 = vmatprep.mubr.msk.bf16.mxu0 %vm274_vm0, %v1057_v60 }
  0x76   : > { %1870 = vmatmul.mubr.msk.bf16.gmra.mrb[20].mxu1 %vm274_vm0, %v198_v5  ;;  %1942 = vmatmul.mubr.msk.bf16.gmra.mrb[20].mxu0 %vm274_vm0, %v1058_v6 }
  0x77   : > { %1873 = vmatprep.mubr.msk.bf16.mxu1 %vm274_vm0, %v199_v7  ;;  %1945 = vmatprep.mubr.msk.bf16.mxu0 %vm274_vm0, %v1059_v8 }
  0x7e   : > { %1874 = vmatmul.mubr.msk.bf16.gmra.mrb[24].mxu1 %vm274_vm0, %v200_v17  ;;  %1946 = vmatmul.mubr.msk.bf16.gmra.mrb[24].mxu0 %vm274_vm0, %v1060_v18 }
  0x7f   : > { %1877 = vmatprep.mubr.msk.bf16.mxu1 %vm274_vm0, %v201_v19  ;;  %1949 = vmatprep.mubr.msk.bf16.mxu0 %vm274_vm0, %v1061_v20 }
  0x86   : > { %1878 = vmatmul.mubr.msk.bf16.gmra.mrb[28].mxu1 %vm274_vm0, %v202_v25  ;;  %1950 = vmatmul.mubr.msk.bf16.gmra.mrb[28].mxu0 %vm274_vm0, %v1062_v26 }
 0x121   : > { %v1851_v27 = vpop.f32.mrb[0].mxu1  ;;  %v1923_v28 = vpop.f32.mrb[0].mxu0 }
 0x122   : > { %v578_v30 = vpop.f32.mrb[1].mxu1  ;;  %v1953_v31 = vadd.f32 %v1923_v28, %v1851_v27  ;;  %v1162_v32 = vpop.f32.mrb[1].mxu0 }
 0x123   : > { %v1852_v33 = vpop.f32.mrb[2].mxu1  ;;  %v1954_v34 = vadd.f32 %v1162_v32, %v578_v30  ;;  %v1924_v35 = vpop.f32.mrb[2].mxu0 }
 0x124   : > { %v581_v36 = vpop.f32.mrb[3].mxu1  ;;  %v1330_v37 = vadd.f32 %v1953_v31, %v2299_v29  ;;  %v1955_v38 = vadd.f32 %v1924_v35, %v1852_v33  ;;  %v1165_v39 = vpop.f32.mrb[3].mxu0 }
 0x125   : > { %v1328_v40 = vadd.f32 %v1954_v34, %v2299_v29  ;;  %v1956_v41 = vadd.f32 %v1165_v39, %v581_v36 }
 0x126   : > { %vm1362_vm1 = vcmp.ge.f32.partialorder %v1330_v37, 0.0  ;;  %v1394_v42 = vmul.f32 0.01, %v1330_v37  ;;  %v1331_v43 = vadd.f32 %v1955_v38, %v2299_v29 }
 0x127   : > { %vm1360_vm3 = vcmp.ge.f32.partialorder %v1328_v40, 0.0  ;;  %v1392_v44 = vmul.f32 0.01, %v1328_v40  ;;  %v1329_v45 = vadd.f32 %v1956_v41, %v2299_v29 }
 0x128   : > { %v1426_v46 = vsel %vm1362_vm1, %v1330_v37, %v1394_v42  ;;  %vm1363_vm4 = vcmp.ge.f32.partialorder %v1331_v43, 0.0  ;;  %v1395_v47 = vmul.f32 0.01, %v1331_v43 }
 0x129   : > { %v1855_v48 = vpop.f32.mrb[4].mxu1  ;;  %1459 = vst.msk [vmem:[%s2306_s14 + $0x10] sm:$0xff] %vm1456_vm2, %v1426_v46  ;;  %v1424_v49 = vsel %vm1360_vm3, %v1328_v40, %v1392_v44  ;;  %vm1361_vm5 = vcmp.ge.f32.partialorder %v1329_v45, 0.0  ;;  %v1393_v50 = vmul.f32 0.01, %v1329_v45  ;;  %v1927_v51 = vpop.f32.mrb[4].mxu0 }
 0x12a   : > { %v594_v52 = vpop.f32.mrb[5].mxu1  ;;  %1457 = vst.msk [vmem:[%s2306_s14] sm:$0xff] %vm1456_vm2, %v1424_v49  ;;  %v1427_v53 = vsel %vm1363_vm4, %v1331_v43, %v1395_v47  ;;  %v1957_v54 = vadd.f32 %v1927_v51, %v1855_v48  ;;  %v1178_v55 = vpop.f32.mrb[5].mxu0 }
 0x12b   : > { %v1856_v56 = vpop.f32.mrb[6].mxu1  ;;  %1460 = vst.msk [vmem:[%s2306_s14 + $0x18] sm:$0xff] %vm1456_vm2, %v1427_v53  ;;  %v1425_v57 = vsel %vm1361_vm5, %v1329_v45, %v1393_v50  ;;  %v1958_v58 = vadd.f32 %v1178_v55, %v594_v52  ;;  %v1928_v59 = vpop.f32.mrb[6].mxu0 }
 0x12c   : > { %v597_v60 = vpop.f32.mrb[7].mxu1  ;;  %1458 = vst.msk [vmem:[%s2306_s14 + $0x8] sm:$0xff] %vm1456_vm2, %v1425_v57  ;;  %v1334_v61 = vadd.f32 %v1957_v54, %v2299_v29  ;;  %v1959_v62 = vadd.f32 %v1928_v59, %v1856_v56  ;;  %v1181_v63 = vpop.f32.mrb[7].mxu0 }
 0x12d   : > { %v1332_v0 = vadd.f32 %v1958_v58, %v2299_v29  ;;  %v1960_v1 = vadd.f32 %v1181_v63, %v597_v60 }
 0x12e   : > { %vm1366_vm6 = vcmp.ge.f32.partialorder %v1334_v61, 0.0  ;;  %v1398_v2 = vmul.f32 0.01, %v1334_v61  ;;  %v1335_v3 = vadd.f32 %v1959_v62, %v2299_v29 }
 0x12f   : > { %vm1364_vm7 = vcmp.ge.f32.partialorder %v1332_v0, 0.0  ;;  %v1396_v4 = vmul.f32 0.01, %v1332_v0  ;;  %v1333_v5 = vadd.f32 %v1960_v1, %v2299_v29 }
 0x130   : > { %v1430_v6 = vsel %vm1366_vm6, %v1334_v61, %v1398_v2  ;;  %vm1367_vm8 = vcmp.ge.f32.partialorder %v1335_v3, 0.0  ;;  %v1399_v7 = vmul.f32 0.01, %v1335_v3 }
 0x131   : > { %v1859_v8 = vpop.f32.mrb[8].mxu1  ;;  %1463 = vst.msk [vmem:[%s2306_s14 + $0x30] sm:$0xff] %vm1456_vm2, %v1430_v6  ;;  %v1428_v9 = vsel %vm1364_vm7, %v1332_v0, %v1396_v4  ;;  %vm1365_vm9 = vcmp.ge.f32.partialorder %v1333_v5, 0.0  ;;  %v1397_v10 = vmul.f32 0.01, %v1333_v5  ;;  %v1931_v11 = vpop.f32.mrb[8].mxu0 }
 0x132   : > { %v610_v12 = vpop.f32.mrb[9].mxu1  ;;  %1461 = vst.msk [vmem:[%s2306_s14 + $0x20] sm:$0xff] %vm1456_vm2, %v1428_v9  ;;  %v1431_v13 = vsel %vm1367_vm8, %v1335_v3, %v1399_v7  ;;  %v1961_v14 = vadd.f32 %v1931_v11, %v1859_v8  ;;  %v1194_v15 = vpop.f32.mrb[9].mxu0 }
 0x133   : > { %v1860_v16 = vpop.f32.mrb[10].mxu1  ;;  %1464 = vst.msk [vmem:[%s2306_s14 + $0x38] sm:$0xff] %vm1456_vm2, %v1431_v13  ;;  %v1429_v17 = vsel %vm1365_vm9, %v1333_v5, %v1397_v10  ;;  %v1962_v18 = vadd.f32 %v1194_v15, %v610_v12  ;;  %v1932_v19 = vpop.f32.mrb[10].mxu0 }
 0x134   : > { %v613_v20 = vpop.f32.mrb[11].mxu1  ;;  %1462 = vst.msk [vmem:[%s2306_s14 + $0x28] sm:$0xff] %vm1456_vm2, %v1429_v17  ;;  %v1338_v21 = vadd.f32 %v1961_v14, %v2299_v29  ;;  %v1963_v22 = vadd.f32 %v1932_v19, %v1860_v16  ;;  %v1197_v23 = vpop.f32.mrb[11].mxu0 }
 0x135   : > { %v1336_v24 = vadd.f32 %v1962_v18, %v2299_v29  ;;  %v1964_v25 = vadd.f32 %v1197_v23, %v613_v20 }
 0x136   : > { %vm1370_vm10 = vcmp.ge.f32.partialorder %v1338_v21, 0.0  ;;  %v1402_v26 = vmul.f32 0.01, %v1338_v21  ;;  %v1339_v27 = vadd.f32 %v1963_v22, %v2299_v29 }
 0x137   : > { %vm1368_vm11 = vcmp.ge.f32.partialorder %v1336_v24, 0.0  ;;  %v1400_v28 = vmul.f32 0.01, %v1336_v24  ;;  %v1337_v30 = vadd.f32 %v1964_v25, %v2299_v29 }
 0x138   : > { %v1434_v31 = vsel %vm1370_vm10, %v1338_v21, %v1402_v26  ;;  %vm1371_vm12 = vcmp.ge.f32.partialorder %v1339_v27, 0.0  ;;  %v1403_v32 = vmul.f32 0.01, %v1339_v27 }
 0x139   : > { %v1863_v33 = vpop.f32.mrb[12].mxu1  ;;  %1467 = vst.msk [vmem:[%s2306_s14 + $0x50] sm:$0xff] %vm1456_vm2, %v1434_v31  ;;  %v1432_v34 = vsel %vm1368_vm11, %v1336_v24, %v1400_v28  ;;  %vm1369_vm13 = vcmp.ge.f32.partialorder %v1337_v30, 0.0  ;;  %v1401_v35 = vmul.f32 0.01, %v1337_v30  ;;  %v1935_v36 = vpop.f32.mrb[12].mxu0 }
 0x13a   : > { %v626_v37 = vpop.f32.mrb[13].mxu1  ;;  %1465 = vst.msk [vmem:[%s2306_s14 + $0x40] sm:$0xff] %vm1456_vm2, %v1432_v34  ;;  %v1435_v38 = vsel %vm1371_vm12, %v1339_v27, %v1403_v32  ;;  %v1965_v39 = vadd.f32 %v1935_v36, %v1863_v33  ;;  %v1210_v40 = vpop.f32.mrb[13].mxu0 }
 0x13b   : > { %v1864_v41 = vpop.f32.mrb[14].mxu1  ;;  %1468 = vst.msk [vmem:[%s2306_s14 + $0x58] sm:$0xff] %vm1456_vm2, %v1435_v38  ;;  %v1433_v42 = vsel %vm1369_vm13, %v1337_v30, %v1401_v35  ;;  %v1966_v43 = vadd.f32 %v1210_v40, %v626_v37  ;;  %v1936_v44 = vpop.f32.mrb[14].mxu0 }
 0x13c   : > { %v629_v45 = vpop.f32.mrb[15].mxu1  ;;  %1466 = vst.msk [vmem:[%s2306_s14 + $0x48] sm:$0xff] %vm1456_vm2, %v1433_v42  ;;  %v1342_v46 = vadd.f32 %v1965_v39, %v2299_v29  ;;  %v1967_v47 = vadd.f32 %v1936_v44, %v1864_v41  ;;  %v1213_v48 = vpop.f32.mrb[15].mxu0 }
 0x13d   : > { %v1340_v49 = vadd.f32 %v1966_v43, %v2299_v29  ;;  %v1968_v50 = vadd.f32 %v1213_v48, %v629_v45 }
 0x13e   : > { %vm1374_vm14 = vcmp.ge.f32.partialorder %v1342_v46, 0.0  ;;  %v1406_v51 = vmul.f32 0.01, %v1342_v46  ;;  %v1343_v52 = vadd.f32 %v1967_v47, %v2299_v29 }
 0x13f   : > { %vm1372_vm15 = vcmp.ge.f32.partialorder %v1340_v49, 0.0  ;;  %v1404_v53 = vmul.f32 0.01, %v1340_v49  ;;  %v1341_v54 = vadd.f32 %v1968_v50, %v2299_v29 }
 0x140   : > { %v1438_v55 = vsel %vm1374_vm14, %v1342_v46, %v1406_v51  ;;  %vm1375_vm0 = vcmp.ge.f32.partialorder %v1343_v52, 0.0  ;;  %v1407_v56 = vmul.f32 0.01, %v1343_v52 }
 0x141   : > { %v1867_v57 = vpop.f32.mrb[16].mxu1  ;;  %1471 = vst.msk [vmem:[%s2306_s14 + $0x70] sm:$0xff] %vm1456_vm2, %v1438_v55  ;;  %v1436_v58 = vsel %vm1372_vm15, %v1340_v49, %v1404_v53  ;;  %vm1373_vm1 = vcmp.ge.f32.partialorder %v1341_v54, 0.0  ;;  %v1405_v59 = vmul.f32 0.01, %v1341_v54  ;;  %v1939_v60 = vpop.f32.mrb[16].mxu0 }
 0x142   : > { %v642_v61 = vpop.f32.mrb[17].mxu1  ;;  %1469 = vst.msk [vmem:[%s2306_s14 + $0x60] sm:$0xff] %vm1456_vm2, %v1436_v58  ;;  %v1439_v62 = vsel %vm1375_vm0, %v1343_v52, %v1407_v56  ;;  %v1969_v63 = vadd.f32 %v1939_v60, %v1867_v57  ;;  %v1226_v0 = vpop.f32.mrb[17].mxu0 }
 0x143   : > { %v1868_v1 = vpop.f32.mrb[18].mxu1  ;;  %1472 = vst.msk [vmem:[%s2306_s14 + $0x78] sm:$0xff] %vm1456_vm2, %v1439_v62  ;;  %v1437_v2 = vsel %vm1373_vm1, %v1341_v54, %v1405_v59  ;;  %v1970_v3 = vadd.f32 %v1226_v0, %v642_v61  ;;  %v1940_v4 = vpop.f32.mrb[18].mxu0 }
 0x144   : > { %v645_v5 = vpop.f32.mrb[19].mxu1  ;;  %1470 = vst.msk [vmem:[%s2306_s14 + $0x68] sm:$0xff] %vm1456_vm2, %v1437_v2  ;;  %v1346_v6 = vadd.f32 %v1969_v63, %v2299_v29  ;;  %v1971_v7 = vadd.f32 %v1940_v4, %v1868_v1  ;;  %v1229_v8 = vpop.f32.mrb[19].mxu0 }
 0x145   : > { %v1344_v9 = vadd.f32 %v1970_v3, %v2299_v29  ;;  %v1972_v10 = vadd.f32 %v1229_v8, %v645_v5 }
 0x146   : > { %vm1378_vm3 = vcmp.ge.f32.partialorder %v1346_v6, 0.0  ;;  %v1410_v11 = vmul.f32 0.01, %v1346_v6  ;;  %v1347_v12 = vadd.f32 %v1971_v7, %v2299_v29 }
 0x147   : > { %vm1376_vm4 = vcmp.ge.f32.partialorder %v1344_v9, 0.0  ;;  %v1408_v13 = vmul.f32 0.01, %v1344_v9  ;;  %v1345_v14 = vadd.f32 %v1972_v10, %v2299_v29 }
 0x148   : > { %v1442_v15 = vsel %vm1378_vm3, %v1346_v6, %v1410_v11  ;;  %vm1379_vm5 = vcmp.ge.f32.partialorder %v1347_v12, 0.0  ;;  %v1411_v16 = vmul.f32 0.01, %v1347_v12 }
 0x149   : > { %v1871_v17 = vpop.f32.mrb[20].mxu1  ;;  %1475 = vst.msk [vmem:[%s2306_s14 + $0x90] sm:$0xff] %vm1456_vm2, %v1442_v15  ;;  %v1440_v18 = vsel %vm1376_vm4, %v1344_v9, %v1408_v13  ;;  %vm1377_vm6 = vcmp.ge.f32.partialorder %v1345_v14, 0.0  ;;  %v1409_v19 = vmul.f32 0.01, %v1345_v14  ;;  %v1943_v20 = vpop.f32.mrb[20].mxu0 }
 0x14a   : > { %v658_v21 = vpop.f32.mrb[21].mxu1  ;;  %1473 = vst.msk [vmem:[%s2306_s14 + $0x80] sm:$0xff] %vm1456_vm2, %v1440_v18  ;;  %v1443_v22 = vsel %vm1379_vm5, %v1347_v12, %v1411_v16  ;;  %v1973_v23 = vadd.f32 %v1943_v20, %v1871_v17  ;;  %v1242_v24 = vpop.f32.mrb[21].mxu0 }
 0x14b   : > { %v1872_v25 = vpop.f32.mrb[22].mxu1  ;;  %1476 = vst.msk [vmem:[%s2306_s14 + $0x98] sm:$0xff] %vm1456_vm2, %v1443_v22  ;;  %v1441_v26 = vsel %vm1377_vm6, %v1345_v14, %v1409_v19  ;;  %v1974_v27 = vadd.f32 %v1242_v24, %v658_v21  ;;  %v1944_v28 = vpop.f32.mrb[22].mxu0 }
 0x14c   : > { %v661_v30 = vpop.f32.mrb[23].mxu1  ;;  %1474 = vst.msk [vmem:[%s2306_s14 + $0x88] sm:$0xff] %vm1456_vm2, %v1441_v26  ;;  %v1350_v31 = vadd.f32 %v1973_v23, %v2299_v29  ;;  %v1975_v32 = vadd.f32 %v1944_v28, %v1872_v25  ;;  %v1245_v33 = vpop.f32.mrb[23].mxu0 }
 0x14d   : > { %v1348_v34 = vadd.f32 %v1974_v27, %v2299_v29  ;;  %v1976_v35 = vadd.f32 %v1245_v33, %v661_v30 }
 0x14e   : > { %vm1382_vm7 = vcmp.ge.f32.partialorder %v1350_v31, 0.0  ;;  %v1414_v36 = vmul.f32 0.01, %v1350_v31  ;;  %v1351_v37 = vadd.f32 %v1975_v32, %v2299_v29 }
 0x14f   : > { %vm1380_vm8 = vcmp.ge.f32.partialorder %v1348_v34, 0.0  ;;  %v1412_v38 = vmul.f32 0.01, %v1348_v34  ;;  %v1349_v39 = vadd.f32 %v1976_v35, %v2299_v29 }
 0x150   : > { %v1446_v40 = vsel %vm1382_vm7, %v1350_v31, %v1414_v36  ;;  %vm1383_vm9 = vcmp.ge.f32.partialorder %v1351_v37, 0.0  ;;  %v1415_v41 = vmul.f32 0.01, %v1351_v37 }
 0x151   : > { %v1875_v42 = vpop.f32.mrb[24].mxu1  ;;  %1479 = vst.msk [vmem:[%s2306_s14 + $0xb0] sm:$0xff] %vm1456_vm2, %v1446_v40  ;;  %v1444_v43 = vsel %vm1380_vm8, %v1348_v34, %v1412_v38  ;;  %vm1381_vm10 = vcmp.ge.f32.partialorder %v1349_v39, 0.0  ;;  %v1413_v44 = vmul.f32 0.01, %v1349_v39  ;;  %v1947_v45 = vpop.f32.mrb[24].mxu0 }
 0x152   : > { %v674_v46 = vpop.f32.mrb[25].mxu1  ;;  %1477 = vst.msk [vmem:[%s2306_s14 + $0xa0] sm:$0xff] %vm1456_vm2, %v1444_v43  ;;  %v1447_v47 = vsel %vm1383_vm9, %v1351_v37, %v1415_v41  ;;  %v1977_v48 = vadd.f32 %v1947_v45, %v1875_v42  ;;  %v1258_v49 = vpop.f32.mrb[25].mxu0 }
 0x153   : > { %v1876_v50 = vpop.f32.mrb[26].mxu1  ;;  %1480 = vst.msk [vmem:[%s2306_s14 + $0xb8] sm:$0xff] %vm1456_vm2, %v1447_v47  ;;  %v1445_v51 = vsel %vm1381_vm10, %v1349_v39, %v1413_v44  ;;  %v1978_v52 = vadd.f32 %v1258_v49, %v674_v46  ;;  %v1948_v53 = vpop.f32.mrb[26].mxu0 }
 0x154   : > { %v677_v54 = vpop.f32.mrb[27].mxu1  ;;  %1478 = vst.msk [vmem:[%s2306_s14 + $0xa8] sm:$0xff] %vm1456_vm2, %v1445_v51  ;;  %v1354_v55 = vadd.f32 %v1977_v48, %v2299_v29  ;;  %v1979_v56 = vadd.f32 %v1948_v53, %v1876_v50  ;;  %v1261_v57 = vpop.f32.mrb[27].mxu0 }
 0x155   : > { %v1352_v58 = vadd.f32 %v1978_v52, %v2299_v29  ;;  %v1980_v59 = vadd.f32 %v1261_v57, %v677_v54 }
 0x156   : > { %vm1386_vm11 = vcmp.ge.f32.partialorder %v1354_v55, 0.0  ;;  %v1418_v60 = vmul.f32 0.01, %v1354_v55  ;;  %v1355_v61 = vadd.f32 %v1979_v56, %v2299_v29 }
 0x157   : > { %vm1384_vm12 = vcmp.ge.f32.partialorder %v1352_v58, 0.0  ;;  %v1416_v62 = vmul.f32 0.01, %v1352_v58  ;;  %v1353_v63 = vadd.f32 %v1980_v59, %v2299_v29 }
 0x158   : > { %v1450_v0 = vsel %vm1386_vm11, %v1354_v55, %v1418_v60  ;;  %vm1387_vm13 = vcmp.ge.f32.partialorder %v1355_v61, 0.0  ;;  %v1419_v1 = vmul.f32 0.01, %v1355_v61 }
 0x159   : > { %v1879_v2 = vpop.f32.mrb[28].mxu1  ;;  %1483 = vst.msk [vmem:[%s2306_s14 + $0xd0] sm:$0xff] %vm1456_vm2, %v1450_v0  ;;  %v1448_v3 = vsel %vm1384_vm12, %v1352_v58, %v1416_v62  ;;  %vm1385_vm14 = vcmp.ge.f32.partialorder %v1353_v63, 0.0  ;;  %v1417_v4 = vmul.f32 0.01, %v1353_v63  ;;  %v1951_v5 = vpop.f32.mrb[28].mxu0 }
 0x15a   : > { %v690_v6 = vpop.f32.mrb[29].mxu1  ;;  %1481 = vst.msk [vmem:[%s2306_s14 + $0xc0] sm:$0xff] %vm1456_vm2, %v1448_v3  ;;  %v1451_v7 = vsel %vm1387_vm13, %v1355_v61, %v1419_v1  ;;  %v1981_v8 = vadd.f32 %v1951_v5, %v1879_v2  ;;  %v1274_v9 = vpop.f32.mrb[29].mxu0 }
 0x15b   : > { %v1880_v10 = vpop.f32.mrb[30].mxu1  ;;  %1484 = vst.msk [vmem:[%s2306_s14 + $0xd8] sm:$0xff] %vm1456_vm2, %v1451_v7  ;;  %v1449_v11 = vsel %vm1385_vm14, %v1353_v63, %v1417_v4  ;;  %v1982_v12 = vadd.f32 %v1274_v9, %v690_v6  ;;  %v1952_v13 = vpop.f32.mrb[30].mxu0 }
 0x15c   : > { %v693_v14 = vpop.f32.mrb[31].mxu1  ;;  %1482 = vst.msk [vmem:[%s2306_s14 + $0xc8] sm:$0xff] %vm1456_vm2, %v1449_v11  ;;  %v1358_v15 = vadd.f32 %v1981_v8, %v2299_v29  ;;  %v1983_v16 = vadd.f32 %v1952_v13, %v1880_v10  ;;  %v1277_v17 = vpop.f32.mrb[31].mxu0 }
 0x15d   : > { %v1356_v18 = vadd.f32 %v1982_v12, %v2299_v29  ;;  %v1984_v19 = vadd.f32 %v1277_v17, %v693_v14 }
 0x15e   : > { %vm1390_vm15 = vcmp.ge.f32.partialorder %v1358_v15, 0.0  ;;  %v1422_v20 = vmul.f32 0.01, %v1358_v15  ;;  %v1359_v21 = vadd.f32 %v1983_v16, %v2299_v29 }
 0x15f   : > { %vm1388_vm0 = vcmp.ge.f32.partialorder %v1356_v18, 0.0  ;;  %v1420_v22 = vmul.f32 0.01, %v1356_v18  ;;  %v1357_v23 = vadd.f32 %v1984_v19, %v2299_v29 }
 0x160   : > { %v1454_v24 = vsel %vm1390_vm15, %v1358_v15, %v1422_v20  ;;  %vm1391_vm1 = vcmp.ge.f32.partialorder %v1359_v21, 0.0  ;;  %v1423_v25 = vmul.f32 0.01, %v1359_v21 }
 0x161   : > { %1487 = vst.msk [vmem:[%s2306_s14 + $0xf0] sm:$0xff] %vm1456_vm2, %v1454_v24  ;;  %v1452_v26 = vsel %vm1388_vm0, %v1356_v18, %v1420_v22  ;;  %vm1389_vm3 = vcmp.ge.f32.partialorder %v1357_v23, 0.0  ;;  %v1421_v27 = vmul.f32 0.01, %v1357_v23 }
 0x162   : > { %1485 = vst.msk [vmem:[%s2306_s14 + $0xe0] sm:$0xff] %vm1456_vm2, %v1452_v26  ;;  %v1455_v28 = vsel %vm1391_vm1, %v1359_v21, %v1423_v25 }
 0x163   : > { %1488 = vst.msk [vmem:[%s2306_s14 + $0xf8] sm:$0xff] %vm1456_vm2, %v1455_v28  ;;  %v1453_v30 = vsel %vm1389_vm3, %v1357_v23, %v1421_v27 }
 0x164   : > { %1486 = vst.msk [vmem:[%s2306_s14 + $0xe8] sm:$0xff] %vm1456_vm2, %v1453_v30 }
 0x165 PF: > { %s13_s12 = sadd.s32 1, %s2071_s12  }
 0x166   : > { %p10_p4 = scmp.ge.s32.totalorder %s13_s12, 5  }
 0x168   :  { %12 = sbr.rel (!%p10_p4) target bundleno = 1 (0x1), region = 66 }

// kernel: vanilla_vae_forward.15
= control target key start
LH: loop header
LB: loop body
LE: loop exit
PB: predicated region body
PF: predicated region fallthrough
CT: control target
= control target key end

     0   :  { %s1194_s12 = smov 0   ;;  %s1381_s0 = inlined_call_operand.vmem [shape: f32[192,64], index: 0, kind: input, shape index: {}]   ;;  %s1382_s1 = inlined_call_operand.vmem [shape: bf16[4,64,32], index: 1, kind: input, shape index: {}]   ;;  %s1383_s2 = inlined_call_operand.vmem [shape: f32[1,32], index: 2, kind: input, shape index: {}]   ;;  %s1384_s3 = inlined_call_operand.vmem [shape: f32[176,32], index: 3, kind: output, shape index: {}]  }
   0x1 LB: > { %s893_s13 = sadd.s32 4294967295, %s1172_s12   ;;  %p896_p0 = scmp.ge.s32.totalorder %s1172_s12, 1  ;;  %s1172_s12 = sphi %s1194_s12, %s13_s12  }
   0x2   : > { %p127_p1 = scmp.lt.s32.totalorder %s1172_s12, 3 }
   0x4   : > { %p128_p2 = pnand %p896_p0, %p127_p1 }
   0x5   : > { %v1150_v0 = vld [vmem:[%s1382_s1 + $0x20] sm:$0xff] (!%p128_p2)   ;;  %s153_s18 = smul.u32 (!%p128_p2), 88, %s893_s13  ;;  %v1152_v2 = vld [vmem:[%s1382_s1 + $0x28] sm:$0xff] (!%p128_p2)   ;;  %v1154_v4 = vld [vmem:[%s1382_s1 + $0x30] sm:$0xff] (!%p128_p2)   ;;  %vm232_vm0 = vcmask (!%p128_p2), 523264   ;;  %vm826_vm2 = vcmask (!%p128_p2), 261120  }
   0x6   : > { %131 = sbr.rel (%p128_p2) target bundleno = 289 (0x121), region = 32  ;;  %v1151_v1 = vld [vmem:[%s1382_s1 + $0x40] sm:$0xff] (!%p128_p2)   ;;  %1038 = vmatprep.subr.bf16.mxu1 (!%p128_p2), %v1150_v0  ;;  %v1153_v3 = vld [vmem:[%s1382_s1 + $0x48] sm:$0xff] (!%p128_p2)   ;;  %v1155_v5 = vld [vmem:[%s1382_s1 + $0x50] sm:$0xff] (!%p128_p2)  }
   0x7   : > { %1078 = vmatprep.subr.bf16.mxu0 (!%p128_p2), %v1151_v1  ;;  %1039 = vmatpush3.bf16.msra.mxu1 (!%p128_p2), %v1150_v0  ;;  %s1225_s29 = scalar_lea.vmem (!%p128_p2), %s1381_s0, %s153_s18  ;;  %v1156_v6 = vld [vmem:[%s1382_s1 + $0x38] sm:$0xff] (!%p128_p2)   ;;  %v1158_v14 = vld [vmem:[%s1382_s1] sm:$0xff] (!%p128_p2)   ;;  %v1160_v21 = vld [vmem:[%s1382_s1 + $0x8] sm:$0xff] (!%p128_p2)   ;;  %s146_s25 = smul.u32 (!%p128_p2), 11, %s893_s13 }
   0x8   : > { %1079 = vmatpush3.bf16.msra.mxu0 (!%p128_p2), %v1151_v1  ;;  %1040 = vmatprep.subr.bf16.mxu1 (!%p128_p2), %v1152_v2  ;;  %v898_v7 = vld [vmem:[%s1225_s29 + $0x1] sm:$0xff] (!%p128_p2)  ;;  %v899_v8 = vld [vmem:[%s1225_s29 + $0x9] sm:$0xff] (!%p128_p2)  ;;  %v938_v9 = vld [vmem:[%s1225_s29 + $0x11] sm:$0xff] (!%p128_p2) }
   0x9   : > { %1080 = vmatprep.subr.bf16.mxu0 (!%p128_p2), %v1153_v3  ;;  %v1157_v10 = vld [vmem:[%s1382_s1 + $0x58] sm:$0xff] (!%p128_p2)   ;;  %v193_v11 = vpack.c.bf16 (!%p128_p2), %v899_v8, %v898_v7  ;;  %v466_v12 = vpack.c.bf16 (!%p128_p2), %v938_v9, %v899_v8  ;;  %v940_v15 = vld [vmem:[%s1225_s29 + $0x21] sm:$0xff] (!%p128_p2)  ;;  %v903_v17 = vld [vmem:[%s1225_s29 + $0x29] sm:$0xff] (!%p128_p2)  ;;  %p147_p3 = scmp.lt.s32.totalorder (!%p128_p2), %s146_s25, 21 }
   0xa   : > { %v901_v13 = vld [vmem:[%s1225_s29 + $0x19] sm:$0xff] (!%p128_p2)  ;;  %v942_v19 = vld [vmem:[%s1225_s29 + $0x31] sm:$0xff] (!%p128_p2)  ;;  %v195_v22 = vpack.c.bf16 (!%p128_p2), %v903_v17, %v940_v15  ;;  %v1161_v24 = vld [vmem:[%s1382_s1 + $0x68] sm:$0xff] (!%p128_p2)  }
   0xb   : > { %1041 = vmatpush3.bf16.msra.mxu1 (!%p128_p2), %v1152_v2  ;;  %1046 = vmatprep.mubr.msk.bf16.mxu1 (!%p128_p2), %vm232_vm0, %v193_v11  ;;  %v1159_v16 = vld [vmem:[%s1382_s1 + $0x60] sm:$0xff] (!%p128_p2)   ;;  %v194_v18 = vpack.c.bf16 (!%p128_p2), %v901_v13, %v938_v9  ;;  %v467_v20 = vpack.c.bf16 (!%p128_p2), %v940_v15, %v901_v13  ;;  %v468_v23 = vpack.c.bf16 (!%p128_p2), %v942_v19, %v903_v17  ;;  %v1162_v27 = vld [vmem:[%s1382_s1 + $0x10] sm:$0xff] (!%p128_p2)   ;;  %v1164_v35 = vld [vmem:[%s1382_s1 + $0x18] sm:$0xff] (!%p128_p2)  }
   0xc   : > { %1081 = vmatpush3.bf16.msra.mxu0 (!%p128_p2), %v1153_v3  ;;  %1042 = vmatprep.subr.bf16.mxu1 (!%p128_p2), %v1154_v4  ;;  %v905_v25 = vld [vmem:[%s1225_s29 + $0x39] sm:$0xff] (!%p128_p2)  ;;  %v944_v26 = vld [vmem:[%s1225_s29 + $0x41] sm:$0xff] (!%p128_p2)  ;;  %v907_v28 = vld [vmem:[%s1225_s29 + $0x49] sm:$0xff] (!%p128_p2) }
   0xd   : > { %1082 = vmatprep.subr.bf16.mxu0 %v1155_v5  ;;  %1086 = vmatprep.mubr.msk.bf16.mxu0 %vm232_vm0, %v466_v12  ;;  %v946_v29 = vld [vmem:[%s1225_s29 + $0x51] sm:$0xff]  ;;  %v196_v31 = vpack.c.bf16 %v905_v25, %v942_v19  ;;  %v469_v32 = vpack.c.bf16 %v944_v26, %v905_v25  ;;  %v197_v33 = vpack.c.bf16 %v907_v28, %v944_v26  ;;  %v947_v37 = vld [vmem:[%s1225_s29 + $0x59] sm:$0xff]  ;;  %v156_v39 = vld [vmem:[%s1225_s29 + $0x8] sm:$0xff]  ;;  %s1386_s25 = smov (!%p147_p3, %s146_s25), 21 }
   0xe   : > { %v1163_v30 = vld [vmem:[%s1382_s1 + $0x70] sm:$0xff]   ;;  %v470_v34 = vpack.c.bf16 %v946_v29, %v907_v28  ;;  %v1165_v36 = vld [vmem:[%s1382_s1 + $0x78] sm:$0xff]   ;;  %v155_v38 = vld [vmem:[%s1225_s29] sm:$0xff]  ;;  %v198_v42 = vpack.c.bf16 %v946_v29, %v946_v29  ;;  %v471_v43 = vpack.c.bf16 %v947_v37, %v947_v37  ;;  %s897_s27 = sshll.u32 %s1386_s25, 3 }
   0xf   : > { %1043 = vmatpush3.bf16.msra.mxu1 %v1154_v4  ;;  %v966_v40 = vld [vmem:[%s1225_s29 + $0xa] sm:$0xff]  ;;  %v967_v41 = vld [vmem:[%s1225_s29 + $0x12] sm:$0xff]  ;;  %v166_v44 = vpack.c.bf16 %v156_v39, %v155_v38  ;;  %v968_v48 = vld [vmem:[%s1225_s29 + $0x1a] sm:$0xff]  ;;  %s1339_s30 = scalar_lea.vmem %s1384_s3, %s897_s27 }
  0x10   : > { %1083 = vmatpush3.bf16.msra.mxu0 %v1155_v5  ;;  %1044 = vmatprep.subr.bf16.mxu1 %v1156_v6  ;;  %v627_v45 = vpack.c.bf16 %v967_v41, %v966_v40  ;;  %v157_v46 = vld [vmem:[%s1225_s29 + $0x10] sm:$0xff]  ;;  %v158_v47 = vld [vmem:[%s1225_s29 + $0x18] sm:$0xff]  ;;  %v969_v49 = vld [vmem:[%s1225_s29 + $0x22] sm:$0xff] }
  0x11   : > { %1084 = vmatprep.subr.bf16.mxu0 %v1157_v10  ;;  %v159_v50 = vld [vmem:[%s1225_s29 + $0x20] sm:$0xff]  ;;  %v160_v51 = vld [vmem:[%s1225_s29 + $0x28] sm:$0xff]  ;;  %v971_v53 = vld [vmem:[%s1225_s29 + $0x32] sm:$0xff]  ;;  %v167_v54 = vpack.c.bf16 %v158_v47, %v157_v46  ;;  %v628_v55 = vpack.c.bf16 %v969_v49, %v968_v48 }
  0x12   : > { %v970_v52 = vld [vmem:[%s1225_s29 + $0x2a] sm:$0xff]  ;;  %v168_v56 = vpack.c.bf16 %v160_v51, %v159_v50  ;;  %v162_v59 = vld [vmem:[%s1225_s29 + $0x38] sm:$0xff]  ;;  %v973_v61 = vld [vmem:[%s1225_s29 + $0x42] sm:$0xff] }
  0x13   : > { %1045 = vmatpush3.bf16.msra.mxu1 %v1156_v6  ;;  %v629_v57 = vpack.c.bf16 %v971_v53, %v970_v52  ;;  %v161_v58 = vld [vmem:[%s1225_s29 + $0x30] sm:$0xff]  ;;  %v972_v60 = vld [vmem:[%s1225_s29 + $0x3a] sm:$0xff]  ;;  %v164_v63 = vld [vmem:[%s1225_s29 + $0x48] sm:$0xff] }
  0x14   : > { %1085 = vmatpush3.bf16.msra.mxu0 %v1157_v10  ;;  %1058 = vmatprep.subr.bf16.mxu1 %v1158_v14  ;;  %v163_v62 = vld [vmem:[%s1225_s29 + $0x40] sm:$0xff]  ;;  %v974_v0 = vld [vmem:[%s1225_s29 + $0x4a] sm:$0xff]  ;;  %v975_v1 = vld [vmem:[%s1225_s29 + $0x52] sm:$0xff]  ;;  %v169_v2 = vpack.c.bf16 %v162_v59, %v161_v58  ;;  %v630_v3 = vpack.c.bf16 %v973_v61, %v972_v60 }
  0x15   : > { %1098 = vmatprep.subr.bf16.mxu0 %v1159_v16  ;;  %v170_v4 = vpack.c.bf16 %v164_v63, %v163_v62  ;;  %v631_v5 = vpack.c.bf16 %v975_v1, %v974_v0  ;;  %v165_v6 = vld [vmem:[%s1225_s29 + $0x50] sm:$0xff]  ;;  %v976_v7 = vld [vmem:[%s1225_s29 + $0x5a] sm:$0xff] }
  0x16   : > { %1047 = vmatmul.mubr.msk.bf16.vlgmr.msra.gmra.mrb[0].mxu1 %vm232_vm0, %v194_v18  ;;  %v171_v8 = vpack.c.bf16 %v165_v6, %v165_v6  ;;  %v632_v9 = vpack.c.bf16 %v976_v7, %v976_v7 }
  0x17   : > { %1087 = vmatmul.mubr.msk.bf16.vlgmr.msra.gmra.mrb[0].mxu0 %vm232_vm0, %v467_v20  ;;  %1059 = vmatpush3.bf16.msra.mxu1 %v1158_v14  ;;  %v1332_v20 = vld [vmem:[%s1383_s2] ss:$0 sm:$0xff] }
  0x18   : > { %1099 = vmatpush3.bf16.msra.mxu0 %v1159_v16  ;;  %1060 = vmatprep.subr.bf16.mxu1 %v1160_v21 }
  0x19   : > { %1050 = vmatprep.mubr.msk.bf16.mxu1 %vm232_vm0, %v195_v22  ;;  %1090 = vmatprep.mubr.msk.bf16.mxu0 %vm232_vm0, %v468_v23 }
  0x1a   : > { %1100 = vmatprep.subr.bf16.mxu0 %v1161_v24 }
  0x1b   : > { %1061 = vmatpush3.bf16.msra.mxu1 %v1160_v21 }
  0x1c   : > { %1101 = vmatpush3.bf16.msra.mxu0 %v1161_v24  ;;  %1062 = vmatprep.subr.bf16.mxu1 %v1162_v27 }
  0x1d   : > { %1102 = vmatprep.subr.bf16.mxu0 %v1163_v30 }
  0x1e   : > { %1051 = vmatmul.mubr.msk.bf16.gmra.mrb[4].mxu1 %vm232_vm0, %v196_v31 }
  0x1f   : > { %1091 = vmatmul.mubr.msk.bf16.gmra.mrb[4].mxu0 %vm232_vm0, %v469_v32  ;;  %1063 = vmatpush3.bf16.msra.mxu1 %v1162_v27 }
  0x20   : > { %1054 = vmatprep.mubr.msk.bf16.mxu1 %vm232_vm0, %v197_v33  ;;  %1094 = vmatprep.mubr.msk.bf16.mxu0 %vm232_vm0, %v470_v34 }
  0x21   : > { %1103 = vmatpush3.bf16.msra.mxu0 %v1163_v30  ;;  %1064 = vmatprep.subr.bf16.mxu1 %v1164_v35 }
  0x22   : > { %1104 = vmatprep.subr.bf16.mxu0 %v1165_v36 }
  0x23   : > { %1065 = vmatpush3.bf16.msra.mxu1 %v1164_v35 }
  0x25   : > { %1105 = vmatpush3.bf16.msra.mxu0 %v1165_v36 }
  0x26   : > { %1055 = vmatmul.mubr.msk.bf16.gmra.mrb[8].mxu1 %vm232_vm0, %v198_v42 }
  0x27   : > { %1095 = vmatmul.mubr.msk.bf16.gmra.mrb[8].mxu0 %vm232_vm0, %v471_v43  ;;  %1066 = vmatprep.mubr.msk.bf16.mxu1 %vm232_vm0, %v166_v44 }
  0x28   : > { %1106 = vmatprep.mubr.msk.bf16.mxu0 %vm232_vm0, %v627_v45 }
  0x2e   : > { %1067 = vmatmul.mubr.msk.bf16.vlgmr.msra.gmra.mrb[0].mxu1 %vm232_vm0, %v167_v54 }
  0x2f   : > { %1107 = vmatmul.mubr.msk.bf16.vlgmr.msra.gmra.mrb[0].mxu0 %vm232_vm0, %v628_v55  ;;  %1070 = vmatprep.mubr.msk.bf16.mxu1 %vm232_vm0, %v168_v56 }
  0x30   : > { %1110 = vmatprep.mubr.msk.bf16.mxu0 %vm232_vm0, %v629_v57 }
  0x36   : > { %1071 = vmatmul.mubr.msk.bf16.gmra.mrb[4].mxu1 %vm232_vm0, %v169_v2 }
  0x37   : > { %1111 = vmatmul.mubr.msk.bf16.gmra.mrb[4].mxu0 %vm232_vm0, %v630_v3  ;;  %1074 = vmatprep.mubr.msk.bf16.mxu1 %vm232_vm0, %v170_v4 }
  0x38   : > { %1114 = vmatprep.mubr.msk.bf16.mxu0 %vm232_vm0, %v631_v5 }
  0x3e   : > { %1075 = vmatmul.mubr.msk.bf16.gmra.mrb[12].mxu1 %vm232_vm0, %v171_v8 }
  0x3f   : > { %1115 = vmatmul.mubr.msk.bf16.gmra.mrb[12].mxu0 %vm232_vm0, %v632_v9 }
  0xf9   : > { %v1317_v10 = vpop.f32.mrb[8].mxu1 }
  0xfa   : > { %v1319_v11 = vpop.f32.mrb[9].mxu1  ;;  %v1321_v12 = vpop.f32.mrb[8].mxu0 }
  0xfb   : > { %v1057_v13 = vpop.f32.mrb[10].mxu1  ;;  %v1323_v14 = vpop.f32.mrb[9].mxu0 }
  0xfc   : > { %v1325_v15 = vpop.f32.mrb[11].mxu1  ;;  %v1097_v16 = vpop.f32.mrb[10].mxu0 }
  0xfd   : > { %v1327_v17 = vpop.f32.mrb[11].mxu0 }
 0x101   : > { %v1068_v18 = vpop.f32.mrb[0].mxu1 }
 0x102   : > { %v1108_v19 = vpop.f32.mrb[0].mxu0  ;;  %v407_v21 = vpop.f32.mrb[1].mxu1 }
 0x103   : > { %v1118_v22 = vadd.f32 %v1108_v19, %v1068_v18  ;;  %v718_v23 = vpop.f32.mrb[1].mxu0  ;;  %v1069_v24 = vpop.f32.mrb[2].mxu1 }
 0x104   : > { %v1119_v25 = vadd.f32 %v718_v23, %v407_v21  ;;  %v1109_v26 = vpop.f32.mrb[2].mxu0  ;;  %v410_v27 = vpop.f32.mrb[3].mxu1 }
 0x105   : > { %v784_v28 = vadd.f32 %v1118_v22, %v1332_v20  ;;  %v1120_v29 = vadd.f32 %v1109_v26, %v1069_v24  ;;  %v721_v30 = vpop.f32.mrb[3].mxu0 }
 0x106   : > { %v782_v31 = vadd.f32 %v1119_v25, %v1332_v20  ;;  %v1121_v32 = vadd.f32 %v721_v30, %v410_v27 }
 0x107   : > { %vm795_vm1 = vcmp.ge.f32.partialorder %v784_v28, 0.0  ;;  %v806_v33 = vmul.f32 0.01, %v784_v28  ;;  %v785_v34 = vadd.f32 %v1120_v29, %v1332_v20 }
 0x108   : > { %vm793_vm3 = vcmp.ge.f32.partialorder %v782_v31, 0.0  ;;  %v804_v35 = vmul.f32 0.01, %v782_v31  ;;  %v783_v36 = vadd.f32 %v1121_v32, %v1332_v20 }
 0x109   : > { %v817_v37 = vsel %vm795_vm1, %v784_v28, %v806_v33  ;;  %vm796_vm4 = vcmp.ge.f32.partialorder %v785_v34, 0.0  ;;  %v807_v38 = vmul.f32 0.01, %v785_v34  ;;  %v1072_v39 = vpop.f32.mrb[4].mxu1 }
 0x10a   : > { %829 = vst.msk [vmem:[%s1339_s30 + $0x10] sm:$0xff] %vm826_vm2, %v817_v37  ;;  %v815_v40 = vsel %vm793_vm3, %v782_v31, %v804_v35  ;;  %vm794_vm5 = vcmp.ge.f32.partialorder %v783_v36, 0.0  ;;  %v805_v41 = vmul.f32 0.01, %v783_v36  ;;  %v1112_v42 = vpop.f32.mrb[4].mxu0  ;;  %v423_v43 = vpop.f32.mrb[5].mxu1 }
 0x10b   : > { %827 = vst.msk [vmem:[%s1339_s30] sm:$0xff] %vm826_vm2, %v815_v40  ;;  %v818_v44 = vsel %vm796_vm4, %v785_v34, %v807_v38  ;;  %v1122_v45 = vadd.f32 %v1112_v42, %v1072_v39  ;;  %v734_v46 = vpop.f32.mrb[5].mxu0  ;;  %v1073_v47 = vpop.f32.mrb[6].mxu1 }
 0x10c   : > { %830 = vst.msk [vmem:[%s1339_s30 + $0x18] sm:$0xff] %vm826_vm2, %v818_v44  ;;  %v816_v48 = vsel %vm794_vm5, %v783_v36, %v805_v41  ;;  %v1123_v49 = vadd.f32 %v734_v46, %v423_v43  ;;  %v1113_v50 = vpop.f32.mrb[6].mxu0  ;;  %v426_v51 = vpop.f32.mrb[7].mxu1 }
 0x10d   : > { %828 = vst.msk [vmem:[%s1339_s30 + $0x8] sm:$0xff] %vm826_vm2, %v816_v48  ;;  %v788_v52 = vadd.f32 %v1122_v45, %v1332_v20  ;;  %v1124_v53 = vadd.f32 %v1113_v50, %v1073_v47  ;;  %v737_v54 = vpop.f32.mrb[7].mxu0 }
 0x10e   : > { %v786_v55 = vadd.f32 %v1123_v49, %v1332_v20  ;;  %v1125_v56 = vadd.f32 %v737_v54, %v426_v51 }
 0x10f   : > { %vm799_vm6 = vcmp.ge.f32.partialorder %v788_v52, 0.0  ;;  %v810_v57 = vmul.f32 0.01, %v788_v52  ;;  %v789_v58 = vadd.f32 %v1124_v53, %v1332_v20 }
 0x110   : > { %vm797_vm7 = vcmp.ge.f32.partialorder %v786_v55, 0.0  ;;  %v808_v59 = vmul.f32 0.01, %v786_v55  ;;  %v787_v60 = vadd.f32 %v1125_v56, %v1332_v20 }
 0x111   : > { %v821_v61 = vsel %vm799_vm6, %v788_v52, %v810_v57  ;;  %vm800_vm8 = vcmp.ge.f32.partialorder %v789_v58, 0.0  ;;  %v811_v62 = vmul.f32 0.01, %v789_v58  ;;  %v1076_v63 = vpop.f32.mrb[12].mxu1 }
 0x112   : > { %833 = vst.msk [vmem:[%s1339_s30 + $0x30] sm:$0xff] %vm826_vm2, %v821_v61  ;;  %v819_v0 = vsel %vm797_vm7, %v786_v55, %v808_v59  ;;  %vm798_vm9 = vcmp.ge.f32.partialorder %v787_v60, 0.0  ;;  %v809_v1 = vmul.f32 0.01, %v787_v60  ;;  %v448_v2 = vadd.f32 %v1076_v63, %v1317_v10  ;;  %v439_v3 = vpop.f32.mrb[13].mxu1  ;;  %v1116_v4 = vpop.f32.mrb[12].mxu0 }
 0x113   : > { %831 = vst.msk [vmem:[%s1339_s30 + $0x20] sm:$0xff] %vm826_vm2, %v819_v0  ;;  %v822_v5 = vsel %vm800_vm8, %v789_v58, %v811_v62  ;;  %v440_v6 = vadd.f32 %v439_v3, %v1319_v11  ;;  %v1077_v7 = vpop.f32.mrb[14].mxu1  ;;  %v750_v8 = vpop.f32.mrb[13].mxu0 }
 0x114   : > { %834 = vst.msk [vmem:[%s1339_s30 + $0x38] sm:$0xff] %vm826_vm2, %v822_v5  ;;  %v820_v9 = vsel %vm798_vm9, %v787_v60, %v809_v1  ;;  %v613_v13 = vadd.f32 %v1321_v12, %v448_v2  ;;  %v442_v16 = vpop.f32.mrb[15].mxu1  ;;  %v1117_v18 = vpop.f32.mrb[14].mxu0 }
 0x115   : > { %832 = vst.msk [vmem:[%s1339_s30 + $0x28] sm:$0xff] %vm826_vm2, %v820_v9  ;;  %v443_v10 = vadd.f32 %v442_v16, %v1325_v15  ;;  %v611_v19 = vadd.f32 %v1323_v14, %v440_v6  ;;  %v753_v21 = vpop.f32.mrb[15].mxu0 }
 0x116   : > { %v774_v22 = vadd.f32 %v1116_v4, %v613_v13 }
 0x117   : > { %v772_v11 = vadd.f32 %v750_v8, %v611_v19  ;;  %v612_v23 = vadd.f32 %v1327_v17, %v443_v10 }
 0x118   : > { %v792_v24 = vadd.f32 %v1332_v20, %v774_v22 }
 0x119   : > { %v790_v12 = vadd.f32 %v1332_v20, %v772_v11  ;;  %v773_v25 = vadd.f32 %v753_v21, %v612_v23 }
 0x11a   : > { %vm803_vm10 = vcmp.ge.f32.partialorder %v792_v24, 0.0  ;;  %v814_v26 = vmul.f32 0.01, %v792_v24 }
 0x11b   : > { %vm801_vm11 = vcmp.ge.f32.partialorder %v790_v12, 0.0  ;;  %v812_v27 = vmul.f32 0.01, %v790_v12  ;;  %v791_v15 = vadd.f32 %v1332_v20, %v773_v25 }
 0x11c   : > { %v825_v28 = vsel %vm803_vm10, %v792_v24, %v814_v26 }
 0x11d   : > { %837 = vst.msk [vmem:[%s1339_s30 + $0x50] sm:$0xff] %vm826_vm2, %v825_v28  ;;  %v823_v14 = vsel %vm801_vm11, %v790_v12, %v812_v27  ;;  %vm802_vm12 = vcmp.ge.f32.partialorder %v791_v15, 0.0  ;;  %v813_v29 = vmul.f32 0.01, %v791_v15 }
 0x11e   : > { %835 = vst.msk [vmem:[%s1339_s30 + $0x40] sm:$0xff] %vm826_vm2, %v823_v14 }
 0x11f   : > { %v824_v17 = vsel %vm802_vm12, %v791_v15, %v813_v29 }
 0x120   : > { %836 = vst.msk [vmem:[%s1339_s30 + $0x48] sm:$0xff] %vm826_vm2, %v824_v17 }
 0x121 PF: > { %s13_s12 = sadd.s32 1, %s1172_s12  }
 0x122   : > { %p10_p4 = scmp.ge.s32.totalorder %s13_s12, 4  }
 0x124   :  { %12 = sbr.rel (!%p10_p4) target bundleno = 1 (0x1), region = 66 }

// kernel: vanilla_vae_forward.16
= control target key start
LH: loop header
LB: loop body
LE: loop exit
PB: predicated region body
PF: predicated region fallthrough
CT: control target
= control target key end

     0   :  { %s1036_s12 = smov 0   ;;  %s1174_s0 = inlined_call_operand.vmem [shape: f32[72,128], index: 0, kind: input, shape index: {}]   ;;  %s1175_s1 = inlined_call_operand.vmem [shape: bf16[4,128,32], index: 1, kind: input, shape index: {}]   ;;  %s1176_s2 = inlined_call_operand.vmem [shape: f32[1,32], index: 2, kind: input, shape index: {}]   ;;  %s1177_s3 = inlined_call_operand.vmem [shape: f32[64,32], index: 3, kind: output, shape index: {}]  }
   0x1 LB: > { %s731_s13 = sadd.s32 4294967295, %s1014_s12   ;;  %p734_p0 = scmp.ge.s32.totalorder %s1014_s12, 1  ;;  %s1014_s12 = sphi %s1036_s12, %s13_s12  }
   0x2   : > { %p127_p1 = scmp.lt.s32.totalorder %s1014_s12, 3 }
   0x4   : > { %p128_p2 = pnand %p734_p0, %p127_p1 }
   0x5   : > { %v976_v0 = vld [vmem:[%s1175_s1 + $0x40] sm:$0xff] (!%p128_p2)   ;;  %v978_v2 = vld [vmem:[%s1175_s1 + $0x48] sm:$0xff] (!%p128_p2)   ;;  %v980_v4 = vld [vmem:[%s1175_s1 + $0x50] sm:$0xff] (!%p128_p2)   ;;  %s737_s30 = sshll.u32 (!%p128_p2), %s731_s13, 5  ;;  %s735_s6 = sshll.u32 (!%p128_p2), %s731_s13, 2  ;;  %vm671_vm1 = vcmask (!%p128_p2), 261120  }
   0x6   : > { %131 = sbr.rel (%p128_p2) target bundleno = 294 (0x126), region = 32  ;;  %v977_v1 = vld [vmem:[%s1175_s1 + $0x80] sm:$0xff] (!%p128_p2)   ;;  %876 = vmatprep.subr.bf16.mxu1 (!%p128_p2), %v976_v0  ;;  %v979_v3 = vld [vmem:[%s1175_s1 + $0x88] sm:$0xff] (!%p128_p2)   ;;  %v981_v5 = vld [vmem:[%s1175_s1 + $0x90] sm:$0xff] (!%p128_p2)   ;;  %s1079_s10 = scalar_lea.vmem (!%p128_p2), %s1174_s0, %s737_s30 }
   0x7   : > { %916 = vmatprep.subr.bf16.mxu0 (!%p128_p2), %v977_v1  ;;  %877 = vmatpush3.bf16.msra.mxu1 (!%p128_p2), %v976_v0  ;;  %v982_v6 = vld [vmem:[%s1175_s1 + $0x58] sm:$0xff] (!%p128_p2)   ;;  %v984_v8 = vld [vmem:[%s1175_s1 + $0x60] sm:$0xff] (!%p128_p2)   ;;  %v986_v10 = vld [vmem:[%s1175_s1 + $0x68] sm:$0xff] (!%p128_p2)   ;;  %p147_p3 = scmp.lt.s32.totalorder (!%p128_p2), %s735_s6, 7 }
   0x8   : > { %917 = vmatpush3.bf16.msra.mxu0 (!%p128_p2), %v977_v1  ;;  %878 = vmatprep.subr.bf16.mxu1 (!%p128_p2), %v978_v2  ;;  %v983_v7 = vld [vmem:[%s1175_s1 + $0x98] sm:$0xff] (!%p128_p2)   ;;  %v985_v9 = vld [vmem:[%s1175_s1 + $0xa0] sm:$0xff] (!%p128_p2)   ;;  %v740_v12 = vld [vmem:[%s1079_s10 + $0x9] sm:$0xff] (!%p128_p2) }
   0x9   : > { %918 = vmatprep.subr.bf16.mxu0 (!%p128_p2), %v979_v3  ;;  %v739_v11 = vld [vmem:[%s1079_s10 + $0x1] sm:$0xff] (!%p128_p2)  ;;  %v777_v16 = vld [vmem:[%s1079_s10 + $0xd] sm:$0xff] (!%p128_p2)  ;;  %v990_v20 = vld [vmem:[%s1175_s1 + $0x78] sm:$0xff] (!%p128_p2)  }
   0xa   : > { %v987_v13 = vld [vmem:[%s1175_s1 + $0xa8] sm:$0xff] (!%p128_p2)   ;;  %v183_v14 = vpack.c.bf16 (!%p128_p2), %v740_v12, %v739_v11  ;;  %v988_v18 = vld [vmem:[%s1175_s1 + $0x70] sm:$0xff] (!%p128_p2)   ;;  %v991_v21 = vld [vmem:[%s1175_s1 + $0xb8] sm:$0xff] (!%p128_p2)  }
   0xb   : > { %879 = vmatpush3.bf16.msra.mxu1 (!%p128_p2), %v978_v2  ;;  %v776_v15 = vld [vmem:[%s1079_s10 + $0x5] sm:$0xff] (!%p128_p2)  ;;  %v989_v19 = vld [vmem:[%s1175_s1 + $0xb0] sm:$0xff] (!%p128_p2)   ;;  %v742_v24 = vld [vmem:[%s1079_s10 + $0x19] sm:$0xff] (!%p128_p2) }
   0xc   : > { %919 = vmatpush3.bf16.msra.mxu0 (!%p128_p2), %v979_v3  ;;  %880 = vmatprep.subr.bf16.mxu1 (!%p128_p2), %v980_v4  ;;  %v402_v17 = vpack.c.bf16 (!%p128_p2), %v777_v16, %v776_v15  ;;  %v741_v22 = vld [vmem:[%s1079_s10 + $0x11] sm:$0xff] (!%p128_p2)  ;;  %v992_v23 = vld [vmem:[%s1175_s1] sm:$0xff] (!%p128_p2)   ;;  %v994_v30 = vld [vmem:[%s1175_s1 + $0x8] sm:$0xff] (!%p128_p2)  }
   0xd   : > { %920 = vmatprep.subr.bf16.mxu0 %v981_v5  ;;  %892 = vmatprep.mubr.bf16.mxu1 %v183_v14  ;;  %v778_v25 = vld [vmem:[%s1079_s10 + $0x15] sm:$0xff]  ;;  %v779_v26 = vld [vmem:[%s1079_s10 + $0x1d] sm:$0xff]  ;;  %v184_v28 = vpack.c.bf16 %v742_v24, %v741_v22  ;;  %v995_v31 = vld [vmem:[%s1175_s1 + $0xc8] sm:$0xff]   ;;  %s1179_s6 = smov (!%p147_p3, %s735_s6), 7 }
   0xe   : > { %932 = vmatprep.mubr.bf16.mxu0 %v402_v17  ;;  %v993_v27 = vld [vmem:[%s1175_s1 + $0xc0] sm:$0xff]   ;;  %v403_v29 = vpack.c.bf16 %v779_v26, %v778_v25  ;;  %v156_v33 = vld [vmem:[%s1079_s10 + $0x8] sm:$0xff]  ;;  %v996_v36 = vld [vmem:[%s1175_s1 + $0x10] sm:$0xff]  }
   0xf   : > { %881 = vmatpush3.bf16.msra.mxu1 %v980_v4  ;;  %v155_v32 = vld [vmem:[%s1079_s10] sm:$0xff]  ;;  %v806_v35 = vld [vmem:[%s1079_s10 + $0xe] sm:$0xff]  ;;  %v998_v40 = vld [vmem:[%s1175_s1 + $0x18] sm:$0xff]  }
  0x10   : > { %921 = vmatpush3.bf16.msra.mxu0 %v981_v5  ;;  %882 = vmatprep.subr.bf16.mxu1 %v982_v6  ;;  %v805_v34 = vld [vmem:[%s1079_s10 + $0x6] sm:$0xff]  ;;  %v159_v37 = vpack.c.bf16 %v156_v33, %v155_v32  ;;  %v997_v39 = vld [vmem:[%s1175_s1 + $0xd0] sm:$0xff]   ;;  %v999_v41 = vld [vmem:[%s1175_s1 + $0xd8] sm:$0xff]  }
  0x11   : > { %922 = vmatprep.subr.bf16.mxu0 %v983_v7  ;;  %v528_v38 = vpack.c.bf16 %v806_v35, %v805_v34  ;;  %v1000_v42 = vld [vmem:[%s1175_s1 + $0x20] sm:$0xff]   ;;  %v1002_v44 = vld [vmem:[%s1175_s1 + $0x28] sm:$0xff]   ;;  %v1004_v46 = vld [vmem:[%s1175_s1 + $0x30] sm:$0xff]  }
  0x12   : > { %v1001_v43 = vld [vmem:[%s1175_s1 + $0xe0] sm:$0xff]   ;;  %v1003_v45 = vld [vmem:[%s1175_s1 + $0xe8] sm:$0xff]   ;;  %v1005_v47 = vld [vmem:[%s1175_s1 + $0xf0] sm:$0xff]  }
  0x13   : > { %883 = vmatpush3.bf16.msra.mxu1 %v982_v6  ;;  %v1006_v48 = vld [vmem:[%s1175_s1 + $0x38] sm:$0xff]   ;;  %v157_v50 = vld [vmem:[%s1079_s10 + $0x10] sm:$0xff]  ;;  %v833_v58 = vld [vmem:[%s1176_s2] ss:$0 sm:$0xff] }
  0x14   : > { %923 = vmatpush3.bf16.msra.mxu0 %v983_v7  ;;  %884 = vmatprep.subr.bf16.mxu1 %v984_v8  ;;  %v1007_v49 = vld [vmem:[%s1175_s1 + $0xf8] sm:$0xff]  }
  0x15   : > { %924 = vmatprep.subr.bf16.mxu0 %v985_v9  ;;  %v158_v51 = vld [vmem:[%s1079_s10 + $0x18] sm:$0xff] }
  0x16   : > { %v807_v52 = vld [vmem:[%s1079_s10 + $0x16] sm:$0xff]  ;;  %v808_v53 = vld [vmem:[%s1079_s10 + $0x1e] sm:$0xff]  ;;  %v160_v54 = vpack.c.bf16 %v158_v51, %v157_v50  ;;  %s736_s10 = sshll.u32 %s1179_s6, 3 }
  0x17   : > { %885 = vmatpush3.bf16.msra.mxu1 %v984_v8  ;;  %v529_v55 = vpack.c.bf16 %v808_v53, %v807_v52  ;;  %s150_s11 = scalar_lea.vmem %s1177_s3, %s736_s10 }
  0x18   : > { %925 = vmatpush3.bf16.msra.mxu0 %v985_v9  ;;  %886 = vmatprep.subr.bf16.mxu1 %v986_v10 }
  0x19   : > { %926 = vmatprep.subr.bf16.mxu0 %v987_v13 }
  0x1b   : > { %887 = vmatpush3.bf16.msra.mxu1 %v986_v10 }
  0x1c   : > { %927 = vmatpush3.bf16.msra.mxu0 %v987_v13  ;;  %888 = vmatprep.subr.bf16.mxu1 %v988_v18 }
  0x1d   : > { %928 = vmatprep.subr.bf16.mxu0 %v989_v19 }
  0x1f   : > { %889 = vmatpush3.bf16.msra.mxu1 %v988_v18 }
  0x20   : > { %929 = vmatpush3.bf16.msra.mxu0 %v989_v19  ;;  %890 = vmatprep.subr.bf16.mxu1 %v990_v20 }
  0x21   : > { %930 = vmatprep.subr.bf16.mxu0 %v991_v21 }
  0x23   : > { %891 = vmatpush3.bf16.msra.mxu1 %v990_v20 }
  0x24   : > { %931 = vmatpush3.bf16.msra.mxu0 %v991_v21  ;;  %896 = vmatprep.subr.bf16.mxu1 %v992_v23 }
  0x25   : > { %936 = vmatprep.subr.bf16.mxu0 %v993_v27 }
  0x26   : > { %893 = vmatmul.mubr.bf16.vlgmr.msra.gmra.mrb[0].mxu1 %v184_v28 }
  0x27   : > { %897 = vmatpush3.bf16.msra.mxu1 %v992_v23  ;;  %933 = vmatmul.mubr.bf16.vlgmr.msra.gmra.mrb[0].mxu0 %v403_v29 }
  0x28   : > { %937 = vmatpush3.bf16.msra.mxu0 %v993_v27  ;;  %898 = vmatprep.subr.bf16.mxu1 %v994_v30 }
  0x29   : > { %938 = vmatprep.subr.bf16.mxu0 %v995_v31  ;;  %912 = vmatprep.mubr.bf16.mxu1 %v159_v37 }
  0x2a   : > { %952 = vmatprep.mubr.bf16.mxu0 %v528_v38 }
  0x2b   : > { %899 = vmatpush3.bf16.msra.mxu1 %v994_v30 }
  0x2c   : > { %939 = vmatpush3.bf16.msra.mxu0 %v995_v31  ;;  %900 = vmatprep.subr.bf16.mxu1 %v996_v36 }
  0x2d   : > { %940 = vmatprep.subr.bf16.mxu0 %v997_v39 }
  0x2f   : > { %901 = vmatpush3.bf16.msra.mxu1 %v996_v36 }
  0x30   : > { %941 = vmatpush3.bf16.msra.mxu0 %v997_v39  ;;  %902 = vmatprep.subr.bf16.mxu1 %v998_v40 }
  0x31   : > { %942 = vmatprep.subr.bf16.mxu0 %v999_v41 }
  0x33   : > { %903 = vmatpush3.bf16.msra.mxu1 %v998_v40 }
  0x34   : > { %943 = vmatpush3.bf16.msra.mxu0 %v999_v41  ;;  %904 = vmatprep.subr.bf16.mxu1 %v1000_v42 }
  0x35   : > { %944 = vmatprep.subr.bf16.mxu0 %v1001_v43 }
  0x37   : > { %905 = vmatpush3.bf16.msra.mxu1 %v1000_v42 }
  0x38   : > { %945 = vmatpush3.bf16.msra.mxu0 %v1001_v43  ;;  %906 = vmatprep.subr.bf16.mxu1 %v1002_v44 }
  0x39   : > { %946 = vmatprep.subr.bf16.mxu0 %v1003_v45 }
  0x3b   : > { %907 = vmatpush3.bf16.msra.mxu1 %v1002_v44 }
  0x3c   : > { %947 = vmatpush3.bf16.msra.mxu0 %v1003_v45  ;;  %908 = vmatprep.subr.bf16.mxu1 %v1004_v46 }
  0x3d   : > { %948 = vmatprep.subr.bf16.mxu0 %v1005_v47 }
  0x3f   : > { %909 = vmatpush3.bf16.msra.mxu1 %v1004_v46 }
  0x40   : > { %949 = vmatpush3.bf16.msra.mxu0 %v1005_v47  ;;  %910 = vmatprep.subr.bf16.mxu1 %v1006_v48 }
  0x41   : > { %950 = vmatprep.subr.bf16.mxu0 %v1007_v49 }
  0x43   : > { %911 = vmatpush3.bf16.msra.mxu1 %v1006_v48 }
  0x44   : > { %951 = vmatpush3.bf16.msra.mxu0 %v1007_v49 }
  0x46   : > { %913 = vmatmul.mubr.bf16.vlgmr.msra.gmra.mrb[0].mxu1 %v160_v54 }
  0x47   : > { %953 = vmatmul.mubr.bf16.vlgmr.msra.gmra.mrb[0].mxu0 %v529_v55 }
 0x119   : > { %v914_v56 = vpop.f32.mrb[0].mxu1 }
 0x11a   : > { %v954_v57 = vpop.f32.mrb[0].mxu0  ;;  %v381_v59 = vpop.f32.mrb[1].mxu1 }
 0x11b   : > { %v956_v60 = vadd.f32 %v954_v57, %v914_v56  ;;  %v629_v61 = vpop.f32.mrb[1].mxu0  ;;  %v915_v62 = vpop.f32.mrb[2].mxu1 }
 0x11c   : > { %v957_v63 = vadd.f32 %v629_v61, %v381_v59  ;;  %v955_v0 = vpop.f32.mrb[2].mxu0  ;;  %v384_v1 = vpop.f32.mrb[3].mxu1 }
 0x11d   : > { %v657_v2 = vadd.f32 %v956_v60, %v833_v58  ;;  %v958_v3 = vadd.f32 %v955_v0, %v915_v62  ;;  %v632_v4 = vpop.f32.mrb[3].mxu0 }
 0x11e   : > { %v655_v5 = vadd.f32 %v957_v63, %v833_v58  ;;  %v959_v6 = vadd.f32 %v632_v4, %v384_v1 }
 0x11f   : > { %v658_v7 = vadd.f32 %v958_v3, %v833_v58  ;;  %vm661_vm2 = vcmp.ge.f32.partialorder %v657_v2, 0.0  ;;  %v665_v10 = vmul.f32 0.01, %v657_v2 }
 0x120   : > { %vm659_vm0 = vcmp.ge.f32.partialorder %v655_v5, 0.0  ;;  %v663_v8 = vmul.f32 0.01, %v655_v5  ;;  %v656_v9 = vadd.f32 %v959_v6, %v833_v58 }
 0x121   : > { %v666_v12 = vmul.f32 0.01, %v658_v7  ;;  %vm662_vm4 = vcmp.ge.f32.partialorder %v658_v7, 0.0  ;;  %v669_v15 = vsel %vm661_vm2, %v657_v2, %v665_v10 }
 0x122   : > { %v667_v11 = vsel %vm659_vm0, %v655_v5, %v663_v8  ;;  %vm660_vm3 = vcmp.ge.f32.partialorder %v656_v9, 0.0  ;;  %v664_v13 = vmul.f32 0.01, %v656_v9  ;;  %674 = vst.msk [vmem:[%s150_s11 + $0x10] sm:$0xff] %vm671_vm1, %v669_v15 }
 0x123   : > { %672 = vst.msk [vmem:[%s150_s11] sm:$0xff] %vm671_vm1, %v667_v11  ;;  %v670_v16 = vsel %vm662_vm4, %v658_v7, %v666_v12 }
 0x124   : > { %v668_v14 = vsel %vm660_vm3, %v656_v9, %v664_v13  ;;  %675 = vst.msk [vmem:[%s150_s11 + $0x18] sm:$0xff] %vm671_vm1, %v670_v16 }
 0x125   : > { %673 = vst.msk [vmem:[%s150_s11 + $0x8] sm:$0xff] %vm671_vm1, %v668_v14 }
 0x126 PF: > { %s13_s12 = sadd.s32 1, %s1014_s12  }
 0x127   : > { %p10_p4 = scmp.ge.s32.totalorder %s13_s12, 4  }
 0x129   :  { %12 = sbr.rel (!%p10_p4) target bundleno = 1 (0x1), region = 66 }

// kernel: vanilla_vae_forward.17
= control target key start
LH: loop header
LB: loop body
LE: loop exit
PB: predicated region body
PF: predicated region fallthrough
CT: control target
= control target key end

     0   :  { %s960_s12 = smov 0   ;;  %s1130_s0 = inlined_call_operand.vmem [shape: f32[40,128], index: 0, kind: input, shape index: {}]   ;;  %s1131_s1 = inlined_call_operand.vmem [shape: bf16[4,128,32], index: 1, kind: input, shape index: {}]   ;;  %s1132_s2 = inlined_call_operand.vmem [shape: f32[1,32], index: 2, kind: input, shape index: {}]   ;;  %s1133_s3 = inlined_call_operand.vmem [shape: f32[32,32], index: 3, kind: output, shape index: {}]  }
   0x1 LB: > { %s673_s13 = sadd.s32 4294967295, %s936_s12   ;;  %p676_p0 = scmp.ge.s32.totalorder %s936_s12, 1  ;;  %s936_s12 = sphi %s960_s12, %s13_s12  }
   0x2   : > { %p127_p1 = scmp.lt.s32.totalorder %s936_s12, 3 }
   0x4   : > { %p128_p2 = pnand %p676_p0, %p127_p1 }
   0x5   : > { %v898_v0 = vld [vmem:[%s1131_s1 + $0x40] sm:$0xff] (!%p128_p2)   ;;  %v938_v1 = vmov (!%p128_p2), 0.0   ;;  %v900_v3 = vld [vmem:[%s1131_s1 + $0x48] sm:$0xff] (!%p128_p2)   ;;  %vm939_vm0 = vmmov (!%p128_p2), 0   ;;  %v902_v5 = vld [vmem:[%s1131_s1 + $0x50] sm:$0xff] (!%p128_p2)   ;;  %s679_s9 = sshll.u32 (!%p128_p2), %s673_s13, 4 }
   0x6   : > { %131 = sbr.rel (%p128_p2) target bundleno = 294 (0x126), region = 32  ;;  %808 = vmatprep.subr.bf16.mxu0 (!%p128_p2), %v938_v1  ;;  %828 = vmatprep.subr.bf16.mxu1 (!%p128_p2), %v938_v1  ;;  %v899_v2 = vld [vmem:[%s1131_s1] sm:$0xff] (!%p128_p2)   ;;  %v901_v4 = vld [vmem:[%s1131_s1 + $0x8] sm:$0xff] (!%p128_p2)   ;;  %v903_v6 = vld [vmem:[%s1131_s1 + $0x10] sm:$0xff] (!%p128_p2)   ;;  %s1025_s16 = scalar_lea.vmem (!%p128_p2), %s1130_s0, %s679_s9  ;;  %vm615_vm2 = vcmask (!%p128_p2), 261120  }
   0x7   : > { %809 = vmatpush3.bf16.msra.mxu0 (!%p128_p2), %v898_v0  ;;  %824 = vmatprep.mubr.msk.bf16.mxu0 (!%p128_p2), %vm939_vm0, %v938_v1  ;;  %v904_v7 = vld [vmem:[%s1131_s1 + $0x58] sm:$0xff] (!%p128_p2)   ;;  %v906_v9 = vld [vmem:[%s1131_s1 + $0x60] sm:$0xff] (!%p128_p2)   ;;  %v908_v11 = vld [vmem:[%s1131_s1 + $0x68] sm:$0xff] (!%p128_p2)  }
   0x8   : > { %829 = vmatpush3.bf16.msra.mxu1 (!%p128_p2), %v899_v2  ;;  %810 = vmatprep.subr.bf16.mxu0 (!%p128_p2), %v938_v1  ;;  %v905_v8 = vld [vmem:[%s1131_s1 + $0x18] sm:$0xff] (!%p128_p2)   ;;  %v907_v10 = vld [vmem:[%s1131_s1 + $0x20] sm:$0xff] (!%p128_p2)   ;;  %v909_v12 = vld [vmem:[%s1131_s1 + $0x28] sm:$0xff] (!%p128_p2)  }
   0x9   : > { %830 = vmatprep.subr.bf16.mxu1 (!%p128_p2), %v938_v1  ;;  %844 = vmatprep.mubr.msk.bf16.mxu1 (!%p128_p2), %vm939_vm0, %v938_v1  ;;  %v910_v13 = vld [vmem:[%s1131_s1 + $0x70] sm:$0xff] (!%p128_p2)   ;;  %v912_v15 = vld [vmem:[%s1131_s1 + $0x78] sm:$0xff] (!%p128_p2)   ;;  %v681_v16 = vld [vmem:[%s1025_s16 + $0x1] sm:$0xff] (!%p128_p2) }
   0xa   : > { %v911_v14 = vld [vmem:[%s1131_s1 + $0x30] sm:$0xff] (!%p128_p2)   ;;  %v913_v17 = vld [vmem:[%s1131_s1 + $0x38] sm:$0xff] (!%p128_p2)   ;;  %v155_v19 = vld [vmem:[%s1025_s16] sm:$0xff] (!%p128_p2) }
   0xb   : > { %811 = vmatpush3.bf16.msra.mxu0 (!%p128_p2), %v900_v3  ;;  %v682_v18 = vld [vmem:[%s1025_s16 + $0x9] sm:$0xff] (!%p128_p2)  ;;  %v914_v23 = vld [vmem:[%s1131_s1 + $0x80] sm:$0xff] (!%p128_p2)   ;;  %v920_v29 = vld [vmem:[%s1131_s1 + $0x98] sm:$0xff] (!%p128_p2)  }
   0xc   : > { %831 = vmatpush3.bf16.msra.mxu1 (!%p128_p2), %v901_v4  ;;  %812 = vmatprep.subr.bf16.mxu0 (!%p128_p2), %v938_v1  ;;  %v156_v20 = vld [vmem:[%s1025_s16 + $0x8] sm:$0xff] (!%p128_p2)  ;;  %v178_v21 = vpack.c.bf16 (!%p128_p2), %v682_v18, %v681_v16  ;;  %v915_v24 = vld [vmem:[%s1131_s1 + $0xc0] sm:$0xff] (!%p128_p2)   ;;  %v918_v27 = vld [vmem:[%s1131_s1 + $0x90] sm:$0xff] (!%p128_p2)  }
   0xd   : > { %832 = vmatprep.subr.bf16.mxu1 %v938_v1  ;;  %v157_v22 = vpack.c.bf16 %v156_v20, %v155_v19  ;;  %v916_v25 = vld [vmem:[%s1131_s1 + $0x88] sm:$0xff]   ;;  %v919_v28 = vld [vmem:[%s1131_s1 + $0xd0] sm:$0xff]   ;;  %v921_v30 = vld [vmem:[%s1131_s1 + $0xd8] sm:$0xff]  }
   0xe   : > { %v917_v26 = vld [vmem:[%s1131_s1 + $0xc8] sm:$0xff]   ;;  %v922_v31 = vld [vmem:[%s1131_s1 + $0xa0] sm:$0xff]   ;;  %v926_v35 = vld [vmem:[%s1131_s1 + $0xb0] sm:$0xff]  }
   0xf   : > { %813 = vmatpush3.bf16.msra.mxu0 %v902_v5  ;;  %v923_v32 = vld [vmem:[%s1131_s1 + $0xe0] sm:$0xff]   ;;  %v924_v33 = vld [vmem:[%s1131_s1 + $0xa8] sm:$0xff]   ;;  %v927_v36 = vld [vmem:[%s1131_s1 + $0xf0] sm:$0xff]  }
  0x10   : > { %833 = vmatpush3.bf16.msra.mxu1 %v903_v6  ;;  %814 = vmatprep.subr.bf16.mxu0 %v938_v1  ;;  %v925_v34 = vld [vmem:[%s1131_s1 + $0xe8] sm:$0xff]   ;;  %v928_v37 = vld [vmem:[%s1131_s1 + $0xb8] sm:$0xff]   ;;  %v769_v59 = vld [vmem:[%s1132_s2] ss:$0 sm:$0xff] }
  0x11   : > { %834 = vmatprep.subr.bf16.mxu1 %v938_v1  ;;  %v716_v38 = vld [vmem:[%s1025_s16 + $0x3] sm:$0xff]  ;;  %v717_v39 = vld [vmem:[%s1025_s16 + $0xb] sm:$0xff]  ;;  %v929_v40 = vld [vmem:[%s1131_s1 + $0xf8] sm:$0xff]  }
  0x12   : > { %v743_v41 = vld [vmem:[%s1025_s16 + $0x4] sm:$0xff]  ;;  %v744_v42 = vld [vmem:[%s1025_s16 + $0xc] sm:$0xff]  ;;  %v378_v43 = vpack.c.bf16 %v717_v39, %v716_v38  ;;  %s677_s16 = sshll.u32 %s673_s13, 1 }
  0x13   : > { %815 = vmatpush3.bf16.msra.mxu0 %v904_v7  ;;  %v491_v44 = vpack.c.bf16 %v744_v42, %v743_v41  ;;  %p147_p3 = scmp.lt.s32.totalorder %s677_s16, 3 }
  0x14   : > { %835 = vmatpush3.bf16.msra.mxu1 %v905_v8  ;;  %816 = vmatprep.subr.bf16.mxu0 %v938_v1 }
  0x15   : > { %836 = vmatprep.subr.bf16.mxu1 %v938_v1  ;;  %s1135_s16 = smov (!%p147_p3, %s677_s16), 3 }
  0x16   : > { %s678_s8 = sshll.u32 %s1135_s16, 3 }
  0x17   : > { %817 = vmatpush3.bf16.msra.mxu0 %v906_v9  ;;  %s150_s10 = scalar_lea.vmem %s1133_s3, %s678_s8 }
  0x18   : > { %837 = vmatpush3.bf16.msra.mxu1 %v907_v10  ;;  %818 = vmatprep.subr.bf16.mxu0 %v938_v1 }
  0x19   : > { %838 = vmatprep.subr.bf16.mxu1 %v938_v1 }
  0x1b   : > { %819 = vmatpush3.bf16.msra.mxu0 %v908_v11 }
  0x1c   : > { %839 = vmatpush3.bf16.msra.mxu1 %v909_v12  ;;  %820 = vmatprep.subr.bf16.mxu0 %v938_v1 }
  0x1d   : > { %840 = vmatprep.subr.bf16.mxu1 %v938_v1 }
  0x1f   : > { %821 = vmatpush3.bf16.msra.mxu0 %v910_v13 }
  0x20   : > { %841 = vmatpush3.bf16.msra.mxu1 %v911_v14  ;;  %822 = vmatprep.subr.bf16.mxu0 %v938_v1 }
  0x21   : > { %842 = vmatprep.subr.bf16.mxu1 %v938_v1 }
  0x23   : > { %823 = vmatpush3.bf16.msra.mxu0 %v912_v15 }
  0x24   : > { %843 = vmatpush3.bf16.msra.mxu1 %v913_v17  ;;  %848 = vmatprep.subr.bf16.mxu0 %v938_v1 }
  0x25   : > { %868 = vmatprep.subr.bf16.mxu1 %v938_v1 }
  0x26   : > { %825 = vmatmul.mubr.bf16.vlgmr.msra.gmra.mrb[0].mxu0 %v178_v21 }
  0x27   : > { %845 = vmatmul.mubr.bf16.vlgmr.msra.gmra.mrb[0].mxu1 %v157_v22  ;;  %849 = vmatpush3.bf16.msra.mxu0 %v914_v23 }
  0x28   : > { %869 = vmatpush3.bf16.msra.mxu1 %v915_v24  ;;  %850 = vmatprep.subr.bf16.mxu0 %v938_v1 }
  0x29   : > { %870 = vmatprep.subr.bf16.mxu1 %v938_v1  ;;  %864 = vmatprep.mubr.msk.bf16.mxu0 %vm939_vm0, %v938_v1 }
  0x2a   : > { %884 = vmatprep.mubr.msk.bf16.mxu1 %vm939_vm0, %v938_v1 }
  0x2b   : > { %851 = vmatpush3.bf16.msra.mxu0 %v916_v25 }
  0x2c   : > { %871 = vmatpush3.bf16.msra.mxu1 %v917_v26  ;;  %852 = vmatprep.subr.bf16.mxu0 %v938_v1 }
  0x2d   : > { %872 = vmatprep.subr.bf16.mxu1 %v938_v1 }
  0x2f   : > { %853 = vmatpush3.bf16.msra.mxu0 %v918_v27 }
  0x30   : > { %873 = vmatpush3.bf16.msra.mxu1 %v919_v28  ;;  %854 = vmatprep.subr.bf16.mxu0 %v938_v1 }
  0x31   : > { %874 = vmatprep.subr.bf16.mxu1 %v938_v1 }
  0x33   : > { %855 = vmatpush3.bf16.msra.mxu0 %v920_v29 }
  0x34   : > { %875 = vmatpush3.bf16.msra.mxu1 %v921_v30  ;;  %856 = vmatprep.subr.bf16.mxu0 %v938_v1 }
  0x35   : > { %876 = vmatprep.subr.bf16.mxu1 %v938_v1 }
  0x37   : > { %857 = vmatpush3.bf16.msra.mxu0 %v922_v31 }
  0x38   : > { %877 = vmatpush3.bf16.msra.mxu1 %v923_v32  ;;  %858 = vmatprep.subr.bf16.mxu0 %v938_v1 }
  0x39   : > { %878 = vmatprep.subr.bf16.mxu1 %v938_v1 }
  0x3b   : > { %859 = vmatpush3.bf16.msra.mxu0 %v924_v33 }
  0x3c   : > { %879 = vmatpush3.bf16.msra.mxu1 %v925_v34  ;;  %860 = vmatprep.subr.bf16.mxu0 %v938_v1 }
  0x3d   : > { %880 = vmatprep.subr.bf16.mxu1 %v938_v1 }
  0x3f   : > { %861 = vmatpush3.bf16.msra.mxu0 %v926_v35 }
  0x40   : > { %881 = vmatpush3.bf16.msra.mxu1 %v927_v36  ;;  %862 = vmatprep.subr.bf16.mxu0 %v938_v1 }
  0x41   : > { %882 = vmatprep.subr.bf16.mxu1 %v938_v1 }
  0x43   : > { %863 = vmatpush3.bf16.msra.mxu0 %v928_v37 }
  0x44   : > { %883 = vmatpush3.bf16.msra.mxu1 %v929_v40 }
  0x46   : > { %865 = vmatmul.mubr.bf16.vlgmr.msra.gmra.mrb[4].mxu0 %v378_v43 }
  0x47   : > { %885 = vmatmul.mubr.bf16.vlgmr.msra.gmra.mrb[4].mxu1 %v491_v44 }
  0xf9   : > { %v278_v45 = vpop.f32.mrb[0].mxu0 }
  0xfa   : > { %v367_v46 = vpop.f32.mrb[0].mxu1  ;;  %v826_v47 = vpop.f32.mrb[1].mxu0 }
  0xfb   : > { %v368_v48 = vadd.f32 %v367_v46, %v278_v45  ;;  %v846_v49 = vpop.f32.mrb[1].mxu1  ;;  %v281_v50 = vpop.f32.mrb[2].mxu0 }
  0xfc   : > { %v370_v51 = vpop.f32.mrb[2].mxu1  ;;  %v827_v52 = vpop.f32.mrb[3].mxu0 }
  0xfd   : > { %v371_v53 = vadd.f32 %v370_v51, %v281_v50  ;;  %v847_v54 = vpop.f32.mrb[3].mxu1 }
 0x119   : > { %v478_v55 = vpop.f32.mrb[4].mxu0 }
 0x11a   : > { %v485_v56 = vadd.f32 %v478_v55, %v368_v48  ;;  %v591_v57 = vpop.f32.mrb[4].mxu1  ;;  %v866_v58 = vpop.f32.mrb[5].mxu0 }
 0x11b   : > { %v886_v60 = vpop.f32.mrb[5].mxu1  ;;  %v481_v61 = vpop.f32.mrb[6].mxu0 }
 0x11c   : > { %v598_v62 = vadd.f32 %v591_v57, %v485_v56  ;;  %v486_v63 = vadd.f32 %v481_v61, %v371_v53  ;;  %v594_v0 = vpop.f32.mrb[6].mxu1  ;;  %v867_v1 = vpop.f32.mrb[7].mxu0 }
 0x11d   : > { %v887_v2 = vpop.f32.mrb[7].mxu1 }
 0x11e   : > { %v607_v3 = vadd.f32 %v769_v59, %v598_v62  ;;  %v599_v4 = vadd.f32 %v594_v0, %v486_v63 }
 0x120   : > { %vm609_vm1 = vcmp.ge.f32.partialorder %v607_v3, 0.0  ;;  %v611_v5 = vmul.f32 0.01, %v607_v3  ;;  %v608_v6 = vadd.f32 %v769_v59, %v599_v4 }
 0x122   : > { %v613_v7 = vsel %vm609_vm1, %v607_v3, %v611_v5  ;;  %vm610_vm3 = vcmp.ge.f32.partialorder %v608_v6, 0.0  ;;  %v612_v8 = vmul.f32 0.01, %v608_v6 }
 0x123   : > { %616 = vst.msk [vmem:[%s150_s10] sm:$0xff] %vm615_vm2, %v613_v7 }
 0x124   : > { %v614_v9 = vsel %vm610_vm3, %v608_v6, %v612_v8 }
 0x125   : > { %617 = vst.msk [vmem:[%s150_s10 + $0x8] sm:$0xff] %vm615_vm2, %v614_v9 }
 0x126 PF: > { %s13_s12 = sadd.s32 1, %s936_s12  }
 0x127   : > { %p10_p4 = scmp.ge.s32.totalorder %s13_s12, 4  }
 0x129   :  { %12 = sbr.rel (!%p10_p4) target bundleno = 1 (0x1), region = 66 }

// kernel: vanilla_vae_forward.19
= control target key start
LH: loop header
LB: loop body
LE: loop exit
PB: predicated region body
PF: predicated region fallthrough
CT: control target
= control target key end

     0   :  { %v97_v0 = vmov 0.0   ;;  %vm98_vm0 = vmmov 0   ;;  %vm34_vm1 = vcmask 130048   ;;  %s131_s1 = inlined_call_operand.vmem [shape: bf16[1,16,128], index: 1, kind: input, shape index: {}]   ;;  %s132_s0 = inlined_call_operand.vmem [shape: f32[8,16], index: 0, kind: input, shape index: {}]   ;;  %s133_s2 = inlined_call_operand.vmem [shape: f32[1,128], index: 2, kind: input, shape index: {}]   ;;  %s134_s3 = inlined_call_operand.vmem [shape: f32[8,128], index: 3, kind: output, shape index: {}]  }
   0x1   :  { %88 = vmatprep.subr.bf16.mxu0 %v97_v0  ;;  %v96_v1 = vld [vmem:[%s131_s1] sm:$0xff]   ;;  %90 = vmatprep.mubr.msk.bf16.mxu0 %vm98_vm0, %v97_v0 }
   0x2   :  { %v17_v2 = vld [vmem:[%s132_s0] sm:$0xff]  ;;  %89 = vmatpush3.bf16.msra.mxu0 %v96_v1 }
   0x3   :  { %v18_v3 = vpack.c.bf16 %v17_v2, %v17_v2  ;;  %v83_v4 = vld [vmem:[%s133_s2] ss:$0 sm:$0xff] }
   0x5   :  { %91 = vmatmul.mubr.msk.bf16.vlgmr.msra.gmra.mrb[0].mxu0 %vm34_vm1, %v18_v3 }
  0xd8   :  { %v72_v5 = vpop.f32.mrb[0].mxu0 }
  0xd9   :  { %v73_v6 = vadd.f32 %v83_v4, %v72_v5  ;;  %v92_v7 = vpop.f32.mrb[1].mxu0 }
  0xda   :  { %v75_v8 = vpop.f32.mrb[2].mxu0 }
  0xdb   :  { %78 = vst [vmem:[%s134_s3] sm:$0xff] %v73_v6  ;;  %v93_v9 = vpop.f32.mrb[3].mxu0 }

// kernel: vanilla_vae_forward.18
= control target key start
LH: loop header
LB: loop body
LE: loop exit
PB: predicated region body
PF: predicated region fallthrough
CT: control target
= control target key end

     0   :  { %v184_v0 = vmov 0.0   ;;  %vm185_vm0 = vmmov 0   ;;  %vm130_vm1 = vcmask 261120   ;;  %s239_s1 = inlined_call_operand.vmem [shape: bf16[1,128,32], index: 1, kind: input, shape index: {}]   ;;  %s240_s0 = inlined_call_operand.vmem [shape: f32[8,128], index: 0, kind: input, shape index: {}]   ;;  %s241_s2 = inlined_call_operand.vmem [shape: f32[1,32], index: 2, kind: input, shape index: {}]   ;;  %s242_s3 = inlined_call_operand.vmem [shape: f32[8,32], index: 3, kind: output, shape index: {}]  }
   0x1   :  { %154 = vmatprep.subr.bf16.mxu0 %v184_v0  ;;  %v176_v1 = vld [vmem:[%s239_s1] sm:$0xff]   ;;  %170 = vmatprep.mubr.msk.bf16.mxu0 %vm185_vm0, %v184_v0  ;;  %v177_v2 = vld [vmem:[%s239_s1 + $0x8] sm:$0xff]   ;;  %v178_v3 = vld [vmem:[%s239_s1 + $0x10] sm:$0xff]  }
   0x2   :  { %155 = vmatpush3.bf16.msra.mxu0 %v176_v1  ;;  %v179_v4 = vld [vmem:[%s239_s1 + $0x18] sm:$0xff]   ;;  %v180_v5 = vld [vmem:[%s239_s1 + $0x20] sm:$0xff]   ;;  %v181_v6 = vld [vmem:[%s239_s1 + $0x28] sm:$0xff]  }
   0x3   :  { %156 = vmatprep.subr.bf16.mxu0 %v184_v0  ;;  %v182_v7 = vld [vmem:[%s239_s1 + $0x30] sm:$0xff]   ;;  %v183_v8 = vld [vmem:[%s239_s1 + $0x38] sm:$0xff]   ;;  %v17_v9 = vld [vmem:[%s240_s0] sm:$0xff] }
   0x4   :  { %v18_v10 = vpack.c.bf16 %v17_v9, %v17_v9  ;;  %v136_v11 = vld [vmem:[%s241_s2] ss:$0 sm:$0xff] }
   0x6   :  { %157 = vmatpush3.bf16.msra.mxu0 %v177_v2 }
   0x7   :  { %158 = vmatprep.subr.bf16.mxu0 %v184_v0 }
   0xa   :  { %159 = vmatpush3.bf16.msra.mxu0 %v178_v3 }
   0xb   :  { %160 = vmatprep.subr.bf16.mxu0 %v184_v0 }
   0xe   :  { %161 = vmatpush3.bf16.msra.mxu0 %v179_v4 }
   0xf   :  { %162 = vmatprep.subr.bf16.mxu0 %v184_v0 }
  0x12   :  { %163 = vmatpush3.bf16.msra.mxu0 %v180_v5 }
  0x13   :  { %164 = vmatprep.subr.bf16.mxu0 %v184_v0 }
  0x16   :  { %165 = vmatpush3.bf16.msra.mxu0 %v181_v6 }
  0x17   :  { %166 = vmatprep.subr.bf16.mxu0 %v184_v0 }
  0x1a   :  { %167 = vmatpush3.bf16.msra.mxu0 %v182_v7 }
  0x1b   :  { %168 = vmatprep.subr.bf16.mxu0 %v184_v0 }
  0x1e   :  { %169 = vmatpush3.bf16.msra.mxu0 %v183_v8 }
  0x21   :  { %171 = vmatmul.mubr.bf16.vlgmr.msra.gmra.mrb[0].mxu0 %v18_v10 }
  0xf4   :  { %v124_v12 = vpop.f32.mrb[0].mxu0 }
  0xf5   :  { %v125_v13 = vadd.f32 %v136_v11, %v124_v12  ;;  %v172_v14 = vpop.f32.mrb[1].mxu0 }
  0xf6   :  { %v127_v15 = vpop.f32.mrb[2].mxu0 }
  0xf7   :  { %131 = vst.msk [vmem:[%s242_s3] sm:$0xff] %vm130_vm1, %v125_v13  ;;  %v173_v16 = vpop.f32.mrb[3].mxu0 }

// kernel: vanilla_vae_forward.21
= control target key start
LH: loop header
LB: loop body
LE: loop exit
PB: predicated region body
PF: predicated region fallthrough
CT: control target
= control target key end

     0   :  { %s720_s12 = smov 0   ;;  %s794_s0 = inlined_call_operand.vmem [shape: f32[72,32], index: 0, kind: input, shape index: {}]   ;;  %s795_s1 = inlined_call_operand.vmem [shape: bf16[4,32,128], index: 1, kind: input, shape index: {}]   ;;  %s796_s2 = inlined_call_operand.vmem [shape: f32[1,128], index: 2, kind: input, shape index: {}]   ;;  %s797_s3 = inlined_call_operand.vmem [shape: f32[64,128], index: 3, kind: output, shape index: {}]  }
   0x1 LB: > { %s563_s13 = sadd.s32 4294967295, %s698_s12   ;;  %p566_p0 = scmp.ge.s32.totalorder %s698_s12, 1  ;;  %s698_s12 = sphi %s720_s12, %s13_s12  }
   0x2   : > { %p127_p1 = scmp.lt.s32.totalorder %s698_s12, 3 }
   0x4   : > { %p128_p2 = pnand %p566_p0, %p127_p1 }
   0x5   : > { %v684_v0 = vld [vmem:[%s795_s1 + $0x10] sm:$0xff] (!%p128_p2)   ;;  %s569_s16 = sshll.u32 (!%p128_p2), %s563_s13, 5  ;;  %v685_v1 = vld [vmem:[%s795_s1 + $0x20] sm:$0xff] (!%p128_p2)   ;;  %v686_v2 = vld [vmem:[%s795_s1 + $0x18] sm:$0xff] (!%p128_p2)   ;;  %vm190_vm0 = vcmask (!%p128_p2), 261120   ;;  %s567_s7 = sshll.u32 (!%p128_p2), %s563_s13, 2 }
   0x6   : > { %131 = sbr.rel (%p128_p2) target bundleno = 249 (0xf9), region = 32  ;;  %s739_s21 = scalar_lea.vmem (!%p128_p2), %s794_s0, %s569_s16  ;;  %632 = vmatprep.subr.bf16.mxu1 (!%p128_p2), %v684_v0  ;;  %648 = vmatprep.subr.bf16.mxu0 (!%p128_p2), %v685_v1  ;;  %v687_v3 = vld [vmem:[%s795_s1 + $0x28] sm:$0xff] (!%p128_p2)   ;;  %v688_v13 = vld [vmem:[%s795_s1] sm:$0xff] (!%p128_p2)   ;;  %v689_v17 = vld [vmem:[%s795_s1 + $0x30] sm:$0xff] (!%p128_p2)  }
   0x7   : > { %633 = vmatpush3.bf16.msra.mxu1 (!%p128_p2), %v684_v0  ;;  %649 = vmatpush3.bf16.msra.mxu0 (!%p128_p2), %v685_v1  ;;  %v571_v4 = vld [vmem:[%s739_s21 + $0x1] sm:$0xff] (!%p128_p2)  ;;  %v572_v5 = vld [vmem:[%s739_s21 + $0x9] sm:$0xff] (!%p128_p2)  ;;  %v573_v9 = vld [vmem:[%s739_s21 + $0x11] sm:$0xff] (!%p128_p2)  ;;  %p147_p3 = scmp.lt.s32.totalorder (!%p128_p2), %s567_s7, 7 }
   0x8   : > { %634 = vmatprep.subr.bf16.mxu1 (!%p128_p2), %v686_v2  ;;  %v588_v6 = vld [vmem:[%s739_s21 + $0x5] sm:$0xff] (!%p128_p2)  ;;  %650 = vmatprep.subr.bf16.mxu0 (!%p128_p2), %v687_v3  ;;  %v171_v7 = vpack.c.bf16 (!%p128_p2), %v572_v5, %v571_v4  ;;  %v589_v8 = vld [vmem:[%s739_s21 + $0xd] sm:$0xff] (!%p128_p2)  ;;  %v574_v10 = vld [vmem:[%s739_s21 + $0x19] sm:$0xff] (!%p128_p2) }
   0x9   : > { %v319_v11 = vpack.c.bf16 (!%p128_p2), %v589_v8, %v588_v6  ;;  %v172_v12 = vpack.c.bf16 (!%p128_p2), %v574_v10, %v573_v9  ;;  %v590_v14 = vld [vmem:[%s739_s21 + $0x15] sm:$0xff] (!%p128_p2)  ;;  %v591_v15 = vld [vmem:[%s739_s21 + $0x1d] sm:$0xff] (!%p128_p2)  ;;  %v690_v18 = vld [vmem:[%s795_s1 + $0x8] sm:$0xff] (!%p128_p2)  }
   0xa   : > { %636 = vmatprep.mubr.msk.bf16.mxu1 (!%p128_p2), %vm190_vm0, %v171_v7  ;;  %v320_v16 = vpack.c.bf16 (!%p128_p2), %v591_v15, %v590_v14  ;;  %v691_v19 = vld [vmem:[%s795_s1 + $0x38] sm:$0xff] (!%p128_p2)   ;;  %v155_v20 = vld [vmem:[%s739_s21] sm:$0xff] (!%p128_p2)  ;;  %v156_v21 = vld [vmem:[%s739_s21 + $0x8] sm:$0xff] (!%p128_p2) }
   0xb   : > { %635 = vmatpush3.bf16.msra.mxu1 (!%p128_p2), %v686_v2  ;;  %651 = vmatpush3.bf16.msra.mxu0 (!%p128_p2), %v687_v3  ;;  %v601_v22 = vld [vmem:[%s739_s21 + $0x6] sm:$0xff] (!%p128_p2)  ;;  %v602_v23 = vld [vmem:[%s739_s21 + $0xe] sm:$0xff] (!%p128_p2)  ;;  %v159_v24 = vpack.c.bf16 (!%p128_p2), %v156_v21, %v155_v20  ;;  %v158_v27 = vld [vmem:[%s739_s21 + $0x18] sm:$0xff] (!%p128_p2) }
   0xc   : > { %652 = vmatprep.mubr.msk.bf16.mxu0 (!%p128_p2), %vm190_vm0, %v319_v11  ;;  %640 = vmatprep.subr.bf16.mxu1 (!%p128_p2), %v688_v13  ;;  %v403_v25 = vpack.c.bf16 (!%p128_p2), %v602_v23, %v601_v22  ;;  %v157_v26 = vld [vmem:[%s739_s21 + $0x10] sm:$0xff] (!%p128_p2)  ;;  %v604_v29 = vld [vmem:[%s739_s21 + $0x1e] sm:$0xff] (!%p128_p2) }
   0xd   : > { %656 = vmatprep.subr.bf16.mxu0 %v689_v17  ;;  %v603_v28 = vld [vmem:[%s739_s21 + $0x16] sm:$0xff]  ;;  %v160_v30 = vpack.c.bf16 %v158_v27, %v157_v26  ;;  %s799_s7 = smov (!%p147_p3, %s567_s7), 7  ;;  %v613_v34 = vld [vmem:[%s796_s2] ss:$0 sm:$0xff] }
   0xe   : > { %637 = vmatmul.mubr.msk.bf16.vlgmr.msra.gmra.mrb[0].mxu1 %vm190_vm0, %v172_v12  ;;  %653 = vmatmul.mubr.msk.bf16.vlgmr.msra.gmra.mrb[0].mxu0 %vm190_vm0, %v320_v16  ;;  %v404_v31 = vpack.c.bf16 %v604_v29, %v603_v28  ;;  %s568_s10 = sshll.u32 %s799_s7, 3 }
   0xf   : > { %641 = vmatpush3.bf16.msra.mxu1 %v688_v13  ;;  %657 = vmatpush3.bf16.msra.mxu0 %v689_v17  ;;  %s150_s14 = scalar_lea.vmem %s797_s3, %s568_s10 }
  0x10   : > { %642 = vmatprep.subr.bf16.mxu1 %v690_v18  ;;  %658 = vmatprep.subr.bf16.mxu0 %v691_v19 }
  0x11   : > { %644 = vmatprep.mubr.msk.bf16.mxu1 %vm190_vm0, %v159_v24  ;;  %660 = vmatprep.mubr.msk.bf16.mxu0 %vm190_vm0, %v403_v25 }
  0x13   : > { %643 = vmatpush3.bf16.msra.mxu1 %v690_v18  ;;  %659 = vmatpush3.bf16.msra.mxu0 %v691_v19 }
  0x1a   : > { %645 = vmatmul.mubr.msk.bf16.vlgmr.msra.gmra.mrb[0].mxu1 %vm190_vm0, %v160_v30  ;;  %661 = vmatmul.mubr.msk.bf16.vlgmr.msra.gmra.mrb[0].mxu0 %vm190_vm0, %v404_v31 }
  0xed   : > { %v646_v32 = vpop.f32.mrb[0].mxu1  ;;  %v662_v33 = vpop.f32.mrb[0].mxu0 }
  0xee   : > { %v298_v35 = vpop.f32.mrb[1].mxu1  ;;  %v664_v36 = vadd.f32 %v662_v33, %v646_v32  ;;  %v462_v37 = vpop.f32.mrb[1].mxu0 }
  0xef   : > { %v647_v38 = vpop.f32.mrb[2].mxu1  ;;  %v665_v39 = vadd.f32 %v462_v37, %v298_v35  ;;  %v663_v40 = vpop.f32.mrb[2].mxu0 }
  0xf0   : > { %v301_v41 = vpop.f32.mrb[3].mxu1  ;;  %v490_v42 = vadd.f32 %v664_v36, %v613_v34  ;;  %v666_v43 = vadd.f32 %v663_v40, %v647_v38  ;;  %v465_v44 = vpop.f32.mrb[3].mxu0 }
  0xf1   : > { %v488_v45 = vadd.f32 %v665_v39, %v613_v34  ;;  %v667_v46 = vadd.f32 %v465_v44, %v301_v41 }
  0xf2   : > { %v491_v47 = vadd.f32 %v666_v43, %v613_v34  ;;  %vm494_vm2 = vcmp.ge.f32.partialorder %v490_v42, 0.0  ;;  %v498_v50 = vmul.f32 0.01, %v490_v42 }
  0xf3   : > { %vm492_vm1 = vcmp.ge.f32.partialorder %v488_v45, 0.0  ;;  %v496_v48 = vmul.f32 0.01, %v488_v45  ;;  %v489_v49 = vadd.f32 %v667_v46, %v613_v34 }
  0xf4   : > { %v499_v52 = vmul.f32 0.01, %v491_v47  ;;  %vm495_vm4 = vcmp.ge.f32.partialorder %v491_v47, 0.0  ;;  %v502_v55 = vsel %vm494_vm2, %v490_v42, %v498_v50 }
  0xf5   : > { %v500_v51 = vsel %vm492_vm1, %v488_v45, %v496_v48  ;;  %vm493_vm3 = vcmp.ge.f32.partialorder %v489_v49, 0.0  ;;  %v497_v53 = vmul.f32 0.01, %v489_v49  ;;  %506 = vst [vmem:[%s150_s14 + $0x10] sm:$0xff] %v502_v55 }
  0xf6   : > { %504 = vst [vmem:[%s150_s14] sm:$0xff] %v500_v51  ;;  %v503_v56 = vsel %vm495_vm4, %v491_v47, %v499_v52 }
  0xf7   : > { %v501_v54 = vsel %vm493_vm3, %v489_v49, %v497_v53  ;;  %507 = vst [vmem:[%s150_s14 + $0x18] sm:$0xff] %v503_v56 }
  0xf8   : > { %505 = vst [vmem:[%s150_s14 + $0x8] sm:$0xff] %v501_v54 }
  0xf9 PF: > { %s13_s12 = sadd.s32 1, %s698_s12  }
  0xfa   : > { %p10_p4 = scmp.ge.s32.totalorder %s13_s12, 4  }
  0xfc   :  { %12 = sbr.rel (!%p10_p4) target bundleno = 1 (0x1), region = 66 }

// kernel: vanilla_vae_forward.20
= control target key start
LH: loop header
LB: loop body
LE: loop exit
PB: predicated region body
PF: predicated region fallthrough
CT: control target
= control target key end

     0   :  { %s628_s12 = smov 0   ;;  %s684_s0 = inlined_call_operand.vmem [shape: f32[40,32], index: 0, kind: input, shape index: {}]   ;;  %s685_s1 = inlined_call_operand.vmem [shape: bf16[4,32,128], index: 1, kind: input, shape index: {}]   ;;  %s686_s2 = inlined_call_operand.vmem [shape: f32[1,128], index: 2, kind: input, shape index: {}]   ;;  %s687_s3 = inlined_call_operand.vmem [shape: f32[32,128], index: 3, kind: output, shape index: {}]  }
   0x1 LB: > { %s493_s13 = sadd.s32 4294967295, %s604_s12   ;;  %p496_p0 = scmp.ge.s32.totalorder %s604_s12, 1  ;;  %s604_s12 = sphi %s628_s12, %s13_s12  }
   0x2   : > { %p127_p1 = scmp.lt.s32.totalorder %s604_s12, 3 }
   0x4   : > { %p128_p2 = pnand %p496_p0, %p127_p1 }
   0x5   : > { %v590_v0 = vld [vmem:[%s685_s1 + $0x10] sm:$0xff] (!%p128_p2)   ;;  %v606_v1 = vmov (!%p128_p2), 0.0   ;;  %v591_v2 = vld [vmem:[%s685_s1] sm:$0xff] (!%p128_p2)   ;;  %v592_v3 = vld [vmem:[%s685_s1 + $0x18] sm:$0xff] (!%p128_p2)   ;;  %vm607_vm0 = vmmov (!%p128_p2), 0   ;;  %s499_s20 = sshll.u32 (!%p128_p2), %s493_s13, 4 }
   0x6   : > { %131 = sbr.rel (%p128_p2) target bundleno = 246 (0xf6), region = 32  ;;  %548 = vmatprep.subr.bf16.mxu0 (!%p128_p2), %v606_v1  ;;  %556 = vmatprep.subr.bf16.mxu1 (!%p128_p2), %v606_v1  ;;  %v593_v4 = vld [vmem:[%s685_s1 + $0x8] sm:$0xff] (!%p128_p2)   ;;  %s154_s25 = scalar_lea.vmem (!%p128_p2), %s684_s0, %s499_s20  ;;  %vm184_vm1 = vcmask (!%p128_p2), 261120   ;;  %v594_v11 = vld [vmem:[%s685_s1 + $0x20] sm:$0xff] (!%p128_p2)   ;;  %v595_v12 = vld [vmem:[%s685_s1 + $0x30] sm:$0xff] (!%p128_p2)  }
   0x7   : > { %549 = vmatpush3.bf16.msra.mxu0 (!%p128_p2), %v590_v0  ;;  %552 = vmatprep.mubr.msk.bf16.mxu0 (!%p128_p2), %vm607_vm0, %v606_v1  ;;  %v501_v5 = vld [vmem:[%s154_s25 + $0x1] sm:$0xff] (!%p128_p2)  ;;  %v502_v6 = vld [vmem:[%s154_s25 + $0x9] sm:$0xff] (!%p128_p2)  ;;  %v597_v16 = vld [vmem:[%s685_s1 + $0x38] sm:$0xff] (!%p128_p2)   ;;  %s497_s7 = sshll.u32 (!%p128_p2), %s493_s13, 1 }
   0x8   : > { %557 = vmatpush3.bf16.msra.mxu1 (!%p128_p2), %v591_v2  ;;  %550 = vmatprep.subr.bf16.mxu0 (!%p128_p2), %v606_v1  ;;  %v155_v7 = vld [vmem:[%s154_s25] sm:$0xff] (!%p128_p2)  ;;  %v166_v8 = vpack.c.bf16 (!%p128_p2), %v502_v6, %v501_v5  ;;  %v156_v9 = vld [vmem:[%s154_s25 + $0x8] sm:$0xff] (!%p128_p2)  ;;  %p147_p3 = scmp.lt.s32.totalorder (!%p128_p2), %s497_s7, 3 }
   0x9   : > { %558 = vmatprep.subr.bf16.mxu1 (!%p128_p2), %v606_v1  ;;  %560 = vmatprep.mubr.msk.bf16.mxu1 (!%p128_p2), %vm607_vm0, %v606_v1  ;;  %v157_v10 = vpack.c.bf16 (!%p128_p2), %v156_v9, %v155_v7  ;;  %v596_v13 = vld [vmem:[%s685_s1 + $0x28] sm:$0xff] (!%p128_p2)   ;;  %v533_v35 = vld [vmem:[%s686_s2] ss:$0 sm:$0xff] (!%p128_p2) }
   0xa   : > { %v514_v14 = vld [vmem:[%s154_s25 + $0x3] sm:$0xff] (!%p128_p2)  ;;  %v515_v15 = vld [vmem:[%s154_s25 + $0xb] sm:$0xff] (!%p128_p2) }
   0xb   : > { %551 = vmatpush3.bf16.msra.mxu0 (!%p128_p2), %v592_v3  ;;  %v524_v17 = vld [vmem:[%s154_s25 + $0x4] sm:$0xff] (!%p128_p2)  ;;  %v525_v18 = vld [vmem:[%s154_s25 + $0xc] sm:$0xff] (!%p128_p2)  ;;  %v289_v19 = vpack.c.bf16 (!%p128_p2), %v515_v15, %v514_v14 }
   0xc   : > { %559 = vmatpush3.bf16.msra.mxu1 (!%p128_p2), %v593_v4  ;;  %564 = vmatprep.subr.bf16.mxu0 (!%p128_p2), %v606_v1  ;;  %v357_v20 = vpack.c.bf16 (!%p128_p2), %v525_v18, %v524_v17 }
   0xd   : > { %572 = vmatprep.subr.bf16.mxu1 %v606_v1  ;;  %s689_s7 = smov (!%p147_p3, %s497_s7), 3 }
   0xe   : > { %553 = vmatmul.mubr.msk.bf16.vlgmr.msra.gmra.mrb[0].mxu0 %vm184_vm1, %v166_v8  ;;  %s498_s10 = sshll.u32 %s689_s7, 3 }
   0xf   : > { %561 = vmatmul.mubr.msk.bf16.vlgmr.msra.gmra.mrb[0].mxu1 %vm184_vm1, %v157_v10  ;;  %565 = vmatpush3.bf16.msra.mxu0 %v594_v11  ;;  %s150_s14 = scalar_lea.vmem %s687_s3, %s498_s10 }
  0x10   : > { %573 = vmatpush3.bf16.msra.mxu1 %v595_v12  ;;  %566 = vmatprep.subr.bf16.mxu0 %v606_v1 }
  0x11   : > { %574 = vmatprep.subr.bf16.mxu1 %v606_v1  ;;  %568 = vmatprep.mubr.msk.bf16.mxu0 %vm607_vm0, %v606_v1 }
  0x12   : > { %576 = vmatprep.mubr.msk.bf16.mxu1 %vm607_vm0, %v606_v1 }
  0x13   : > { %567 = vmatpush3.bf16.msra.mxu0 %v596_v13 }
  0x14   : > { %575 = vmatpush3.bf16.msra.mxu1 %v597_v16 }
  0x16   : > { %569 = vmatmul.mubr.msk.bf16.vlgmr.msra.gmra.mrb[4].mxu0 %vm184_vm1, %v289_v19 }
  0x17   : > { %577 = vmatmul.mubr.msk.bf16.vlgmr.msra.gmra.mrb[4].mxu1 %vm184_vm1, %v357_v20 }
  0xe1   : > { %v222_v21 = vpop.f32.mrb[0].mxu0 }
  0xe2   : > { %v278_v22 = vpop.f32.mrb[0].mxu1  ;;  %v554_v23 = vpop.f32.mrb[1].mxu0 }
  0xe3   : > { %v279_v24 = vadd.f32 %v278_v22, %v222_v21  ;;  %v562_v25 = vpop.f32.mrb[1].mxu1  ;;  %v225_v26 = vpop.f32.mrb[2].mxu0 }
  0xe4   : > { %v281_v27 = vpop.f32.mrb[2].mxu1  ;;  %v555_v28 = vpop.f32.mrb[3].mxu0 }
  0xe5   : > { %v282_v29 = vadd.f32 %v281_v27, %v225_v26  ;;  %v563_v30 = vpop.f32.mrb[3].mxu1 }
  0xe9   : > { %v344_v31 = vpop.f32.mrb[4].mxu0 }
  0xea   : > { %v351_v32 = vadd.f32 %v344_v31, %v279_v24  ;;  %v412_v33 = vpop.f32.mrb[4].mxu1  ;;  %v570_v34 = vpop.f32.mrb[5].mxu0 }
  0xeb   : > { %v578_v36 = vpop.f32.mrb[5].mxu1  ;;  %v347_v37 = vpop.f32.mrb[6].mxu0 }
  0xec   : > { %v419_v38 = vadd.f32 %v412_v33, %v351_v32  ;;  %v352_v39 = vadd.f32 %v347_v37, %v282_v29  ;;  %v415_v40 = vpop.f32.mrb[6].mxu1  ;;  %v571_v41 = vpop.f32.mrb[7].mxu0 }
  0xed   : > { %v579_v42 = vpop.f32.mrb[7].mxu1 }
  0xee   : > { %v428_v43 = vadd.f32 %v533_v35, %v419_v38  ;;  %v420_v44 = vadd.f32 %v415_v40, %v352_v39 }
  0xf0   : > { %vm430_vm2 = vcmp.ge.f32.partialorder %v428_v43, 0.0  ;;  %v432_v45 = vmul.f32 0.01, %v428_v43  ;;  %v429_v46 = vadd.f32 %v533_v35, %v420_v44 }
  0xf2   : > { %v434_v47 = vsel %vm430_vm2, %v428_v43, %v432_v45  ;;  %vm431_vm3 = vcmp.ge.f32.partialorder %v429_v46, 0.0  ;;  %v433_v48 = vmul.f32 0.01, %v429_v46 }
  0xf3   : > { %436 = vst [vmem:[%s150_s14] sm:$0xff] %v434_v47 }
  0xf4   : > { %v435_v49 = vsel %vm431_vm3, %v429_v46, %v433_v48 }
  0xf5   : > { %437 = vst [vmem:[%s150_s14 + $0x8] sm:$0xff] %v435_v49 }
  0xf6 PF: > { %s13_s12 = sadd.s32 1, %s604_s12  }
  0xf7   : > { %p10_p4 = scmp.ge.s32.totalorder %s13_s12, 4  }
  0xf9   :  { %12 = sbr.rel (!%p10_p4) target bundleno = 1 (0x1), region = 66 }

// kernel: vanilla_vae_forward.22
= control target key start
LH: loop header
LB: loop body
LE: loop exit
PB: predicated region body
PF: predicated region fallthrough
CT: control target
= control target key end

     0   :  { %s1078_s12 = smov 0   ;;  %s1241_s0 = inlined_call_operand.vmem [shape: f32[192,32], index: 0, kind: input, shape index: {}]   ;;  %s1242_s1 = inlined_call_operand.vmem [shape: bf16[4,32,64], index: 1, kind: input, shape index: {}]   ;;  %s1243_s2 = inlined_call_operand.vmem [shape: f32[1,64], index: 2, kind: input, shape index: {}]   ;;  %s1244_s3 = inlined_call_operand.vmem [shape: f32[176,64], index: 3, kind: output, shape index: {}]  }
   0x1 LB: > { %s829_s13 = sadd.s32 4294967295, %s1056_s12   ;;  %p832_p0 = scmp.ge.s32.totalorder %s1056_s12, 1  ;;  %s1056_s12 = sphi %s1078_s12, %s13_s12  }
   0x2   : > { %p127_p1 = scmp.lt.s32.totalorder %s1056_s12, 3 }
   0x4   : > { %p128_p2 = pnand %p832_p0, %p127_p1 }
   0x5   : > { %v1042_v0 = vld [vmem:[%s1242_s1 + $0x10] sm:$0xff] (!%p128_p2)   ;;  %s153_s16 = smul.u32 (!%p128_p2), 88, %s829_s13  ;;  %v1043_v1 = vld [vmem:[%s1242_s1 + $0x20] sm:$0xff] (!%p128_p2)   ;;  %v1044_v2 = vld [vmem:[%s1242_s1 + $0x18] sm:$0xff] (!%p128_p2)   ;;  %vm212_vm0 = vcmask (!%p128_p2), 261120   ;;  %vm762_vm2 = vcmask (!%p128_p2), 523264  }
   0x6   : > { %131 = sbr.rel (%p128_p2) target bundleno = 281 (0x119), region = 32  ;;  %946 = vmatprep.subr.bf16.mxu1 (!%p128_p2), %v1042_v0  ;;  %978 = vmatprep.subr.bf16.mxu0 (!%p128_p2), %v1043_v1  ;;  %v1045_v3 = vld [vmem:[%s1242_s1 + $0x28] sm:$0xff] (!%p128_p2)   ;;  %v1046_v11 = vld [vmem:[%s1242_s1] sm:$0xff] (!%p128_p2)   ;;  %v1047_v14 = vld [vmem:[%s1242_s1 + $0x30] sm:$0xff] (!%p128_p2)  }
   0x7   : > { %s1100_s23 = scalar_lea.vmem (!%p128_p2), %s1241_s0, %s153_s16  ;;  %947 = vmatpush3.bf16.msra.mxu1 (!%p128_p2), %v1042_v0  ;;  %979 = vmatpush3.bf16.msra.mxu0 (!%p128_p2), %v1043_v1  ;;  %v1048_v19 = vld [vmem:[%s1242_s1 + $0x8] sm:$0xff] (!%p128_p2)   ;;  %v1049_v21 = vld [vmem:[%s1242_s1 + $0x38] sm:$0xff] (!%p128_p2)   ;;  %s146_s7 = smul.u32 (!%p128_p2), 11, %s829_s13 }
   0x8   : > { %948 = vmatprep.subr.bf16.mxu1 (!%p128_p2), %v1044_v2  ;;  %v834_v4 = vld [vmem:[%s1100_s23 + $0x1] sm:$0xff] (!%p128_p2)  ;;  %v835_v5 = vld [vmem:[%s1100_s23 + $0x9] sm:$0xff] (!%p128_p2)  ;;  %v866_v6 = vld [vmem:[%s1100_s23 + $0x11] sm:$0xff] (!%p128_p2)  ;;  %980 = vmatprep.subr.bf16.mxu0 (!%p128_p2), %v1045_v3 }
   0x9   : > { %v189_v7 = vpack.c.bf16 (!%p128_p2), %v835_v5, %v834_v4  ;;  %v434_v8 = vpack.c.bf16 (!%p128_p2), %v866_v6, %v835_v5  ;;  %v837_v9 = vld [vmem:[%s1100_s23 + $0x19] sm:$0xff] (!%p128_p2)  ;;  %v868_v12 = vld [vmem:[%s1100_s23 + $0x21] sm:$0xff] (!%p128_p2)  ;;  %v839_v15 = vld [vmem:[%s1100_s23 + $0x29] sm:$0xff] (!%p128_p2)  ;;  %p147_p3 = scmp.lt.s32.totalorder (!%p128_p2), %s146_s7, 21 }
   0xa   : > { %v190_v10 = vpack.c.bf16 (!%p128_p2), %v837_v9, %v866_v6  ;;  %v435_v13 = vpack.c.bf16 (!%p128_p2), %v868_v12, %v837_v9  ;;  %v191_v16 = vpack.c.bf16 (!%p128_p2), %v839_v15, %v868_v12  ;;  %v870_v17 = vld [vmem:[%s1100_s23 + $0x31] sm:$0xff] (!%p128_p2)  ;;  %v841_v20 = vld [vmem:[%s1100_s23 + $0x39] sm:$0xff] (!%p128_p2)  ;;  %v872_v22 = vld [vmem:[%s1100_s23 + $0x41] sm:$0xff] (!%p128_p2) }
   0xb   : > { %949 = vmatpush3.bf16.msra.mxu1 (!%p128_p2), %v1044_v2  ;;  %950 = vmatprep.mubr.msk.bf16.mxu1 (!%p128_p2), %vm212_vm0, %v189_v7  ;;  %v436_v18 = vpack.c.bf16 (!%p128_p2), %v870_v17, %v839_v15  ;;  %v843_v23 = vld [vmem:[%s1100_s23 + $0x49] sm:$0xff] (!%p128_p2)  ;;  %v874_v24 = vld [vmem:[%s1100_s23 + $0x51] sm:$0xff] (!%p128_p2)  ;;  %v192_v25 = vpack.c.bf16 (!%p128_p2), %v841_v20, %v870_v17  ;;  %v437_v26 = vpack.c.bf16 (!%p128_p2), %v872_v22, %v841_v20  ;;  %v875_v29 = vld [vmem:[%s1100_s23 + $0x59] sm:$0xff] (!%p128_p2) }
   0xc   : > { %981 = vmatpush3.bf16.msra.mxu0 (!%p128_p2), %v1045_v3  ;;  %982 = vmatprep.mubr.msk.bf16.mxu0 (!%p128_p2), %vm212_vm0, %v434_v8  ;;  %v193_v27 = vpack.c.bf16 (!%p128_p2), %v843_v23, %v872_v22  ;;  %v438_v28 = vpack.c.bf16 (!%p128_p2), %v874_v24, %v843_v23  ;;  %v155_v30 = vld [vmem:[%s1100_s23] sm:$0xff] (!%p128_p2)  ;;  %v156_v31 = vld [vmem:[%s1100_s23 + $0x8] sm:$0xff] (!%p128_p2)  ;;  %v889_v33 = vld [vmem:[%s1100_s23 + $0x12] sm:$0xff] (!%p128_p2)  ;;  %v194_v34 = vpack.c.bf16 (!%p128_p2), %v874_v24, %v874_v24 }
   0xd   : > { %962 = vmatprep.subr.bf16.mxu1 %v1046_v11  ;;  %994 = vmatprep.subr.bf16.mxu0 %v1047_v14  ;;  %v888_v32 = vld [vmem:[%s1100_s23 + $0xa] sm:$0xff]  ;;  %v439_v35 = vpack.c.bf16 %v875_v29, %v875_v29  ;;  %v166_v36 = vpack.c.bf16 %v156_v31, %v155_v30  ;;  %v158_v39 = vld [vmem:[%s1100_s23 + $0x18] sm:$0xff]  ;;  %v891_v41 = vld [vmem:[%s1100_s23 + $0x22] sm:$0xff]  ;;  %s1246_s7 = smov (!%p147_p3, %s146_s7), 21 }
   0xe   : > { %951 = vmatmul.mubr.msk.bf16.vlgmr.msra.gmra.mrb[0].mxu1 %vm212_vm0, %v190_v10  ;;  %v579_v37 = vpack.c.bf16 %v889_v33, %v888_v32  ;;  %v157_v38 = vld [vmem:[%s1100_s23 + $0x10] sm:$0xff]  ;;  %v890_v40 = vld [vmem:[%s1100_s23 + $0x1a] sm:$0xff]  ;;  %v160_v43 = vld [vmem:[%s1100_s23 + $0x28] sm:$0xff]  ;;  %s833_s10 = sshll.u32 %s1246_s7, 3 }
   0xf   : > { %983 = vmatmul.mubr.msk.bf16.vlgmr.msra.gmra.mrb[0].mxu0 %vm212_vm0, %v435_v13  ;;  %963 = vmatpush3.bf16.msra.mxu1 %v1046_v11  ;;  %v159_v42 = vld [vmem:[%s1100_s23 + $0x20] sm:$0xff]  ;;  %v892_v44 = vld [vmem:[%s1100_s23 + $0x2a] sm:$0xff]  ;;  %v893_v45 = vld [vmem:[%s1100_s23 + $0x32] sm:$0xff]  ;;  %v167_v46 = vpack.c.bf16 %v158_v39, %v157_v38  ;;  %v580_v47 = vpack.c.bf16 %v891_v41, %v890_v40  ;;  %s1199_s14 = scalar_lea.vmem %s1244_s3, %s833_s10 }
  0x10   : > { %995 = vmatpush3.bf16.msra.mxu0 %v1047_v14  ;;  %954 = vmatprep.mubr.msk.bf16.mxu1 %vm212_vm0, %v191_v16  ;;  %v168_v48 = vpack.c.bf16 %v160_v43, %v159_v42  ;;  %v581_v49 = vpack.c.bf16 %v893_v45, %v892_v44  ;;  %v161_v50 = vld [vmem:[%s1100_s23 + $0x30] sm:$0xff]  ;;  %v162_v51 = vld [vmem:[%s1100_s23 + $0x38] sm:$0xff]  ;;  %v895_v53 = vld [vmem:[%s1100_s23 + $0x42] sm:$0xff] }
  0x11   : > { %986 = vmatprep.mubr.msk.bf16.mxu0 %vm212_vm0, %v436_v18  ;;  %964 = vmatprep.subr.bf16.mxu1 %v1048_v19  ;;  %v894_v52 = vld [vmem:[%s1100_s23 + $0x3a] sm:$0xff]  ;;  %v164_v55 = vld [vmem:[%s1100_s23 + $0x48] sm:$0xff]  ;;  %v897_v57 = vld [vmem:[%s1100_s23 + $0x52] sm:$0xff]  ;;  %v169_v58 = vpack.c.bf16 %v162_v51, %v161_v50 }
  0x12   : > { %996 = vmatprep.subr.bf16.mxu0 %v1049_v21  ;;  %v163_v54 = vld [vmem:[%s1100_s23 + $0x40] sm:$0xff]  ;;  %v896_v56 = vld [vmem:[%s1100_s23 + $0x4a] sm:$0xff]  ;;  %v582_v59 = vpack.c.bf16 %v895_v53, %v894_v52 }
  0x13   : > { %965 = vmatpush3.bf16.msra.mxu1 %v1048_v19  ;;  %v170_v60 = vpack.c.bf16 %v164_v55, %v163_v54  ;;  %v583_v61 = vpack.c.bf16 %v897_v57, %v896_v56  ;;  %v165_v62 = vld [vmem:[%s1100_s23 + $0x50] sm:$0xff]  ;;  %v898_v63 = vld [vmem:[%s1100_s23 + $0x5a] sm:$0xff] }
  0x14   : > { %997 = vmatpush3.bf16.msra.mxu0 %v1049_v21  ;;  %v171_v0 = vpack.c.bf16 %v165_v62, %v165_v62  ;;  %v584_v1 = vpack.c.bf16 %v898_v63, %v898_v63  ;;  %v1192_v12 = vld [vmem:[%s1243_s2] ss:$0 sm:$0xff] }
  0x16   : > { %955 = vmatmul.mubr.msk.bf16.gmra.mrb[4].mxu1 %vm212_vm0, %v192_v25 }
  0x17   : > { %987 = vmatmul.mubr.msk.bf16.gmra.mrb[4].mxu0 %vm212_vm0, %v437_v26  ;;  %958 = vmatprep.mubr.msk.bf16.mxu1 %vm212_vm0, %v193_v27 }
  0x18   : > { %990 = vmatprep.mubr.msk.bf16.mxu0 %vm212_vm0, %v438_v28 }
  0x1e   : > { %959 = vmatmul.mubr.msk.bf16.gmra.mrb[8].mxu1 %vm212_vm0, %v194_v34 }
  0x1f   : > { %991 = vmatmul.mubr.msk.bf16.gmra.mrb[8].mxu0 %vm212_vm0, %v439_v35  ;;  %966 = vmatprep.mubr.msk.bf16.mxu1 %vm212_vm0, %v166_v36 }
  0x20   : > { %998 = vmatprep.mubr.msk.bf16.mxu0 %vm212_vm0, %v579_v37 }
  0x26   : > { %967 = vmatmul.mubr.msk.bf16.vlgmr.msra.gmra.mrb[0].mxu1 %vm212_vm0, %v167_v46 }
  0x27   : > { %999 = vmatmul.mubr.msk.bf16.vlgmr.msra.gmra.mrb[0].mxu0 %vm212_vm0, %v580_v47  ;;  %970 = vmatprep.mubr.msk.bf16.mxu1 %vm212_vm0, %v168_v48 }
  0x28   : > { %1002 = vmatprep.mubr.msk.bf16.mxu0 %vm212_vm0, %v581_v49 }
  0x2e   : > { %971 = vmatmul.mubr.msk.bf16.gmra.mrb[4].mxu1 %vm212_vm0, %v169_v58 }
  0x2f   : > { %1003 = vmatmul.mubr.msk.bf16.gmra.mrb[4].mxu0 %vm212_vm0, %v582_v59  ;;  %974 = vmatprep.mubr.msk.bf16.mxu1 %vm212_vm0, %v170_v60 }
  0x30   : > { %1006 = vmatprep.mubr.msk.bf16.mxu0 %vm212_vm0, %v583_v61 }
  0x36   : > { %975 = vmatmul.mubr.msk.bf16.gmra.mrb[12].mxu1 %vm212_vm0, %v171_v0 }
  0x37   : > { %1007 = vmatmul.mubr.msk.bf16.gmra.mrb[12].mxu0 %vm212_vm0, %v584_v1 }
  0xf1   : > { %v1177_v2 = vpop.f32.mrb[8].mxu1 }
  0xf2   : > { %v1179_v3 = vpop.f32.mrb[9].mxu1  ;;  %v1181_v4 = vpop.f32.mrb[8].mxu0 }
  0xf3   : > { %v961_v5 = vpop.f32.mrb[10].mxu1  ;;  %v1183_v6 = vpop.f32.mrb[9].mxu0 }
  0xf4   : > { %v1185_v7 = vpop.f32.mrb[11].mxu1  ;;  %v993_v8 = vpop.f32.mrb[10].mxu0 }
  0xf5   : > { %v1187_v9 = vpop.f32.mrb[11].mxu0 }
  0xf9   : > { %v968_v10 = vpop.f32.mrb[0].mxu1 }
  0xfa   : > { %v1000_v11 = vpop.f32.mrb[0].mxu0  ;;  %v375_v13 = vpop.f32.mrb[1].mxu1 }
  0xfb   : > { %v1010_v14 = vadd.f32 %v1000_v11, %v968_v10  ;;  %v654_v15 = vpop.f32.mrb[1].mxu0  ;;  %v969_v16 = vpop.f32.mrb[2].mxu1 }
  0xfc   : > { %v1011_v17 = vadd.f32 %v654_v15, %v375_v13  ;;  %v1001_v18 = vpop.f32.mrb[2].mxu0  ;;  %v378_v19 = vpop.f32.mrb[3].mxu1 }
  0xfd   : > { %v720_v20 = vadd.f32 %v1010_v14, %v1192_v12  ;;  %v1012_v21 = vadd.f32 %v1001_v18, %v969_v16  ;;  %v657_v22 = vpop.f32.mrb[3].mxu0 }
  0xfe   : > { %v718_v23 = vadd.f32 %v1011_v17, %v1192_v12  ;;  %v1013_v24 = vadd.f32 %v657_v22, %v378_v19 }
  0xff   : > { %vm731_vm1 = vcmp.ge.f32.partialorder %v720_v20, 0.0  ;;  %v742_v25 = vmul.f32 0.01, %v720_v20  ;;  %v721_v26 = vadd.f32 %v1012_v21, %v1192_v12 }
 0x100   : > { %vm729_vm3 = vcmp.ge.f32.partialorder %v718_v23, 0.0  ;;  %v740_v27 = vmul.f32 0.01, %v718_v23  ;;  %v719_v28 = vadd.f32 %v1013_v24, %v1192_v12 }
 0x101   : > { %v753_v29 = vsel %vm731_vm1, %v720_v20, %v742_v25  ;;  %vm732_vm4 = vcmp.ge.f32.partialorder %v721_v26, 0.0  ;;  %v743_v30 = vmul.f32 0.01, %v721_v26  ;;  %v972_v31 = vpop.f32.mrb[4].mxu1 }
 0x102   : > { %765 = vst.msk [vmem:[%s1199_s14 + $0x10] sm:$0xff] %vm762_vm2, %v753_v29  ;;  %v751_v32 = vsel %vm729_vm3, %v718_v23, %v740_v27  ;;  %vm730_vm5 = vcmp.ge.f32.partialorder %v719_v28, 0.0  ;;  %v741_v33 = vmul.f32 0.01, %v719_v28  ;;  %v1004_v34 = vpop.f32.mrb[4].mxu0  ;;  %v391_v35 = vpop.f32.mrb[5].mxu1 }
 0x103   : > { %763 = vst.msk [vmem:[%s1199_s14] sm:$0xff] %vm762_vm2, %v751_v32  ;;  %v754_v36 = vsel %vm732_vm4, %v721_v26, %v743_v30  ;;  %v1014_v37 = vadd.f32 %v1004_v34, %v972_v31  ;;  %v670_v38 = vpop.f32.mrb[5].mxu0  ;;  %v973_v39 = vpop.f32.mrb[6].mxu1 }
 0x104   : > { %766 = vst.msk [vmem:[%s1199_s14 + $0x18] sm:$0xff] %vm762_vm2, %v754_v36  ;;  %v752_v40 = vsel %vm730_vm5, %v719_v28, %v741_v33  ;;  %v1015_v41 = vadd.f32 %v670_v38, %v391_v35  ;;  %v1005_v42 = vpop.f32.mrb[6].mxu0  ;;  %v394_v43 = vpop.f32.mrb[7].mxu1 }
 0x105   : > { %764 = vst.msk [vmem:[%s1199_s14 + $0x8] sm:$0xff] %vm762_vm2, %v752_v40  ;;  %v724_v44 = vadd.f32 %v1014_v37, %v1192_v12  ;;  %v1016_v45 = vadd.f32 %v1005_v42, %v973_v39  ;;  %v673_v46 = vpop.f32.mrb[7].mxu0 }
 0x106   : > { %v722_v47 = vadd.f32 %v1015_v41, %v1192_v12  ;;  %v1017_v48 = vadd.f32 %v673_v46, %v394_v43 }
 0x107   : > { %vm735_vm6 = vcmp.ge.f32.partialorder %v724_v44, 0.0  ;;  %v746_v49 = vmul.f32 0.01, %v724_v44  ;;  %v725_v50 = vadd.f32 %v1016_v45, %v1192_v12 }
 0x108   : > { %vm733_vm7 = vcmp.ge.f32.partialorder %v722_v47, 0.0  ;;  %v744_v51 = vmul.f32 0.01, %v722_v47  ;;  %v723_v52 = vadd.f32 %v1017_v48, %v1192_v12 }
 0x109   : > { %v757_v53 = vsel %vm735_vm6, %v724_v44, %v746_v49  ;;  %vm736_vm8 = vcmp.ge.f32.partialorder %v725_v50, 0.0  ;;  %v747_v54 = vmul.f32 0.01, %v725_v50  ;;  %v976_v55 = vpop.f32.mrb[12].mxu1 }
 0x10a   : > { %769 = vst.msk [vmem:[%s1199_s14 + $0x30] sm:$0xff] %vm762_vm2, %v757_v53  ;;  %v755_v56 = vsel %vm733_vm7, %v722_v47, %v744_v51  ;;  %vm734_vm9 = vcmp.ge.f32.partialorder %v723_v52, 0.0  ;;  %v745_v57 = vmul.f32 0.01, %v723_v52  ;;  %v416_v58 = vadd.f32 %v976_v55, %v1177_v2  ;;  %v407_v59 = vpop.f32.mrb[13].mxu1  ;;  %v1008_v60 = vpop.f32.mrb[12].mxu0 }
 0x10b   : > { %767 = vst.msk [vmem:[%s1199_s14 + $0x20] sm:$0xff] %vm762_vm2, %v755_v56  ;;  %v758_v61 = vsel %vm736_vm8, %v725_v50, %v747_v54  ;;  %v408_v62 = vadd.f32 %v407_v59, %v1179_v3  ;;  %v977_v63 = vpop.f32.mrb[14].mxu1  ;;  %v686_v0 = vpop.f32.mrb[13].mxu0 }
 0x10c   : > { %770 = vst.msk [vmem:[%s1199_s14 + $0x38] sm:$0xff] %vm762_vm2, %v758_v61  ;;  %v756_v1 = vsel %vm734_vm9, %v723_v52, %v745_v57  ;;  %v565_v5 = vadd.f32 %v1181_v4, %v416_v58  ;;  %v410_v8 = vpop.f32.mrb[15].mxu1  ;;  %v1009_v10 = vpop.f32.mrb[14].mxu0 }
 0x10d   : > { %768 = vst.msk [vmem:[%s1199_s14 + $0x28] sm:$0xff] %vm762_vm2, %v756_v1  ;;  %v411_v2 = vadd.f32 %v410_v8, %v1185_v7  ;;  %v563_v11 = vadd.f32 %v1183_v6, %v408_v62  ;;  %v689_v13 = vpop.f32.mrb[15].mxu0 }
 0x10e   : > { %v710_v14 = vadd.f32 %v1008_v60, %v565_v5 }
 0x10f   : > { %v708_v3 = vadd.f32 %v686_v0, %v563_v11  ;;  %v564_v15 = vadd.f32 %v1187_v9, %v411_v2 }
 0x110   : > { %v728_v16 = vadd.f32 %v1192_v12, %v710_v14 }
 0x111   : > { %v726_v4 = vadd.f32 %v1192_v12, %v708_v3  ;;  %v709_v17 = vadd.f32 %v689_v13, %v564_v15 }
 0x112   : > { %vm739_vm10 = vcmp.ge.f32.partialorder %v728_v16, 0.0  ;;  %v750_v18 = vmul.f32 0.01, %v728_v16 }
 0x113   : > { %vm737_vm11 = vcmp.ge.f32.partialorder %v726_v4, 0.0  ;;  %v748_v19 = vmul.f32 0.01, %v726_v4  ;;  %v727_v7 = vadd.f32 %v1192_v12, %v709_v17 }
 0x114   : > { %v761_v20 = vsel %vm739_vm10, %v728_v16, %v750_v18 }
 0x115   : > { %773 = vst.msk [vmem:[%s1199_s14 + $0x50] sm:$0xff] %vm762_vm2, %v761_v20  ;;  %v759_v6 = vsel %vm737_vm11, %v726_v4, %v748_v19  ;;  %vm738_vm12 = vcmp.ge.f32.partialorder %v727_v7, 0.0  ;;  %v749_v21 = vmul.f32 0.01, %v727_v7 }
 0x116   : > { %771 = vst.msk [vmem:[%s1199_s14 + $0x40] sm:$0xff] %vm762_vm2, %v759_v6 }
 0x117   : > { %v760_v9 = vsel %vm738_vm12, %v727_v7, %v749_v21 }
 0x118   : > { %772 = vst.msk [vmem:[%s1199_s14 + $0x48] sm:$0xff] %vm762_vm2, %v760_v9 }
 0x119 PF: > { %s13_s12 = sadd.s32 1, %s1056_s12  }
 0x11a   : > { %p10_p4 = scmp.ge.s32.totalorder %s13_s12, 4  }
 0x11c   :  { %12 = sbr.rel (!%p10_p4) target bundleno = 1 (0x1), region = 66 }

// kernel: vanilla_vae_forward.23
= control target key start
LH: loop header
LB: loop body
LE: loop exit
PB: predicated region body
PF: predicated region fallthrough
CT: control target
= control target key end

     0   :  { %s2035_s12 = smov 0   ;;  %s2335_s0 = inlined_call_operand.vmem [shape: f32[792,16], index: 0, kind: input, shape index: {}]   ;;  %s2336_s1 = inlined_call_operand.vmem [shape: bf16[4,16,32], index: 1, kind: input, shape index: {}]   ;;  %s2337_s2 = inlined_call_operand.vmem [shape: f32[1,32], index: 2, kind: input, shape index: {}]   ;;  %s2338_s3 = inlined_call_operand.vmem [shape: f32[768,32], index: 3, kind: output, shape index: {}]  }
   0x1 LB: > { %s1512_s13 = sadd.s32 4294967295, %s2013_s12   ;;  %p1515_p0 = scmp.ge.s32.totalorder %s2013_s12, 1  ;;  %s2013_s12 = sphi %s2035_s12, %s13_s12  }
   0x2   : > { %p127_p1 = scmp.lt.s32.totalorder %s2013_s12, 4 }
   0x4   : > { %p128_p2 = pnand %p1515_p0, %p127_p1 }
   0x5   : > { %v2003_v0 = vld [vmem:[%s2336_s1 + $0x8] sm:$0xff] (!%p128_p2)   ;;  %s1518_s16 = sshll.u32 (!%p128_p2), %s1512_s13, 8  ;;  %v2004_v1 = vld [vmem:[%s2336_s1 + $0x10] sm:$0xff] (!%p128_p2)   ;;  %vm264_vm0 = vcmask (!%p128_p2), 130048   ;;  %v2005_v8 = vld [vmem:[%s2336_s1] sm:$0xff] (!%p128_p2)   ;;  %s1516_s26 = sshll.u32 (!%p128_p2), %s1512_s13, 5 }
   0x6   : > { %131 = sbr.rel (%p128_p2) target bundleno = 355 (0x163), region = 32  ;;  %s2054_s21 = scalar_lea.vmem (!%p128_p2), %s2335_s0, %s1518_s16  ;;  %1763 = vmatprep.subr.bf16.mxu1 (!%p128_p2), %v2003_v0  ;;  %1831 = vmatprep.subr.bf16.mxu0 (!%p128_p2), %v2004_v1  ;;  %v2006_v12 = vld [vmem:[%s2336_s1 + $0x18] sm:$0xff] (!%p128_p2)   ;;  %vm1424_vm2 = vcmask (!%p128_p2), 261120  }
   0x7   : > { %v1520_v2 = vld [vmem:[%s2054_s21 + $0x1] sm:$0xff] (!%p128_p2)  ;;  %v1521_v3 = vld [vmem:[%s2054_s21 + $0x9] sm:$0xff] (!%p128_p2)  ;;  %v1589_v4 = vld [vmem:[%s2054_s21 + $0x11] sm:$0xff] (!%p128_p2)  ;;  %1764 = vmatpush3.bf16.msra.mxu1 (!%p128_p2), %v2003_v0  ;;  %1832 = vmatpush3.bf16.msra.mxu0 (!%p128_p2), %v2004_v1  ;;  %p147_p3 = scmp.lt.s32.totalorder (!%p128_p2), %s1516_s26, 95 }
   0x8   : > { %v239_v5 = vpack.c.bf16 (!%p128_p2), %v1521_v3, %v1520_v2  ;;  %v1590_v6 = vld [vmem:[%s2054_s21 + $0x19] sm:$0xff] (!%p128_p2)  ;;  %v1591_v9 = vld [vmem:[%s2054_s21 + $0x21] sm:$0xff] (!%p128_p2)  ;;  %v1592_v10 = vld [vmem:[%s2054_s21 + $0x29] sm:$0xff] (!%p128_p2)  ;;  %1797 = vmatprep.subr.bf16.mxu1 (!%p128_p2), %v2005_v8  ;;  %1865 = vmatprep.subr.bf16.mxu0 (!%p128_p2), %v2006_v12 }
   0x9   : > { %v723_v7 = vpack.c.bf16 (!%p128_p2), %v1590_v6, %v1589_v4  ;;  %v724_v11 = vpack.c.bf16 (!%p128_p2), %v1592_v10, %v1591_v9  ;;  %v1593_v13 = vld [vmem:[%s2054_s21 + $0x31] sm:$0xff] (!%p128_p2)  ;;  %v1594_v14 = vld [vmem:[%s2054_s21 + $0x39] sm:$0xff] (!%p128_p2)  ;;  %v1595_v16 = vld [vmem:[%s2054_s21 + $0x41] sm:$0xff] (!%p128_p2) }
   0xa   : > { %1765 = vmatprep.mubr.msk.bf16.mxu1 (!%p128_p2), %vm264_vm0, %v239_v5  ;;  %v725_v15 = vpack.c.bf16 (!%p128_p2), %v1594_v14, %v1593_v13  ;;  %v1596_v17 = vld [vmem:[%s2054_s21 + $0x49] sm:$0xff] (!%p128_p2)  ;;  %v1597_v18 = vld [vmem:[%s2054_s21 + $0x51] sm:$0xff] (!%p128_p2)  ;;  %v1598_v19 = vld [vmem:[%s2054_s21 + $0x59] sm:$0xff] (!%p128_p2) }
   0xb   : > { %1833 = vmatprep.mubr.msk.bf16.mxu0 (!%p128_p2), %vm264_vm0, %v723_v7  ;;  %1766 = vmatmul.mubr.msk.bf16.vlgmr.msra.gmra.mrb[0].mxu1 (!%p128_p2), %vm264_vm0, %v723_v7  ;;  %v726_v20 = vpack.c.bf16 (!%p128_p2), %v1596_v17, %v1595_v16  ;;  %v727_v21 = vpack.c.bf16 (!%p128_p2), %v1598_v19, %v1597_v18  ;;  %v1599_v22 = vld [vmem:[%s2054_s21 + $0x61] sm:$0xff] (!%p128_p2)  ;;  %v1600_v23 = vld [vmem:[%s2054_s21 + $0x69] sm:$0xff] (!%p128_p2)  ;;  %v1601_v24 = vld [vmem:[%s2054_s21 + $0x71] sm:$0xff] (!%p128_p2) }
   0xc   : > { %1834 = vmatmul.mubr.msk.bf16.vlgmr.msra.gmra.mrb[0].mxu0 (!%p128_p2), %vm264_vm0, %v724_v11  ;;  %1798 = vmatpush3.bf16.msra.mxu1 (!%p128_p2), %v2005_v8  ;;  %v1602_v25 = vld [vmem:[%s2054_s21 + $0x79] sm:$0xff] (!%p128_p2)  ;;  %v728_v26 = vpack.c.bf16 (!%p128_p2), %v1600_v23, %v1599_v22  ;;  %v1603_v28 = vld [vmem:[%s2054_s21 + $0x81] sm:$0xff] (!%p128_p2)  ;;  %v1604_v29 = vld [vmem:[%s2054_s21 + $0x89] sm:$0xff] (!%p128_p2) }
   0xd   : > { %1866 = vmatpush3.bf16.msra.mxu0 %v2006_v12  ;;  %1769 = vmatprep.mubr.msk.bf16.mxu1 %vm264_vm0, %v724_v11  ;;  %v729_v27 = vpack.c.bf16 %v1602_v25, %v1601_v24  ;;  %v1605_v30 = vld [vmem:[%s2054_s21 + $0x91] sm:$0xff]  ;;  %v1606_v31 = vld [vmem:[%s2054_s21 + $0x99] sm:$0xff]  ;;  %v730_v32 = vpack.c.bf16 %v1604_v29, %v1603_v28  ;;  %v1607_v34 = vld [vmem:[%s2054_s21 + $0xa1] sm:$0xff]  ;;  %s2340_s26 = smov (!%p147_p3, %s1516_s26), 95 }
   0xe   : > { %1837 = vmatprep.mubr.msk.bf16.mxu0 %vm264_vm0, %v725_v15  ;;  %v731_v33 = vpack.c.bf16 %v1606_v31, %v1605_v30  ;;  %v1608_v35 = vld [vmem:[%s2054_s21 + $0xa9] sm:$0xff]  ;;  %v1609_v36 = vld [vmem:[%s2054_s21 + $0xb1] sm:$0xff]  ;;  %v1610_v37 = vld [vmem:[%s2054_s21 + $0xb9] sm:$0xff]  ;;  %s1517_s29 = sshll.u32 %s2340_s26, 3 }
   0xf   : > { %v732_v38 = vpack.c.bf16 %v1608_v35, %v1607_v34  ;;  %v733_v39 = vpack.c.bf16 %v1610_v37, %v1609_v36  ;;  %v1611_v40 = vld [vmem:[%s2054_s21 + $0xc1] sm:$0xff]  ;;  %v1612_v41 = vld [vmem:[%s2054_s21 + $0xc9] sm:$0xff]  ;;  %v1613_v42 = vld [vmem:[%s2054_s21 + $0xd1] sm:$0xff]  ;;  %s2236_s5 = scalar_lea.vmem %s2338_s3, %s1517_s29 }
  0x10   : > { %v1614_v43 = vld [vmem:[%s2054_s21 + $0xd9] sm:$0xff]  ;;  %v734_v44 = vpack.c.bf16 %v1612_v41, %v1611_v40  ;;  %v1615_v46 = vld [vmem:[%s2054_s21 + $0xe1] sm:$0xff]  ;;  %v1616_v47 = vld [vmem:[%s2054_s21 + $0xe9] sm:$0xff] }
  0x11   : > { %v735_v45 = vpack.c.bf16 %v1614_v43, %v1613_v42  ;;  %v1617_v48 = vld [vmem:[%s2054_s21 + $0xf1] sm:$0xff]  ;;  %v1618_v49 = vld [vmem:[%s2054_s21 + $0xf9] sm:$0xff]  ;;  %v736_v50 = vpack.c.bf16 %v1616_v47, %v1615_v46  ;;  %v1619_v52 = vld [vmem:[%s2054_s21 + $0x101] sm:$0xff] }
  0x12   : > { %v737_v51 = vpack.c.bf16 %v1618_v49, %v1617_v48  ;;  %v1620_v53 = vld [vmem:[%s2054_s21 + $0x109] sm:$0xff]  ;;  %v155_v54 = vld [vmem:[%s2054_s21] sm:$0xff]  ;;  %v1641_v56 = vld [vmem:[%s2054_s21 + $0x12] sm:$0xff] }
  0x13   : > { %1770 = vmatmul.mubr.msk.bf16.gmra.mrb[4].mxu1 %vm264_vm0, %v725_v15  ;;  %v156_v55 = vld [vmem:[%s2054_s21 + $0x8] sm:$0xff]  ;;  %v1642_v57 = vld [vmem:[%s2054_s21 + $0x1a] sm:$0xff]  ;;  %v738_v58 = vpack.c.bf16 %v1620_v53, %v1619_v52  ;;  %v157_v61 = vld [vmem:[%s2054_s21 + $0x10] sm:$0xff] }
  0x14   : > { %1838 = vmatmul.mubr.msk.bf16.gmra.mrb[4].mxu0 %vm264_vm0, %v726_v20  ;;  %1773 = vmatprep.mubr.msk.bf16.mxu1 %vm264_vm0, %v726_v20  ;;  %v187_v59 = vpack.c.bf16 %v156_v55, %v155_v54  ;;  %v1023_v60 = vpack.c.bf16 %v1642_v57, %v1641_v56  ;;  %v158_v62 = vld [vmem:[%s2054_s21 + $0x18] sm:$0xff]  ;;  %v1643_v63 = vld [vmem:[%s2054_s21 + $0x22] sm:$0xff]  ;;  %v1644_v0 = vld [vmem:[%s2054_s21 + $0x2a] sm:$0xff] }
  0x15   : > { %1841 = vmatprep.mubr.msk.bf16.mxu0 %vm264_vm0, %v727_v21  ;;  %v159_v1 = vld [vmem:[%s2054_s21 + $0x20] sm:$0xff]  ;;  %v160_v2 = vld [vmem:[%s2054_s21 + $0x28] sm:$0xff]  ;;  %v1645_v3 = vld [vmem:[%s2054_s21 + $0x32] sm:$0xff]  ;;  %v188_v5 = vpack.c.bf16 %v158_v62, %v157_v61  ;;  %v1024_v6 = vpack.c.bf16 %v1644_v0, %v1643_v63 }
  0x16   : > { %v1646_v4 = vld [vmem:[%s2054_s21 + $0x3a] sm:$0xff]  ;;  %v189_v7 = vpack.c.bf16 %v160_v2, %v159_v1  ;;  %v161_v9 = vld [vmem:[%s2054_s21 + $0x30] sm:$0xff]  ;;  %v1647_v11 = vld [vmem:[%s2054_s21 + $0x42] sm:$0xff] }
  0x17   : > { %v1025_v8 = vpack.c.bf16 %v1646_v4, %v1645_v3  ;;  %v162_v10 = vld [vmem:[%s2054_s21 + $0x38] sm:$0xff]  ;;  %v1648_v12 = vld [vmem:[%s2054_s21 + $0x4a] sm:$0xff]  ;;  %v163_v13 = vld [vmem:[%s2054_s21 + $0x40] sm:$0xff] }
  0x18   : > { %v164_v14 = vld [vmem:[%s2054_s21 + $0x48] sm:$0xff]  ;;  %v1649_v15 = vld [vmem:[%s2054_s21 + $0x52] sm:$0xff]  ;;  %v1650_v16 = vld [vmem:[%s2054_s21 + $0x5a] sm:$0xff]  ;;  %v190_v17 = vpack.c.bf16 %v162_v10, %v161_v9  ;;  %v1026_v18 = vpack.c.bf16 %v1648_v12, %v1647_v11 }
  0x19   : > { %v191_v19 = vpack.c.bf16 %v164_v14, %v163_v13  ;;  %v1027_v20 = vpack.c.bf16 %v1650_v16, %v1649_v15  ;;  %v166_v22 = vld [vmem:[%s2054_s21 + $0x58] sm:$0xff]  ;;  %v1651_v23 = vld [vmem:[%s2054_s21 + $0x62] sm:$0xff]  ;;  %v1652_v24 = vld [vmem:[%s2054_s21 + $0x6a] sm:$0xff] }
  0x1a   : > { %v167_v25 = vld [vmem:[%s2054_s21 + $0x60] sm:$0xff]  ;;  %v1028_v30 = vpack.c.bf16 %v1652_v24, %v1651_v23  ;;  %v170_v34 = vld [vmem:[%s2054_s21 + $0x78] sm:$0xff]  ;;  %v1656_v36 = vld [vmem:[%s2054_s21 + $0x8a] sm:$0xff] }
  0x1b   : > { %1774 = vmatmul.mubr.msk.bf16.gmra.mrb[8].mxu1 %vm264_vm0, %v727_v21  ;;  %v165_v21 = vld [vmem:[%s2054_s21 + $0x50] sm:$0xff]  ;;  %v1654_v28 = vld [vmem:[%s2054_s21 + $0x7a] sm:$0xff]  ;;  %v1655_v35 = vld [vmem:[%s2054_s21 + $0x82] sm:$0xff] }
  0x1c   : > { %1842 = vmatmul.mubr.msk.bf16.gmra.mrb[8].mxu0 %vm264_vm0, %v728_v26  ;;  %1777 = vmatprep.mubr.msk.bf16.mxu1 %vm264_vm0, %v728_v26  ;;  %v168_v26 = vld [vmem:[%s2054_s21 + $0x68] sm:$0xff]  ;;  %v192_v29 = vpack.c.bf16 %v166_v22, %v165_v21  ;;  %v171_v37 = vld [vmem:[%s2054_s21 + $0x80] sm:$0xff]  ;;  %v1030_v42 = vpack.c.bf16 %v1656_v36, %v1655_v35  ;;  %v174_v46 = vld [vmem:[%s2054_s21 + $0x98] sm:$0xff] }
  0x1d   : > { %1845 = vmatprep.mubr.msk.bf16.mxu0 %vm264_vm0, %v729_v27  ;;  %v193_v31 = vpack.c.bf16 %v168_v26, %v167_v25  ;;  %v1658_v40 = vld [vmem:[%s2054_s21 + $0x9a] sm:$0xff]  ;;  %v1659_v47 = vld [vmem:[%s2054_s21 + $0xa2] sm:$0xff]  ;;  %v1660_v48 = vld [vmem:[%s2054_s21 + $0xaa] sm:$0xff] }
  0x1e   : > { %v175_v49 = vld [vmem:[%s2054_s21 + $0xa0] sm:$0xff]  ;;  %v1032_v54 = vpack.c.bf16 %v1660_v48, %v1659_v47  ;;  %v177_v57 = vld [vmem:[%s2054_s21 + $0xb0] sm:$0xff]  ;;  %v180_v62 = vld [vmem:[%s2054_s21 + $0xc8] sm:$0xff] }
  0x1f   : > { %v1662_v52 = vld [vmem:[%s2054_s21 + $0xba] sm:$0xff]  ;;  %v1665_v63 = vld [vmem:[%s2054_s21 + $0xd2] sm:$0xff]  ;;  %v184_v10 = vld [vmem:[%s2054_s21 + $0xe8] sm:$0xff] }
  0x20   : > { %v179_v61 = vld [vmem:[%s2054_s21 + $0xc0] sm:$0xff]  ;;  %v1669_v11 = vld [vmem:[%s2054_s21 + $0xf2] sm:$0xff] }
  0x21   : > { %v1666_v0 = vld [vmem:[%s2054_s21 + $0xda] sm:$0xff]  ;;  %v199_v3 = vpack.c.bf16 %v180_v62, %v179_v61 }
  0x22   : > { %v1035_v4 = vpack.c.bf16 %v1666_v0, %v1665_v63  ;;  %v183_v9 = vld [vmem:[%s2054_s21 + $0xe0] sm:$0xff] }
  0x23   : > { %1778 = vmatmul.mubr.msk.bf16.gmra.mrb[12].mxu1 %vm264_vm0, %v729_v27  ;;  %v1653_v27 = vld [vmem:[%s2054_s21 + $0x72] sm:$0xff]  ;;  %v1670_v12 = vld [vmem:[%s2054_s21 + $0xfa] sm:$0xff]  ;;  %v201_v15 = vpack.c.bf16 %v184_v10, %v183_v9 }
  0x24   : > { %1846 = vmatmul.mubr.msk.bf16.gmra.mrb[12].mxu0 %vm264_vm0, %v730_v32  ;;  %1781 = vmatprep.mubr.msk.bf16.mxu1 %vm264_vm0, %v730_v32  ;;  %v1029_v32 = vpack.c.bf16 %v1654_v28, %v1653_v27  ;;  %v1037_v16 = vpack.c.bf16 %v1670_v12, %v1669_v11  ;;  %v2229_v25 = vld [vmem:[%s2337_s2] ss:$0 sm:$0xff] }
  0x25   : > { %1849 = vmatprep.mubr.msk.bf16.mxu0 %vm264_vm0, %v731_v33 }
  0x2b   : > { %1782 = vmatmul.mubr.msk.bf16.gmra.mrb[16].mxu1 %vm264_vm0, %v731_v33  ;;  %v169_v33 = vld [vmem:[%s2054_s21 + $0x70] sm:$0xff] }
  0x2c   : > { %1850 = vmatmul.mubr.msk.bf16.gmra.mrb[16].mxu0 %vm264_vm0, %v732_v38  ;;  %1785 = vmatprep.mubr.msk.bf16.mxu1 %vm264_vm0, %v732_v38  ;;  %v172_v38 = vld [vmem:[%s2054_s21 + $0x88] sm:$0xff]  ;;  %v194_v41 = vpack.c.bf16 %v170_v34, %v169_v33 }
  0x2d   : > { %1853 = vmatprep.mubr.msk.bf16.mxu0 %vm264_vm0, %v733_v39  ;;  %v195_v43 = vpack.c.bf16 %v172_v38, %v171_v37 }
  0x33   : > { %1786 = vmatmul.mubr.msk.bf16.gmra.mrb[20].mxu1 %vm264_vm0, %v733_v39  ;;  %v1657_v39 = vld [vmem:[%s2054_s21 + $0x92] sm:$0xff] }
  0x34   : > { %1854 = vmatmul.mubr.msk.bf16.gmra.mrb[20].mxu0 %vm264_vm0, %v734_v44  ;;  %1789 = vmatprep.mubr.msk.bf16.mxu1 %vm264_vm0, %v734_v44  ;;  %v1031_v44 = vpack.c.bf16 %v1658_v40, %v1657_v39 }
  0x35   : > { %1857 = vmatprep.mubr.msk.bf16.mxu0 %vm264_vm0, %v735_v45 }
  0x3b   : > { %1790 = vmatmul.mubr.msk.bf16.gmra.mrb[24].mxu1 %vm264_vm0, %v735_v45  ;;  %v173_v45 = vld [vmem:[%s2054_s21 + $0x90] sm:$0xff] }
  0x3c   : > { %1858 = vmatmul.mubr.msk.bf16.gmra.mrb[24].mxu0 %vm264_vm0, %v736_v50  ;;  %1793 = vmatprep.mubr.msk.bf16.mxu1 %vm264_vm0, %v736_v50  ;;  %v176_v50 = vld [vmem:[%s2054_s21 + $0xa8] sm:$0xff]  ;;  %v196_v53 = vpack.c.bf16 %v174_v46, %v173_v45 }
  0x3d   : > { %1861 = vmatprep.mubr.msk.bf16.mxu0 %vm264_vm0, %v737_v51  ;;  %v197_v55 = vpack.c.bf16 %v176_v50, %v175_v49 }
  0x43   : > { %1794 = vmatmul.mubr.msk.bf16.gmra.mrb[28].mxu1 %vm264_vm0, %v737_v51  ;;  %v1661_v51 = vld [vmem:[%s2054_s21 + $0xb2] sm:$0xff] }
  0x44   : > { %1862 = vmatmul.mubr.msk.bf16.gmra.mrb[28].mxu0 %vm264_vm0, %v738_v58  ;;  %1799 = vmatprep.mubr.msk.bf16.mxu1 %vm264_vm0, %v187_v59  ;;  %v1033_v56 = vpack.c.bf16 %v1662_v52, %v1661_v51  ;;  %v178_v58 = vld [vmem:[%s2054_s21 + $0xb8] sm:$0xff]  ;;  %v1663_v59 = vld [vmem:[%s2054_s21 + $0xc2] sm:$0xff] }
  0x45   : > { %1867 = vmatprep.mubr.msk.bf16.mxu0 %vm264_vm0, %v1023_v60  ;;  %v1664_v60 = vld [vmem:[%s2054_s21 + $0xca] sm:$0xff]  ;;  %v198_v1 = vpack.c.bf16 %v178_v58, %v177_v57 }
  0x46   : > { %v1034_v2 = vpack.c.bf16 %v1664_v60, %v1663_v59 }
  0x4b   : > { %1800 = vmatmul.mubr.msk.bf16.vlgmr.msra.gmra.mrb[0].mxu1 %vm264_vm0, %v188_v5  ;;  %v181_v5 = vld [vmem:[%s2054_s21 + $0xd0] sm:$0xff] }
  0x4c   : > { %1868 = vmatmul.mubr.msk.bf16.vlgmr.msra.gmra.mrb[0].mxu0 %vm264_vm0, %v1024_v6  ;;  %1803 = vmatprep.mubr.msk.bf16.mxu1 %vm264_vm0, %v189_v7  ;;  %v182_v6 = vld [vmem:[%s2054_s21 + $0xd8] sm:$0xff]  ;;  %v1667_v7 = vld [vmem:[%s2054_s21 + $0xe2] sm:$0xff] }
  0x4d   : > { %1871 = vmatprep.mubr.msk.bf16.mxu0 %vm264_vm0, %v1025_v8  ;;  %v1668_v8 = vld [vmem:[%s2054_s21 + $0xea] sm:$0xff]  ;;  %v200_v13 = vpack.c.bf16 %v182_v6, %v181_v5 }
  0x4e   : > { %v1036_v14 = vpack.c.bf16 %v1668_v8, %v1667_v7 }
  0x53   : > { %1804 = vmatmul.mubr.msk.bf16.gmra.mrb[4].mxu1 %vm264_vm0, %v190_v17  ;;  %v185_v17 = vld [vmem:[%s2054_s21 + $0xf0] sm:$0xff] }
  0x54   : > { %1872 = vmatmul.mubr.msk.bf16.gmra.mrb[4].mxu0 %vm264_vm0, %v1026_v18  ;;  %1807 = vmatprep.mubr.msk.bf16.mxu1 %vm264_vm0, %v191_v19  ;;  %v186_v18 = vld [vmem:[%s2054_s21 + $0xf8] sm:$0xff]  ;;  %v1671_v19 = vld [vmem:[%s2054_s21 + $0x102] sm:$0xff] }
  0x55   : > { %1875 = vmatprep.mubr.msk.bf16.mxu0 %vm264_vm0, %v1027_v20  ;;  %v1672_v20 = vld [vmem:[%s2054_s21 + $0x10a] sm:$0xff]  ;;  %v202_v21 = vpack.c.bf16 %v186_v18, %v185_v17 }
  0x56   : > { %v1038_v22 = vpack.c.bf16 %v1672_v20, %v1671_v19 }
  0x5b   : > { %1808 = vmatmul.mubr.msk.bf16.gmra.mrb[8].mxu1 %vm264_vm0, %v192_v29 }
  0x5c   : > { %1876 = vmatmul.mubr.msk.bf16.gmra.mrb[8].mxu0 %vm264_vm0, %v1028_v30  ;;  %1811 = vmatprep.mubr.msk.bf16.mxu1 %vm264_vm0, %v193_v31 }
  0x5d   : > { %1879 = vmatprep.mubr.msk.bf16.mxu0 %vm264_vm0, %v1029_v32 }
  0x63   : > { %1812 = vmatmul.mubr.msk.bf16.gmra.mrb[12].mxu1 %vm264_vm0, %v194_v41 }
  0x64   : > { %1880 = vmatmul.mubr.msk.bf16.gmra.mrb[12].mxu0 %vm264_vm0, %v1030_v42  ;;  %1815 = vmatprep.mubr.msk.bf16.mxu1 %vm264_vm0, %v195_v43 }
  0x65   : > { %1883 = vmatprep.mubr.msk.bf16.mxu0 %vm264_vm0, %v1031_v44 }
  0x6b   : > { %1816 = vmatmul.mubr.msk.bf16.gmra.mrb[16].mxu1 %vm264_vm0, %v196_v53 }
  0x6c   : > { %1884 = vmatmul.mubr.msk.bf16.gmra.mrb[16].mxu0 %vm264_vm0, %v1032_v54  ;;  %1819 = vmatprep.mubr.msk.bf16.mxu1 %vm264_vm0, %v197_v55 }
  0x6d   : > { %1887 = vmatprep.mubr.msk.bf16.mxu0 %vm264_vm0, %v1033_v56 }
  0x73   : > { %1820 = vmatmul.mubr.msk.bf16.gmra.mrb[20].mxu1 %vm264_vm0, %v198_v1 }
  0x74   : > { %1888 = vmatmul.mubr.msk.bf16.gmra.mrb[20].mxu0 %vm264_vm0, %v1034_v2  ;;  %1823 = vmatprep.mubr.msk.bf16.mxu1 %vm264_vm0, %v199_v3 }
  0x75   : > { %1891 = vmatprep.mubr.msk.bf16.mxu0 %vm264_vm0, %v1035_v4 }
  0x7b   : > { %1824 = vmatmul.mubr.msk.bf16.gmra.mrb[24].mxu1 %vm264_vm0, %v200_v13 }
  0x7c   : > { %1892 = vmatmul.mubr.msk.bf16.gmra.mrb[24].mxu0 %vm264_vm0, %v1036_v14  ;;  %1827 = vmatprep.mubr.msk.bf16.mxu1 %vm264_vm0, %v201_v15 }
  0x7d   : > { %1895 = vmatprep.mubr.msk.bf16.mxu0 %vm264_vm0, %v1037_v16 }
  0x83   : > { %1828 = vmatmul.mubr.msk.bf16.gmra.mrb[28].mxu1 %vm264_vm0, %v202_v21 }
  0x84   : > { %1896 = vmatmul.mubr.msk.bf16.gmra.mrb[28].mxu0 %vm264_vm0, %v1038_v22 }
 0x11e   : > { %v1801_v23 = vpop.f32.mrb[0].mxu1 }
 0x11f   : > { %v1869_v24 = vpop.f32.mrb[0].mxu0  ;;  %v562_v26 = vpop.f32.mrb[1].mxu1 }
 0x120   : > { %v1899_v27 = vadd.f32 %v1869_v24, %v1801_v23  ;;  %v1130_v28 = vpop.f32.mrb[1].mxu0  ;;  %v1802_v29 = vpop.f32.mrb[2].mxu1 }
 0x121   : > { %v1900_v30 = vadd.f32 %v1130_v28, %v562_v26  ;;  %v1870_v31 = vpop.f32.mrb[2].mxu0  ;;  %v565_v32 = vpop.f32.mrb[3].mxu1 }
 0x122   : > { %v1298_v33 = vadd.f32 %v1899_v27, %v2229_v25  ;;  %v1901_v34 = vadd.f32 %v1870_v31, %v1802_v29  ;;  %v1133_v35 = vpop.f32.mrb[3].mxu0 }
 0x123   : > { %v1296_v36 = vadd.f32 %v1900_v30, %v2229_v25  ;;  %v1902_v37 = vadd.f32 %v1133_v35, %v565_v32 }
 0x124   : > { %vm1330_vm1 = vcmp.ge.f32.partialorder %v1298_v33, 0.0  ;;  %v1362_v38 = vmul.f32 0.01, %v1298_v33  ;;  %v1299_v39 = vadd.f32 %v1901_v34, %v2229_v25 }
 0x125   : > { %vm1328_vm3 = vcmp.ge.f32.partialorder %v1296_v36, 0.0  ;;  %v1360_v40 = vmul.f32 0.01, %v1296_v36  ;;  %v1297_v41 = vadd.f32 %v1902_v37, %v2229_v25 }
 0x126   : > { %v1394_v42 = vsel %vm1330_vm1, %v1298_v33, %v1362_v38  ;;  %vm1331_vm4 = vcmp.ge.f32.partialorder %v1299_v39, 0.0  ;;  %v1363_v43 = vmul.f32 0.01, %v1299_v39  ;;  %v1805_v44 = vpop.f32.mrb[4].mxu1 }
 0x127   : > { %1427 = vst.msk [vmem:[%s2236_s5 + $0x10] sm:$0xff] %vm1424_vm2, %v1394_v42  ;;  %v1392_v45 = vsel %vm1328_vm3, %v1296_v36, %v1360_v40  ;;  %vm1329_vm5 = vcmp.ge.f32.partialorder %v1297_v41, 0.0  ;;  %v1361_v46 = vmul.f32 0.01, %v1297_v41  ;;  %v1873_v47 = vpop.f32.mrb[4].mxu0  ;;  %v578_v48 = vpop.f32.mrb[5].mxu1 }
 0x128   : > { %1425 = vst.msk [vmem:[%s2236_s5] sm:$0xff] %vm1424_vm2, %v1392_v45  ;;  %v1395_v49 = vsel %vm1331_vm4, %v1299_v39, %v1363_v43  ;;  %v1903_v50 = vadd.f32 %v1873_v47, %v1805_v44  ;;  %v1146_v51 = vpop.f32.mrb[5].mxu0  ;;  %v1806_v52 = vpop.f32.mrb[6].mxu1 }
 0x129   : > { %1428 = vst.msk [vmem:[%s2236_s5 + $0x18] sm:$0xff] %vm1424_vm2, %v1395_v49  ;;  %v1393_v53 = vsel %vm1329_vm5, %v1297_v41, %v1361_v46  ;;  %v1904_v54 = vadd.f32 %v1146_v51, %v578_v48  ;;  %v1874_v55 = vpop.f32.mrb[6].mxu0  ;;  %v581_v56 = vpop.f32.mrb[7].mxu1 }
 0x12a   : > { %1426 = vst.msk [vmem:[%s2236_s5 + $0x8] sm:$0xff] %vm1424_vm2, %v1393_v53  ;;  %v1302_v57 = vadd.f32 %v1903_v50, %v2229_v25  ;;  %v1905_v58 = vadd.f32 %v1874_v55, %v1806_v52  ;;  %v1149_v59 = vpop.f32.mrb[7].mxu0 }
 0x12b   : > { %v1300_v60 = vadd.f32 %v1904_v54, %v2229_v25  ;;  %v1906_v61 = vadd.f32 %v1149_v59, %v581_v56 }
 0x12c   : > { %vm1334_vm6 = vcmp.ge.f32.partialorder %v1302_v57, 0.0  ;;  %v1366_v62 = vmul.f32 0.01, %v1302_v57  ;;  %v1303_v63 = vadd.f32 %v1905_v58, %v2229_v25 }
 0x12d   : > { %vm1332_vm7 = vcmp.ge.f32.partialorder %v1300_v60, 0.0  ;;  %v1364_v0 = vmul.f32 0.01, %v1300_v60  ;;  %v1301_v1 = vadd.f32 %v1906_v61, %v2229_v25 }
 0x12e   : > { %v1398_v2 = vsel %vm1334_vm6, %v1302_v57, %v1366_v62  ;;  %vm1335_vm8 = vcmp.ge.f32.partialorder %v1303_v63, 0.0  ;;  %v1367_v3 = vmul.f32 0.01, %v1303_v63  ;;  %v1809_v4 = vpop.f32.mrb[8].mxu1 }
 0x12f   : > { %1431 = vst.msk [vmem:[%s2236_s5 + $0x30] sm:$0xff] %vm1424_vm2, %v1398_v2  ;;  %v1396_v5 = vsel %vm1332_vm7, %v1300_v60, %v1364_v0  ;;  %vm1333_vm9 = vcmp.ge.f32.partialorder %v1301_v1, 0.0  ;;  %v1365_v6 = vmul.f32 0.01, %v1301_v1  ;;  %v1877_v7 = vpop.f32.mrb[8].mxu0  ;;  %v594_v8 = vpop.f32.mrb[9].mxu1 }
 0x130   : > { %1429 = vst.msk [vmem:[%s2236_s5 + $0x20] sm:$0xff] %vm1424_vm2, %v1396_v5  ;;  %v1399_v9 = vsel %vm1335_vm8, %v1303_v63, %v1367_v3  ;;  %v1907_v10 = vadd.f32 %v1877_v7, %v1809_v4  ;;  %v1162_v11 = vpop.f32.mrb[9].mxu0  ;;  %v1810_v12 = vpop.f32.mrb[10].mxu1 }
 0x131   : > { %1432 = vst.msk [vmem:[%s2236_s5 + $0x38] sm:$0xff] %vm1424_vm2, %v1399_v9  ;;  %v1397_v13 = vsel %vm1333_vm9, %v1301_v1, %v1365_v6  ;;  %v1908_v14 = vadd.f32 %v1162_v11, %v594_v8  ;;  %v1878_v15 = vpop.f32.mrb[10].mxu0  ;;  %v597_v16 = vpop.f32.mrb[11].mxu1 }
 0x132   : > { %1430 = vst.msk [vmem:[%s2236_s5 + $0x28] sm:$0xff] %vm1424_vm2, %v1397_v13  ;;  %v1306_v17 = vadd.f32 %v1907_v10, %v2229_v25  ;;  %v1909_v18 = vadd.f32 %v1878_v15, %v1810_v12  ;;  %v1165_v19 = vpop.f32.mrb[11].mxu0 }
 0x133   : > { %v1304_v20 = vadd.f32 %v1908_v14, %v2229_v25  ;;  %v1910_v21 = vadd.f32 %v1165_v19, %v597_v16 }
 0x134   : > { %vm1338_vm10 = vcmp.ge.f32.partialorder %v1306_v17, 0.0  ;;  %v1370_v22 = vmul.f32 0.01, %v1306_v17  ;;  %v1307_v23 = vadd.f32 %v1909_v18, %v2229_v25 }
 0x135   : > { %vm1336_vm11 = vcmp.ge.f32.partialorder %v1304_v20, 0.0  ;;  %v1368_v24 = vmul.f32 0.01, %v1304_v20  ;;  %v1305_v26 = vadd.f32 %v1910_v21, %v2229_v25 }
 0x136   : > { %v1402_v27 = vsel %vm1338_vm10, %v1306_v17, %v1370_v22  ;;  %vm1339_vm12 = vcmp.ge.f32.partialorder %v1307_v23, 0.0  ;;  %v1371_v28 = vmul.f32 0.01, %v1307_v23  ;;  %v1813_v29 = vpop.f32.mrb[12].mxu1 }
 0x137   : > { %1435 = vst.msk [vmem:[%s2236_s5 + $0x50] sm:$0xff] %vm1424_vm2, %v1402_v27  ;;  %v1400_v30 = vsel %vm1336_vm11, %v1304_v20, %v1368_v24  ;;  %vm1337_vm13 = vcmp.ge.f32.partialorder %v1305_v26, 0.0  ;;  %v1369_v31 = vmul.f32 0.01, %v1305_v26  ;;  %v1881_v32 = vpop.f32.mrb[12].mxu0  ;;  %v610_v33 = vpop.f32.mrb[13].mxu1 }
 0x138   : > { %1433 = vst.msk [vmem:[%s2236_s5 + $0x40] sm:$0xff] %vm1424_vm2, %v1400_v30  ;;  %v1403_v34 = vsel %vm1339_vm12, %v1307_v23, %v1371_v28  ;;  %v1911_v35 = vadd.f32 %v1881_v32, %v1813_v29  ;;  %v1178_v36 = vpop.f32.mrb[13].mxu0  ;;  %v1814_v37 = vpop.f32.mrb[14].mxu1 }
 0x139   : > { %1436 = vst.msk [vmem:[%s2236_s5 + $0x58] sm:$0xff] %vm1424_vm2, %v1403_v34  ;;  %v1401_v38 = vsel %vm1337_vm13, %v1305_v26, %v1369_v31  ;;  %v1912_v39 = vadd.f32 %v1178_v36, %v610_v33  ;;  %v1882_v40 = vpop.f32.mrb[14].mxu0  ;;  %v613_v41 = vpop.f32.mrb[15].mxu1 }
 0x13a   : > { %1434 = vst.msk [vmem:[%s2236_s5 + $0x48] sm:$0xff] %vm1424_vm2, %v1401_v38  ;;  %v1310_v42 = vadd.f32 %v1911_v35, %v2229_v25  ;;  %v1913_v43 = vadd.f32 %v1882_v40, %v1814_v37  ;;  %v1181_v44 = vpop.f32.mrb[15].mxu0 }
 0x13b   : > { %v1308_v45 = vadd.f32 %v1912_v39, %v2229_v25  ;;  %v1914_v46 = vadd.f32 %v1181_v44, %v613_v41 }
 0x13c   : > { %vm1342_vm14 = vcmp.ge.f32.partialorder %v1310_v42, 0.0  ;;  %v1374_v47 = vmul.f32 0.01, %v1310_v42  ;;  %v1311_v48 = vadd.f32 %v1913_v43, %v2229_v25 }
 0x13d   : > { %vm1340_vm15 = vcmp.ge.f32.partialorder %v1308_v45, 0.0  ;;  %v1372_v49 = vmul.f32 0.01, %v1308_v45  ;;  %v1309_v50 = vadd.f32 %v1914_v46, %v2229_v25 }
 0x13e   : > { %v1406_v51 = vsel %vm1342_vm14, %v1310_v42, %v1374_v47  ;;  %vm1343_vm0 = vcmp.ge.f32.partialorder %v1311_v48, 0.0  ;;  %v1375_v52 = vmul.f32 0.01, %v1311_v48  ;;  %v1817_v53 = vpop.f32.mrb[16].mxu1 }
 0x13f   : > { %1439 = vst.msk [vmem:[%s2236_s5 + $0x70] sm:$0xff] %vm1424_vm2, %v1406_v51  ;;  %v1404_v54 = vsel %vm1340_vm15, %v1308_v45, %v1372_v49  ;;  %vm1341_vm1 = vcmp.ge.f32.partialorder %v1309_v50, 0.0  ;;  %v1373_v55 = vmul.f32 0.01, %v1309_v50  ;;  %v1885_v56 = vpop.f32.mrb[16].mxu0  ;;  %v626_v57 = vpop.f32.mrb[17].mxu1 }
 0x140   : > { %1437 = vst.msk [vmem:[%s2236_s5 + $0x60] sm:$0xff] %vm1424_vm2, %v1404_v54  ;;  %v1407_v58 = vsel %vm1343_vm0, %v1311_v48, %v1375_v52  ;;  %v1915_v59 = vadd.f32 %v1885_v56, %v1817_v53  ;;  %v1194_v60 = vpop.f32.mrb[17].mxu0  ;;  %v1818_v61 = vpop.f32.mrb[18].mxu1 }
 0x141   : > { %1440 = vst.msk [vmem:[%s2236_s5 + $0x78] sm:$0xff] %vm1424_vm2, %v1407_v58  ;;  %v1405_v62 = vsel %vm1341_vm1, %v1309_v50, %v1373_v55  ;;  %v1916_v63 = vadd.f32 %v1194_v60, %v626_v57  ;;  %v1886_v0 = vpop.f32.mrb[18].mxu0  ;;  %v629_v1 = vpop.f32.mrb[19].mxu1 }
 0x142   : > { %1438 = vst.msk [vmem:[%s2236_s5 + $0x68] sm:$0xff] %vm1424_vm2, %v1405_v62  ;;  %v1314_v2 = vadd.f32 %v1915_v59, %v2229_v25  ;;  %v1917_v3 = vadd.f32 %v1886_v0, %v1818_v61  ;;  %v1197_v4 = vpop.f32.mrb[19].mxu0 }
 0x143   : > { %v1312_v5 = vadd.f32 %v1916_v63, %v2229_v25  ;;  %v1918_v6 = vadd.f32 %v1197_v4, %v629_v1 }
 0x144   : > { %vm1346_vm3 = vcmp.ge.f32.partialorder %v1314_v2, 0.0  ;;  %v1378_v7 = vmul.f32 0.01, %v1314_v2  ;;  %v1315_v8 = vadd.f32 %v1917_v3, %v2229_v25 }
 0x145   : > { %vm1344_vm4 = vcmp.ge.f32.partialorder %v1312_v5, 0.0  ;;  %v1376_v9 = vmul.f32 0.01, %v1312_v5  ;;  %v1313_v10 = vadd.f32 %v1918_v6, %v2229_v25 }
 0x146   : > { %v1410_v11 = vsel %vm1346_vm3, %v1314_v2, %v1378_v7  ;;  %vm1347_vm5 = vcmp.ge.f32.partialorder %v1315_v8, 0.0  ;;  %v1379_v12 = vmul.f32 0.01, %v1315_v8  ;;  %v1821_v13 = vpop.f32.mrb[20].mxu1 }
 0x147   : > { %1443 = vst.msk [vmem:[%s2236_s5 + $0x90] sm:$0xff] %vm1424_vm2, %v1410_v11  ;;  %v1408_v14 = vsel %vm1344_vm4, %v1312_v5, %v1376_v9  ;;  %vm1345_vm6 = vcmp.ge.f32.partialorder %v1313_v10, 0.0  ;;  %v1377_v15 = vmul.f32 0.01, %v1313_v10  ;;  %v1889_v16 = vpop.f32.mrb[20].mxu0  ;;  %v642_v17 = vpop.f32.mrb[21].mxu1 }
 0x148   : > { %1441 = vst.msk [vmem:[%s2236_s5 + $0x80] sm:$0xff] %vm1424_vm2, %v1408_v14  ;;  %v1411_v18 = vsel %vm1347_vm5, %v1315_v8, %v1379_v12  ;;  %v1919_v19 = vadd.f32 %v1889_v16, %v1821_v13  ;;  %v1210_v20 = vpop.f32.mrb[21].mxu0  ;;  %v1822_v21 = vpop.f32.mrb[22].mxu1 }
 0x149   : > { %1444 = vst.msk [vmem:[%s2236_s5 + $0x98] sm:$0xff] %vm1424_vm2, %v1411_v18  ;;  %v1409_v22 = vsel %vm1345_vm6, %v1313_v10, %v1377_v15  ;;  %v1920_v23 = vadd.f32 %v1210_v20, %v642_v17  ;;  %v1890_v24 = vpop.f32.mrb[22].mxu0  ;;  %v645_v26 = vpop.f32.mrb[23].mxu1 }
 0x14a   : > { %1442 = vst.msk [vmem:[%s2236_s5 + $0x88] sm:$0xff] %vm1424_vm2, %v1409_v22  ;;  %v1318_v27 = vadd.f32 %v1919_v19, %v2229_v25  ;;  %v1921_v28 = vadd.f32 %v1890_v24, %v1822_v21  ;;  %v1213_v29 = vpop.f32.mrb[23].mxu0 }
 0x14b   : > { %v1316_v30 = vadd.f32 %v1920_v23, %v2229_v25  ;;  %v1922_v31 = vadd.f32 %v1213_v29, %v645_v26 }
 0x14c   : > { %vm1350_vm7 = vcmp.ge.f32.partialorder %v1318_v27, 0.0  ;;  %v1382_v32 = vmul.f32 0.01, %v1318_v27  ;;  %v1319_v33 = vadd.f32 %v1921_v28, %v2229_v25 }
 0x14d   : > { %vm1348_vm8 = vcmp.ge.f32.partialorder %v1316_v30, 0.0  ;;  %v1380_v34 = vmul.f32 0.01, %v1316_v30  ;;  %v1317_v35 = vadd.f32 %v1922_v31, %v2229_v25 }
 0x14e   : > { %v1414_v36 = vsel %vm1350_vm7, %v1318_v27, %v1382_v32  ;;  %vm1351_vm9 = vcmp.ge.f32.partialorder %v1319_v33, 0.0  ;;  %v1383_v37 = vmul.f32 0.01, %v1319_v33  ;;  %v1825_v38 = vpop.f32.mrb[24].mxu1 }
 0x14f   : > { %1447 = vst.msk [vmem:[%s2236_s5 + $0xb0] sm:$0xff] %vm1424_vm2, %v1414_v36  ;;  %v1412_v39 = vsel %vm1348_vm8, %v1316_v30, %v1380_v34  ;;  %vm1349_vm10 = vcmp.ge.f32.partialorder %v1317_v35, 0.0  ;;  %v1381_v40 = vmul.f32 0.01, %v1317_v35  ;;  %v1893_v41 = vpop.f32.mrb[24].mxu0  ;;  %v658_v42 = vpop.f32.mrb[25].mxu1 }
 0x150   : > { %1445 = vst.msk [vmem:[%s2236_s5 + $0xa0] sm:$0xff] %vm1424_vm2, %v1412_v39  ;;  %v1415_v43 = vsel %vm1351_vm9, %v1319_v33, %v1383_v37  ;;  %v1923_v44 = vadd.f32 %v1893_v41, %v1825_v38  ;;  %v1226_v45 = vpop.f32.mrb[25].mxu0  ;;  %v1826_v46 = vpop.f32.mrb[26].mxu1 }
 0x151   : > { %1448 = vst.msk [vmem:[%s2236_s5 + $0xb8] sm:$0xff] %vm1424_vm2, %v1415_v43  ;;  %v1413_v47 = vsel %vm1349_vm10, %v1317_v35, %v1381_v40  ;;  %v1924_v48 = vadd.f32 %v1226_v45, %v658_v42  ;;  %v1894_v49 = vpop.f32.mrb[26].mxu0  ;;  %v661_v50 = vpop.f32.mrb[27].mxu1 }
 0x152   : > { %1446 = vst.msk [vmem:[%s2236_s5 + $0xa8] sm:$0xff] %vm1424_vm2, %v1413_v47  ;;  %v1322_v51 = vadd.f32 %v1923_v44, %v2229_v25  ;;  %v1925_v52 = vadd.f32 %v1894_v49, %v1826_v46  ;;  %v1229_v53 = vpop.f32.mrb[27].mxu0 }
 0x153   : > { %v1320_v54 = vadd.f32 %v1924_v48, %v2229_v25  ;;  %v1926_v55 = vadd.f32 %v1229_v53, %v661_v50 }
 0x154   : > { %vm1354_vm11 = vcmp.ge.f32.partialorder %v1322_v51, 0.0  ;;  %v1386_v56 = vmul.f32 0.01, %v1322_v51  ;;  %v1323_v57 = vadd.f32 %v1925_v52, %v2229_v25 }
 0x155   : > { %vm1352_vm12 = vcmp.ge.f32.partialorder %v1320_v54, 0.0  ;;  %v1384_v58 = vmul.f32 0.01, %v1320_v54  ;;  %v1321_v59 = vadd.f32 %v1926_v55, %v2229_v25 }
 0x156   : > { %v1418_v60 = vsel %vm1354_vm11, %v1322_v51, %v1386_v56  ;;  %vm1355_vm13 = vcmp.ge.f32.partialorder %v1323_v57, 0.0  ;;  %v1387_v61 = vmul.f32 0.01, %v1323_v57  ;;  %v1829_v62 = vpop.f32.mrb[28].mxu1 }
 0x157   : > { %1451 = vst.msk [vmem:[%s2236_s5 + $0xd0] sm:$0xff] %vm1424_vm2, %v1418_v60  ;;  %v1416_v63 = vsel %vm1352_vm12, %v1320_v54, %v1384_v58  ;;  %vm1353_vm14 = vcmp.ge.f32.partialorder %v1321_v59, 0.0  ;;  %v1385_v0 = vmul.f32 0.01, %v1321_v59  ;;  %v1897_v1 = vpop.f32.mrb[28].mxu0  ;;  %v674_v2 = vpop.f32.mrb[29].mxu1 }
 0x158   : > { %1449 = vst.msk [vmem:[%s2236_s5 + $0xc0] sm:$0xff] %vm1424_vm2, %v1416_v63  ;;  %v1419_v3 = vsel %vm1355_vm13, %v1323_v57, %v1387_v61  ;;  %v1927_v4 = vadd.f32 %v1897_v1, %v1829_v62  ;;  %v1242_v5 = vpop.f32.mrb[29].mxu0  ;;  %v1830_v6 = vpop.f32.mrb[30].mxu1 }
 0x159   : > { %1452 = vst.msk [vmem:[%s2236_s5 + $0xd8] sm:$0xff] %vm1424_vm2, %v1419_v3  ;;  %v1417_v7 = vsel %vm1353_vm14, %v1321_v59, %v1385_v0  ;;  %v1928_v8 = vadd.f32 %v1242_v5, %v674_v2  ;;  %v1898_v9 = vpop.f32.mrb[30].mxu0  ;;  %v677_v10 = vpop.f32.mrb[31].mxu1 }
 0x15a   : > { %1450 = vst.msk [vmem:[%s2236_s5 + $0xc8] sm:$0xff] %vm1424_vm2, %v1417_v7  ;;  %v1326_v11 = vadd.f32 %v1927_v4, %v2229_v25  ;;  %v1929_v12 = vadd.f32 %v1898_v9, %v1830_v6  ;;  %v1245_v13 = vpop.f32.mrb[31].mxu0 }
 0x15b   : > { %v1324_v14 = vadd.f32 %v1928_v8, %v2229_v25  ;;  %v1930_v15 = vadd.f32 %v1245_v13, %v677_v10 }
 0x15c   : > { %vm1358_vm15 = vcmp.ge.f32.partialorder %v1326_v11, 0.0  ;;  %v1390_v16 = vmul.f32 0.01, %v1326_v11  ;;  %v1327_v17 = vadd.f32 %v1929_v12, %v2229_v25 }
 0x15d   : > { %vm1356_vm0 = vcmp.ge.f32.partialorder %v1324_v14, 0.0  ;;  %v1388_v18 = vmul.f32 0.01, %v1324_v14  ;;  %v1325_v19 = vadd.f32 %v1930_v15, %v2229_v25 }
 0x15e   : > { %v1422_v20 = vsel %vm1358_vm15, %v1326_v11, %v1390_v16  ;;  %vm1359_vm1 = vcmp.ge.f32.partialorder %v1327_v17, 0.0  ;;  %v1391_v21 = vmul.f32 0.01, %v1327_v17 }
 0x15f   : > { %1455 = vst.msk [vmem:[%s2236_s5 + $0xf0] sm:$0xff] %vm1424_vm2, %v1422_v20  ;;  %v1420_v22 = vsel %vm1356_vm0, %v1324_v14, %v1388_v18  ;;  %vm1357_vm3 = vcmp.ge.f32.partialorder %v1325_v19, 0.0  ;;  %v1389_v23 = vmul.f32 0.01, %v1325_v19 }
 0x160   : > { %1453 = vst.msk [vmem:[%s2236_s5 + $0xe0] sm:$0xff] %vm1424_vm2, %v1420_v22  ;;  %v1423_v24 = vsel %vm1359_vm1, %v1327_v17, %v1391_v21 }
 0x161   : > { %1456 = vst.msk [vmem:[%s2236_s5 + $0xf8] sm:$0xff] %vm1424_vm2, %v1423_v24  ;;  %v1421_v26 = vsel %vm1357_vm3, %v1325_v19, %v1389_v23 }
 0x162   : > { %1454 = vst.msk [vmem:[%s2236_s5 + $0xe8] sm:$0xff] %vm1424_vm2, %v1421_v26 }
 0x163 PF: > { %s13_s12 = sadd.s32 1, %s2013_s12  }
 0x164   : > { %p10_p4 = scmp.ge.s32.totalorder %s13_s12, 5  }
 0x166   :  { %12 = sbr.rel (!%p10_p4) target bundleno = 1 (0x1), region = 66 }

// kernel: vanilla_vae_forward.24
= control target key start
LH: loop header
LB: loop body
LE: loop exit
PB: predicated region body
PF: predicated region fallthrough
CT: control target
= control target key end

     0   :  { %s2013_s12 = smov 0   ;;  %s2323_s0 = inlined_call_operand.vmem [shape: f32[2344,8], index: 0, kind: input, shape index: {}]   ;;  %s2324_s1 = inlined_call_operand.vmem [shape: bf16[4,8,32], index: 1, kind: input, shape index: {}]   ;;  %s2325_s2 = inlined_call_operand.vmem [shape: f32[1,32], index: 2, kind: input, shape index: {}]   ;;  %s2326_s3 = inlined_call_operand.vmem [shape: f32[2304,32], index: 3, kind: output, shape index: {}]  }
   0x1 LB: > { %s1497_s13 = sadd.s32 4294967295, %s1991_s12   ;;  %p1500_p0 = scmp.ge.s32.totalorder %s1991_s12, 1  ;;  %s1991_s12 = sphi %s2013_s12, %s13_s12  }
   0x2   : > { %p127_p1 = scmp.lt.s32.totalorder %s1991_s12, 10 }
   0x4   : > { %p128_p2 = pnand %p1500_p0, %p127_p1 }
   0x5   : > { %v1537_v0 = vld [vmem:[%s2324_s1 + $0x4] sm:$0xf] (!%p128_p2)  ;;  %vm305_vm0 = vcmask (!%p128_p2), 1043456   ;;  %v1603_v1 = vld [vmem:[%s2324_s1 + $0x8] sm:$0xf] (!%p128_p2)  ;;  %s1503_s18 = sshll.u32 (!%p128_p2), %s1497_s13, 8 }
   0x6   : > { %131 = sbr.rel (%p128_p2) target bundleno = 355 (0x163), region = 32  ;;  %1973 = vmatprep.subr.msk.bf16.mxu1 (!%p128_p2), %vm305_vm0, %v1537_v0  ;;  %1975 = vmatprep.subr.msk.bf16.mxu0 (!%p128_p2), %vm305_vm0, %v1603_v1  ;;  %v307_v2 = vsel (!%p128_p2), %vm305_vm0, %v1537_v0, 0  ;;  %v783_v3 = vsel (!%p128_p2), %vm305_vm0, %v1603_v1, 0  ;;  %s2036_s21 = scalar_lea.vmem (!%p128_p2), %s2323_s0, %s1503_s18  ;;  %v203_v4 = vld [vmem:[%s2324_s1] sm:$0xf] (!%p128_p2)  ;;  %vm256_vm1 = vcmask (!%p128_p2), 64512  }
   0x7   : > { %1742 = vmatpush3.bf16.msra.mxu1 (!%p128_p2), %v307_v2  ;;  %1810 = vmatpush3.bf16.msra.mxu0 (!%p128_p2), %v783_v3  ;;  %v1505_v5 = vld [vmem:[%s2036_s21 + $0x1] sm:$0xff] (!%p128_p2)  ;;  %v1506_v6 = vld [vmem:[%s2036_s21 + $0x9] sm:$0xff] (!%p128_p2)  ;;  %v1507_v11 = vld [vmem:[%s2036_s21 + $0x11] sm:$0xff] (!%p128_p2)  ;;  %v519_v17 = vsel (!%p128_p2), %vm305_vm0, %v203_v4, 0  ;;  %s1501_s26 = sshll.u32 (!%p128_p2), %s1497_s13, 5  ;;  %vm1409_vm3 = vcmask (!%p128_p2), 261120  }
   0x8   : > { %v1571_v7 = vld [vmem:[%s2036_s21 + $0x21] sm:$0xff] (!%p128_p2)  ;;  %v238_v8 = vpack.c.bf16 (!%p128_p2), %v1506_v6, %v1505_v5  ;;  %1974 = vmatprep.subr.msk.bf16.mxu1 (!%p128_p2), %vm305_vm0, %v203_v4  ;;  %v1572_v9 = vld [vmem:[%s2036_s21 + $0x29] sm:$0xff] (!%p128_p2)  ;;  %v1508_v13 = vld [vmem:[%s2036_s21 + $0x19] sm:$0xff] (!%p128_p2)  ;;  %p147_p3 = scmp.lt.s32.totalorder (!%p128_p2), %s1501_s26, 287 }
   0x9   : > { %v1653_v10 = vld [vmem:[%s2324_s1 + $0xc] sm:$0xf] (!%p128_p2)  ;;  %v716_v12 = vpack.c.bf16 (!%p128_p2), %v1572_v9, %v1571_v7  ;;  %v1573_v14 = vld [vmem:[%s2036_s21 + $0x31] sm:$0xff] (!%p128_p2)  ;;  %v1574_v15 = vld [vmem:[%s2036_s21 + $0x39] sm:$0xff] (!%p128_p2)  ;;  %v239_v16 = vpack.c.bf16 (!%p128_p2), %v1508_v13, %v1507_v11 }
   0xa   : > { %1976 = vmatprep.subr.msk.bf16.mxu0 (!%p128_p2), %vm305_vm0, %v1653_v10  ;;  %1743 = vmatprep.mubr.msk.bf16.mxu1 (!%p128_p2), %vm256_vm1, %v238_v8  ;;  %v717_v18 = vpack.c.bf16 (!%p128_p2), %v1574_v15, %v1573_v14  ;;  %v1079_v19 = vsel (!%p128_p2), %vm305_vm0, %v1653_v10, 0  ;;  %v1575_v20 = vld [vmem:[%s2036_s21 + $0x41] sm:$0xff] (!%p128_p2)  ;;  %v1576_v21 = vld [vmem:[%s2036_s21 + $0x49] sm:$0xff] (!%p128_p2)  ;;  %v1577_v23 = vld [vmem:[%s2036_s21 + $0x51] sm:$0xff] (!%p128_p2) }
   0xb   : > { %1811 = vmatprep.mubr.msk.bf16.mxu0 (!%p128_p2), %vm256_vm1, %v716_v12  ;;  %v718_v22 = vpack.c.bf16 (!%p128_p2), %v1576_v21, %v1575_v20  ;;  %1744 = vmatmul.mubr.msk.bf16.vlgmr.msra.gmra.mrb[0].mxu1 (!%p128_p2), %vm256_vm1, %v239_v16  ;;  %v1578_v24 = vld [vmem:[%s2036_s21 + $0x59] sm:$0xff] (!%p128_p2)  ;;  %v1579_v25 = vld [vmem:[%s2036_s21 + $0x61] sm:$0xff] (!%p128_p2)  ;;  %v1580_v26 = vld [vmem:[%s2036_s21 + $0x69] sm:$0xff] (!%p128_p2) }
   0xc   : > { %1812 = vmatmul.mubr.msk.bf16.vlgmr.msra.gmra.mrb[0].mxu0 (!%p128_p2), %vm256_vm1, %v717_v18  ;;  %1776 = vmatpush3.bf16.msra.mxu1 (!%p128_p2), %v519_v17  ;;  %v719_v27 = vpack.c.bf16 (!%p128_p2), %v1578_v24, %v1577_v23  ;;  %v720_v28 = vpack.c.bf16 (!%p128_p2), %v1580_v26, %v1579_v25  ;;  %v1581_v29 = vld [vmem:[%s2036_s21 + $0x71] sm:$0xff] (!%p128_p2)  ;;  %v1582_v30 = vld [vmem:[%s2036_s21 + $0x79] sm:$0xff] (!%p128_p2)  ;;  %v1583_v31 = vld [vmem:[%s2036_s21 + $0x81] sm:$0xff] (!%p128_p2) }
   0xd   : > { %1844 = vmatpush3.bf16.msra.mxu0 %v1079_v19  ;;  %1747 = vmatprep.mubr.msk.bf16.mxu1 %vm256_vm1, %v716_v12  ;;  %v1584_v32 = vld [vmem:[%s2036_s21 + $0x89] sm:$0xff]  ;;  %v721_v33 = vpack.c.bf16 %v1582_v30, %v1581_v29  ;;  %v1585_v35 = vld [vmem:[%s2036_s21 + $0x91] sm:$0xff]  ;;  %v1586_v36 = vld [vmem:[%s2036_s21 + $0x99] sm:$0xff]  ;;  %s2328_s26 = smov (!%p147_p3, %s1501_s26), 287 }
   0xe   : > { %1815 = vmatprep.mubr.msk.bf16.mxu0 %vm256_vm1, %v718_v22  ;;  %v722_v34 = vpack.c.bf16 %v1584_v32, %v1583_v31  ;;  %v1587_v37 = vld [vmem:[%s2036_s21 + $0xa1] sm:$0xff]  ;;  %v1588_v38 = vld [vmem:[%s2036_s21 + $0xa9] sm:$0xff]  ;;  %v723_v39 = vpack.c.bf16 %v1586_v36, %v1585_v35  ;;  %v1589_v41 = vld [vmem:[%s2036_s21 + $0xb1] sm:$0xff]  ;;  %s1502_s29 = sshll.u32 %s2328_s26, 3 }
   0xf   : > { %v724_v40 = vpack.c.bf16 %v1588_v38, %v1587_v37  ;;  %v1590_v42 = vld [vmem:[%s2036_s21 + $0xb9] sm:$0xff]  ;;  %v1591_v43 = vld [vmem:[%s2036_s21 + $0xc1] sm:$0xff]  ;;  %v1592_v44 = vld [vmem:[%s2036_s21 + $0xc9] sm:$0xff]  ;;  %s2224_s5 = scalar_lea.vmem %s2326_s3, %s1502_s29 }
  0x10   : > { %v725_v45 = vpack.c.bf16 %v1590_v42, %v1589_v41  ;;  %v726_v46 = vpack.c.bf16 %v1592_v44, %v1591_v43  ;;  %v1593_v47 = vld [vmem:[%s2036_s21 + $0xd1] sm:$0xff]  ;;  %v1594_v48 = vld [vmem:[%s2036_s21 + $0xd9] sm:$0xff]  ;;  %v1595_v49 = vld [vmem:[%s2036_s21 + $0xe1] sm:$0xff] }
  0x11   : > { %v1596_v50 = vld [vmem:[%s2036_s21 + $0xe9] sm:$0xff]  ;;  %v727_v51 = vpack.c.bf16 %v1594_v48, %v1593_v47  ;;  %v1597_v53 = vld [vmem:[%s2036_s21 + $0xf1] sm:$0xff]  ;;  %v1598_v54 = vld [vmem:[%s2036_s21 + $0xf9] sm:$0xff] }
  0x12   : > { %v728_v52 = vpack.c.bf16 %v1596_v50, %v1595_v49  ;;  %v1599_v55 = vld [vmem:[%s2036_s21 + $0x101] sm:$0xff]  ;;  %v1600_v56 = vld [vmem:[%s2036_s21 + $0x109] sm:$0xff]  ;;  %v729_v57 = vpack.c.bf16 %v1598_v54, %v1597_v53  ;;  %v1601_v59 = vld [vmem:[%s2036_s21 + $0x111] sm:$0xff] }
  0x13   : > { %1748 = vmatmul.mubr.msk.bf16.gmra.mrb[4].mxu1 %vm256_vm1, %v717_v18  ;;  %v730_v58 = vpack.c.bf16 %v1600_v56, %v1599_v55  ;;  %v1602_v60 = vld [vmem:[%s2036_s21 + $0x119] sm:$0xff]  ;;  %v156_v62 = vld [vmem:[%s2036_s21 + $0x8] sm:$0xff]  ;;  %v157_v4 = vld [vmem:[%s2036_s21 + $0x10] sm:$0xff] }
  0x14   : > { %1816 = vmatmul.mubr.msk.bf16.gmra.mrb[4].mxu0 %vm256_vm1, %v719_v27  ;;  %1751 = vmatprep.mubr.msk.bf16.mxu1 %vm256_vm1, %v718_v22  ;;  %v155_v61 = vld [vmem:[%s2036_s21] sm:$0xff]  ;;  %v1622_v0 = vld [vmem:[%s2036_s21 + $0x2a] sm:$0xff]  ;;  %v731_v1 = vpack.c.bf16 %v1602_v60, %v1601_v59  ;;  %v158_v5 = vld [vmem:[%s2036_s21 + $0x18] sm:$0xff] }
  0x15   : > { %1819 = vmatprep.mubr.msk.bf16.mxu0 %vm256_vm1, %v720_v28  ;;  %v1621_v63 = vld [vmem:[%s2036_s21 + $0x22] sm:$0xff]  ;;  %v187_v2 = vpack.c.bf16 %v156_v62, %v155_v61  ;;  %v1623_v6 = vld [vmem:[%s2036_s21 + $0x32] sm:$0xff]  ;;  %v1624_v7 = vld [vmem:[%s2036_s21 + $0x3a] sm:$0xff]  ;;  %v188_v12 = vpack.c.bf16 %v158_v5, %v157_v4 }
  0x16   : > { %v1012_v3 = vpack.c.bf16 %v1622_v0, %v1621_v63  ;;  %v159_v8 = vld [vmem:[%s2036_s21 + $0x20] sm:$0xff]  ;;  %v160_v9 = vld [vmem:[%s2036_s21 + $0x28] sm:$0xff]  ;;  %v1013_v13 = vpack.c.bf16 %v1624_v7, %v1623_v6  ;;  %v161_v16 = vld [vmem:[%s2036_s21 + $0x30] sm:$0xff] }
  0x17   : > { %v1625_v10 = vld [vmem:[%s2036_s21 + $0x42] sm:$0xff]  ;;  %v1626_v11 = vld [vmem:[%s2036_s21 + $0x4a] sm:$0xff]  ;;  %v189_v14 = vpack.c.bf16 %v160_v9, %v159_v8  ;;  %v162_v17 = vld [vmem:[%s2036_s21 + $0x38] sm:$0xff] }
  0x18   : > { %v1014_v15 = vpack.c.bf16 %v1626_v11, %v1625_v10  ;;  %v1627_v18 = vld [vmem:[%s2036_s21 + $0x52] sm:$0xff]  ;;  %v1628_v19 = vld [vmem:[%s2036_s21 + $0x5a] sm:$0xff]  ;;  %v164_v21 = vld [vmem:[%s2036_s21 + $0x48] sm:$0xff]  ;;  %v190_v24 = vpack.c.bf16 %v162_v17, %v161_v16 }
  0x19   : > { %v163_v20 = vld [vmem:[%s2036_s21 + $0x40] sm:$0xff]  ;;  %v1630_v23 = vld [vmem:[%s2036_s21 + $0x6a] sm:$0xff]  ;;  %v1015_v25 = vpack.c.bf16 %v1628_v19, %v1627_v18  ;;  %v166_v29 = vld [vmem:[%s2036_s21 + $0x58] sm:$0xff] }
  0x1a   : > { %v1629_v22 = vld [vmem:[%s2036_s21 + $0x62] sm:$0xff]  ;;  %v191_v26 = vpack.c.bf16 %v164_v21, %v163_v20  ;;  %v1631_v30 = vld [vmem:[%s2036_s21 + $0x72] sm:$0xff]  ;;  %v1632_v31 = vld [vmem:[%s2036_s21 + $0x7a] sm:$0xff] }
  0x1b   : > { %1752 = vmatmul.mubr.msk.bf16.gmra.mrb[8].mxu1 %vm256_vm1, %v719_v27  ;;  %v1016_v27 = vpack.c.bf16 %v1630_v23, %v1629_v22  ;;  %v167_v32 = vld [vmem:[%s2036_s21 + $0x60] sm:$0xff]  ;;  %v1634_v35 = vld [vmem:[%s2036_s21 + $0x8a] sm:$0xff]  ;;  %v1017_v37 = vpack.c.bf16 %v1632_v31, %v1631_v30  ;;  %v170_v41 = vld [vmem:[%s2036_s21 + $0x78] sm:$0xff] }
  0x1c   : > { %1820 = vmatmul.mubr.msk.bf16.gmra.mrb[8].mxu0 %vm256_vm1, %v721_v33  ;;  %1755 = vmatprep.mubr.msk.bf16.mxu1 %vm256_vm1, %v720_v28  ;;  %v165_v28 = vld [vmem:[%s2036_s21 + $0x50] sm:$0xff]  ;;  %v1636_v43 = vld [vmem:[%s2036_s21 + $0x9a] sm:$0xff]  ;;  %v180_v5 = vld [vmem:[%s2036_s21 + $0xc8] sm:$0xff] }
  0x1d   : > { %1823 = vmatprep.mubr.msk.bf16.mxu0 %vm256_vm1, %v722_v34  ;;  %v192_v36 = vpack.c.bf16 %v166_v29, %v165_v28  ;;  %v1635_v42 = vld [vmem:[%s2036_s21 + $0x92] sm:$0xff]  ;;  %v171_v44 = vld [vmem:[%s2036_s21 + $0x80] sm:$0xff]  ;;  %v1638_v47 = vld [vmem:[%s2036_s21 + $0xaa] sm:$0xff] }
  0x1e   : > { %v1019_v49 = vpack.c.bf16 %v1636_v43, %v1635_v42  ;;  %v174_v53 = vld [vmem:[%s2036_s21 + $0x98] sm:$0xff]  ;;  %v175_v56 = vld [vmem:[%s2036_s21 + $0xa0] sm:$0xff]  ;;  %v1642_v59 = vld [vmem:[%s2036_s21 + $0xca] sm:$0xff] }
  0x1f   : > { %v1639_v54 = vld [vmem:[%s2036_s21 + $0xb2] sm:$0xff]  ;;  %v1640_v55 = vld [vmem:[%s2036_s21 + $0xba] sm:$0xff]  ;;  %v1645_v6 = vld [vmem:[%s2036_s21 + $0xe2] sm:$0xff] }
  0x20   : > { %v1021_v61 = vpack.c.bf16 %v1640_v55, %v1639_v54  ;;  %v177_v0 = vld [vmem:[%s2036_s21 + $0xb0] sm:$0xff]  ;;  %v179_v4 = vld [vmem:[%s2036_s21 + $0xc0] sm:$0xff]  ;;  %v184_v17 = vld [vmem:[%s2036_s21 + $0xe8] sm:$0xff] }
  0x21   : > { %v1646_v7 = vld [vmem:[%s2036_s21 + $0xea] sm:$0xff]  ;;  %v199_v10 = vpack.c.bf16 %v180_v5, %v179_v4  ;;  %v183_v16 = vld [vmem:[%s2036_s21 + $0xe0] sm:$0xff] }
  0x22   : > { %v1024_v11 = vpack.c.bf16 %v1646_v7, %v1645_v6  ;;  %v1649_v18 = vld [vmem:[%s2036_s21 + $0x102] sm:$0xff]  ;;  %v1650_v19 = vld [vmem:[%s2036_s21 + $0x10a] sm:$0xff]  ;;  %v201_v22 = vpack.c.bf16 %v184_v17, %v183_v16 }
  0x23   : > { %1756 = vmatmul.mubr.msk.bf16.gmra.mrb[12].mxu1 %vm256_vm1, %v721_v33  ;;  %v168_v33 = vld [vmem:[%s2036_s21 + $0x68] sm:$0xff]  ;;  %v1026_v23 = vpack.c.bf16 %v1650_v19, %v1649_v18 }
  0x24   : > { %1824 = vmatmul.mubr.msk.bf16.gmra.mrb[12].mxu0 %vm256_vm1, %v723_v39  ;;  %1759 = vmatprep.mubr.msk.bf16.mxu1 %vm256_vm1, %v722_v34  ;;  %v1633_v34 = vld [vmem:[%s2036_s21 + $0x82] sm:$0xff]  ;;  %v193_v38 = vpack.c.bf16 %v168_v33, %v167_v32  ;;  %v2217_v32 = vld [vmem:[%s2325_s2] ss:$0 sm:$0xff] }
  0x25   : > { %1827 = vmatprep.mubr.msk.bf16.mxu0 %vm256_vm1, %v724_v40 }
  0x2b   : > { %1760 = vmatmul.mubr.msk.bf16.gmra.mrb[16].mxu1 %vm256_vm1, %v723_v39  ;;  %v1018_v39 = vpack.c.bf16 %v1634_v35, %v1633_v34 }
  0x2c   : > { %1828 = vmatmul.mubr.msk.bf16.gmra.mrb[16].mxu0 %vm256_vm1, %v725_v45  ;;  %1763 = vmatprep.mubr.msk.bf16.mxu1 %vm256_vm1, %v724_v40  ;;  %v169_v40 = vld [vmem:[%s2036_s21 + $0x70] sm:$0xff] }
  0x2d   : > { %1831 = vmatprep.mubr.msk.bf16.mxu0 %vm256_vm1, %v726_v46  ;;  %v194_v48 = vpack.c.bf16 %v170_v41, %v169_v40 }
  0x33   : > { %1764 = vmatmul.mubr.msk.bf16.gmra.mrb[20].mxu1 %vm256_vm1, %v725_v45  ;;  %v172_v45 = vld [vmem:[%s2036_s21 + $0x88] sm:$0xff] }
  0x34   : > { %1832 = vmatmul.mubr.msk.bf16.gmra.mrb[20].mxu0 %vm256_vm1, %v727_v51  ;;  %1767 = vmatprep.mubr.msk.bf16.mxu1 %vm256_vm1, %v726_v46  ;;  %v1637_v46 = vld [vmem:[%s2036_s21 + $0xa2] sm:$0xff]  ;;  %v195_v50 = vpack.c.bf16 %v172_v45, %v171_v44 }
  0x35   : > { %1835 = vmatprep.mubr.msk.bf16.mxu0 %vm256_vm1, %v728_v52 }
  0x3b   : > { %1768 = vmatmul.mubr.msk.bf16.gmra.mrb[24].mxu1 %vm256_vm1, %v727_v51  ;;  %v1020_v51 = vpack.c.bf16 %v1638_v47, %v1637_v46 }
  0x3c   : > { %1836 = vmatmul.mubr.msk.bf16.gmra.mrb[24].mxu0 %vm256_vm1, %v729_v57  ;;  %1771 = vmatprep.mubr.msk.bf16.mxu1 %vm256_vm1, %v728_v52  ;;  %v173_v52 = vld [vmem:[%s2036_s21 + $0x90] sm:$0xff] }
  0x3d   : > { %1839 = vmatprep.mubr.msk.bf16.mxu0 %vm256_vm1, %v730_v58  ;;  %v1641_v58 = vld [vmem:[%s2036_s21 + $0xc2] sm:$0xff]  ;;  %v196_v60 = vpack.c.bf16 %v174_v53, %v173_v52 }
  0x3e   : > { %v1022_v63 = vpack.c.bf16 %v1642_v59, %v1641_v58 }
  0x43   : > { %1772 = vmatmul.mubr.msk.bf16.gmra.mrb[28].mxu1 %vm256_vm1, %v729_v57  ;;  %v176_v57 = vld [vmem:[%s2036_s21 + $0xa8] sm:$0xff] }
  0x44   : > { %1840 = vmatmul.mubr.msk.bf16.gmra.mrb[28].mxu0 %vm256_vm1, %v731_v1  ;;  %1777 = vmatprep.mubr.msk.bf16.mxu1 %vm256_vm1, %v187_v2  ;;  %v197_v62 = vpack.c.bf16 %v176_v57, %v175_v56  ;;  %v178_v1 = vld [vmem:[%s2036_s21 + $0xb8] sm:$0xff] }
  0x45   : > { %1845 = vmatprep.mubr.msk.bf16.mxu0 %vm256_vm1, %v1012_v3  ;;  %v1643_v2 = vld [vmem:[%s2036_s21 + $0xd2] sm:$0xff]  ;;  %v1644_v3 = vld [vmem:[%s2036_s21 + $0xda] sm:$0xff]  ;;  %v198_v8 = vpack.c.bf16 %v178_v1, %v177_v0 }
  0x46   : > { %v1023_v9 = vpack.c.bf16 %v1644_v3, %v1643_v2 }
  0x4b   : > { %1778 = vmatmul.mubr.msk.bf16.vlgmr.msra.gmra.mrb[0].mxu1 %vm256_vm1, %v188_v12  ;;  %v181_v12 = vld [vmem:[%s2036_s21 + $0xd0] sm:$0xff] }
  0x4c   : > { %1846 = vmatmul.mubr.msk.bf16.vlgmr.msra.gmra.mrb[0].mxu0 %vm256_vm1, %v1013_v13  ;;  %1781 = vmatprep.mubr.msk.bf16.mxu1 %vm256_vm1, %v189_v14  ;;  %v182_v13 = vld [vmem:[%s2036_s21 + $0xd8] sm:$0xff] }
  0x4d   : > { %1849 = vmatprep.mubr.msk.bf16.mxu0 %vm256_vm1, %v1014_v15  ;;  %v1647_v14 = vld [vmem:[%s2036_s21 + $0xf2] sm:$0xff]  ;;  %v1648_v15 = vld [vmem:[%s2036_s21 + $0xfa] sm:$0xff]  ;;  %v200_v20 = vpack.c.bf16 %v182_v13, %v181_v12 }
  0x4e   : > { %v1025_v21 = vpack.c.bf16 %v1648_v15, %v1647_v14 }
  0x53   : > { %1782 = vmatmul.mubr.msk.bf16.gmra.mrb[4].mxu1 %vm256_vm1, %v190_v24  ;;  %v185_v24 = vld [vmem:[%s2036_s21 + $0xf0] sm:$0xff] }
  0x54   : > { %1850 = vmatmul.mubr.msk.bf16.gmra.mrb[4].mxu0 %vm256_vm1, %v1015_v25  ;;  %1785 = vmatprep.mubr.msk.bf16.mxu1 %vm256_vm1, %v191_v26  ;;  %v186_v25 = vld [vmem:[%s2036_s21 + $0xf8] sm:$0xff] }
  0x55   : > { %1853 = vmatprep.mubr.msk.bf16.mxu0 %vm256_vm1, %v1016_v27  ;;  %v1651_v26 = vld [vmem:[%s2036_s21 + $0x112] sm:$0xff]  ;;  %v1652_v27 = vld [vmem:[%s2036_s21 + $0x11a] sm:$0xff]  ;;  %v202_v28 = vpack.c.bf16 %v186_v25, %v185_v24 }
  0x56   : > { %v1027_v29 = vpack.c.bf16 %v1652_v27, %v1651_v26 }
  0x5b   : > { %1786 = vmatmul.mubr.msk.bf16.gmra.mrb[8].mxu1 %vm256_vm1, %v192_v36 }
  0x5c   : > { %1854 = vmatmul.mubr.msk.bf16.gmra.mrb[8].mxu0 %vm256_vm1, %v1017_v37  ;;  %1789 = vmatprep.mubr.msk.bf16.mxu1 %vm256_vm1, %v193_v38 }
  0x5d   : > { %1857 = vmatprep.mubr.msk.bf16.mxu0 %vm256_vm1, %v1018_v39 }
  0x63   : > { %1790 = vmatmul.mubr.msk.bf16.gmra.mrb[12].mxu1 %vm256_vm1, %v194_v48 }
  0x64   : > { %1858 = vmatmul.mubr.msk.bf16.gmra.mrb[12].mxu0 %vm256_vm1, %v1019_v49  ;;  %1793 = vmatprep.mubr.msk.bf16.mxu1 %vm256_vm1, %v195_v50 }
  0x65   : > { %1861 = vmatprep.mubr.msk.bf16.mxu0 %vm256_vm1, %v1020_v51 }
  0x6b   : > { %1794 = vmatmul.mubr.msk.bf16.gmra.mrb[16].mxu1 %vm256_vm1, %v196_v60 }
  0x6c   : > { %1862 = vmatmul.mubr.msk.bf16.gmra.mrb[16].mxu0 %vm256_vm1, %v1021_v61  ;;  %1797 = vmatprep.mubr.msk.bf16.mxu1 %vm256_vm1, %v197_v62 }
  0x6d   : > { %1865 = vmatprep.mubr.msk.bf16.mxu0 %vm256_vm1, %v1022_v63 }
  0x73   : > { %1798 = vmatmul.mubr.msk.bf16.gmra.mrb[20].mxu1 %vm256_vm1, %v198_v8 }
  0x74   : > { %1866 = vmatmul.mubr.msk.bf16.gmra.mrb[20].mxu0 %vm256_vm1, %v1023_v9  ;;  %1801 = vmatprep.mubr.msk.bf16.mxu1 %vm256_vm1, %v199_v10 }
  0x75   : > { %1869 = vmatprep.mubr.msk.bf16.mxu0 %vm256_vm1, %v1024_v11 }
  0x7b   : > { %1802 = vmatmul.mubr.msk.bf16.gmra.mrb[24].mxu1 %vm256_vm1, %v200_v20 }
  0x7c   : > { %1870 = vmatmul.mubr.msk.bf16.gmra.mrb[24].mxu0 %vm256_vm1, %v1025_v21  ;;  %1805 = vmatprep.mubr.msk.bf16.mxu1 %vm256_vm1, %v201_v22 }
  0x7d   : > { %1873 = vmatprep.mubr.msk.bf16.mxu0 %vm256_vm1, %v1026_v23 }
  0x83   : > { %1806 = vmatmul.mubr.msk.bf16.gmra.mrb[28].mxu1 %vm256_vm1, %v202_v28 }
  0x84   : > { %1874 = vmatmul.mubr.msk.bf16.gmra.mrb[28].mxu0 %vm256_vm1, %v1027_v29 }
 0x11e   : > { %v1779_v30 = vpop.f32.mrb[0].mxu1 }
 0x11f   : > { %v1847_v31 = vpop.f32.mrb[0].mxu0  ;;  %v555_v34 = vpop.f32.mrb[1].mxu1 }
 0x120   : > { %v1877_v33 = vadd.f32 %v1847_v31, %v1779_v30  ;;  %v1115_v35 = vpop.f32.mrb[1].mxu0  ;;  %v1780_v37 = vpop.f32.mrb[2].mxu1 }
 0x121   : > { %v1878_v36 = vadd.f32 %v1115_v35, %v555_v34  ;;  %v1848_v38 = vpop.f32.mrb[2].mxu0  ;;  %v558_v41 = vpop.f32.mrb[3].mxu1 }
 0x122   : > { %v1283_v39 = vadd.f32 %v1877_v33, %v2217_v32  ;;  %v1879_v40 = vadd.f32 %v1848_v38, %v1780_v37  ;;  %v1118_v42 = vpop.f32.mrb[3].mxu0 }
 0x123   : > { %v1281_v43 = vadd.f32 %v1878_v36, %v2217_v32  ;;  %v1880_v44 = vadd.f32 %v1118_v42, %v558_v41 }
 0x124   : > { %vm1315_vm2 = vcmp.ge.f32.partialorder %v1283_v39, 0.0  ;;  %v1347_v45 = vmul.f32 0.01, %v1283_v39  ;;  %v1284_v46 = vadd.f32 %v1879_v40, %v2217_v32 }
 0x125   : > { %vm1313_vm4 = vcmp.ge.f32.partialorder %v1281_v43, 0.0  ;;  %v1345_v47 = vmul.f32 0.01, %v1281_v43  ;;  %v1282_v48 = vadd.f32 %v1880_v44, %v2217_v32 }
 0x126   : > { %v1379_v49 = vsel %vm1315_vm2, %v1283_v39, %v1347_v45  ;;  %vm1316_vm5 = vcmp.ge.f32.partialorder %v1284_v46, 0.0  ;;  %v1348_v50 = vmul.f32 0.01, %v1284_v46  ;;  %v1783_v53 = vpop.f32.mrb[4].mxu1 }
 0x127   : > { %1412 = vst.msk [vmem:[%s2224_s5 + $0x10] sm:$0xff] %vm1409_vm3, %v1379_v49  ;;  %v1377_v51 = vsel %vm1313_vm4, %v1281_v43, %v1345_v47  ;;  %vm1314_vm6 = vcmp.ge.f32.partialorder %v1282_v48, 0.0  ;;  %v1346_v52 = vmul.f32 0.01, %v1282_v48  ;;  %v1851_v54 = vpop.f32.mrb[4].mxu0  ;;  %v571_v57 = vpop.f32.mrb[5].mxu1 }
 0x128   : > { %1410 = vst.msk [vmem:[%s2224_s5] sm:$0xff] %vm1409_vm3, %v1377_v51  ;;  %v1380_v55 = vsel %vm1316_vm5, %v1284_v46, %v1348_v50  ;;  %v1881_v56 = vadd.f32 %v1851_v54, %v1783_v53  ;;  %v1131_v58 = vpop.f32.mrb[5].mxu0  ;;  %v1784_v61 = vpop.f32.mrb[6].mxu1 }
 0x129   : > { %1413 = vst.msk [vmem:[%s2224_s5 + $0x18] sm:$0xff] %vm1409_vm3, %v1380_v55  ;;  %v1378_v59 = vsel %vm1314_vm6, %v1282_v48, %v1346_v52  ;;  %v1882_v60 = vadd.f32 %v1131_v58, %v571_v57  ;;  %v1852_v62 = vpop.f32.mrb[6].mxu0  ;;  %v574_v1 = vpop.f32.mrb[7].mxu1 }
 0x12a   : > { %1411 = vst.msk [vmem:[%s2224_s5 + $0x8] sm:$0xff] %vm1409_vm3, %v1378_v59  ;;  %v1287_v63 = vadd.f32 %v1881_v56, %v2217_v32  ;;  %v1883_v0 = vadd.f32 %v1852_v62, %v1784_v61  ;;  %v1134_v2 = vpop.f32.mrb[7].mxu0 }
 0x12b   : > { %v1285_v3 = vadd.f32 %v1882_v60, %v2217_v32  ;;  %v1884_v4 = vadd.f32 %v1134_v2, %v574_v1 }
 0x12c   : > { %vm1319_vm7 = vcmp.ge.f32.partialorder %v1287_v63, 0.0  ;;  %v1351_v5 = vmul.f32 0.01, %v1287_v63  ;;  %v1288_v6 = vadd.f32 %v1883_v0, %v2217_v32 }
 0x12d   : > { %vm1317_vm8 = vcmp.ge.f32.partialorder %v1285_v3, 0.0  ;;  %v1349_v7 = vmul.f32 0.01, %v1285_v3  ;;  %v1286_v8 = vadd.f32 %v1884_v4, %v2217_v32 }
 0x12e   : > { %v1383_v9 = vsel %vm1319_vm7, %v1287_v63, %v1351_v5  ;;  %vm1320_vm9 = vcmp.ge.f32.partialorder %v1288_v6, 0.0  ;;  %v1352_v10 = vmul.f32 0.01, %v1288_v6  ;;  %v1787_v13 = vpop.f32.mrb[8].mxu1 }
 0x12f   : > { %1416 = vst.msk [vmem:[%s2224_s5 + $0x30] sm:$0xff] %vm1409_vm3, %v1383_v9  ;;  %v1381_v11 = vsel %vm1317_vm8, %v1285_v3, %v1349_v7  ;;  %vm1318_vm10 = vcmp.ge.f32.partialorder %v1286_v8, 0.0  ;;  %v1350_v12 = vmul.f32 0.01, %v1286_v8  ;;  %v1855_v14 = vpop.f32.mrb[8].mxu0  ;;  %v587_v17 = vpop.f32.mrb[9].mxu1 }
 0x130   : > { %1414 = vst.msk [vmem:[%s2224_s5 + $0x20] sm:$0xff] %vm1409_vm3, %v1381_v11  ;;  %v1384_v15 = vsel %vm1320_vm9, %v1288_v6, %v1352_v10  ;;  %v1885_v16 = vadd.f32 %v1855_v14, %v1787_v13  ;;  %v1147_v18 = vpop.f32.mrb[9].mxu0  ;;  %v1788_v21 = vpop.f32.mrb[10].mxu1 }
 0x131   : > { %1417 = vst.msk [vmem:[%s2224_s5 + $0x38] sm:$0xff] %vm1409_vm3, %v1384_v15  ;;  %v1382_v19 = vsel %vm1318_vm10, %v1286_v8, %v1350_v12  ;;  %v1886_v20 = vadd.f32 %v1147_v18, %v587_v17  ;;  %v1856_v22 = vpop.f32.mrb[10].mxu0  ;;  %v590_v25 = vpop.f32.mrb[11].mxu1 }
 0x132   : > { %1415 = vst.msk [vmem:[%s2224_s5 + $0x28] sm:$0xff] %vm1409_vm3, %v1382_v19  ;;  %v1291_v23 = vadd.f32 %v1885_v16, %v2217_v32  ;;  %v1887_v24 = vadd.f32 %v1856_v22, %v1788_v21  ;;  %v1150_v26 = vpop.f32.mrb[11].mxu0 }
 0x133   : > { %v1289_v27 = vadd.f32 %v1886_v20, %v2217_v32  ;;  %v1888_v28 = vadd.f32 %v1150_v26, %v590_v25 }
 0x134   : > { %vm1323_vm11 = vcmp.ge.f32.partialorder %v1291_v23, 0.0  ;;  %v1355_v29 = vmul.f32 0.01, %v1291_v23  ;;  %v1292_v30 = vadd.f32 %v1887_v24, %v2217_v32 }
 0x135   : > { %vm1321_vm12 = vcmp.ge.f32.partialorder %v1289_v27, 0.0  ;;  %v1353_v31 = vmul.f32 0.01, %v1289_v27  ;;  %v1290_v33 = vadd.f32 %v1888_v28, %v2217_v32 }
 0x136   : > { %v1387_v34 = vsel %vm1323_vm11, %v1291_v23, %v1355_v29  ;;  %vm1324_vm13 = vcmp.ge.f32.partialorder %v1292_v30, 0.0  ;;  %v1356_v35 = vmul.f32 0.01, %v1292_v30  ;;  %v1791_v38 = vpop.f32.mrb[12].mxu1 }
 0x137   : > { %1420 = vst.msk [vmem:[%s2224_s5 + $0x50] sm:$0xff] %vm1409_vm3, %v1387_v34  ;;  %v1385_v36 = vsel %vm1321_vm12, %v1289_v27, %v1353_v31  ;;  %vm1322_vm14 = vcmp.ge.f32.partialorder %v1290_v33, 0.0  ;;  %v1354_v37 = vmul.f32 0.01, %v1290_v33  ;;  %v1859_v39 = vpop.f32.mrb[12].mxu0  ;;  %v603_v42 = vpop.f32.mrb[13].mxu1 }
 0x138   : > { %1418 = vst.msk [vmem:[%s2224_s5 + $0x40] sm:$0xff] %vm1409_vm3, %v1385_v36  ;;  %v1388_v40 = vsel %vm1324_vm13, %v1292_v30, %v1356_v35  ;;  %v1889_v41 = vadd.f32 %v1859_v39, %v1791_v38  ;;  %v1163_v43 = vpop.f32.mrb[13].mxu0  ;;  %v1792_v46 = vpop.f32.mrb[14].mxu1 }
 0x139   : > { %1421 = vst.msk [vmem:[%s2224_s5 + $0x58] sm:$0xff] %vm1409_vm3, %v1388_v40  ;;  %v1386_v44 = vsel %vm1322_vm14, %v1290_v33, %v1354_v37  ;;  %v1890_v45 = vadd.f32 %v1163_v43, %v603_v42  ;;  %v1860_v47 = vpop.f32.mrb[14].mxu0  ;;  %v606_v50 = vpop.f32.mrb[15].mxu1 }
 0x13a   : > { %1419 = vst.msk [vmem:[%s2224_s5 + $0x48] sm:$0xff] %vm1409_vm3, %v1386_v44  ;;  %v1295_v48 = vadd.f32 %v1889_v41, %v2217_v32  ;;  %v1891_v49 = vadd.f32 %v1860_v47, %v1792_v46  ;;  %v1166_v51 = vpop.f32.mrb[15].mxu0 }
 0x13b   : > { %v1293_v52 = vadd.f32 %v1890_v45, %v2217_v32  ;;  %v1892_v53 = vadd.f32 %v1166_v51, %v606_v50 }
 0x13c   : > { %vm1327_vm15 = vcmp.ge.f32.partialorder %v1295_v48, 0.0  ;;  %v1359_v54 = vmul.f32 0.01, %v1295_v48  ;;  %v1296_v55 = vadd.f32 %v1891_v49, %v2217_v32 }
 0x13d   : > { %vm1325_vm0 = vcmp.ge.f32.partialorder %v1293_v52, 0.0  ;;  %v1357_v56 = vmul.f32 0.01, %v1293_v52  ;;  %v1294_v57 = vadd.f32 %v1892_v53, %v2217_v32 }
 0x13e   : > { %v1391_v58 = vsel %vm1327_vm15, %v1295_v48, %v1359_v54  ;;  %vm1328_vm1 = vcmp.ge.f32.partialorder %v1296_v55, 0.0  ;;  %v1360_v59 = vmul.f32 0.01, %v1296_v55  ;;  %v1795_v62 = vpop.f32.mrb[16].mxu1 }
 0x13f   : > { %1424 = vst.msk [vmem:[%s2224_s5 + $0x70] sm:$0xff] %vm1409_vm3, %v1391_v58  ;;  %v1389_v60 = vsel %vm1325_vm0, %v1293_v52, %v1357_v56  ;;  %vm1326_vm2 = vcmp.ge.f32.partialorder %v1294_v57, 0.0  ;;  %v1358_v61 = vmul.f32 0.01, %v1294_v57  ;;  %v1863_v63 = vpop.f32.mrb[16].mxu0  ;;  %v619_v2 = vpop.f32.mrb[17].mxu1 }
 0x140   : > { %1422 = vst.msk [vmem:[%s2224_s5 + $0x60] sm:$0xff] %vm1409_vm3, %v1389_v60  ;;  %v1392_v0 = vsel %vm1328_vm1, %v1296_v55, %v1360_v59  ;;  %v1893_v1 = vadd.f32 %v1863_v63, %v1795_v62  ;;  %v1179_v3 = vpop.f32.mrb[17].mxu0  ;;  %v1796_v6 = vpop.f32.mrb[18].mxu1 }
 0x141   : > { %1425 = vst.msk [vmem:[%s2224_s5 + $0x78] sm:$0xff] %vm1409_vm3, %v1392_v0  ;;  %v1390_v4 = vsel %vm1326_vm2, %v1294_v57, %v1358_v61  ;;  %v1894_v5 = vadd.f32 %v1179_v3, %v619_v2  ;;  %v1864_v7 = vpop.f32.mrb[18].mxu0  ;;  %v622_v10 = vpop.f32.mrb[19].mxu1 }
 0x142   : > { %1423 = vst.msk [vmem:[%s2224_s5 + $0x68] sm:$0xff] %vm1409_vm3, %v1390_v4  ;;  %v1299_v8 = vadd.f32 %v1893_v1, %v2217_v32  ;;  %v1895_v9 = vadd.f32 %v1864_v7, %v1796_v6  ;;  %v1182_v11 = vpop.f32.mrb[19].mxu0 }
 0x143   : > { %v1297_v12 = vadd.f32 %v1894_v5, %v2217_v32  ;;  %v1896_v13 = vadd.f32 %v1182_v11, %v622_v10 }
 0x144   : > { %vm1331_vm4 = vcmp.ge.f32.partialorder %v1299_v8, 0.0  ;;  %v1363_v14 = vmul.f32 0.01, %v1299_v8  ;;  %v1300_v15 = vadd.f32 %v1895_v9, %v2217_v32 }
 0x145   : > { %vm1329_vm5 = vcmp.ge.f32.partialorder %v1297_v12, 0.0  ;;  %v1361_v16 = vmul.f32 0.01, %v1297_v12  ;;  %v1298_v17 = vadd.f32 %v1896_v13, %v2217_v32 }
 0x146   : > { %v1395_v18 = vsel %vm1331_vm4, %v1299_v8, %v1363_v14  ;;  %vm1332_vm6 = vcmp.ge.f32.partialorder %v1300_v15, 0.0  ;;  %v1364_v19 = vmul.f32 0.01, %v1300_v15  ;;  %v1799_v22 = vpop.f32.mrb[20].mxu1 }
 0x147   : > { %1428 = vst.msk [vmem:[%s2224_s5 + $0x90] sm:$0xff] %vm1409_vm3, %v1395_v18  ;;  %v1393_v20 = vsel %vm1329_vm5, %v1297_v12, %v1361_v16  ;;  %vm1330_vm7 = vcmp.ge.f32.partialorder %v1298_v17, 0.0  ;;  %v1362_v21 = vmul.f32 0.01, %v1298_v17  ;;  %v1867_v23 = vpop.f32.mrb[20].mxu0  ;;  %v635_v26 = vpop.f32.mrb[21].mxu1 }
 0x148   : > { %1426 = vst.msk [vmem:[%s2224_s5 + $0x80] sm:$0xff] %vm1409_vm3, %v1393_v20  ;;  %v1396_v24 = vsel %vm1332_vm6, %v1300_v15, %v1364_v19  ;;  %v1897_v25 = vadd.f32 %v1867_v23, %v1799_v22  ;;  %v1195_v27 = vpop.f32.mrb[21].mxu0  ;;  %v1800_v30 = vpop.f32.mrb[22].mxu1 }
 0x149   : > { %1429 = vst.msk [vmem:[%s2224_s5 + $0x98] sm:$0xff] %vm1409_vm3, %v1396_v24  ;;  %v1394_v28 = vsel %vm1330_vm7, %v1298_v17, %v1362_v21  ;;  %v1898_v29 = vadd.f32 %v1195_v27, %v635_v26  ;;  %v1868_v31 = vpop.f32.mrb[22].mxu0  ;;  %v638_v35 = vpop.f32.mrb[23].mxu1 }
 0x14a   : > { %1427 = vst.msk [vmem:[%s2224_s5 + $0x88] sm:$0xff] %vm1409_vm3, %v1394_v28  ;;  %v1303_v33 = vadd.f32 %v1897_v25, %v2217_v32  ;;  %v1899_v34 = vadd.f32 %v1868_v31, %v1800_v30  ;;  %v1198_v36 = vpop.f32.mrb[23].mxu0 }
 0x14b   : > { %v1301_v37 = vadd.f32 %v1898_v29, %v2217_v32  ;;  %v1900_v38 = vadd.f32 %v1198_v36, %v638_v35 }
 0x14c   : > { %vm1335_vm8 = vcmp.ge.f32.partialorder %v1303_v33, 0.0  ;;  %v1367_v39 = vmul.f32 0.01, %v1303_v33  ;;  %v1304_v40 = vadd.f32 %v1899_v34, %v2217_v32 }
 0x14d   : > { %vm1333_vm9 = vcmp.ge.f32.partialorder %v1301_v37, 0.0  ;;  %v1365_v41 = vmul.f32 0.01, %v1301_v37  ;;  %v1302_v42 = vadd.f32 %v1900_v38, %v2217_v32 }
 0x14e   : > { %v1399_v43 = vsel %vm1335_vm8, %v1303_v33, %v1367_v39  ;;  %vm1336_vm10 = vcmp.ge.f32.partialorder %v1304_v40, 0.0  ;;  %v1368_v44 = vmul.f32 0.01, %v1304_v40  ;;  %v1803_v47 = vpop.f32.mrb[24].mxu1 }
 0x14f   : > { %1432 = vst.msk [vmem:[%s2224_s5 + $0xb0] sm:$0xff] %vm1409_vm3, %v1399_v43  ;;  %v1397_v45 = vsel %vm1333_vm9, %v1301_v37, %v1365_v41  ;;  %vm1334_vm11 = vcmp.ge.f32.partialorder %v1302_v42, 0.0  ;;  %v1366_v46 = vmul.f32 0.01, %v1302_v42  ;;  %v1871_v48 = vpop.f32.mrb[24].mxu0  ;;  %v651_v51 = vpop.f32.mrb[25].mxu1 }
 0x150   : > { %1430 = vst.msk [vmem:[%s2224_s5 + $0xa0] sm:$0xff] %vm1409_vm3, %v1397_v45  ;;  %v1400_v49 = vsel %vm1336_vm10, %v1304_v40, %v1368_v44  ;;  %v1901_v50 = vadd.f32 %v1871_v48, %v1803_v47  ;;  %v1211_v52 = vpop.f32.mrb[25].mxu0  ;;  %v1804_v55 = vpop.f32.mrb[26].mxu1 }
 0x151   : > { %1433 = vst.msk [vmem:[%s2224_s5 + $0xb8] sm:$0xff] %vm1409_vm3, %v1400_v49  ;;  %v1398_v53 = vsel %vm1334_vm11, %v1302_v42, %v1366_v46  ;;  %v1902_v54 = vadd.f32 %v1211_v52, %v651_v51  ;;  %v1872_v56 = vpop.f32.mrb[26].mxu0  ;;  %v654_v59 = vpop.f32.mrb[27].mxu1 }
 0x152   : > { %1431 = vst.msk [vmem:[%s2224_s5 + $0xa8] sm:$0xff] %vm1409_vm3, %v1398_v53  ;;  %v1307_v57 = vadd.f32 %v1901_v50, %v2217_v32  ;;  %v1903_v58 = vadd.f32 %v1872_v56, %v1804_v55  ;;  %v1214_v60 = vpop.f32.mrb[27].mxu0 }
 0x153   : > { %v1305_v61 = vadd.f32 %v1902_v54, %v2217_v32  ;;  %v1904_v62 = vadd.f32 %v1214_v60, %v654_v59 }
 0x154   : > { %vm1339_vm12 = vcmp.ge.f32.partialorder %v1307_v57, 0.0  ;;  %v1371_v63 = vmul.f32 0.01, %v1307_v57  ;;  %v1308_v0 = vadd.f32 %v1903_v58, %v2217_v32 }
 0x155   : > { %vm1337_vm13 = vcmp.ge.f32.partialorder %v1305_v61, 0.0  ;;  %v1369_v1 = vmul.f32 0.01, %v1305_v61  ;;  %v1306_v2 = vadd.f32 %v1904_v62, %v2217_v32 }
 0x156   : > { %v1403_v3 = vsel %vm1339_vm12, %v1307_v57, %v1371_v63  ;;  %vm1340_vm14 = vcmp.ge.f32.partialorder %v1308_v0, 0.0  ;;  %v1372_v4 = vmul.f32 0.01, %v1308_v0  ;;  %v1807_v7 = vpop.f32.mrb[28].mxu1 }
 0x157   : > { %1436 = vst.msk [vmem:[%s2224_s5 + $0xd0] sm:$0xff] %vm1409_vm3, %v1403_v3  ;;  %v1401_v5 = vsel %vm1337_vm13, %v1305_v61, %v1369_v1  ;;  %vm1338_vm15 = vcmp.ge.f32.partialorder %v1306_v2, 0.0  ;;  %v1370_v6 = vmul.f32 0.01, %v1306_v2  ;;  %v1875_v8 = vpop.f32.mrb[28].mxu0  ;;  %v667_v11 = vpop.f32.mrb[29].mxu1 }
 0x158   : > { %1434 = vst.msk [vmem:[%s2224_s5 + $0xc0] sm:$0xff] %vm1409_vm3, %v1401_v5  ;;  %v1404_v9 = vsel %vm1340_vm14, %v1308_v0, %v1372_v4  ;;  %v1905_v10 = vadd.f32 %v1875_v8, %v1807_v7  ;;  %v1227_v12 = vpop.f32.mrb[29].mxu0  ;;  %v1808_v15 = vpop.f32.mrb[30].mxu1 }
 0x159   : > { %1437 = vst.msk [vmem:[%s2224_s5 + $0xd8] sm:$0xff] %vm1409_vm3, %v1404_v9  ;;  %v1402_v13 = vsel %vm1338_vm15, %v1306_v2, %v1370_v6  ;;  %v1906_v14 = vadd.f32 %v1227_v12, %v667_v11  ;;  %v1876_v16 = vpop.f32.mrb[30].mxu0  ;;  %v670_v19 = vpop.f32.mrb[31].mxu1 }
 0x15a   : > { %1435 = vst.msk [vmem:[%s2224_s5 + $0xc8] sm:$0xff] %vm1409_vm3, %v1402_v13  ;;  %v1311_v17 = vadd.f32 %v1905_v10, %v2217_v32  ;;  %v1907_v18 = vadd.f32 %v1876_v16, %v1808_v15  ;;  %v1230_v20 = vpop.f32.mrb[31].mxu0 }
 0x15b   : > { %v1309_v21 = vadd.f32 %v1906_v14, %v2217_v32  ;;  %v1908_v22 = vadd.f32 %v1230_v20, %v670_v19 }
 0x15c   : > { %vm1343_vm0 = vcmp.ge.f32.partialorder %v1311_v17, 0.0  ;;  %v1375_v23 = vmul.f32 0.01, %v1311_v17  ;;  %v1312_v24 = vadd.f32 %v1907_v18, %v2217_v32 }
 0x15d   : > { %vm1341_vm1 = vcmp.ge.f32.partialorder %v1309_v21, 0.0  ;;  %v1373_v25 = vmul.f32 0.01, %v1309_v21  ;;  %v1310_v26 = vadd.f32 %v1908_v22, %v2217_v32 }
 0x15e   : > { %v1407_v27 = vsel %vm1343_vm0, %v1311_v17, %v1375_v23  ;;  %vm1344_vm2 = vcmp.ge.f32.partialorder %v1312_v24, 0.0  ;;  %v1376_v28 = vmul.f32 0.01, %v1312_v24 }
 0x15f   : > { %1440 = vst.msk [vmem:[%s2224_s5 + $0xf0] sm:$0xff] %vm1409_vm3, %v1407_v27  ;;  %v1405_v29 = vsel %vm1341_vm1, %v1309_v21, %v1373_v25  ;;  %vm1342_vm4 = vcmp.ge.f32.partialorder %v1310_v26, 0.0  ;;  %v1374_v30 = vmul.f32 0.01, %v1310_v26 }
 0x160   : > { %1438 = vst.msk [vmem:[%s2224_s5 + $0xe0] sm:$0xff] %vm1409_vm3, %v1405_v29  ;;  %v1408_v31 = vsel %vm1344_vm2, %v1312_v24, %v1376_v28 }
 0x161   : > { %1441 = vst.msk [vmem:[%s2224_s5 + $0xf8] sm:$0xff] %vm1409_vm3, %v1408_v31  ;;  %v1406_v33 = vsel %vm1342_vm4, %v1310_v26, %v1374_v30 }
 0x162   : > { %1439 = vst.msk [vmem:[%s2224_s5 + $0xe8] sm:$0xff] %vm1409_vm3, %v1406_v33 }
 0x163 PF: > { %s13_s12 = sadd.s32 1, %s1991_s12  }
 0x164   : > { %p10_p4 = scmp.ge.s32.totalorder %s13_s12, 11  }
 0x166   :  { %12 = sbr.rel (!%p10_p4) target bundleno = 1 (0x1), region = 66 }

// kernel: vanilla_vae_forward.25
= control target key start
LH: loop header
LB: loop body
LE: loop exit
PB: predicated region body
PF: predicated region fallthrough
CT: control target
= control target key end

     0   :  { %s3874_s12 = smov 0   ;;  %s4925_s0 = inlined_call_operand.vmem [shape: f32[9352,8], index: 0, kind: input, shape index: {}]   ;;  %s4926_s1 = inlined_call_operand.vmem [shape: bf16[9,3,8], index: 1, kind: input, shape index: {}]   ;;  %s4927_s2 = inlined_call_operand.vmem [shape: f32[3,1], index: 2, kind: input, shape index: {}]   ;;  %s4928_s3 = inlined_call_operand.vmem [shape: f32[3,9216], index: 3, kind: output, shape index: {}]  }
   0x1 LB: > { %s2804_s13 = sadd.s32 4294967295, %s3851_s12   ;;  %p2807_p0 = scmp.ge.s32.totalorder %s3851_s12, 1  ;;  %s3851_s12 = sphi %s3874_s12, %s13_s12  }
   0x2   : > { %p127_p1 = scmp.lt.s32.totalorder %s3851_s12, 19 }
   0x4   : > { %p128_p2 = pnand %p2807_p0, %p127_p1 }
   0x5   : > { %s2810_s14 = sshll.u32 (!%p128_p2), %s2804_s13, 9  ;;  %vm352_vm0 = vcmask (!%p128_p2), 64512   ;;  %v3887_v0 = vld [vmem:[%s4926_s1 + $0x2] sm:$0x3] (!%p128_p2)  ;;  %s2808_s11 = sshll.u32 (!%p128_p2), %s2804_s13, 2 }
   0x6   : > { %131 = sbr.rel (%p128_p2) target bundleno = 821 (0x335), region = 32  ;;  %s3892_s19 = scalar_lea.vmem (!%p128_p2), %s4925_s0, %s2810_s14  ;;  %3375 = vmatprep.mubr.msk.bf16.mxu0 (!%p128_p2), %vm352_vm0, %v3887_v0  ;;  %3393 = vmatprep.mubr.msk.bf16.mxu1 (!%p128_p2), %vm352_vm0, %v3887_v0 }
   0x7   : > { %v2828_v1 = vld [vmem:[%s3892_s19 + $0x81] sm:$0xff] (!%p128_p2)  ;;  %v2829_v2 = vld [vmem:[%s3892_s19 + $0x89] sm:$0xff] (!%p128_p2)  ;;  %v2830_v12 = vld [vmem:[%s3892_s19 + $0x91] sm:$0xff] (!%p128_p2)  ;;  %p147_p3 = scmp.lt.s32.totalorder (!%p128_p2), %s2808_s11, 71 }
   0x8   : > { %v2860_v3 = vld [vmem:[%s3892_s19 + $0x181] sm:$0xff] (!%p128_p2)  ;;  %v326_v4 = vpack.c.bf16 (!%p128_p2), %v2829_v2, %v2828_v1  ;;  %v2861_v5 = vld [vmem:[%s3892_s19 + $0x189] sm:$0xff] (!%p128_p2)  ;;  %v2831_v14 = vld [vmem:[%s3892_s19 + $0x99] sm:$0xff] (!%p128_p2) }
   0x9   : > { %v2812_v6 = vld [vmem:[%s3892_s19 + $0x1] sm:$0xff] (!%p128_p2)  ;;  %v2813_v7 = vld [vmem:[%s3892_s19 + $0x9] sm:$0xff] (!%p128_p2)  ;;  %v342_v8 = vpack.c.bf16 (!%p128_p2), %v2861_v5, %v2860_v3  ;;  %v2862_v15 = vld [vmem:[%s3892_s19 + $0x191] sm:$0xff] (!%p128_p2)  ;;  %v327_v18 = vpack.c.bf16 (!%p128_p2), %v2831_v14, %v2830_v12 }
   0xa   : > { %v318_v9 = vpack.c.bf16 (!%p128_p2), %v2813_v7, %v2812_v6  ;;  %v2844_v10 = vld [vmem:[%s3892_s19 + $0x101] sm:$0xff] (!%p128_p2)  ;;  %v2845_v11 = vld [vmem:[%s3892_s19 + $0x109] sm:$0xff] (!%p128_p2)  ;;  %3683 = vmatprep.subr.msk.bf16.mxu0 (!%p128_p2), %vm352_vm0, %v326_v4  ;;  %v2863_v16 = vld [vmem:[%s3892_s19 + $0x199] sm:$0xff] (!%p128_p2) }
   0xb   : > { %v334_v13 = vpack.c.bf16 (!%p128_p2), %v2845_v11, %v2844_v10  ;;  %3691 = vmatprep.subr.msk.bf16.mxu1 (!%p128_p2), %vm352_vm0, %v342_v8  ;;  %v343_v19 = vpack.c.bf16 (!%p128_p2), %v2863_v16, %v2862_v15  ;;  %v2814_v20 = vld [vmem:[%s3892_s19 + $0x11] sm:$0xff] (!%p128_p2)  ;;  %v2815_v21 = vld [vmem:[%s3892_s19 + $0x19] sm:$0xff] (!%p128_p2)  ;;  %v2832_v27 = vld [vmem:[%s3892_s19 + $0xa1] sm:$0xff] (!%p128_p2) }
   0xc   : > { %v357_v17 = vsel (!%p128_p2), %vm352_vm0, %v318_v9, 0  ;;  %v2846_v22 = vld [vmem:[%s3892_s19 + $0x111] sm:$0xff] (!%p128_p2)  ;;  %v2847_v24 = vld [vmem:[%s3892_s19 + $0x119] sm:$0xff] (!%p128_p2)  ;;  %v319_v25 = vpack.c.bf16 (!%p128_p2), %v2815_v21, %v2814_v20  ;;  %v2833_v28 = vld [vmem:[%s3892_s19 + $0xa9] sm:$0xff] (!%p128_p2) }
   0xd   : > { %3360 = vmatpush3.bf16.xpose.msra.mxu0 %v357_v17  ;;  %v405_v23 = vsel %vm352_vm0, %v334_v13, 0  ;;  %v335_v26 = vpack.c.bf16 %v2847_v24, %v2846_v22  ;;  %v2864_v29 = vld [vmem:[%s3892_s19 + $0x1a1] sm:$0xff]  ;;  %v2865_v30 = vld [vmem:[%s3892_s19 + $0x1a9] sm:$0xff]  ;;  %v328_v32 = vpack.c.bf16 %v2833_v28, %v2832_v27  ;;  %v2834_v41 = vld [vmem:[%s3892_s19 + $0xb1] sm:$0xff]  ;;  %s4930_s11 = smov (!%p147_p3, %s2808_s11), 71 }
   0xe   : > { %3378 = vmatpush3.bf16.xpose.msra.mxu1 %v405_v23  ;;  %3684 = vmatprep.subr.msk.bf16.mxu0 %vm352_vm0, %v327_v18  ;;  %v360_v31 = vsel %vm352_vm0, %v319_v25, 0  ;;  %v344_v34 = vpack.c.bf16 %v2865_v30, %v2864_v29  ;;  %v2816_v35 = vld [vmem:[%s3892_s19 + $0x21] sm:$0xff]  ;;  %v2817_v36 = vld [vmem:[%s3892_s19 + $0x29] sm:$0xff]  ;;  %v2835_v42 = vld [vmem:[%s3892_s19 + $0xb9] sm:$0xff]  ;;  %s2809_s14 = sshll.u32 %s4930_s11, 2 }
   0xf   : > { %3692 = vmatprep.subr.msk.bf16.mxu1 %vm352_vm0, %v343_v19  ;;  %v408_v33 = vsel %vm352_vm0, %v335_v26, 0  ;;  %v2848_v37 = vld [vmem:[%s3892_s19 + $0x121] sm:$0xff]  ;;  %v2849_v38 = vld [vmem:[%s3892_s19 + $0x129] sm:$0xff]  ;;  %v320_v39 = vpack.c.bf16 %v2817_v36, %v2816_v35  ;;  %v2866_v43 = vld [vmem:[%s3892_s19 + $0x1b1] sm:$0xff]  ;;  %v329_v46 = vpack.c.bf16 %v2835_v42, %v2834_v41  ;;  %s150_s16 = scalar_lea.vmem %s4928_s3, %s2809_s14 }
  0x10   : > { %v336_v40 = vpack.c.bf16 %v2849_v38, %v2848_v37  ;;  %v2867_v44 = vld [vmem:[%s3892_s19 + $0x1b9] sm:$0xff]  ;;  %v2818_v49 = vld [vmem:[%s3892_s19 + $0x31] sm:$0xff]  ;;  %v2836_v55 = vld [vmem:[%s3892_s19 + $0xc1] sm:$0xff] }
  0x11   : > { %v363_v45 = vsel %vm352_vm0, %v320_v39, 0  ;;  %v345_v48 = vpack.c.bf16 %v2867_v44, %v2866_v43  ;;  %v2819_v50 = vld [vmem:[%s3892_s19 + $0x39] sm:$0xff]  ;;  %v2850_v51 = vld [vmem:[%s3892_s19 + $0x131] sm:$0xff]  ;;  %v2837_v56 = vld [vmem:[%s3892_s19 + $0xc9] sm:$0xff] }
  0x12   : > { %v411_v47 = vsel %vm352_vm0, %v336_v40, 0  ;;  %v2851_v52 = vld [vmem:[%s3892_s19 + $0x139] sm:$0xff]  ;;  %v321_v53 = vpack.c.bf16 %v2819_v50, %v2818_v49  ;;  %v2868_v57 = vld [vmem:[%s3892_s19 + $0x1c1] sm:$0xff]  ;;  %v2869_v58 = vld [vmem:[%s3892_s19 + $0x1c9] sm:$0xff]  ;;  %v330_v60 = vpack.c.bf16 %v2837_v56, %v2836_v55 }
  0x13   : > { %v337_v54 = vpack.c.bf16 %v2851_v52, %v2850_v51  ;;  %v346_v62 = vpack.c.bf16 %v2869_v58, %v2868_v57  ;;  %v2820_v63 = vld [vmem:[%s3892_s19 + $0x41] sm:$0xff]  ;;  %v2821_v1 = vld [vmem:[%s3892_s19 + $0x49] sm:$0xff]  ;;  %v2838_v6 = vld [vmem:[%s3892_s19 + $0xd1] sm:$0xff] }
  0x14   : > { %v366_v59 = vsel %vm352_vm0, %v321_v53, 0  ;;  %v2852_v2 = vld [vmem:[%s3892_s19 + $0x141] sm:$0xff]  ;;  %v2853_v3 = vld [vmem:[%s3892_s19 + $0x149] sm:$0xff]  ;;  %v322_v4 = vpack.c.bf16 %v2821_v1, %v2820_v63  ;;  %v2839_v7 = vld [vmem:[%s3892_s19 + $0xd9] sm:$0xff] }
  0x15   : > { %3362 = vmatpush3.bf16.xpose.msra.mxu0 %v360_v31  ;;  %v414_v61 = vsel %vm352_vm0, %v337_v54, 0  ;;  %v338_v5 = vpack.c.bf16 %v2853_v3, %v2852_v2  ;;  %v2870_v8 = vld [vmem:[%s3892_s19 + $0x1d1] sm:$0xff]  ;;  %v2871_v9 = vld [vmem:[%s3892_s19 + $0x1d9] sm:$0xff]  ;;  %v331_v11 = vpack.c.bf16 %v2839_v7, %v2838_v6  ;;  %v2840_v20 = vld [vmem:[%s3892_s19 + $0xe1] sm:$0xff] }
  0x16   : > { %3380 = vmatpush3.bf16.xpose.msra.mxu1 %v408_v33  ;;  %3685 = vmatprep.subr.msk.bf16.mxu0 %vm352_vm0, %v328_v32  ;;  %v369_v10 = vsel %vm352_vm0, %v322_v4, 0  ;;  %v347_v13 = vpack.c.bf16 %v2871_v9, %v2870_v8  ;;  %v2822_v14 = vld [vmem:[%s3892_s19 + $0x51] sm:$0xff]  ;;  %v2823_v15 = vld [vmem:[%s3892_s19 + $0x59] sm:$0xff]  ;;  %v2841_v21 = vld [vmem:[%s3892_s19 + $0xe9] sm:$0xff] }
  0x17   : > { %3693 = vmatprep.subr.msk.bf16.mxu1 %vm352_vm0, %v344_v34  ;;  %v417_v12 = vsel %vm352_vm0, %v338_v5, 0  ;;  %v2854_v16 = vld [vmem:[%s3892_s19 + $0x151] sm:$0xff]  ;;  %v2855_v17 = vld [vmem:[%s3892_s19 + $0x159] sm:$0xff]  ;;  %v323_v18 = vpack.c.bf16 %v2823_v15, %v2822_v14  ;;  %v2872_v22 = vld [vmem:[%s3892_s19 + $0x1e1] sm:$0xff]  ;;  %v332_v25 = vpack.c.bf16 %v2841_v21, %v2840_v20 }
  0x18   : > { %v339_v19 = vpack.c.bf16 %v2855_v17, %v2854_v16  ;;  %v2873_v23 = vld [vmem:[%s3892_s19 + $0x1e9] sm:$0xff]  ;;  %v2824_v28 = vld [vmem:[%s3892_s19 + $0x61] sm:$0xff]  ;;  %v2842_v34 = vld [vmem:[%s3892_s19 + $0xf1] sm:$0xff] }
  0x19   : > { %v372_v24 = vsel %vm352_vm0, %v323_v18, 0  ;;  %v348_v27 = vpack.c.bf16 %v2873_v23, %v2872_v22  ;;  %v2825_v29 = vld [vmem:[%s3892_s19 + $0x69] sm:$0xff]  ;;  %v2856_v30 = vld [vmem:[%s3892_s19 + $0x161] sm:$0xff]  ;;  %v2843_v35 = vld [vmem:[%s3892_s19 + $0xf9] sm:$0xff] }
  0x1a   : > { %v420_v26 = vsel %vm352_vm0, %v339_v19, 0  ;;  %v2857_v31 = vld [vmem:[%s3892_s19 + $0x169] sm:$0xff]  ;;  %v324_v32 = vpack.c.bf16 %v2825_v29, %v2824_v28  ;;  %v2874_v36 = vld [vmem:[%s3892_s19 + $0x1f1] sm:$0xff]  ;;  %v2875_v37 = vld [vmem:[%s3892_s19 + $0x1f9] sm:$0xff]  ;;  %v333_v39 = vpack.c.bf16 %v2843_v35, %v2842_v34 }
  0x1b   : > { %v340_v33 = vpack.c.bf16 %v2857_v31, %v2856_v30  ;;  %v349_v41 = vpack.c.bf16 %v2875_v37, %v2874_v36  ;;  %v2826_v42 = vld [vmem:[%s3892_s19 + $0x71] sm:$0xff]  ;;  %v2827_v43 = vld [vmem:[%s3892_s19 + $0x79] sm:$0xff]  ;;  %v172_v49 = vld [vmem:[%s3892_s19 + $0x88] sm:$0xff] }
  0x1c   : > { %v375_v38 = vsel %vm352_vm0, %v324_v32, 0  ;;  %v2858_v44 = vld [vmem:[%s3892_s19 + $0x171] sm:$0xff]  ;;  %v203_v50 = vld [vmem:[%s3892_s19 + $0x180] sm:$0xff]  ;;  %v204_v51 = vld [vmem:[%s3892_s19 + $0x188] sm:$0xff] }
  0x1d   : > { %3364 = vmatpush3.bf16.xpose.msra.mxu0 %v363_v45  ;;  %v423_v40 = vsel %vm352_vm0, %v340_v33, 0  ;;  %v2859_v45 = vld [vmem:[%s3892_s19 + $0x179] sm:$0xff]  ;;  %v243_v55 = vpack.c.bf16 %v204_v51, %v203_v50  ;;  %v156_v57 = vld [vmem:[%s3892_s19 + $0x8] sm:$0xff]  ;;  %v205_v1 = vld [vmem:[%s3892_s19 + $0x190] sm:$0xff] }
  0x1e   : > { %3382 = vmatpush3.bf16.xpose.msra.mxu1 %v411_v47  ;;  %3686 = vmatprep.subr.msk.bf16.mxu0 %vm352_vm0, %v329_v46  ;;  %v325_v46 = vpack.c.bf16 %v2827_v43, %v2826_v42  ;;  %v341_v47 = vpack.c.bf16 %v2859_v45, %v2858_v44  ;;  %v155_v56 = vld [vmem:[%s3892_s19] sm:$0xff]  ;;  %v174_v63 = vld [vmem:[%s3892_s19 + $0x98] sm:$0xff]  ;;  %v157_v7 = vld [vmem:[%s3892_s19 + $0x10] sm:$0xff] }
  0x1f   : > { %3694 = vmatprep.subr.msk.bf16.mxu1 %vm352_vm0, %v345_v48  ;;  %v171_v48 = vld [vmem:[%s3892_s19 + $0x80] sm:$0xff]  ;;  %v206_v2 = vld [vmem:[%s3892_s19 + $0x198] sm:$0xff]  ;;  %v189_v9 = vld [vmem:[%s3892_s19 + $0x110] sm:$0xff] }
  0x20   : > { %v378_v52 = vsel %vm352_vm0, %v325_v46, 0  ;;  %v227_v53 = vpack.c.bf16 %v172_v49, %v171_v48  ;;  %v426_v54 = vsel %vm352_vm0, %v341_v47, 0  ;;  %v187_v58 = vld [vmem:[%s3892_s19 + $0x100] sm:$0xff]  ;;  %v244_v6 = vpack.c.bf16 %v206_v2, %v205_v1  ;;  %v158_v8 = vld [vmem:[%s3892_s19 + $0x18] sm:$0xff]  ;;  %v176_v15 = vld [vmem:[%s3892_s19 + $0xa8] sm:$0xff] }
  0x21   : > { %v175_v14 = vld [vmem:[%s3892_s19 + $0xa0] sm:$0xff]  ;;  %v208_v17 = vld [vmem:[%s3892_s19 + $0x1a8] sm:$0xff]  ;;  %v178_v28 = vld [vmem:[%s3892_s19 + $0xb8] sm:$0xff] }
  0x22   : > { %v207_v16 = vld [vmem:[%s3892_s19 + $0x1a0] sm:$0xff]  ;;  %v229_v18 = vpack.c.bf16 %v176_v15, %v175_v14  ;;  %v160_v22 = vld [vmem:[%s3892_s19 + $0x28] sm:$0xff]  ;;  %v209_v29 = vld [vmem:[%s3892_s19 + $0x1b0] sm:$0xff] }
  0x23   : > { %v245_v20 = vpack.c.bf16 %v208_v17, %v207_v16  ;;  %v159_v21 = vld [vmem:[%s3892_s19 + $0x20] sm:$0xff]  ;;  %v210_v30 = vld [vmem:[%s3892_s19 + $0x1b8] sm:$0xff]  ;;  %v161_v35 = vld [vmem:[%s3892_s19 + $0x30] sm:$0xff] }
  0x24   : > { %v191_v23 = vld [vmem:[%s3892_s19 + $0x120] sm:$0xff]  ;;  %v246_v34 = vpack.c.bf16 %v210_v30, %v209_v29  ;;  %v162_v36 = vld [vmem:[%s3892_s19 + $0x38] sm:$0xff]  ;;  %v193_v37 = vld [vmem:[%s3892_s19 + $0x130] sm:$0xff] }
  0x25   : > { %3366 = vmatpush3.bf16.xpose.msra.mxu0 %v366_v59  ;;  %v188_v59 = vld [vmem:[%s3892_s19 + $0x108] sm:$0xff]  ;;  %v211_v43 = vld [vmem:[%s3892_s19 + $0x1c0] sm:$0xff]  ;;  %v166_v1 = vld [vmem:[%s3892_s19 + $0x58] sm:$0xff] }
  0x26   : > { %3384 = vmatpush3.bf16.xpose.msra.mxu1 %v414_v61  ;;  %3687 = vmatprep.subr.msk.bf16.mxu0 %vm352_vm0, %v330_v60  ;;  %v219_v60 = vpack.c.bf16 %v156_v57, %v155_v56  ;;  %v235_v61 = vpack.c.bf16 %v188_v59, %v187_v58  ;;  %v180_v42 = vld [vmem:[%s3892_s19 + $0xc8] sm:$0xff]  ;;  %v163_v49 = vld [vmem:[%s3892_s19 + $0x40] sm:$0xff]  ;;  %v182_v56 = vld [vmem:[%s3892_s19 + $0xd8] sm:$0xff] }
  0x27   : > { %3695 = vmatprep.subr.msk.bf16.mxu1 %vm352_vm0, %v346_v62  ;;  %v173_v62 = vld [vmem:[%s3892_s19 + $0x90] sm:$0xff]  ;;  %v212_v44 = vld [vmem:[%s3892_s19 + $0x1c8] sm:$0xff]  ;;  %v195_v51 = vld [vmem:[%s3892_s19 + $0x140] sm:$0xff] }
  0x28   : > { %v538_v3 = vsel %vm352_vm0, %v219_v60, 0  ;;  %v228_v4 = vpack.c.bf16 %v174_v63, %v173_v62  ;;  %v586_v5 = vsel %vm352_vm0, %v235_v61, 0  ;;  %v247_v48 = vpack.c.bf16 %v212_v44, %v211_v43  ;;  %v164_v50 = vld [vmem:[%s3892_s19 + $0x48] sm:$0xff]  ;;  %v213_v57 = vld [vmem:[%s3892_s19 + $0x1d0] sm:$0xff]  ;;  %v214_v58 = vld [vmem:[%s3892_s19 + $0x1d8] sm:$0xff] }
  0x29   : > { %v248_v62 = vpack.c.bf16 %v214_v58, %v213_v57  ;;  %v165_v63 = vld [vmem:[%s3892_s19 + $0x50] sm:$0xff]  ;;  %v167_v15 = vld [vmem:[%s3892_s19 + $0x60] sm:$0xff]  ;;  %v168_v16 = vld [vmem:[%s3892_s19 + $0x68] sm:$0xff] }
  0x2a   : > { %v197_v2 = vld [vmem:[%s3892_s19 + $0x150] sm:$0xff]  ;;  %v199_v17 = vld [vmem:[%s3892_s19 + $0x160] sm:$0xff]  ;;  %v170_v29 = vld [vmem:[%s3892_s19 + $0x78] sm:$0xff] }
  0x2b   : > { %v201_v30 = vld [vmem:[%s3892_s19 + $0x170] sm:$0xff]  ;;  %v2914_v44 = vld [vmem:[%s3892_s19 + $0x102] sm:$0xff]  ;;  %v2885_v57 = vld [vmem:[%s3892_s19 + $0x1a] sm:$0xff] }
  0x2c   : > { %v2883_v43 = vld [vmem:[%s3892_s19 + $0xa] sm:$0xff]  ;;  %v2916_v58 = vld [vmem:[%s3892_s19 + $0x112] sm:$0xff] }
  0x2d   : > { %3368 = vmatpush3.bf16.xpose.msra.mxu0 %v369_v10  ;;  %v190_v10 = vld [vmem:[%s3892_s19 + $0x118] sm:$0xff] }
  0x2e   : > { %3386 = vmatpush3.bf16.xpose.msra.mxu1 %v417_v12  ;;  %3688 = vmatprep.subr.msk.bf16.mxu0 %vm352_vm0, %v331_v11  ;;  %v4019_v11 = vld [vmem:[%s4926_s1] sm:$0x3]  ;;  %v220_v12 = vpack.c.bf16 %v158_v8, %v157_v7  ;;  %v184_v7 = vld [vmem:[%s3892_s19 + $0xe8] sm:$0xff] }
  0x2f   : > { %3696 = vmatprep.subr.msk.bf16.mxu1 %vm352_vm0, %v347_v13  ;;  %v236_v13 = vpack.c.bf16 %v190_v10, %v189_v9  ;;  %v215_v8 = vld [vmem:[%s3892_s19 + $0x1e0] sm:$0xff]  ;;  %v216_v9 = vld [vmem:[%s3892_s19 + $0x1e8] sm:$0xff] }
  0x30   : > { %v249_v14 = vpack.c.bf16 %v216_v9, %v215_v8  ;;  %v2887_v8 = vld [vmem:[%s3892_s19 + $0x2a] sm:$0xff]  ;;  %v2918_v9 = vld [vmem:[%s3892_s19 + $0x122] sm:$0xff] }
  0x31   : > { %v589_v19 = vsel %vm352_vm0, %v236_v13, 0 }
  0x35   : > { %3370 = vmatpush3.bf16.xpose.msra.mxu0 %v372_v24  ;;  %v192_v24 = vld [vmem:[%s3892_s19 + $0x128] sm:$0xff] }
  0x36   : > { %3388 = vmatpush3.bf16.xpose.msra.mxu1 %v420_v26  ;;  %3689 = vmatprep.subr.msk.bf16.mxu0 %vm352_vm0, %v332_v25  ;;  %v221_v25 = vpack.c.bf16 %v160_v22, %v159_v21  ;;  %v237_v26 = vpack.c.bf16 %v192_v24, %v191_v23  ;;  %v186_v21 = vld [vmem:[%s3892_s19 + $0xf8] sm:$0xff]  ;;  %v217_v22 = vld [vmem:[%s3892_s19 + $0x1f0] sm:$0xff] }
  0x37   : > { %3697 = vmatprep.subr.msk.bf16.mxu1 %vm352_vm0, %v348_v27  ;;  %v177_v27 = vld [vmem:[%s3892_s19 + $0xb0] sm:$0xff]  ;;  %v218_v23 = vld [vmem:[%s3892_s19 + $0x1f8] sm:$0xff] }
  0x38   : > { %v544_v31 = vsel %vm352_vm0, %v221_v25, 0  ;;  %v230_v32 = vpack.c.bf16 %v178_v28, %v177_v27  ;;  %v592_v33 = vsel %vm352_vm0, %v237_v26, 0  ;;  %v250_v27 = vpack.c.bf16 %v218_v23, %v217_v22  ;;  %v169_v28 = vld [vmem:[%s3892_s19 + $0x70] sm:$0xff]  ;;  %v2889_v22 = vld [vmem:[%s3892_s19 + $0x3a] sm:$0xff] }
  0x39   : > { %v2920_v23 = vld [vmem:[%s3892_s19 + $0x132] sm:$0xff] }
  0x3d   : > { %3372 = vmatpush3.bf16.xpose.msra.mxu0 %v375_v38  ;;  %v194_v38 = vld [vmem:[%s3892_s19 + $0x138] sm:$0xff] }
  0x3e   : > { %3390 = vmatpush3.bf16.xpose.msra.mxu1 %v423_v40  ;;  %3690 = vmatprep.subr.msk.bf16.mxu0 %vm352_vm0, %v333_v39  ;;  %v222_v39 = vpack.c.bf16 %v162_v36, %v161_v35  ;;  %v238_v40 = vpack.c.bf16 %v194_v38, %v193_v37  ;;  %v2899_v35 = vld [vmem:[%s3892_s19 + $0x8a] sm:$0xff]  ;;  %v2930_v36 = vld [vmem:[%s3892_s19 + $0x182] sm:$0xff] }
  0x3f   : > { %3698 = vmatprep.subr.msk.bf16.mxu1 %vm352_vm0, %v349_v41  ;;  %v179_v41 = vld [vmem:[%s3892_s19 + $0xc0] sm:$0xff]  ;;  %v2931_v37 = vld [vmem:[%s3892_s19 + $0x18a] sm:$0xff] }
  0x40   : > { %v547_v45 = vsel %vm352_vm0, %v222_v39, 0  ;;  %v231_v46 = vpack.c.bf16 %v180_v42, %v179_v41  ;;  %v595_v47 = vsel %vm352_vm0, %v238_v40, 0  ;;  %v4109_v41 = vpack.c.bf16 %v2931_v37, %v2930_v36  ;;  %v2882_v42 = vld [vmem:[%s3892_s19 + $0x2] sm:$0xff]  ;;  %v2891_v36 = vld [vmem:[%s3892_s19 + $0x4a] sm:$0xff] }
  0x41   : > { %v2922_v37 = vld [vmem:[%s3892_s19 + $0x142] sm:$0xff] }
  0x45   : > { %3374 = vmatpush3.bf16.xpose.msra.mxu0 %v378_v52  ;;  %v196_v52 = vld [vmem:[%s3892_s19 + $0x148] sm:$0xff] }
  0x46   : > { %3392 = vmatpush3.bf16.xpose.msra.mxu1 %v426_v54  ;;  %3699 = vmatprep.subr.msk.bf16.mxu0 %vm352_vm0, %v227_v53  ;;  %v223_v53 = vpack.c.bf16 %v164_v50, %v163_v49  ;;  %v239_v54 = vpack.c.bf16 %v196_v52, %v195_v51  ;;  %v2901_v49 = vld [vmem:[%s3892_s19 + $0x9a] sm:$0xff]  ;;  %v2932_v50 = vld [vmem:[%s3892_s19 + $0x192] sm:$0xff] }
  0x47   : > { %3707 = vmatprep.subr.msk.bf16.mxu1 %vm352_vm0, %v243_v55  ;;  %v181_v55 = vld [vmem:[%s3892_s19 + $0xd0] sm:$0xff]  ;;  %v2933_v51 = vld [vmem:[%s3892_s19 + $0x19a] sm:$0xff] }
  0x48   : > { %v550_v59 = vsel %vm352_vm0, %v223_v53, 0  ;;  %v232_v60 = vpack.c.bf16 %v182_v56, %v181_v55  ;;  %v598_v61 = vsel %vm352_vm0, %v239_v54, 0  ;;  %v4130_v55 = vpack.c.bf16 %v2933_v51, %v2932_v50  ;;  %v2884_v56 = vld [vmem:[%s3892_s19 + $0x12] sm:$0xff] }
  0x4c   : > { %3376 = vmatmul.mubr.msk.bf16.vlgmr.msra.gmra.mrb[0].mxu0 %vm352_vm0, %v3887_v0 }
  0x4d   : > { %3394 = vmatmul.mubr.msk.bf16.vlgmr.msra.gmra.mrb[0].mxu1 %vm352_vm0, %v3887_v0  ;;  %3396 = vmatpush3.bf16.xpose.msra.mxu0 %v538_v3  ;;  %v541_v0 = vsel %vm352_vm0, %v220_v12, 0  ;;  %v198_v3 = vld [vmem:[%s3892_s19 + $0x158] sm:$0xff] }
  0x4e   : > { %3414 = vmatpush3.bf16.xpose.msra.mxu1 %v586_v5  ;;  %3700 = vmatprep.subr.msk.bf16.mxu0 %vm352_vm0, %v228_v4  ;;  %v224_v4 = vpack.c.bf16 %v166_v1, %v165_v63  ;;  %v240_v5 = vpack.c.bf16 %v198_v3, %v197_v2  ;;  %v2902_v63 = vld [vmem:[%s3892_s19 + $0xa2] sm:$0xff]  ;;  %v2903_v1 = vld [vmem:[%s3892_s19 + $0xaa] sm:$0xff] }
  0x4f   : > { %3708 = vmatprep.subr.msk.bf16.mxu1 %vm352_vm0, %v244_v6  ;;  %3411 = vmatprep.mubr.msk.bf16.mxu0 %vm352_vm0, %v4019_v11  ;;  %v183_v6 = vld [vmem:[%s3892_s19 + $0xe0] sm:$0xff]  ;;  %v2935_v2 = vld [vmem:[%s3892_s19 + $0x1aa] sm:$0xff] }
  0x50   : > { %3429 = vmatprep.mubr.msk.bf16.mxu1 %vm352_vm0, %v4019_v11  ;;  %v553_v10 = vsel %vm352_vm0, %v224_v4, 0  ;;  %v233_v12 = vpack.c.bf16 %v184_v7, %v183_v6  ;;  %v601_v13 = vsel %vm352_vm0, %v240_v5, 0  ;;  %v4160_v4 = vpack.c.bf16 %v2903_v1, %v2902_v63  ;;  %v2886_v7 = vld [vmem:[%s3892_s19 + $0x22] sm:$0xff]  ;;  %v2911_v63 = vld [vmem:[%s3892_s19 + $0xea] sm:$0xff] }
  0x51   : > { %v2942_v1 = vld [vmem:[%s3892_s19 + $0x1e2] sm:$0xff] }
  0x55   : > { %3398 = vmatpush3.bf16.xpose.msra.mxu0 %v541_v0  ;;  %v200_v0 = vld [vmem:[%s3892_s19 + $0x168] sm:$0xff] }
  0x56   : > { %3416 = vmatpush3.bf16.xpose.msra.mxu1 %v589_v19  ;;  %3701 = vmatprep.subr.msk.bf16.mxu0 %vm352_vm0, %v229_v18  ;;  %v225_v18 = vpack.c.bf16 %v168_v16, %v167_v15  ;;  %v241_v19 = vpack.c.bf16 %v200_v0, %v199_v17  ;;  %v2905_v15 = vld [vmem:[%s3892_s19 + $0xba] sm:$0xff]  ;;  %v2936_v16 = vld [vmem:[%s3892_s19 + $0x1b2] sm:$0xff] }
  0x57   : > { %3709 = vmatprep.subr.msk.bf16.mxu1 %vm352_vm0, %v245_v20  ;;  %v185_v20 = vld [vmem:[%s3892_s19 + $0xf0] sm:$0xff]  ;;  %v2937_v17 = vld [vmem:[%s3892_s19 + $0x1ba] sm:$0xff] }
  0x58   : > { %v556_v24 = vsel %vm352_vm0, %v225_v18, 0  ;;  %v234_v25 = vpack.c.bf16 %v186_v21, %v185_v20  ;;  %v604_v26 = vsel %vm352_vm0, %v241_v19, 0  ;;  %v4185_v20 = vpack.c.bf16 %v2937_v17, %v2936_v16  ;;  %v2888_v21 = vld [vmem:[%s3892_s19 + $0x32] sm:$0xff]  ;;  %v2913_v17 = vld [vmem:[%s3892_s19 + $0xfa] sm:$0xff] }
  0x59   : > { %v2912_v16 = vld [vmem:[%s3892_s19 + $0xf2] sm:$0xff] }
  0x5d   : > { %3400 = vmatpush3.bf16.xpose.msra.mxu0 %v544_v31  ;;  %v202_v31 = vld [vmem:[%s3892_s19 + $0x178] sm:$0xff] }
  0x5e   : > { %3418 = vmatpush3.bf16.xpose.msra.mxu1 %v592_v33  ;;  %3702 = vmatprep.subr.msk.bf16.mxu0 %vm352_vm0, %v230_v32  ;;  %v226_v32 = vpack.c.bf16 %v170_v29, %v169_v28  ;;  %v242_v33 = vpack.c.bf16 %v202_v31, %v201_v30  ;;  %v2907_v28 = vld [vmem:[%s3892_s19 + $0xca] sm:$0xff]  ;;  %v2938_v29 = vld [vmem:[%s3892_s19 + $0x1c2] sm:$0xff] }
  0x5f   : > { %3710 = vmatprep.subr.msk.bf16.mxu1 %vm352_vm0, %v246_v34  ;;  %v2898_v34 = vld [vmem:[%s3892_s19 + $0x82] sm:$0xff]  ;;  %v2939_v30 = vld [vmem:[%s3892_s19 + $0x1ca] sm:$0xff] }
  0x60   : > { %v559_v38 = vsel %vm352_vm0, %v226_v32, 0  ;;  %v4106_v39 = vpack.c.bf16 %v2899_v35, %v2898_v34  ;;  %v607_v40 = vsel %vm352_vm0, %v242_v33, 0  ;;  %v4206_v34 = vpack.c.bf16 %v2939_v30, %v2938_v29  ;;  %v2890_v35 = vld [vmem:[%s3892_s19 + $0x42] sm:$0xff]  ;;  %v2929_v29 = vld [vmem:[%s3892_s19 + $0x17a] sm:$0xff] }
  0x65   : > { %3402 = vmatpush3.bf16.xpose.msra.mxu0 %v547_v45  ;;  %v2915_v45 = vld [vmem:[%s3892_s19 + $0x10a] sm:$0xff] }
  0x66   : > { %3420 = vmatpush3.bf16.xpose.msra.mxu1 %v595_v47  ;;  %3703 = vmatprep.subr.msk.bf16.mxu0 %vm352_vm0, %v231_v46  ;;  %v781_v46 = vpack.c.bf16 %v2883_v43, %v2882_v42  ;;  %v4119_v47 = vpack.c.bf16 %v2915_v45, %v2914_v44  ;;  %v2908_v43 = vld [vmem:[%s3892_s19 + $0xd2] sm:$0xff]  ;;  %v2909_v44 = vld [vmem:[%s3892_s19 + $0xda] sm:$0xff] }
  0x67   : > { %3711 = vmatprep.subr.msk.bf16.mxu1 %vm352_vm0, %v247_v48  ;;  %v2900_v48 = vld [vmem:[%s3892_s19 + $0x92] sm:$0xff] }
  0x68   : > { %v819_v52 = vsel %vm352_vm0, %v781_v46, 0  ;;  %v4126_v53 = vpack.c.bf16 %v2901_v49, %v2900_v48  ;;  %v867_v54 = vsel %vm352_vm0, %v4119_v47, 0  ;;  %v2940_v45 = vld [vmem:[%s3892_s19 + $0x1d2] sm:$0xff]  ;;  %v2941_v46 = vld [vmem:[%s3892_s19 + $0x1da] sm:$0xff]  ;;  %v794_v49 = vpack.c.bf16 %v2909_v44, %v2908_v43  ;;  %v3011_v44 = vld [vmem:[%s3892_s19 + $0x22a] sm:$0xff] }
  0x69   : > { %v810_v51 = vpack.c.bf16 %v2941_v46, %v2940_v45  ;;  %v3013_v46 = vld [vmem:[%s3892_s19 + $0x23a] sm:$0xff] }
  0x6a   : > { %v1119_v45 = vsel %vm352_vm0, %v4126_v53, 0 }
  0x6d   : > { %3404 = vmatpush3.bf16.xpose.msra.mxu0 %v550_v59  ;;  %v2917_v59 = vld [vmem:[%s3892_s19 + $0x11a] sm:$0xff] }
  0x6e   : > { %3422 = vmatpush3.bf16.xpose.msra.mxu1 %v598_v61  ;;  %3704 = vmatprep.subr.msk.bf16.mxu0 %vm352_vm0, %v232_v60  ;;  %v4141_v60 = vld [vmem:[%s4926_s1 + $0x4] sm:$0x3]  ;;  %v782_v61 = vpack.c.bf16 %v2885_v57, %v2884_v56  ;;  %v2924_v56 = vld [vmem:[%s3892_s19 + $0x152] sm:$0xff]  ;;  %v2925_v57 = vld [vmem:[%s3892_s19 + $0x15a] sm:$0xff] }
  0x6f   : > { %3712 = vmatprep.subr.msk.bf16.mxu1 %vm352_vm0, %v248_v62  ;;  %v4149_v62 = vpack.c.bf16 %v2917_v59, %v2916_v58  ;;  %v802_v59 = vpack.c.bf16 %v2925_v57, %v2924_v56  ;;  %v3018_v56 = vld [vmem:[%s3892_s19 + $0x43] sm:$0xff] }
  0x70   : > { %v822_v3 = vsel %vm352_vm0, %v782_v61, 0  ;;  %v2910_v61 = vld [vmem:[%s3892_s19 + $0xe2] sm:$0xff] }
  0x71   : > { %v870_v5 = vsel %vm352_vm0, %v4149_v62, 0  ;;  %v3050_v57 = vld [vmem:[%s3892_s19 + $0x143] sm:$0xff] }
  0x75   : > { %3406 = vmatpush3.bf16.xpose.msra.mxu0 %v553_v10  ;;  %v2919_v10 = vld [vmem:[%s3892_s19 + $0x12a] sm:$0xff] }
  0x76   : > { %3424 = vmatpush3.bf16.xpose.msra.mxu1 %v601_v13  ;;  %3705 = vmatprep.subr.msk.bf16.mxu0 %vm352_vm0, %v233_v12  ;;  %v783_v12 = vpack.c.bf16 %v2887_v8, %v2886_v7  ;;  %v4174_v13 = vpack.c.bf16 %v2919_v10, %v2918_v9  ;;  %v2894_v8 = vld [vmem:[%s3892_s19 + $0x62] sm:$0xff]  ;;  %v2895_v9 = vld [vmem:[%s3892_s19 + $0x6a] sm:$0xff] }
  0x77   : > { %3713 = vmatprep.subr.msk.bf16.mxu1 %vm352_vm0, %v249_v14  ;;  %v2904_v14 = vld [vmem:[%s3892_s19 + $0xb2] sm:$0xff]  ;;  %v2926_v10 = vld [vmem:[%s3892_s19 + $0x162] sm:$0xff] }
  0x78   : > { %v825_v0 = vsel %vm352_vm0, %v783_v12, 0  ;;  %v4181_v18 = vpack.c.bf16 %v2905_v15, %v2904_v14  ;;  %v873_v19 = vsel %vm352_vm0, %v4174_v13, 0  ;;  %v2927_v12 = vld [vmem:[%s3892_s19 + $0x16a] sm:$0xff]  ;;  %v787_v14 = vpack.c.bf16 %v2895_v9, %v2894_v8  ;;  %v3021_v8 = vld [vmem:[%s3892_s19 + $0x5b] sm:$0xff]  ;;  %v3052_v9 = vld [vmem:[%s3892_s19 + $0x153] sm:$0xff] }
  0x79   : > { %v803_v15 = vpack.c.bf16 %v2927_v12, %v2926_v10  ;;  %v3053_v10 = vld [vmem:[%s3892_s19 + $0x15b] sm:$0xff]  ;;  %v4338_v12 = vld [vmem:[%s4926_s1 + $0x8] sm:$0x3] }
  0x7d   : > { %3408 = vmatpush3.bf16.xpose.msra.mxu0 %v556_v24  ;;  %v2921_v24 = vld [vmem:[%s3892_s19 + $0x13a] sm:$0xff] }
  0x7e   : > { %3426 = vmatpush3.bf16.xpose.msra.mxu1 %v604_v26  ;;  %3706 = vmatprep.subr.msk.bf16.mxu0 %vm352_vm0, %v234_v25  ;;  %v784_v25 = vpack.c.bf16 %v2889_v22, %v2888_v21  ;;  %v4195_v26 = vpack.c.bf16 %v2921_v24, %v2920_v23  ;;  %v837_v21 = vsel %vm352_vm0, %v787_v14, 0  ;;  %v796_v22 = vpack.c.bf16 %v2913_v17, %v2912_v16  ;;  %v3038_v16 = vld [vmem:[%s3892_s19 + $0xe3] sm:$0xff]  ;;  %v3039_v17 = vld [vmem:[%s3892_s19 + $0xeb] sm:$0xff] }
  0x7f   : > { %3714 = vmatprep.subr.msk.bf16.mxu1 %vm352_vm0, %v250_v27  ;;  %v2906_v27 = vld [vmem:[%s3892_s19 + $0xc2] sm:$0xff]  ;;  %v885_v23 = vsel %vm352_vm0, %v803_v15, 0  ;;  %v1368_v15 = vpack.c.bf16 %v3053_v10, %v3052_v9  ;;  %v3060_v10 = vld [vmem:[%s3892_s19 + $0x193] sm:$0xff] }
  0x80   : > { %v828_v31 = vsel %vm352_vm0, %v784_v25, 0  ;;  %v4202_v32 = vpack.c.bf16 %v2907_v28, %v2906_v27  ;;  %v876_v33 = vsel %vm352_vm0, %v4195_v26, 0  ;;  %v2896_v25 = vld [vmem:[%s3892_s19 + $0x72] sm:$0xff]  ;;  %v2897_v27 = vld [vmem:[%s3892_s19 + $0x7a] sm:$0xff] }
  0x81   : > { %v2928_v28 = vld [vmem:[%s3892_s19 + $0x172] sm:$0xff]  ;;  %v788_v30 = vpack.c.bf16 %v2897_v27, %v2896_v25  ;;  %v3022_v25 = vld [vmem:[%s3892_s19 + $0x63] sm:$0xff]  ;;  %v3029_v9 = vld [vmem:[%s3892_s19 + $0x9b] sm:$0xff] }
  0x82   : > { %v3023_v27 = vld [vmem:[%s3892_s19 + $0x6b] sm:$0xff] }
  0x85   : > { %3410 = vmatpush3.bf16.xpose.msra.mxu0 %v559_v38  ;;  %v2923_v38 = vld [vmem:[%s3892_s19 + $0x14a] sm:$0xff] }
  0x86   : > { %3428 = vmatpush3.bf16.xpose.msra.mxu1 %v607_v40  ;;  %3715 = vmatprep.subr.msk.bf16.mxu0 %vm352_vm0, %v4106_v39  ;;  %v785_v40 = vpack.c.bf16 %v2891_v36, %v2890_v35  ;;  %v801_v42 = vpack.c.bf16 %v2923_v38, %v2922_v37  ;;  %v4263_v36 = vld [vmem:[%s4926_s1 + $0x6] sm:$0x3]  ;;  %v3008_v37 = vld [vmem:[%s3892_s19 + $0x212] sm:$0xff]  ;;  %v3009_v38 = vld [vmem:[%s3892_s19 + $0x21a] sm:$0xff] }
  0x87   : > { %3723 = vmatprep.subr.msk.bf16.mxu1 %vm352_vm0, %v4109_v41  ;;  %v1095_v43 = vpack.c.bf16 %v3009_v38, %v3008_v37 }
  0x88   : > { %v831_v48 = vsel %vm352_vm0, %v785_v40, 0  ;;  %v879_v50 = vsel %vm352_vm0, %v801_v42, 0  ;;  %v1116_v40 = vsel %vm352_vm0, %v4106_v39, 0  ;;  %v1164_v42 = vsel %vm352_vm0, %v4109_v41, 0 }
  0x89   : > { %v1167_v39 = vsel %vm352_vm0, %v4130_v55, 0 }
  0x8c   : > { %3412 = vmatmul.mubr.msk.bf16.vlgmr.msra.gmra.mrb[4].mxu0 %vm352_vm0, %v4019_v11 }
  0x8d   : > { %3430 = vmatmul.mubr.msk.bf16.vlgmr.msra.gmra.mrb[4].mxu1 %vm352_vm0, %v4019_v11  ;;  %3432 = vmatpush3.bf16.xpose.msra.mxu0 %v819_v52  ;;  %v2934_v11 = vld [vmem:[%s3892_s19 + $0x1a2] sm:$0xff]  ;;  %v2892_v52 = vld [vmem:[%s3892_s19 + $0x52] sm:$0xff] }
  0x8e   : > { %3450 = vmatpush3.bf16.xpose.msra.mxu1 %v867_v54  ;;  %3716 = vmatprep.subr.msk.bf16.mxu0 %vm352_vm0, %v4126_v53  ;;  %v4164_v6 = vpack.c.bf16 %v2935_v2, %v2934_v11  ;;  %v2893_v54 = vld [vmem:[%s3892_s19 + $0x5a] sm:$0xff]  ;;  %v2943_v11 = vld [vmem:[%s3892_s19 + $0x1ea] sm:$0xff]  ;;  %v1122_v53 = vsel %vm352_vm0, %v4160_v4, 0 }
  0x8f   : > { %3724 = vmatprep.subr.msk.bf16.mxu1 %vm352_vm0, %v4130_v55  ;;  %3447 = vmatprep.mubr.msk.bf16.mxu0 %vm352_vm0, %v4141_v60  ;;  %v786_v58 = vpack.c.bf16 %v2893_v54, %v2892_v52  ;;  %v811_v7 = vpack.c.bf16 %v2943_v11, %v2942_v1  ;;  %v1173_v52 = vsel %vm352_vm0, %v4185_v20, 0  ;;  %v3069_v1 = vld [vmem:[%s3892_s19 + $0x1db] sm:$0xff] }
  0x90   : > { %3465 = vmatprep.mubr.msk.bf16.mxu1 %vm352_vm0, %v4141_v60  ;;  %v1170_v55 = vsel %vm352_vm0, %v4164_v6, 0 }
  0x91   : > { %v834_v2 = vsel %vm352_vm0, %v786_v58, 0  ;;  %v3051_v58 = vld [vmem:[%s3892_s19 + $0x14b] sm:$0xff] }
  0x95   : > { %3434 = vmatpush3.bf16.xpose.msra.mxu0 %v822_v3  ;;  %v795_v3 = vpack.c.bf16 %v2911_v63, %v2910_v61  ;;  %v3036_v61 = vld [vmem:[%s3892_s19 + $0xd3] sm:$0xff]  ;;  %v3037_v63 = vld [vmem:[%s3892_s19 + $0xdb] sm:$0xff] }
  0x96   : > { %3452 = vmatpush3.bf16.xpose.msra.mxu1 %v870_v5  ;;  %3717 = vmatprep.subr.msk.bf16.mxu0 %vm352_vm0, %v4160_v4  ;;  %v882_v5 = vsel %vm352_vm0, %v802_v59, 0  ;;  %v1125_v4 = vsel %vm352_vm0, %v4181_v18, 0  ;;  %v1367_v59 = vpack.c.bf16 %v3051_v58, %v3050_v57  ;;  %v3027_v57 = vld [vmem:[%s3892_s19 + $0x8b] sm:$0xff]  ;;  %v3058_v58 = vld [vmem:[%s3892_s19 + $0x183] sm:$0xff] }
  0x97   : > { %3725 = vmatprep.subr.msk.bf16.mxu1 %vm352_vm0, %v4164_v6 }
  0x9d   : > { %3436 = vmatpush3.bf16.xpose.msra.mxu0 %v825_v0  ;;  %v2944_v0 = vld [vmem:[%s3892_s19 + $0x1f2] sm:$0xff] }
  0x9e   : > { %3454 = vmatpush3.bf16.xpose.msra.mxu1 %v873_v19  ;;  %3718 = vmatprep.subr.msk.bf16.mxu0 %vm352_vm0, %v4181_v18  ;;  %v2945_v19 = vld [vmem:[%s3892_s19 + $0x1fa] sm:$0xff] }
  0x9f   : > { %3726 = vmatprep.subr.msk.bf16.mxu1 %vm352_vm0, %v4185_v20  ;;  %v812_v24 = vpack.c.bf16 %v2945_v19, %v2944_v0  ;;  %v3068_v20 = vld [vmem:[%s3892_s19 + $0x1d3] sm:$0xff]  ;;  %v3070_v0 = vld [vmem:[%s3892_s19 + $0x1e3] sm:$0xff]  ;;  %v3071_v19 = vld [vmem:[%s3892_s19 + $0x1eb] sm:$0xff] }
  0xa5   : > { %3438 = vmatpush3.bf16.xpose.msra.mxu0 %v828_v31  ;;  %v804_v31 = vpack.c.bf16 %v2929_v29, %v2928_v28  ;;  %v3054_v28 = vld [vmem:[%s3892_s19 + $0x163] sm:$0xff]  ;;  %v3055_v29 = vld [vmem:[%s3892_s19 + $0x16b] sm:$0xff] }
  0xa6   : > { %3456 = vmatpush3.bf16.xpose.msra.mxu1 %v876_v33  ;;  %3719 = vmatprep.subr.msk.bf16.mxu0 %vm352_vm0, %v4202_v32  ;;  %v840_v33 = vsel %vm352_vm0, %v788_v30, 0  ;;  %v1353_v30 = vpack.c.bf16 %v3023_v27, %v3022_v25  ;;  %v3030_v27 = vld [vmem:[%s3892_s19 + $0xa3] sm:$0xff] }
  0xa7   : > { %3727 = vmatprep.subr.msk.bf16.mxu1 %vm352_vm0, %v4206_v34  ;;  %v888_v35 = vsel %vm352_vm0, %v804_v31, 0  ;;  %v1369_v31 = vpack.c.bf16 %v3055_v29, %v3054_v28  ;;  %v3031_v28 = vld [vmem:[%s3892_s19 + $0xab] sm:$0xff]  ;;  %v3062_v29 = vld [vmem:[%s3892_s19 + $0x1a3] sm:$0xff] }
  0xa9   : > { %v1443_v37 = vsel %vm352_vm0, %v1369_v31, 0  ;;  %v1357_v31 = vpack.c.bf16 %v3031_v28, %v3030_v27  ;;  %v3123_v27 = vld [vmem:[%s3892_s19 + $0x16c] sm:$0xff] }
  0xad   : > { %3440 = vmatpush3.bf16.xpose.msra.mxu0 %v831_v48 }
  0xae   : > { %3458 = vmatpush3.bf16.xpose.msra.mxu1 %v879_v50  ;;  %3720 = vmatprep.subr.msk.bf16.mxu0 %vm352_vm0, %v794_v49 }
  0xaf   : > { %3728 = vmatprep.subr.msk.bf16.mxu1 %vm352_vm0, %v810_v51 }
  0xb5   : > { %3442 = vmatpush3.bf16.xpose.msra.mxu0 %v834_v2 }
  0xb6   : > { %3460 = vmatpush3.bf16.xpose.msra.mxu1 %v882_v5  ;;  %3721 = vmatprep.subr.msk.bf16.mxu0 %vm352_vm0, %v795_v3 }
  0xb7   : > { %3729 = vmatprep.subr.msk.bf16.mxu1 %vm352_vm0, %v811_v7 }
  0xbd   : > { %3444 = vmatpush3.bf16.xpose.msra.mxu0 %v837_v21 }
  0xbe   : > { %3462 = vmatpush3.bf16.xpose.msra.mxu1 %v885_v23  ;;  %3722 = vmatprep.subr.msk.bf16.mxu0 %vm352_vm0, %v796_v22 }
  0xbf   : > { %3730 = vmatprep.subr.msk.bf16.mxu1 %vm352_vm0, %v812_v24 }
  0xc5   : > { %3446 = vmatpush3.bf16.xpose.msra.mxu0 %v840_v33 }
  0xc6   : > { %3464 = vmatpush3.bf16.xpose.msra.mxu1 %v888_v35  ;;  %3731 = vmatprep.subr.msk.bf16.mxu0 %vm352_vm0, %v4202_v32  ;;  %v3007_v32 = vld [vmem:[%s3892_s19 + $0x20a] sm:$0xff] }
  0xc7   : > { %3739 = vmatprep.subr.msk.bf16.mxu1 %vm352_vm0, %v4206_v34 }
  0xcc   : > { %3448 = vmatmul.mubr.msk.bf16.vlgmr.msra.gmra.mrb[8].mxu0 %vm352_vm0, %v4141_v60 }
  0xcd   : > { %3466 = vmatmul.mubr.msk.bf16.vlgmr.msra.gmra.mrb[8].mxu1 %vm352_vm0, %v4141_v60  ;;  %3468 = vmatpush3.bf16.xpose.msra.mxu0 %v831_v48  ;;  %v3006_v60 = vld [vmem:[%s3892_s19 + $0x202] sm:$0xff] }
  0xce   : > { %3486 = vmatpush3.bf16.xpose.msra.mxu1 %v879_v50  ;;  %3732 = vmatprep.subr.msk.bf16.mxu0 %vm352_vm0, %v794_v49  ;;  %v1094_v34 = vpack.c.bf16 %v3007_v32, %v3006_v60  ;;  %v3035_v49 = vld [vmem:[%s3892_s19 + $0xcb] sm:$0xff]  ;;  %v3066_v50 = vld [vmem:[%s3892_s19 + $0x1c3] sm:$0xff]  ;;  %v3073_v60 = vld [vmem:[%s3892_s19 + $0x1fb] sm:$0xff]  ;;  %v1395_v32 = vsel %vm352_vm0, %v1353_v30, 0 }
  0xcf   : > { %3740 = vmatprep.subr.msk.bf16.mxu1 %vm352_vm0, %v810_v51  ;;  %3483 = vmatprep.mubr.msk.bf16.mxu0 %vm352_vm0, %v4263_v36  ;;  %v3067_v51 = vld [vmem:[%s3892_s19 + $0x1cb] sm:$0xff] }
  0xd0   : > { %3501 = vmatprep.mubr.msk.bf16.mxu1 %vm352_vm0, %v4263_v36  ;;  %v1375_v54 = vpack.c.bf16 %v3067_v51, %v3066_v50  ;;  %v3063_v30 = vld [vmem:[%s3892_s19 + $0x1ab] sm:$0xff] }
  0xd5   : > { %3470 = vmatpush3.bf16.xpose.msra.mxu0 %v834_v2  ;;  %v1360_v2 = vpack.c.bf16 %v3037_v63, %v3036_v61  ;;  %v3044_v63 = vld [vmem:[%s3892_s19 + $0x113] sm:$0xff] }
  0xd6   : > { %3488 = vmatpush3.bf16.xpose.msra.mxu1 %v882_v5  ;;  %3733 = vmatprep.subr.msk.bf16.mxu0 %vm352_vm0, %v795_v3  ;;  %v1437_v3 = vsel %vm352_vm0, %v1367_v59, 0  ;;  %v1376_v5 = vpack.c.bf16 %v3069_v1, %v3068_v20  ;;  %v3045_v20 = vld [vmem:[%s3892_s19 + $0x11b] sm:$0xff]  ;;  %v3076_v1 = vld [vmem:[%s3892_s19 + $0x213] sm:$0xff] }
  0xd7   : > { %3741 = vmatprep.subr.msk.bf16.mxu1 %vm352_vm0, %v811_v7  ;;  %v3020_v7 = vld [vmem:[%s3892_s19 + $0x53] sm:$0xff] }
  0xd8   : > { %v1352_v14 = vpack.c.bf16 %v3021_v8, %v3020_v7  ;;  %v3028_v8 = vld [vmem:[%s3892_s19 + $0x93] sm:$0xff] }
  0xdd   : > { %3472 = vmatpush3.bf16.xpose.msra.mxu0 %v837_v21  ;;  %v1392_v21 = vsel %vm352_vm0, %v1352_v14, 0  ;;  %v3061_v14 = vld [vmem:[%s3892_s19 + $0x19b] sm:$0xff] }
  0xde   : > { %3490 = vmatpush3.bf16.xpose.msra.mxu1 %v885_v23  ;;  %3734 = vmatprep.subr.msk.bf16.mxu0 %vm352_vm0, %v796_v22  ;;  %v1361_v22 = vpack.c.bf16 %v3039_v17, %v3038_v16  ;;  %v1440_v23 = vsel %vm352_vm0, %v1368_v15, 0  ;;  %v1356_v15 = vpack.c.bf16 %v3029_v9, %v3028_v8  ;;  %v1372_v16 = vpack.c.bf16 %v3061_v14, %v3060_v10  ;;  %v3046_v17 = vld [vmem:[%s3892_s19 + $0x123] sm:$0xff] }
  0xdf   : > { %3742 = vmatprep.subr.msk.bf16.mxu1 %vm352_vm0, %v812_v24  ;;  %v1377_v24 = vpack.c.bf16 %v3071_v19, %v3070_v0  ;;  %v3047_v0 = vld [vmem:[%s3892_s19 + $0x12b] sm:$0xff]  ;;  %v3078_v19 = vld [vmem:[%s3892_s19 + $0x223] sm:$0xff] }
  0xe0   : > { %v3121_v8 = vld [vmem:[%s3892_s19 + $0x15c] sm:$0xff]  ;;  %v4468_v9 = vld [vmem:[%s4926_s1 + $0xa] sm:$0x3] }
  0xe5   : > { %3474 = vmatpush3.bf16.xpose.msra.mxu0 %v840_v33  ;;  %v3040_v33 = vld [vmem:[%s3892_s19 + $0xf3] sm:$0xff] }
  0xe6   : > { %3492 = vmatpush3.bf16.xpose.msra.mxu1 %v888_v35  ;;  %3735 = vmatprep.subr.msk.bf16.mxu0 %vm352_vm0, %v4119_v47  ;;  %v3010_v47 = vld [vmem:[%s3892_s19 + $0x222] sm:$0xff] }
  0xe7   : > { %3743 = vmatprep.subr.msk.bf16.mxu1 %vm352_vm0, %v1094_v34  ;;  %v1096_v41 = vpack.c.bf16 %v3011_v44, %v3010_v47  ;;  %v3041_v35 = vld [vmem:[%s3892_s19 + $0xfb] sm:$0xff] }
  0xe8   : > { %v1362_v34 = vpack.c.bf16 %v3041_v35, %v3040_v33  ;;  %v3057_v47 = vld [vmem:[%s3892_s19 + $0x17b] sm:$0xff]  ;;  %v1373_v33 = vpack.c.bf16 %v3063_v30, %v3062_v29  ;;  %v3048_v35 = vld [vmem:[%s3892_s19 + $0x133] sm:$0xff] }
  0xe9   : > { %v3108_v30 = vld [vmem:[%s3892_s19 + $0xf4] sm:$0xff] }
  0xed   : > { %3476 = vmatpush3.bf16.xpose.msra.mxu0 %v1116_v40  ;;  %v3024_v40 = vld [vmem:[%s3892_s19 + $0x73] sm:$0xff] }
  0xee   : > { %3494 = vmatpush3.bf16.xpose.msra.mxu1 %v1164_v42  ;;  %3736 = vmatprep.subr.msk.bf16.mxu0 %vm352_vm0, %v4149_v62  ;;  %v3012_v62 = vld [vmem:[%s3892_s19 + $0x232] sm:$0xff]  ;;  %v3025_v42 = vld [vmem:[%s3892_s19 + $0x7b] sm:$0xff] }
  0xef   : > { %3744 = vmatprep.subr.msk.bf16.mxu1 %vm352_vm0, %v1095_v43  ;;  %v1097_v48 = vpack.c.bf16 %v3013_v46, %v3012_v62  ;;  %v3056_v43 = vld [vmem:[%s3892_s19 + $0x173] sm:$0xff]  ;;  %v1354_v44 = vpack.c.bf16 %v3025_v42, %v3024_v40  ;;  %v3043_v62 = vld [vmem:[%s3892_s19 + $0x10b] sm:$0xff] }
  0xf0   : > { %v3032_v42 = vld [vmem:[%s3892_s19 + $0xb3] sm:$0xff] }
  0xf5   : > { %3478 = vmatpush3.bf16.xpose.msra.mxu0 %v1119_v45 }
  0xf6   : > { %3496 = vmatpush3.bf16.xpose.msra.mxu1 %v1167_v39  ;;  %3737 = vmatprep.subr.msk.bf16.mxu0 %vm352_vm0, %v4174_v13  ;;  %v3034_v13 = vld [vmem:[%s3892_s19 + $0xc3] sm:$0xff]  ;;  %v1370_v39 = vpack.c.bf16 %v3057_v47, %v3056_v43  ;;  %v3033_v43 = vld [vmem:[%s3892_s19 + $0xbb] sm:$0xff]  ;;  %v3064_v47 = vld [vmem:[%s3892_s19 + $0x1b3] sm:$0xff] }
  0xf7   : > { %3745 = vmatprep.subr.msk.bf16.mxu1 %vm352_vm0, %v1096_v41  ;;  %v1359_v6 = vpack.c.bf16 %v3035_v49, %v3034_v13  ;;  %v3042_v41 = vld [vmem:[%s3892_s19 + $0x103] sm:$0xff] }
  0xfd   : > { %3480 = vmatpush3.bf16.xpose.msra.mxu0 %v1122_v53 }
  0xfe   : > { %3498 = vmatpush3.bf16.xpose.msra.mxu1 %v1170_v55  ;;  %3738 = vmatprep.subr.msk.bf16.mxu0 %vm352_vm0, %v4195_v26  ;;  %v3019_v26 = vld [vmem:[%s3892_s19 + $0x4b] sm:$0xff]  ;;  %v3074_v55 = vld [vmem:[%s3892_s19 + $0x203] sm:$0xff] }
  0xff   : > { %3746 = vmatprep.subr.msk.bf16.mxu1 %vm352_vm0, %v1097_v48  ;;  %v1351_v18 = vpack.c.bf16 %v3019_v26, %v3018_v56  ;;  %v3075_v48 = vld [vmem:[%s3892_s19 + $0x20b] sm:$0xff]  ;;  %v3026_v26 = vld [vmem:[%s3892_s19 + $0x83] sm:$0xff] }
 0x100   : > { %v1379_v56 = vpack.c.bf16 %v3075_v48, %v3074_v55  ;;  %v1355_v59 = vpack.c.bf16 %v3027_v57, %v3026_v26  ;;  %v3103_v55 = vld [vmem:[%s3892_s19 + $0xcc] sm:$0xff]  ;;  %v3134_v48 = vld [vmem:[%s3892_s19 + $0x1c4] sm:$0xff] }
 0x101   : > { %v1389_v11 = vsel %vm352_vm0, %v1351_v18, 0  ;;  %v3059_v18 = vld [vmem:[%s3892_s19 + $0x18b] sm:$0xff] }
 0x102   : > { %v1371_v61 = vpack.c.bf16 %v3059_v18, %v3058_v58  ;;  %v3119_v26 = vld [vmem:[%s3892_s19 + $0x14c] sm:$0xff]  ;;  %v3104_v18 = vld [vmem:[%s3892_s19 + $0xd4] sm:$0xff] }
 0x105   : > { %3482 = vmatpush3.bf16.xpose.msra.mxu0 %v1125_v4  ;;  %v1398_v4 = vsel %vm352_vm0, %v1354_v44, 0  ;;  %v3065_v44 = vld [vmem:[%s3892_s19 + $0x1bb] sm:$0xff] }
 0x106   : > { %3500 = vmatpush3.bf16.xpose.msra.mxu1 %v1173_v52  ;;  %3747 = vmatprep.subr.msk.bf16.mxu0 %vm352_vm0, %v1359_v6  ;;  %v1363_v6 = vpack.c.bf16 %v3043_v62, %v3042_v41  ;;  %v1374_v41 = vpack.c.bf16 %v3065_v44, %v3064_v47  ;;  %v3102_v62 = vld [vmem:[%s3892_s19 + $0xc4] sm:$0xff] }
 0x107   : > { %3755 = vmatprep.subr.msk.bf16.mxu1 %vm352_vm0, %v1375_v54  ;;  %v1446_v54 = vsel %vm352_vm0, %v1370_v39, 0  ;;  %v1358_v39 = vpack.c.bf16 %v3033_v43, %v3032_v42  ;;  %v3125_v42 = vld [vmem:[%s3892_s19 + $0x17c] sm:$0xff] }
 0x10c   : > { %3484 = vmatmul.mubr.msk.bf16.vlgmr.msra.gmra.mrb[12].mxu0 %vm352_vm0, %v4263_v36 }
 0x10d   : > { %3502 = vmatmul.mubr.msk.bf16.vlgmr.msra.gmra.mrb[12].mxu1 %vm352_vm0, %v4263_v36  ;;  %3504 = vmatpush3.bf16.xpose.msra.mxu0 %v1389_v11  ;;  %v3072_v36 = vld [vmem:[%s3892_s19 + $0x1f3] sm:$0xff]  ;;  %v3077_v11 = vld [vmem:[%s3892_s19 + $0x21b] sm:$0xff] }
 0x10e   : > { %3522 = vmatpush3.bf16.xpose.msra.mxu1 %v1437_v3  ;;  %3748 = vmatprep.subr.msk.bf16.mxu0 %vm352_vm0, %v1360_v2  ;;  %v1378_v38 = vpack.c.bf16 %v3073_v60, %v3072_v36  ;;  %v1401_v2 = vsel %vm352_vm0, %v1355_v59, 0  ;;  %v1364_v3 = vpack.c.bf16 %v3045_v20, %v3044_v63  ;;  %v1380_v7 = vpack.c.bf16 %v3077_v11, %v3076_v1  ;;  %v3049_v36 = vld [vmem:[%s3892_s19 + $0x13b] sm:$0xff]  ;;  %v3080_v60 = vld [vmem:[%s3892_s19 + $0x233] sm:$0xff] }
 0x10f   : > { %3756 = vmatprep.subr.msk.bf16.mxu1 %vm352_vm0, %v1376_v5  ;;  %3519 = vmatprep.mubr.msk.bf16.mxu0 %vm352_vm0, %v4338_v12  ;;  %v1449_v5 = vsel %vm352_vm0, %v1371_v61, 0  ;;  %v3105_v59 = vld [vmem:[%s3892_s19 + $0xdc] sm:$0xff]  ;;  %v3136_v61 = vld [vmem:[%s3892_s19 + $0x1d4] sm:$0xff] }
 0x110   : > { %3537 = vmatprep.mubr.msk.bf16.mxu1 %vm352_vm0, %v4338_v12  ;;  %v3137_v63 = vld [vmem:[%s3892_s19 + $0x1dc] sm:$0xff]  ;;  %v4453_v1 = vpack.c.bf16 %v3105_v59, %v3104_v18 }
 0x115   : > { %3506 = vmatpush3.bf16.xpose.msra.mxu0 %v1392_v21  ;;  %v3079_v21 = vld [vmem:[%s3892_s19 + $0x22b] sm:$0xff] }
 0x116   : > { %3524 = vmatpush3.bf16.xpose.msra.mxu1 %v1440_v23  ;;  %3749 = vmatprep.subr.msk.bf16.mxu0 %vm352_vm0, %v1361_v22  ;;  %v1404_v22 = vsel %vm352_vm0, %v1356_v15, 0  ;;  %v1365_v23 = vpack.c.bf16 %v3047_v0, %v3046_v17  ;;  %v1381_v25 = vpack.c.bf16 %v3079_v21, %v3078_v19  ;;  %v3106_v15 = vld [vmem:[%s3892_s19 + $0xe4] sm:$0xff]  ;;  %v3139_v17 = vld [vmem:[%s3892_s19 + $0x1ec] sm:$0xff] }
 0x117   : > { %3757 = vmatprep.subr.msk.bf16.mxu1 %vm352_vm0, %v1377_v24  ;;  %v1452_v24 = vsel %vm352_vm0, %v1372_v16, 0  ;;  %v3107_v16 = vld [vmem:[%s3892_s19 + $0xec] sm:$0xff] }
 0x118   : > { %v4487_v19 = vpack.c.bf16 %v3107_v16, %v3106_v15  ;;  %v3145_v15 = vld [vmem:[%s3892_s19 + $0x21c] sm:$0xff] }
 0x11d   : > { %3508 = vmatpush3.bf16.xpose.msra.mxu0 %v1395_v32  ;;  %v3081_v32 = vld [vmem:[%s3892_s19 + $0x23b] sm:$0xff] }
 0x11e   : > { %3526 = vmatpush3.bf16.xpose.msra.mxu1 %v1443_v37  ;;  %3750 = vmatprep.subr.msk.bf16.mxu0 %vm352_vm0, %v1362_v34  ;;  %v1407_v34 = vsel %vm352_vm0, %v1357_v31, 0  ;;  %v1366_v37 = vpack.c.bf16 %v3049_v36, %v3048_v35  ;;  %v1382_v40 = vpack.c.bf16 %v3081_v32, %v3080_v60  ;;  %v3109_v31 = vld [vmem:[%s3892_s19 + $0xfc] sm:$0xff] }
 0x11f   : > { %v4371_v45 = vpop.f32.mrb[0].mxu0  ;;  %3758 = vmatprep.subr.msk.bf16.mxu1 %vm352_vm0, %v1378_v38  ;;  %v1455_v38 = vsel %vm352_vm0, %v1373_v33, 0  ;;  %v3140_v33 = vld [vmem:[%s3892_s19 + $0x1f4] sm:$0xff]  ;;  %v3141_v35 = vld [vmem:[%s3892_s19 + $0x1fc] sm:$0xff]  ;;  %v4508_v60 = vpack.c.bf16 %v3109_v31, %v3108_v30  ;;  %v3114_v30 = vld [vmem:[%s3892_s19 + $0x124] sm:$0xff] }
 0x120   : > { %v4376_v46 = vpop.f32.mrb[0].mxu1  ;;  %v4378_v53 = vpop.f32.mrb[1].mxu0  ;;  %v3115_v31 = vld [vmem:[%s3892_s19 + $0x12c] sm:$0xff] }
 0x121   : > { %v4382_v13 = vpop.f32.mrb[1].mxu1  ;;  %v490_v49 = vpop.f32.mrb[2].mxu0 }
 0x122   : > { %v531_v50 = vpop.f32.mrb[2].mxu1  ;;  %v491_v51 = vpop.f32.mrb[3].mxu0  ;;  %v3135_v49 = vld [vmem:[%s3892_s19 + $0x1cc] sm:$0xff] }
 0x123   : > { %v532_v52 = vpop.f32.mrb[3].mxu1  ;;  %v1410_v50 = vsel %vm352_vm0, %v1358_v39, 0  ;;  %v4433_v51 = vpack.c.bf16 %v3103_v55, %v3102_v62  ;;  %v3110_v39 = vld [vmem:[%s3892_s19 + $0x104] sm:$0xff] }
 0x124   : > { %v3086_v52 = vld [vmem:[%s3892_s19 + $0x44] sm:$0xff] }
 0x125   : > { %3510 = vmatpush3.bf16.xpose.msra.mxu0 %v1398_v4  ;;  %v1458_v4 = vsel %vm352_vm0, %v1374_v41, 0  ;;  %v3111_v41 = vld [vmem:[%s3892_s19 + $0x10c] sm:$0xff] }
 0x126   : > { %3528 = vmatpush3.bf16.xpose.msra.mxu1 %v1446_v54  ;;  %3751 = vmatprep.subr.msk.bf16.mxu0 %vm352_vm0, %v1363_v6  ;;  %v4436_v6 = vpack.c.bf16 %v3135_v49, %v3134_v48  ;;  %v3087_v54 = vld [vmem:[%s3892_s19 + $0x4c] sm:$0xff]  ;;  %v3142_v49 = vld [vmem:[%s3892_s19 + $0x204] sm:$0xff]  ;;  %v4541_v59 = vpack.c.bf16 %v3111_v41, %v3110_v39 }
 0x127   : > { %3759 = vmatprep.subr.msk.bf16.mxu1 %vm352_vm0, %v1379_v56  ;;  %v3118_v56 = vld [vmem:[%s3892_s19 + $0x144] sm:$0xff]  ;;  %v1636_v57 = vpack.c.bf16 %v3087_v54, %v3086_v52 }
 0x128   : > { %v4446_v58 = vpack.c.bf16 %v3119_v26, %v3118_v56 }
 0x129   : > { %v1674_v20 = vsel %vm352_vm0, %v1636_v57, 0 }
 0x12a   : > { %v1722_v11 = vsel %vm352_vm0, %v4446_v58, 0 }
 0x12d   : > { %3512 = vmatpush3.bf16.xpose.msra.mxu0 %v1401_v2  ;;  %v4457_v2 = vpack.c.bf16 %v3137_v63, %v3136_v61  ;;  %v3094_v63 = vld [vmem:[%s3892_s19 + $0x84] sm:$0xff] }
 0x12e   : > { %3530 = vmatpush3.bf16.xpose.msra.mxu1 %v1449_v5  ;;  %3752 = vmatprep.subr.msk.bf16.mxu0 %vm352_vm0, %v1364_v3  ;;  %v3088_v3 = vld [vmem:[%s3892_s19 + $0x54] sm:$0xff]  ;;  %v3089_v5 = vld [vmem:[%s3892_s19 + $0x5c] sm:$0xff] }
 0x12f   : > { %3760 = vmatprep.subr.msk.bf16.mxu1 %vm352_vm0, %v1380_v7  ;;  %v3120_v7 = vld [vmem:[%s3892_s19 + $0x154] sm:$0xff]  ;;  %v1637_v10 = vpack.c.bf16 %v3089_v5, %v3088_v3 }
 0x130   : > { %v4476_v14 = vpack.c.bf16 %v3121_v8, %v3120_v7  ;;  %v3112_v7 = vld [vmem:[%s3892_s19 + $0x114] sm:$0xff]  ;;  %v3113_v8 = vld [vmem:[%s3892_s19 + $0x11c] sm:$0xff] }
 0x131   : > { %v1677_v0 = vsel %vm352_vm0, %v1637_v10, 0  ;;  %v3144_v10 = vld [vmem:[%s3892_s19 + $0x214] sm:$0xff] }
 0x132   : > { %v1725_v21 = vsel %vm352_vm0, %v4476_v14, 0 }
 0x135   : > { %3514 = vmatpush3.bf16.xpose.msra.mxu0 %v1404_v22 }
 0x136   : > { %3532 = vmatpush3.bf16.xpose.msra.mxu1 %v1452_v24  ;;  %3753 = vmatprep.subr.msk.bf16.mxu0 %vm352_vm0, %v1365_v23  ;;  %v3090_v23 = vld [vmem:[%s3892_s19 + $0x64] sm:$0xff]  ;;  %v3091_v24 = vld [vmem:[%s3892_s19 + $0x6c] sm:$0xff] }
 0x137   : > { %3761 = vmatprep.subr.msk.bf16.mxu1 %vm352_vm0, %v1381_v25  ;;  %v3122_v25 = vld [vmem:[%s3892_s19 + $0x164] sm:$0xff]  ;;  %v1638_v28 = vpack.c.bf16 %v3091_v24, %v3090_v23  ;;  %v3097_v23 = vld [vmem:[%s3892_s19 + $0x9c] sm:$0xff]  ;;  %v3128_v24 = vld [vmem:[%s3892_s19 + $0x194] sm:$0xff] }
 0x138   : > { %v4501_v29 = vpack.c.bf16 %v3123_v27, %v3122_v25  ;;  %v3129_v25 = vld [vmem:[%s3892_s19 + $0x19c] sm:$0xff] }
 0x139   : > { %v1680_v36 = vsel %vm352_vm0, %v1638_v28, 0  ;;  %v1657_v28 = vpack.c.bf16 %v3129_v25, %v3128_v24  ;;  %v1971_v25 = vsel %vm352_vm0, %v4433_v51, 0 }
 0x13a   : > { %v1728_v32 = vsel %vm352_vm0, %v4501_v29, 0 }
 0x13d   : > { %3516 = vmatpush3.bf16.xpose.msra.mxu0 %v1407_v34  ;;  %v4512_v34 = vpack.c.bf16 %v3141_v35, %v3140_v33  ;;  %v3146_v33 = vld [vmem:[%s3892_s19 + $0x224] sm:$0xff]  ;;  %v3147_v35 = vld [vmem:[%s3892_s19 + $0x22c] sm:$0xff] }
 0x13e   : > { %3534 = vmatpush3.bf16.xpose.msra.mxu1 %v1455_v38  ;;  %3754 = vmatprep.subr.msk.bf16.mxu0 %vm352_vm0, %v1366_v37  ;;  %v3092_v37 = vld [vmem:[%s3892_s19 + $0x74] sm:$0xff]  ;;  %v3093_v38 = vld [vmem:[%s3892_s19 + $0x7c] sm:$0xff] }
 0x13f   : > { %3762 = vmatprep.subr.msk.bf16.mxu1 %vm352_vm0, %v1382_v40  ;;  %v3124_v40 = vld [vmem:[%s3892_s19 + $0x174] sm:$0xff]  ;;  %v1639_v43 = vpack.c.bf16 %v3093_v38, %v3092_v37  ;;  %v1737_v37 = vsel %vm352_vm0, %v1657_v28, 0  ;;  %v1666_v38 = vpack.c.bf16 %v3147_v35, %v3146_v33  ;;  %v3215_v28 = vld [vmem:[%s3892_s19 + $0x26c] sm:$0xff] }
 0x140   : > { %v4522_v44 = vpack.c.bf16 %v3125_v42, %v3124_v40  ;;  %v3098_v40 = vld [vmem:[%s3892_s19 + $0xa4] sm:$0xff]  ;;  %v3099_v42 = vld [vmem:[%s3892_s19 + $0xac] sm:$0xff] }
 0x141   : > { %v1683_v18 = vsel %vm352_vm0, %v1639_v43, 0  ;;  %v3130_v43 = vld [vmem:[%s3892_s19 + $0x1a4] sm:$0xff]  ;;  %v1642_v39 = vpack.c.bf16 %v3099_v42, %v3098_v40  ;;  %v3239_v35 = vld [vmem:[%s3892_s19 + $0x10d] sm:$0xff] }
 0x142   : > { %v3222_v40 = vld [vmem:[%s3892_s19 + $0x85] sm:$0xff] }
 0x143   : > { %v3254_v42 = vld [vmem:[%s3892_s19 + $0x185] sm:$0xff] }
 0x145   : > { %3518 = vmatpush3.bf16.xpose.msra.mxu0 %v1410_v50  ;;  %v3143_v50 = vld [vmem:[%s3892_s19 + $0x20c] sm:$0xff] }
 0x146   : > { %3536 = vmatpush3.bf16.xpose.msra.mxu1 %v1458_v4  ;;  %3763 = vmatprep.subr.msk.bf16.mxu0 %vm352_vm0, %v4433_v51  ;;  %v2022_v51 = vsel %vm352_vm0, %v4457_v2, 0 }
 0x147   : > { %3771 = vmatprep.subr.msk.bf16.mxu1 %vm352_vm0, %v4436_v6 }
 0x14c   : > { %3520 = vmatmul.mubr.msk.bf16.vlgmr.msra.gmra.mrb[16].mxu0 %vm352_vm0, %v4338_v12 }
 0x14d   : > { %3538 = vmatmul.mubr.msk.bf16.vlgmr.msra.gmra.mrb[16].mxu1 %vm352_vm0, %v4338_v12  ;;  %3540 = vmatpush3.bf16.xpose.msra.mxu0 %v1674_v20  ;;  %v3138_v12 = vld [vmem:[%s3892_s19 + $0x1e4] sm:$0xff]  ;;  %v3095_v20 = vld [vmem:[%s3892_s19 + $0x8c] sm:$0xff] }
 0x14e   : > { %3558 = vmatpush3.bf16.xpose.msra.mxu1 %v1722_v11  ;;  %3764 = vmatprep.subr.msk.bf16.mxu0 %vm352_vm0, %v4453_v1  ;;  %v4491_v22 = vpack.c.bf16 %v3139_v17, %v3138_v12  ;;  %v3127_v11 = vld [vmem:[%s3892_s19 + $0x18c] sm:$0xff]  ;;  %v1640_v3 = vpack.c.bf16 %v3095_v20, %v3094_v63  ;;  %v1649_v12 = vpack.c.bf16 %v3113_v8, %v3112_v7  ;;  %v3133_v63 = vld [vmem:[%s3892_s19 + $0x1bc] sm:$0xff]  ;;  %v3210_v8 = vld [vmem:[%s3892_s19 + $0x244] sm:$0xff] }
 0x14f   : > { %3772 = vmatprep.subr.msk.bf16.mxu1 %vm352_vm0, %v4457_v2  ;;  %3555 = vmatprep.mubr.msk.bf16.mxu0 %vm352_vm0, %v4468_v9 }
 0x150   : > { %3573 = vmatprep.mubr.msk.bf16.mxu1 %vm352_vm0, %v4468_v9  ;;  %v1686_v16 = vsel %vm352_vm0, %v1640_v3, 0  ;;  %v2025_v2 = vsel %vm352_vm0, %v4491_v22, 0 }
 0x155   : > { %3542 = vmatpush3.bf16.xpose.msra.mxu0 %v1677_v0  ;;  %v1665_v0 = vpack.c.bf16 %v3145_v15, %v3144_v10  ;;  %v3211_v10 = vld [vmem:[%s3892_s19 + $0x24c] sm:$0xff] }
 0x156   : > { %3560 = vmatpush3.bf16.xpose.msra.mxu1 %v1725_v21  ;;  %3765 = vmatprep.subr.msk.bf16.mxu0 %vm352_vm0, %v4487_v19  ;;  %v3096_v21 = vld [vmem:[%s3892_s19 + $0x94] sm:$0xff]  ;;  %v1949_v24 = vpack.c.bf16 %v3211_v10, %v3210_v8  ;;  %v3226_v8 = vld [vmem:[%s3892_s19 + $0xa5] sm:$0xff] }
 0x157   : > { %3773 = vmatprep.subr.msk.bf16.mxu1 %vm352_vm0, %v4491_v22  ;;  %v1641_v27 = vpack.c.bf16 %v3097_v23, %v3096_v21  ;;  %v3227_v10 = vld [vmem:[%s3892_s19 + $0xad] sm:$0xff] }
 0x15d   : > { %3544 = vmatpush3.bf16.xpose.msra.mxu0 %v1680_v36  ;;  %v1689_v36 = vsel %vm352_vm0, %v1641_v27, 0 }
 0x15e   : > { %3562 = vmatpush3.bf16.xpose.msra.mxu1 %v1728_v32  ;;  %3766 = vmatprep.subr.msk.bf16.mxu0 %vm352_vm0, %v4508_v60  ;;  %v1650_v32 = vpack.c.bf16 %v3115_v31, %v3114_v30  ;;  %v1974_v30 = vsel %vm352_vm0, %v4453_v1, 0  ;;  %v3217_v31 = vld [vmem:[%s3892_s19 + $0x27c] sm:$0xff]  ;;  %v1977_v1 = vsel %vm352_vm0, %v4487_v19, 0  ;;  %v1980_v19 = vsel %vm352_vm0, %v4508_v60, 0 }
 0x15f   : > { %v667_v47 = vpop.f32.mrb[4].mxu0  ;;  %3774 = vmatprep.subr.msk.bf16.mxu1 %vm352_vm0, %v4512_v34 }
 0x160   : > { %v4527_v62 = vadd.f32 %v667_v47, %v4371_v45  ;;  %v708_v55 = vpop.f32.mrb[4].mxu1  ;;  %v669_v48 = vpop.f32.mrb[5].mxu0  ;;  %v3131_v47 = vld [vmem:[%s3892_s19 + $0x1ac] sm:$0xff] }
 0x161   : > { %v4532_v4 = vadd.f32 %v708_v55, %v4376_v46  ;;  %v4535_v52 = vadd.f32 %v669_v48, %v4378_v53  ;;  %v710_v54 = vpop.f32.mrb[5].mxu1  ;;  %v671_v56 = vpop.f32.mrb[6].mxu0  ;;  %v1731_v46 = vsel %vm352_vm0, %v4522_v44, 0  ;;  %v4545_v53 = vpack.c.bf16 %v3143_v50, %v3142_v49  ;;  %v3116_v55 = vld [vmem:[%s3892_s19 + $0x134] sm:$0xff]  ;;  %v3117_v48 = vld [vmem:[%s3892_s19 + $0x13c] sm:$0xff] }
 0x162   : > { %v4538_v26 = vadd.f32 %v710_v54, %v4382_v13  ;;  %v712_v45 = vpop.f32.mrb[6].mxu1  ;;  %v672_v57 = vpop.f32.mrb[7].mxu0  ;;  %v3126_v13 = vld [vmem:[%s3892_s19 + $0x184] sm:$0xff]  ;;  %v1658_v41 = vpack.c.bf16 %v3131_v47, %v3130_v43  ;;  %v3148_v49 = vld [vmem:[%s3892_s19 + $0x234] sm:$0xff]  ;;  %v3149_v50 = vld [vmem:[%s3892_s19 + $0x23c] sm:$0xff]  ;;  %v1692_v54 = vsel %vm352_vm0, %v1642_v39, 0  ;;  %v1651_v56 = vpack.c.bf16 %v3117_v48, %v3116_v55 }
 0x163   : > { %v713_v61 = vpop.f32.mrb[7].mxu1  ;;  %v1656_v5 = vpack.c.bf16 %v3127_v11, %v3126_v13  ;;  %v1667_v57 = vpack.c.bf16 %v3149_v50, %v3148_v49  ;;  %v3255_v43 = vld [vmem:[%s3892_s19 + $0x18d] sm:$0xff]  ;;  %v3240_v39 = vld [vmem:[%s3892_s19 + $0x115] sm:$0xff]  ;;  %v3273_v55 = vld [vmem:[%s3892_s19 + $0x21d] sm:$0xff] }
 0x164   : > { %v1740_v45 = vsel %vm352_vm0, %v1658_v41, 0  ;;  %v3101_v61 = vld [vmem:[%s3892_s19 + $0xbc] sm:$0xff]  ;;  %v2222_v47 = vpack.c.bf16 %v3255_v43, %v3254_v42 }
 0x165   : > { %3546 = vmatpush3.bf16.xpose.msra.mxu0 %v1683_v18  ;;  %v1734_v17 = vsel %vm352_vm0, %v1656_v5, 0  ;;  %v3100_v18 = vld [vmem:[%s3892_s19 + $0xb4] sm:$0xff]  ;;  %v4602_v5 = vld [vmem:[%s4926_s1 + $0xc] sm:$0x3]  ;;  %v3241_v41 = vld [vmem:[%s3892_s19 + $0x11d] sm:$0xff] }
 0x166   : > { %3564 = vmatpush3.bf16.xpose.msra.mxu1 %v1731_v46  ;;  %3767 = vmatprep.subr.msk.bf16.mxu0 %vm352_vm0, %v4541_v59  ;;  %v3132_v46 = vld [vmem:[%s3892_s19 + $0x1b4] sm:$0xff]  ;;  %v1643_v20 = vpack.c.bf16 %v3101_v61, %v3100_v18  ;;  %v2215_v49 = vpack.c.bf16 %v3241_v41, %v3240_v39  ;;  %v2292_v50 = vsel %vm352_vm0, %v2222_v47, 0  ;;  %v3257_v18 = vld [vmem:[%s3892_s19 + $0x19d] sm:$0xff]  ;;  %v4689_v61 = vld [vmem:[%s4926_s1 + $0xe] sm:$0x3] }
 0x167   : > { %3775 = vmatprep.subr.msk.bf16.mxu1 %vm352_vm0, %v4545_v53  ;;  %v1659_v13 = vpack.c.bf16 %v3133_v63, %v3132_v46  ;;  %v3231_v41 = vld [vmem:[%s3892_s19 + $0xcd] sm:$0xff] }
 0x168   : > { %v1695_v11 = vsel %vm352_vm0, %v1643_v20, 0  ;;  %v3242_v20 = vld [vmem:[%s3892_s19 + $0x125] sm:$0xff] }
 0x169   : > { %v1743_v3 = vsel %vm352_vm0, %v1659_v13, 0  ;;  %v3243_v13 = vld [vmem:[%s3892_s19 + $0x12d] sm:$0xff] }
 0x16d   : > { %3548 = vmatpush3.bf16.xpose.msra.mxu0 %v1686_v16 }
 0x16e   : > { %3566 = vmatpush3.bf16.xpose.msra.mxu1 %v1734_v17  ;;  %3768 = vmatprep.subr.msk.bf16.mxu0 %vm352_vm0, %v1649_v12 }
 0x16f   : > { %3776 = vmatprep.subr.msk.bf16.mxu1 %vm352_vm0, %v1665_v0 }
 0x175   : > { %3550 = vmatpush3.bf16.xpose.msra.mxu0 %v1689_v36 }
 0x176   : > { %3568 = vmatpush3.bf16.xpose.msra.mxu1 %v1737_v37  ;;  %3769 = vmatprep.subr.msk.bf16.mxu0 %vm352_vm0, %v1650_v32 }
 0x177   : > { %3777 = vmatprep.subr.msk.bf16.mxu1 %vm352_vm0, %v1666_v38 }
 0x17d   : > { %3552 = vmatpush3.bf16.xpose.msra.mxu0 %v1692_v54 }
 0x17e   : > { %3570 = vmatpush3.bf16.xpose.msra.mxu1 %v1740_v45  ;;  %3770 = vmatprep.subr.msk.bf16.mxu0 %vm352_vm0, %v1651_v56 }
 0x17f   : > { %3778 = vmatprep.subr.msk.bf16.mxu1 %vm352_vm0, %v1667_v57 }
 0x185   : > { %3554 = vmatpush3.bf16.xpose.msra.mxu0 %v1695_v11 }
 0x186   : > { %3572 = vmatpush3.bf16.xpose.msra.mxu1 %v1743_v3  ;;  %3779 = vmatprep.subr.msk.bf16.mxu0 %vm352_vm0, %v4541_v59 }
 0x187   : > { %3787 = vmatprep.subr.msk.bf16.mxu1 %vm352_vm0, %v4545_v53 }
 0x18c   : > { %3556 = vmatmul.mubr.msk.bf16.vlgmr.msra.gmra.mrb[20].mxu0 %vm352_vm0, %v4468_v9 }
 0x18d   : > { %3574 = vmatmul.mubr.msk.bf16.vlgmr.msra.gmra.mrb[20].mxu1 %vm352_vm0, %v4468_v9  ;;  %3576 = vmatpush3.bf16.xpose.msra.mxu0 %v1686_v16 }
 0x18e   : > { %3594 = vmatpush3.bf16.xpose.msra.mxu1 %v1734_v17  ;;  %3780 = vmatprep.subr.msk.bf16.mxu0 %vm352_vm0, %v1649_v12 }
 0x18f   : > { %3788 = vmatprep.subr.msk.bf16.mxu1 %vm352_vm0, %v1665_v0  ;;  %3591 = vmatprep.mubr.msk.bf16.mxu0 %vm352_vm0, %v4602_v5 }
 0x190   : > { %3609 = vmatprep.mubr.msk.bf16.mxu1 %vm352_vm0, %v4602_v5 }
 0x195   : > { %3578 = vmatpush3.bf16.xpose.msra.mxu0 %v1689_v36  ;;  %v3270_v36 = vld [vmem:[%s3892_s19 + $0x205] sm:$0xff] }
 0x196   : > { %3596 = vmatpush3.bf16.xpose.msra.mxu1 %v1737_v37  ;;  %3781 = vmatprep.subr.msk.bf16.mxu0 %vm352_vm0, %v1650_v32  ;;  %v3271_v32 = vld [vmem:[%s3892_s19 + $0x20d] sm:$0xff]  ;;  %v2028_v37 = vsel %vm352_vm0, %v4512_v34, 0  ;;  %v3272_v34 = vld [vmem:[%s3892_s19 + $0x215] sm:$0xff] }
 0x197   : > { %3789 = vmatprep.subr.msk.bf16.mxu1 %vm352_vm0, %v1666_v38  ;;  %v2230_v38 = vpack.c.bf16 %v3271_v32, %v3270_v36  ;;  %v3278_v32 = vld [vmem:[%s3892_s19 + $0x245] sm:$0xff] }
 0x19d   : > { %3580 = vmatpush3.bf16.xpose.msra.mxu0 %v1692_v54  ;;  %v2231_v54 = vpack.c.bf16 %v3273_v55, %v3272_v34  ;;  %v3262_v34 = vld [vmem:[%s3892_s19 + $0x1c5] sm:$0xff]  ;;  %v3263_v55 = vld [vmem:[%s3892_s19 + $0x1cd] sm:$0xff] }
 0x19e   : > { %3598 = vmatpush3.bf16.xpose.msra.mxu1 %v1740_v45  ;;  %3782 = vmatprep.subr.msk.bf16.mxu0 %vm352_vm0, %v1651_v56  ;;  %v3224_v56 = vld [vmem:[%s3892_s19 + $0x95] sm:$0xff]  ;;  %v3225_v45 = vld [vmem:[%s3892_s19 + $0x9d] sm:$0xff] }
 0x19f   : > { %v948_v9 = vpop.f32.mrb[8].mxu0  ;;  %3790 = vmatprep.subr.msk.bf16.mxu1 %vm352_vm0, %v1667_v57  ;;  %v3256_v57 = vld [vmem:[%s3892_s19 + $0x195] sm:$0xff]  ;;  %v2207_v46 = vpack.c.bf16 %v3225_v45, %v3224_v56  ;;  %v3281_v56 = vld [vmem:[%s3892_s19 + $0x25d] sm:$0xff] }
 0x1a0   : > { %v4617_v59 = vadd.f32 %v948_v9, %v4527_v62  ;;  %v989_v53 = vpop.f32.mrb[8].mxu1  ;;  %v950_v7 = vpop.f32.mrb[9].mxu0  ;;  %v2223_v63 = vpack.c.bf16 %v3257_v18, %v3256_v57  ;;  %v2216_v9 = vpack.c.bf16 %v3243_v13, %v3242_v20  ;;  %v3233_v20 = vld [vmem:[%s3892_s19 + $0xdd] sm:$0xff]  ;;  %v3264_v13 = vld [vmem:[%s3892_s19 + $0x1d5] sm:$0xff] }
 0x1a1   : > { %v4622_v15 = vadd.f32 %v989_v53, %v4532_v4  ;;  %v4625_v16 = vadd.f32 %v950_v7, %v4535_v52  ;;  %v991_v12 = vpop.f32.mrb[9].mxu1  ;;  %v952_v17 = vpop.f32.mrb[10].mxu0  ;;  %v3212_v4 = vld [vmem:[%s3892_s19 + $0x254] sm:$0xff]  ;;  %v3213_v52 = vld [vmem:[%s3892_s19 + $0x25c] sm:$0xff] }
 0x1a2   : > { %v4628_v0 = vadd.f32 %v991_v12, %v4538_v26  ;;  %v993_v21 = vpop.f32.mrb[10].mxu1  ;;  %v953_v62 = vpop.f32.mrb[11].mxu0  ;;  %v2019_v26 = vsel %vm352_vm0, %v4436_v6, 0  ;;  %v1950_v27 = vpack.c.bf16 %v3213_v52, %v3212_v4  ;;  %v2295_v53 = vsel %vm352_vm0, %v2223_v63, 0  ;;  %v3258_v12 = vld [vmem:[%s3892_s19 + $0x1a5] sm:$0xff]  ;;  %v3259_v17 = vld [vmem:[%s3892_s19 + $0x1ad] sm:$0xff] }
 0x1a3   : > { %v994_v23 = vpop.f32.mrb[11].mxu1  ;;  %v2208_v21 = vpack.c.bf16 %v3227_v10, %v3226_v8  ;;  %v2224_v62 = vpack.c.bf16 %v3259_v17, %v3258_v12  ;;  %v3276_v4 = vld [vmem:[%s3892_s19 + $0x235] sm:$0xff]  ;;  %v3277_v52 = vld [vmem:[%s3892_s19 + $0x23d] sm:$0xff]  ;;  %v3283_v8 = vld [vmem:[%s3892_s19 + $0x26d] sm:$0xff] }
 0x1a4   : > { %v3244_v23 = vld [vmem:[%s3892_s19 + $0x135] sm:$0xff] }
 0x1a5   : > { %3582 = vmatpush3.bf16.xpose.msra.mxu0 %v1695_v11  ;;  %v3274_v11 = vld [vmem:[%s3892_s19 + $0x225] sm:$0xff]  ;;  %v3232_v63 = vld [vmem:[%s3892_s19 + $0xd5] sm:$0xff] }
 0x1a6   : > { %3600 = vmatpush3.bf16.xpose.msra.mxu1 %v1743_v3  ;;  %3783 = vmatprep.subr.msk.bf16.mxu0 %vm352_vm0, %v4446_v58  ;;  %v3214_v58 = vld [vmem:[%s3892_s19 + $0x264] sm:$0xff]  ;;  %v3275_v3 = vld [vmem:[%s3892_s19 + $0x22d] sm:$0xff] }
 0x1a7   : > { %3791 = vmatprep.subr.msk.bf16.mxu1 %vm352_vm0, %v1949_v24  ;;  %v1951_v6 = vpack.c.bf16 %v3215_v28, %v3214_v58  ;;  %v2232_v7 = vpack.c.bf16 %v3275_v3, %v3274_v11  ;;  %v3245_v24 = vld [vmem:[%s3892_s19 + $0x13d] sm:$0xff]  ;;  %v2233_v58 = vpack.c.bf16 %v3277_v52, %v3276_v4  ;;  %v3228_v28 = vld [vmem:[%s3892_s19 + $0xb5] sm:$0xff]  ;;  %v2211_v3 = vpack.c.bf16 %v3233_v20, %v3232_v63  ;;  %v3267_v4 = vld [vmem:[%s3892_s19 + $0x1ed] sm:$0xff] }
 0x1a8   : > { %v3265_v11 = vld [vmem:[%s3892_s19 + $0x1dd] sm:$0xff]  ;;  %v4810_v20 = vld [vmem:[%s4926_s1 + $0x10] sm:$0x3] }
 0x1a9   : > { %v2259_v10 = vsel %vm352_vm0, %v2211_v3, 0  ;;  %v3325_v63 = vld [vmem:[%s3892_s19 + $0x19e] sm:$0xff]  ;;  %v3310_v3 = vld [vmem:[%s3892_s19 + $0x126] sm:$0xff] }
 0x1ad   : > { %3584 = vmatpush3.bf16.xpose.msra.mxu0 %v1971_v25  ;;  %v2250_v25 = vsel %vm352_vm0, %v2208_v21, 0 }
 0x1ae   : > { %3602 = vmatpush3.bf16.xpose.msra.mxu1 %v2019_v26  ;;  %3784 = vmatprep.subr.msk.bf16.mxu0 %vm352_vm0, %v4476_v14  ;;  %v3216_v14 = vld [vmem:[%s3892_s19 + $0x274] sm:$0xff]  ;;  %v2217_v26 = vpack.c.bf16 %v3245_v24, %v3244_v23  ;;  %v3266_v24 = vld [vmem:[%s3892_s19 + $0x1e5] sm:$0xff] }
 0x1af   : > { %3792 = vmatprep.subr.msk.bf16.mxu1 %vm352_vm0, %v1950_v27  ;;  %v1952_v33 = vpack.c.bf16 %v3217_v31, %v3216_v14  ;;  %v2298_v27 = vsel %vm352_vm0, %v2224_v62, 0  ;;  %v3234_v62 = vld [vmem:[%s3892_s19 + $0xe5] sm:$0xff]  ;;  %v3235_v23 = vld [vmem:[%s3892_s19 + $0xed] sm:$0xff] }
 0x1b0   : > { %v2212_v52 = vpack.c.bf16 %v3235_v23, %v3234_v62  ;;  %v3327_v62 = vld [vmem:[%s3892_s19 + $0x1ae] sm:$0xff] }
 0x1b5   : > { %3586 = vmatpush3.bf16.xpose.msra.mxu0 %v1974_v30  ;;  %v3229_v30 = vld [vmem:[%s3892_s19 + $0xbd] sm:$0xff] }
 0x1b6   : > { %3604 = vmatpush3.bf16.xpose.msra.mxu1 %v2022_v51  ;;  %3785 = vmatprep.subr.msk.bf16.mxu0 %vm352_vm0, %v4501_v29  ;;  %v3238_v29 = vld [vmem:[%s3892_s19 + $0x105] sm:$0xff]  ;;  %v3260_v51 = vld [vmem:[%s3892_s19 + $0x1b5] sm:$0xff]  ;;  %v2209_v14 = vpack.c.bf16 %v3229_v30, %v3228_v28  ;;  %v3285_v28 = vld [vmem:[%s3892_s19 + $0x27d] sm:$0xff]  ;;  %v2262_v30 = vsel %vm352_vm0, %v2212_v52, 0 }
 0x1b7   : > { %3793 = vmatprep.subr.msk.bf16.mxu1 %vm352_vm0, %v1951_v6  ;;  %v2214_v22 = vpack.c.bf16 %v3239_v35, %v3238_v29  ;;  %v3261_v6 = vld [vmem:[%s3892_s19 + $0x1bd] sm:$0xff] }
 0x1b8   : > { %v2253_v43 = vsel %vm352_vm0, %v2209_v14, 0  ;;  %v3313_v52 = vld [vmem:[%s3892_s19 + $0x13e] sm:$0xff] }
 0x1bd   : > { %3588 = vmatpush3.bf16.xpose.msra.mxu0 %v1977_v1  ;;  %v2225_v1 = vpack.c.bf16 %v3261_v6, %v3260_v51 }
 0x1be   : > { %3606 = vmatpush3.bf16.xpose.msra.mxu1 %v2025_v2  ;;  %3786 = vmatprep.subr.msk.bf16.mxu0 %vm352_vm0, %v4522_v44  ;;  %v3223_v44 = vld [vmem:[%s3892_s19 + $0x8d] sm:$0xff]  ;;  %v3246_v2 = vld [vmem:[%s3892_s19 + $0x145] sm:$0xff] }
 0x1bf   : > { %3794 = vmatprep.subr.msk.bf16.mxu1 %vm352_vm0, %v1952_v33  ;;  %v2206_v60 = vpack.c.bf16 %v3223_v44, %v3222_v40  ;;  %v3247_v33 = vld [vmem:[%s3892_s19 + $0x14d] sm:$0xff] }
 0x1c1   : > { %v2244_v48 = vsel %vm352_vm0, %v2206_v60, 0  ;;  %v2218_v60 = vpack.c.bf16 %v3247_v33, %v3246_v2  ;;  %v3268_v2 = vld [vmem:[%s3892_s19 + $0x1f5] sm:$0xff]  ;;  %v3269_v33 = vld [vmem:[%s3892_s19 + $0x1fd] sm:$0xff] }
 0x1c5   : > { %3590 = vmatpush3.bf16.xpose.msra.mxu0 %v1980_v19  ;;  %v3279_v19 = vld [vmem:[%s3892_s19 + $0x24d] sm:$0xff] }
 0x1c6   : > { %3608 = vmatpush3.bf16.xpose.msra.mxu1 %v2028_v37  ;;  %3795 = vmatprep.subr.msk.bf16.mxu0 %vm352_vm0, %v2214_v22  ;;  %v2234_v39 = vpack.c.bf16 %v3279_v19, %v3278_v32  ;;  %v3306_v32 = vld [vmem:[%s3892_s19 + $0x106] sm:$0xff]  ;;  %v3307_v19 = vld [vmem:[%s3892_s19 + $0x10e] sm:$0xff] }
 0x1c7   : > { %3803 = vmatprep.subr.msk.bf16.mxu1 %vm352_vm0, %v2230_v38 }
 0x1cc   : > { %3592 = vmatmul.mubr.msk.bf16.vlgmr.msra.gmra.mrb[24].mxu0 %vm352_vm0, %v4602_v5 }
 0x1cd   : > { %3610 = vmatmul.mubr.msk.bf16.vlgmr.msra.gmra.mrb[24].mxu1 %vm352_vm0, %v4602_v5  ;;  %3612 = vmatpush3.bf16.xpose.msra.mxu0 %v2244_v48  ;;  %v2247_v5 = vsel %vm352_vm0, %v2207_v46, 0  ;;  %v2226_v48 = vpack.c.bf16 %v3263_v55, %v3262_v34  ;;  %v3308_v55 = vld [vmem:[%s3892_s19 + $0x116] sm:$0xff] }
 0x1ce   : > { %3630 = vmatpush3.bf16.xpose.msra.mxu1 %v2292_v50  ;;  %3796 = vmatprep.subr.msk.bf16.mxu0 %vm352_vm0, %v2215_v49  ;;  %v3248_v49 = vld [vmem:[%s3892_s19 + $0x155] sm:$0xff]  ;;  %v3249_v50 = vld [vmem:[%s3892_s19 + $0x15d] sm:$0xff] }
 0x1cf   : > { %3804 = vmatprep.subr.msk.bf16.mxu1 %vm352_vm0, %v2231_v54  ;;  %3627 = vmatprep.mubr.msk.bf16.mxu0 %vm352_vm0, %v4689_v61  ;;  %v3280_v54 = vld [vmem:[%s3892_s19 + $0x255] sm:$0xff]  ;;  %v2219_v57 = vpack.c.bf16 %v3249_v50, %v3248_v49  ;;  %v2304_v18 = vsel %vm352_vm0, %v2226_v48, 0  ;;  %v3341_v49 = vld [vmem:[%s3892_s19 + $0x21e] sm:$0xff] }
 0x1d0   : > { %3645 = vmatprep.mubr.msk.bf16.mxu1 %vm352_vm0, %v4689_v61  ;;  %v2235_v46 = vpack.c.bf16 %v3281_v56, %v3280_v54  ;;  %v3340_v48 = vld [vmem:[%s3892_s19 + $0x216] sm:$0xff] }
 0x1d5   : > { %3614 = vmatpush3.bf16.xpose.msra.mxu0 %v2247_v5  ;;  %v2227_v5 = vpack.c.bf16 %v3265_v11, %v3264_v13 }
 0x1d6   : > { %3632 = vmatpush3.bf16.xpose.msra.mxu1 %v2295_v53  ;;  %3797 = vmatprep.subr.msk.bf16.mxu0 %vm352_vm0, %v2216_v9  ;;  %v3250_v9 = vld [vmem:[%s3892_s19 + $0x165] sm:$0xff]  ;;  %v3251_v53 = vld [vmem:[%s3892_s19 + $0x16d] sm:$0xff] }
 0x1d7   : > { %3805 = vmatprep.subr.msk.bf16.mxu1 %vm352_vm0, %v2232_v7  ;;  %v3282_v7 = vld [vmem:[%s3892_s19 + $0x265] sm:$0xff]  ;;  %v2220_v12 = vpack.c.bf16 %v3251_v53, %v3250_v9  ;;  %v2307_v17 = vsel %vm352_vm0, %v2227_v5, 0  ;;  %v3311_v5 = vld [vmem:[%s3892_s19 + $0x12e] sm:$0xff] }
 0x1d8   : > { %v2236_v21 = vpack.c.bf16 %v3283_v8, %v3282_v7  ;;  %v3342_v9 = vld [vmem:[%s3892_s19 + $0x226] sm:$0xff]  ;;  %v3343_v53 = vld [vmem:[%s3892_s19 + $0x22e] sm:$0xff]  ;;  %v2501_v7 = vpack.c.bf16 %v3311_v5, %v3310_v3  ;;  %v3300_v5 = vld [vmem:[%s3892_s19 + $0xd6] sm:$0xff] }
 0x1dd   : > { %3616 = vmatpush3.bf16.xpose.msra.mxu0 %v2250_v25  ;;  %v2228_v25 = vpack.c.bf16 %v3267_v4, %v3266_v24  ;;  %v3312_v4 = vld [vmem:[%s3892_s19 + $0x136] sm:$0xff] }
 0x1de   : > { %3634 = vmatpush3.bf16.xpose.msra.mxu1 %v2298_v27  ;;  %3798 = vmatprep.subr.msk.bf16.mxu0 %vm352_vm0, %v2217_v26  ;;  %v3252_v26 = vld [vmem:[%s3892_s19 + $0x175] sm:$0xff]  ;;  %v3253_v27 = vld [vmem:[%s3892_s19 + $0x17d] sm:$0xff] }
 0x1df   : > { %v1233_v31 = vpop.f32.mrb[12].mxu0  ;;  %3806 = vmatprep.subr.msk.bf16.mxu1 %vm352_vm0, %v2233_v58  ;;  %v3284_v58 = vld [vmem:[%s3892_s19 + $0x275] sm:$0xff]  ;;  %v2221_v51 = vpack.c.bf16 %v3253_v27, %v3252_v26  ;;  %v2310_v6 = vsel %vm352_vm0, %v2228_v25, 0  ;;  %v3345_v26 = vld [vmem:[%s3892_s19 + $0x23e] sm:$0xff] }
 0x1e0   : > { %v4726_v29 = vadd.f32 %v1233_v31, %v4617_v59  ;;  %v1274_v35 = vpop.f32.mrb[12].mxu1  ;;  %v1235_v36 = vpop.f32.mrb[13].mxu0  ;;  %v2237_v14 = vpack.c.bf16 %v3285_v28, %v3284_v58  ;;  %v3236_v31 = vld [vmem:[%s3892_s19 + $0xf5] sm:$0xff]  ;;  %v2502_v58 = vpack.c.bf16 %v3313_v52, %v3312_v4  ;;  %v3302_v52 = vld [vmem:[%s3892_s19 + $0xe6] sm:$0xff] }
 0x1e1   : > { %v4731_v22 = vadd.f32 %v1274_v35, %v4622_v15  ;;  %v4734_v37 = vadd.f32 %v1235_v36, %v4625_v16  ;;  %v1276_v38 = vpop.f32.mrb[13].mxu1  ;;  %v1237_v40 = vpop.f32.mrb[14].mxu0  ;;  %v2301_v15 = vsel %vm352_vm0, %v2225_v1, 0  ;;  %v3230_v16 = vld [vmem:[%s3892_s19 + $0xc5] sm:$0xff]  ;;  %v3237_v1 = vld [vmem:[%s3892_s19 + $0xfd] sm:$0xff]  ;;  %v2229_v36 = vpack.c.bf16 %v3269_v33, %v3268_v2 }
 0x1e2   : > { %v4737_v44 = vadd.f32 %v1276_v38, %v4628_v0  ;;  %v1278_v59 = vpop.f32.mrb[14].mxu1  ;;  %v1238_v42 = vpop.f32.mrb[15].mxu0  ;;  %v2210_v0 = vpack.c.bf16 %v3231_v41, %v3230_v16  ;;  %v2213_v35 = vpack.c.bf16 %v3237_v1, %v3236_v31  ;;  %v3338_v38 = vld [vmem:[%s3892_s19 + $0x206] sm:$0xff]  ;;  %v3339_v40 = vld [vmem:[%s3892_s19 + $0x20e] sm:$0xff]  ;;  %v3344_v25 = vld [vmem:[%s3892_s19 + $0x236] sm:$0xff] }
 0x1e3   : > { %v1279_v47 = vpop.f32.mrb[15].mxu1  ;;  %v2499_v42 = vpack.c.bf16 %v3307_v19, %v3306_v32  ;;  %v3323_v16 = vld [vmem:[%s3892_s19 + $0x18e] sm:$0xff]  ;;  %v3329_v31 = vld [vmem:[%s3892_s19 + $0x1be] sm:$0xff] }
 0x1e4   : > { %v2256_v45 = vsel %vm352_vm0, %v2210_v0, 0  ;;  %v2265_v59 = vsel %vm352_vm0, %v2213_v35, 0  ;;  %v3290_v47 = vld [vmem:[%s3892_s19 + $0x86] sm:$0xff]  ;;  %v3309_v0 = vld [vmem:[%s3892_s19 + $0x11e] sm:$0xff] }
 0x1e5   : > { %3618 = vmatpush3.bf16.xpose.msra.mxu0 %v2253_v43  ;;  %v2313_v43 = vsel %vm352_vm0, %v2229_v36, 0  ;;  %v2500_v54 = vpack.c.bf16 %v3309_v0, %v3308_v55  ;;  %v3314_v35 = vld [vmem:[%s3892_s19 + $0x146] sm:$0xff]  ;;  %v3315_v36 = vld [vmem:[%s3892_s19 + $0x14e] sm:$0xff] }
 0x1e6   : > { %3636 = vmatpush3.bf16.xpose.msra.mxu1 %v2301_v15  ;;  %3799 = vmatprep.subr.msk.bf16.mxu0 %vm352_vm0, %v2218_v60  ;;  %v2515_v60 = vpack.c.bf16 %v3339_v40, %v3338_v38  ;;  %v3291_v15 = vld [vmem:[%s3892_s19 + $0x8e] sm:$0xff]  ;;  %v3346_v40 = vld [vmem:[%s3892_s19 + $0x246] sm:$0xff] }
 0x1e7   : > { %3807 = vmatprep.subr.msk.bf16.mxu1 %vm352_vm0, %v2234_v39  ;;  %v3322_v39 = vld [vmem:[%s3892_s19 + $0x186] sm:$0xff]  ;;  %v2491_v41 = vpack.c.bf16 %v3291_v15, %v3290_v47 }
 0x1e8   : > { %v2507_v34 = vpack.c.bf16 %v3323_v16, %v3322_v39  ;;  %v3298_v0 = vld [vmem:[%s3892_s19 + $0xc6] sm:$0xff] }
 0x1e9   : > { %v2529_v50 = vsel %vm352_vm0, %v2491_v41, 0  ;;  %v2503_v41 = vpack.c.bf16 %v3315_v36, %v3314_v35  ;;  %v3304_v35 = vld [vmem:[%s3892_s19 + $0xf6] sm:$0xff]  ;;  %v3305_v36 = vld [vmem:[%s3892_s19 + $0xfe] sm:$0xff] }
 0x1ea   : > { %v2577_v56 = vsel %vm352_vm0, %v2507_v34, 0  ;;  %v3853_v34 = vmov 0  }
 0x1eb   : > { %3836 = vset.pattern.permute.xlu0 %v3853_v34 }
 0x1ed   : > { %3620 = vmatpush3.bf16.xpose.msra.mxu0 %v2256_v45  ;;  %v2516_v45 = vpack.c.bf16 %v3341_v49, %v3340_v48  ;;  %v3299_v48 = vld [vmem:[%s3892_s19 + $0xce] sm:$0xff]  ;;  %v3330_v49 = vld [vmem:[%s3892_s19 + $0x1c6] sm:$0xff] }
 0x1ee   : > { %3638 = vmatpush3.bf16.xpose.msra.mxu1 %v2304_v18  ;;  %3800 = vmatprep.subr.msk.bf16.mxu0 %vm352_vm0, %v2219_v57  ;;  %v3292_v57 = vld [vmem:[%s3892_s19 + $0x96] sm:$0xff]  ;;  %v3293_v18 = vld [vmem:[%s3892_s19 + $0x9e] sm:$0xff] }
 0x1ef   : > { %3808 = vmatprep.subr.msk.bf16.mxu1 %vm352_vm0, %v2235_v46  ;;  %v3324_v46 = vld [vmem:[%s3892_s19 + $0x196] sm:$0xff]  ;;  %v2492_v13 = vpack.c.bf16 %v3293_v18, %v3292_v57  ;;  %v3317_v57 = vld [vmem:[%s3892_s19 + $0x15e] sm:$0xff] }
 0x1f0   : > { %v2508_v11 = vpack.c.bf16 %v3325_v63, %v3324_v46  ;;  %v3348_v18 = vld [vmem:[%s3892_s19 + $0x256] sm:$0xff]  ;;  %v3349_v46 = vld [vmem:[%s3892_s19 + $0x25e] sm:$0xff] }
 0x1f1   : > { %v2520_v3 = vpack.c.bf16 %v3349_v46, %v3348_v18 }
 0x1f2   : > { %v2580_v8 = vsel %vm352_vm0, %v2508_v11, 0 }
 0x1f5   : > { %3622 = vmatpush3.bf16.xpose.msra.mxu0 %v2259_v10  ;;  %v2517_v10 = vpack.c.bf16 %v3343_v53, %v3342_v9  ;;  %v3301_v9 = vld [vmem:[%s3892_s19 + $0xde] sm:$0xff]  ;;  %v3332_v53 = vld [vmem:[%s3892_s19 + $0x1d6] sm:$0xff] }
 0x1f6   : > { %3640 = vmatpush3.bf16.xpose.msra.mxu1 %v2307_v17  ;;  %3801 = vmatprep.subr.msk.bf16.mxu0 %vm352_vm0, %v2220_v12  ;;  %v3294_v12 = vld [vmem:[%s3892_s19 + $0xa6] sm:$0xff]  ;;  %v3295_v17 = vld [vmem:[%s3892_s19 + $0xae] sm:$0xff] }
 0x1f7   : > { %3809 = vmatprep.subr.msk.bf16.mxu1 %vm352_vm0, %v2236_v21  ;;  %v3326_v21 = vld [vmem:[%s3892_s19 + $0x1a6] sm:$0xff]  ;;  %v2493_v23 = vpack.c.bf16 %v3295_v17, %v3294_v12  ;;  %v3319_v12 = vld [vmem:[%s3892_s19 + $0x16e] sm:$0xff] }
 0x1f8   : > { %v2509_v24 = vpack.c.bf16 %v3327_v62, %v3326_v21  ;;  %v3350_v17 = vld [vmem:[%s3892_s19 + $0x266] sm:$0xff]  ;;  %v3351_v21 = vld [vmem:[%s3892_s19 + $0x26e] sm:$0xff] }
 0x1f9   : > { %v2535_v27 = vsel %vm352_vm0, %v2493_v23, 0  ;;  %v2521_v4 = vpack.c.bf16 %v3351_v21, %v3350_v17 }
 0x1fa   : > { %v2583_v28 = vsel %vm352_vm0, %v2509_v24, 0 }
 0x1fd   : > { %3624 = vmatpush3.bf16.xpose.msra.mxu0 %v2262_v30  ;;  %v2518_v30 = vpack.c.bf16 %v3345_v26, %v3344_v25  ;;  %v3303_v25 = vld [vmem:[%s3892_s19 + $0xee] sm:$0xff]  ;;  %v3334_v26 = vld [vmem:[%s3892_s19 + $0x1e6] sm:$0xff] }
 0x1fe   : > { %3642 = vmatpush3.bf16.xpose.msra.mxu1 %v2310_v6  ;;  %3802 = vmatprep.subr.msk.bf16.mxu0 %vm352_vm0, %v2221_v51  ;;  %v3296_v51 = vld [vmem:[%s3892_s19 + $0xb6] sm:$0xff]  ;;  %v3297_v6 = vld [vmem:[%s3892_s19 + $0xbe] sm:$0xff] }
 0x1ff   : > { %3810 = vmatprep.subr.msk.bf16.mxu1 %vm352_vm0, %v2237_v14  ;;  %v3328_v14 = vld [vmem:[%s3892_s19 + $0x1b6] sm:$0xff]  ;;  %v2494_v1 = vpack.c.bf16 %v3297_v6, %v3296_v51  ;;  %v3321_v51 = vld [vmem:[%s3892_s19 + $0x17e] sm:$0xff] }
 0x200   : > { %v2510_v33 = vpack.c.bf16 %v3329_v31, %v3328_v14  ;;  %v3352_v6 = vld [vmem:[%s3892_s19 + $0x276] sm:$0xff]  ;;  %v3353_v14 = vld [vmem:[%s3892_s19 + $0x27e] sm:$0xff] }
 0x201   : > { %v2538_v16 = vsel %vm352_vm0, %v2494_v1, 0 }
 0x202   : > { %v2586_v55 = vsel %vm352_vm0, %v2510_v33, 0  ;;  %v2522_v33 = vpack.c.bf16 %v3353_v14, %v3352_v6 }
 0x205   : > { %3626 = vmatpush3.bf16.xpose.msra.mxu0 %v2265_v59  ;;  %v3347_v59 = vld [vmem:[%s3892_s19 + $0x24e] sm:$0xff] }
 0x206   : > { %3644 = vmatpush3.bf16.xpose.msra.mxu1 %v2313_v43  ;;  %3811 = vmatprep.subr.msk.bf16.mxu0 %vm352_vm0, %v2499_v42 }
 0x207   : > { %3819 = vmatprep.subr.msk.bf16.mxu1 %vm352_vm0, %v2515_v60 }
 0x20c   : > { %3628 = vmatmul.mubr.msk.bf16.vlgmr.msra.gmra.mrb[28].mxu0 %vm352_vm0, %v4689_v61 }
 0x20d   : > { %3646 = vmatmul.mubr.msk.bf16.vlgmr.msra.gmra.mrb[28].mxu1 %vm352_vm0, %v4689_v61  ;;  %3648 = vmatpush3.bf16.xpose.msra.mxu0 %v2529_v50  ;;  %v2532_v61 = vsel %vm352_vm0, %v2492_v13, 0  ;;  %v3331_v50 = vld [vmem:[%s3892_s19 + $0x1ce] sm:$0xff] }
 0x20e   : > { %3666 = vmatpush3.bf16.xpose.msra.mxu1 %v2577_v56  ;;  %3812 = vmatprep.subr.msk.bf16.mxu0 %vm352_vm0, %v2500_v54  ;;  %v2495_v54 = vpack.c.bf16 %v3299_v48, %v3298_v0  ;;  %v2511_v56 = vpack.c.bf16 %v3331_v50, %v3330_v49 }
 0x20f   : > { %3820 = vmatprep.subr.msk.bf16.mxu1 %vm352_vm0, %v2516_v45  ;;  %3663 = vmatprep.mubr.msk.bf16.mxu0 %vm352_vm0, %v4810_v20  ;;  %v3316_v45 = vld [vmem:[%s3892_s19 + $0x156] sm:$0xff] }
 0x210   : > { %3681 = vmatprep.mubr.msk.bf16.mxu1 %vm352_vm0, %v4810_v20  ;;  %v2541_v63 = vsel %vm352_vm0, %v2495_v54, 0  ;;  %v2504_v13 = vpack.c.bf16 %v3317_v57, %v3316_v45  ;;  %v2589_v11 = vsel %vm352_vm0, %v2511_v56, 0 }
 0x215   : > { %3650 = vmatpush3.bf16.xpose.msra.mxu0 %v2532_v61  ;;  %v3333_v61 = vld [vmem:[%s3892_s19 + $0x1de] sm:$0xff] }
 0x216   : > { %3668 = vmatpush3.bf16.xpose.msra.mxu1 %v2580_v8  ;;  %3813 = vmatprep.subr.msk.bf16.mxu0 %vm352_vm0, %v2501_v7  ;;  %v2496_v7 = vpack.c.bf16 %v3301_v9, %v3300_v5  ;;  %v2512_v8 = vpack.c.bf16 %v3333_v61, %v3332_v53 }
 0x217   : > { %3821 = vmatprep.subr.msk.bf16.mxu1 %vm352_vm0, %v2517_v10  ;;  %v3318_v10 = vld [vmem:[%s3892_s19 + $0x166] sm:$0xff] }
 0x218   : > { %v2544_v62 = vsel %vm352_vm0, %v2496_v7, 0  ;;  %v2505_v23 = vpack.c.bf16 %v3319_v12, %v3318_v10  ;;  %v2592_v24 = vsel %vm352_vm0, %v2512_v8, 0 }
 0x21d   : > { %3652 = vmatpush3.bf16.xpose.msra.mxu0 %v2535_v27  ;;  %v3335_v27 = vld [vmem:[%s3892_s19 + $0x1ee] sm:$0xff] }
 0x21e   : > { %3670 = vmatpush3.bf16.xpose.msra.mxu1 %v2583_v28  ;;  %3814 = vmatprep.subr.msk.bf16.mxu0 %vm352_vm0, %v2502_v58  ;;  %v2497_v58 = vpack.c.bf16 %v3303_v25, %v3302_v52  ;;  %v2513_v28 = vpack.c.bf16 %v3335_v27, %v3334_v26 }
 0x21f   : > { %v1518_v2 = vpop.f32.mrb[16].mxu0  ;;  %3822 = vmatprep.subr.msk.bf16.mxu1 %vm352_vm0, %v2518_v30  ;;  %v3320_v30 = vld [vmem:[%s3892_s19 + $0x176] sm:$0xff] }
 0x220   : > { %v4847_v32 = vadd.f32 %v1518_v2, %v4726_v29  ;;  %v1559_v19 = vpop.f32.mrb[16].mxu1  ;;  %v1520_v38 = vpop.f32.mrb[17].mxu0  ;;  %v2547_v31 = vsel %vm352_vm0, %v2497_v58, 0  ;;  %v2506_v1 = vpack.c.bf16 %v3321_v51, %v3320_v30  ;;  %v2595_v2 = vsel %vm352_vm0, %v2513_v28, 0 }
 0x221   : > { %v4852_v42 = vadd.f32 %v1559_v19, %v4731_v22  ;;  %v4855_v43 = vadd.f32 %v1520_v38, %v4734_v37  ;;  %v1561_v60 = vpop.f32.mrb[17].mxu1  ;;  %v1522_v47 = vpop.f32.mrb[18].mxu0  ;;  %v2710_v22 = vld [vmem:[%s4927_s2] sm:$0x7]  ;;  %v3336_v19 = vld [vmem:[%s3892_s19 + $0x1f6] sm:$0xff] }
 0x222   : > { %v4858_v15 = vadd.f32 %v1561_v60, %v4737_v44  ;;  %v1563_v29 = vpop.f32.mrb[18].mxu1  ;;  %v1523_v39 = vpop.f32.mrb[19].mxu0  ;;  %v2519_v44 = vpack.c.bf16 %v3347_v59, %v3346_v40  ;;  %2713 = vperm.xlu0 %3836, %v2710_v22   ;;  %v3337_v38 = vld [vmem:[%s3892_s19 + $0x1fe] sm:$0xff]  ;;  %v2498_v40 = vpack.c.bf16 %v3305_v36, %v3304_v35 }
 0x223   : > { %v1564_v37 = vpop.f32.mrb[19].mxu1  ;;  %v2514_v59 = vpack.c.bf16 %v3337_v38, %v3336_v19 }
 0x224   : > { %v2550_v60 = vsel %vm352_vm0, %v2498_v40, 0 }
 0x225   : > { %3654 = vmatpush3.bf16.xpose.msra.mxu0 %v2538_v16  ;;  %v2598_v47 = vsel %vm352_vm0, %v2514_v59, 0 }
 0x226   : > { %3672 = vmatpush3.bf16.xpose.msra.mxu1 %v2586_v55  ;;  %3815 = vmatprep.subr.msk.bf16.mxu0 %vm352_vm0, %v2503_v41 }
 0x227   : > { %3823 = vmatprep.subr.msk.bf16.mxu1 %vm352_vm0, %v2519_v44 }
 0x22d   : > { %3656 = vmatpush3.bf16.xpose.msra.mxu0 %v2541_v63 }
 0x22e   : > { %3674 = vmatpush3.bf16.xpose.msra.mxu1 %v2589_v11  ;;  %3816 = vmatprep.subr.msk.bf16.mxu0 %vm352_vm0, %v2504_v13 }
 0x22f   : > { %3824 = vmatprep.subr.msk.bf16.mxu1 %vm352_vm0, %v2520_v3 }
 0x235   : > { %3658 = vmatpush3.bf16.xpose.msra.mxu0 %v2544_v62 }
 0x236   : > { %3676 = vmatpush3.bf16.xpose.msra.mxu1 %v2592_v24  ;;  %3817 = vmatprep.subr.msk.bf16.mxu0 %vm352_vm0, %v2505_v23 }
 0x237   : > { %3825 = vmatprep.subr.msk.bf16.mxu1 %vm352_vm0, %v2521_v4 }
 0x23d   : > { %3660 = vmatpush3.bf16.xpose.msra.mxu0 %v2547_v31 }
 0x23e   : > { %3678 = vmatpush3.bf16.xpose.msra.mxu1 %v2595_v2  ;;  %3818 = vmatprep.subr.msk.bf16.mxu0 %vm352_vm0, %v2506_v1 }
 0x23f   : > { %3826 = vmatprep.subr.msk.bf16.mxu1 %vm352_vm0, %v2522_v33 }
 0x245   : > { %3662 = vmatpush3.bf16.xpose.msra.mxu0 %v2550_v60 }
 0x246   : > { %3680 = vmatpush3.bf16.xpose.msra.mxu1 %v2598_v47 }
 0x24c   : > { %3664 = vmatmul.mubr.msk.bf16.vlgmr.msra.gmra.mrb[32].mxu0 %vm352_vm0, %v4810_v20 }
 0x24d   : > { %3682 = vmatmul.mubr.msk.bf16.vlgmr.msra.gmra.mrb[32].mxu1 %vm352_vm0, %v4810_v20 }
 0x25f   : > { %v1803_v29 = vpop.f32.mrb[20].mxu0 }
 0x260   : > { %v1851_v39 = vadd.f32 %v1803_v29, %v4847_v32  ;;  %v1844_v16 = vpop.f32.mrb[20].mxu1  ;;  %v1805_v41 = vpop.f32.mrb[21].mxu0 }
 0x261   : > { %v1853_v34 = vadd.f32 %v1844_v16, %v4852_v42  ;;  %v1852_v22 = vadd.f32 %v1805_v41, %v4855_v43  ;;  %v1846_v37 = vpop.f32.mrb[21].mxu1  ;;  %v1807_v55 = vpop.f32.mrb[22].mxu0 }
 0x262   : > { %v1854_v44 = vadd.f32 %v1846_v37, %v4858_v15  ;;  %v1848_v0 = vpop.f32.mrb[22].mxu1  ;;  %v1808_v48 = vpop.f32.mrb[23].mxu0 }
 0x263   : > { %v1849_v49 = vpop.f32.mrb[23].mxu1 }
 0x29f   : > { %v2088_v50 = vpop.f32.mrb[24].mxu0 }
 0x2a0   : > { %v2136_v54 = vadd.f32 %v2088_v50, %v1851_v39  ;;  %v2129_v56 = vpop.f32.mrb[24].mxu1  ;;  %v2090_v20 = vpop.f32.mrb[25].mxu0 }
 0x2a1   : > { %v2138_v45 = vadd.f32 %v2129_v56, %v1853_v34  ;;  %v2137_v57 = vadd.f32 %v2090_v20, %v1852_v22  ;;  %v2131_v32 = vpop.f32.mrb[25].mxu1  ;;  %v2092_v18 = vpop.f32.mrb[26].mxu0 }
 0x2a2   : > { %v2139_v46 = vadd.f32 %v2131_v32, %v1854_v44  ;;  %v2133_v63 = vpop.f32.mrb[26].mxu1  ;;  %v2093_v42 = vpop.f32.mrb[27].mxu0 }
 0x2a3   : > { %v2134_v13 = vpop.f32.mrb[27].mxu1  ;;  %v2714_v21 = vpop.permute.xlu0 %2713 }
 0x2df   : > { %v2373_v43 = vpop.f32.mrb[28].mxu0 }
 0x2e0   : > { %v2421_v11 = vadd.f32 %v2373_v43, %v2136_v54  ;;  %v2414_v3 = vpop.f32.mrb[28].mxu1  ;;  %v2375_v5 = vpop.f32.mrb[29].mxu0 }
 0x2e1   : > { %v2423_v15 = vadd.f32 %v2414_v3, %v2138_v45  ;;  %v2422_v9 = vadd.f32 %v2375_v5, %v2137_v57  ;;  %v2416_v53 = vpop.f32.mrb[29].mxu1  ;;  %v2377_v61 = vpop.f32.mrb[30].mxu0 }
 0x2e2   : > { %v2424_v7 = vadd.f32 %v2416_v53, %v2139_v46  ;;  %v2418_v8 = vpop.f32.mrb[30].mxu1  ;;  %v2378_v10 = vpop.f32.mrb[31].mxu0 }
 0x2e3   : > { %v2419_v12 = vpop.f32.mrb[31].mxu1 }
 0x31f   : > { %v2658_v17 = vpop.f32.mrb[32].mxu0 }
 0x320   : > { %v2706_v62 = vadd.f32 %v2658_v17, %v2421_v11  ;;  %v2699_v23 = vpop.f32.mrb[32].mxu1  ;;  %v2660_v24 = vpop.f32.mrb[33].mxu0 }
 0x321   : > { %v2708_v4 = vadd.f32 %v2699_v23, %v2423_v15  ;;  %v2707_v52 = vadd.f32 %v2660_v24, %v2422_v9  ;;  %v2701_v25 = vpop.f32.mrb[33].mxu1  ;;  %v2662_v26 = vpop.f32.mrb[34].mxu0 }
 0x322   : > { %v2709_v27 = vadd.f32 %v2701_v25, %v2424_v7  ;;  %v2716_v58 = vadd.f32 %v2714_v21, %v2706_v62  ;;  %v2703_v28 = vpop.f32.mrb[34].mxu1  ;;  %v2663_v30 = vpop.f32.mrb[35].mxu0 }
 0x323   : > { %v2717_v51 = vadd.f32 %v2714_v21, %v2707_v52  ;;  %v2718_v6 = vadd.f32 %v2714_v21, %v2708_v4  ;;  %v2704_v14 = vpop.f32.mrb[35].mxu1 }
 0x324   : > { %v2719_v31 = vadd.f32 %v2714_v21, %v2709_v27  ;;  %3837 = vtanh.f32 %v2716_v58 }
 0x325   : > { %3839 = vtanh.f32 %v2717_v51 }
 0x326   : > { %3841 = vtanh.f32 %v2718_v6 }
 0x327   : > { %3843 = vtanh.f32 %v2719_v31 }
 0x32e   : > { %v3838_v1 = vpop.eup %3837 }
 0x32f   : > { %v3840_v2 = vpop.eup %3839 }
 0x330   : > { %v3842_v33 = vpop.eup %3841  ;;  %v2728_v35 = vcombine.low %v3838_v1, %v3840_v2 }
 0x331   : > { %v3844_v36 = vpop.eup %3843 }
 0x332   : > { %v2729_v19 = vcombine.low %v3842_v33, %v3844_v36  ;;  %2732 = vst [vmem:[%s150_s16] sm:$0x77] %v2728_v35 }
 0x334   : > { %2733 = vst [vmem:[%s150_s16 + $0x8] sm:$0x77] %v2729_v19 }
 0x335 PF: > { %s13_s12 = sadd.s32 1, %s3851_s12  }
 0x336   : > { %p10_p4 = scmp.ge.s32.totalorder %s13_s12, 20  }
 0x338   :  { %12 = sbr.rel (!%p10_p4) target bundleno = 1 (0x1), region = 76 }

</bundles_post_ra>
